<compile_context>
chip_gen: v5e
topology: v5e:2x2
jax: 0.10.0
libtpu: 0.0.40
codegen_flags: <defaults>
</compile_context>

<pallas_src>
import functools

import jax
import jax.numpy as jnp
from jax import lax
from jax.experimental import pallas as pl
from jax.experimental.pallas import tpu as pltpu


COMPUTE_DTYPE = jnp.bfloat16      # MXU operand dtype; accumulation is f32.


def _round_up(x, m):
    return (x + m - 1) // m * m


# ----------------------------- glue helpers ----------------------------------

def _extract_patches(x, ksize, stride, padding):
    """x: (N,H,W,C) -> (N, HO*WO, ksize*ksize*C); taps folded onto the lane
    (contraction) axis.  Pure data-movement glue (only used for 3x3 convs;
    for stride-2 convs this is <2x the activation size, not a 9x blow-up)."""
    N, H, W, C = x.shape
    if padding:
        x = jnp.pad(x, ((0, 0), (padding, padding), (padding, padding), (0, 0)))
    Hp, Wp = H + 2 * padding, W + 2 * padding
    HO = (Hp - ksize) // stride + 1
    WO = (Wp - ksize) // stride + 1
    views = []
    for i in range(ksize):
        for j in range(ksize):
            views.append(x[:, i:i + stride * (HO - 1) + 1:stride,
                           j:j + stride * (WO - 1) + 1:stride, :])
    p = jnp.concatenate(views, axis=-1)               # (N, HO, WO, K*C)
    return p.reshape(N, HO * WO, ksize * ksize * C), HO, WO


# ----------------------------- Pallas kernels ---------------------------------

def _conv_bn_relu_kernel(p_ref, w_ref, s_ref, b_ref, o_ref):
    # p_ref: (1, HWp, K*Cin)   w_ref: (K*Cin, TC)   s/b: (1, TC)   o: (1, HWp, TC)
    # Single deep-contraction MXU matmul (f32 accumulation), BN fold, ReLU.
    y = jnp.dot(p_ref[0], w_ref[...], preferred_element_type=jnp.float32)
    y = y * s_ref[...] + b_ref[...]
    o_ref[0] = jnp.maximum(y, 0.0).astype(o_ref.dtype)


def _fused_1x1_3x3_kernel(x_ref, w1_ref, s1_ref, b1_ref,
                          w2_ref, s2_ref, b2_ref, o_ref, y1p_ref):
    # x_ref : (1, H, W, Cin)          w1_ref: (Cin, C1)      s1/b1: (1, C1)
    # w2_ref: (9, C1, C2)             s2/b2 : (1, C2)        o_ref: (1, H*W, C2)
    # y1p_ref (VMEM scratch): (H+2, W+2, C1) -- zero-padded 1x1 activation.
    H, W, Cin = x_ref.shape[1], x_ref.shape[2], x_ref.shape[3]
    C1 = w1_ref.shape[1]
    C2 = w2_ref.shape[2]

    # Stage 1: 1x1 conv (plain matmul) + folded BN + ReLU, all in f32.
    x2d = x_ref[0].reshape(H * W, Cin)
    y1 = jnp.dot(x2d, w1_ref[...], preferred_element_type=jnp.float32)
    y1 = jnp.maximum(y1 * s1_ref[...] + b1_ref[...], 0.0)

    # Keep the intermediate in VMEM (zero-padded for the following 3x3, pad=1).
    y1p_ref[...] = jnp.zeros_like(y1p_ref)
    y1p_ref[1:H + 1, 1:W + 1, :] = y1.reshape(H, W, C1).astype(y1p_ref.dtype)

    # Stage 2: 3x3 SAME conv as 9 tap matmuls from the VMEM-resident activation.
    acc = jnp.zeros((H * W, C2), jnp.float32)
    for i in range(3):
        for j in range(3):
            win = y1p_ref[i:i + H, j:j + W, :].reshape(H * W, C1)
            acc = acc + jnp.dot(win, w2_ref[3 * i + j],
                                preferred_element_type=jnp.float32)
    y2 = jnp.maximum(acc * s2_ref[...] + b2_ref[...], 0.0)
    o_ref[0] = y2.astype(o_ref.dtype)


def _maxpool3x3_kernel(x_ref, o_ref):
    # x_ref: (1, H, W, C) -> o_ref: (1, H-2, W-2, C): 3x3 / stride-1 VALID max.
    # No im2col: max over the 9 shifted windows of the in-VMEM input.
    HO, WO = o_ref.shape[1], o_ref.shape[2]
    m = x_ref[0, 0:HO, 0:WO, :]
    for i in range(3):
        for j in range(3):
            if i == 0 and j == 0:
                continue
            m = jnp.maximum(m, x_ref[0, i:i + HO, j:j + WO, :])
    o_ref[0] = m


# ----------------------------- op wrappers ------------------------------------

def conv_bn_relu(x_nhwc, w_oihw, bn_scale, bn_bias, stride=1, padding=0,
                 compute_dtype=COMPUTE_DTYPE):
    Cout, Cin, KH, KW = w_oihw.shape
    N, H, W, _ = x_nhwc.shape
    if KH == 1 and KW == 1 and stride == 1 and padding == 0:
        # 1x1 conv is already a plain matmul: no patch extraction.
        HO, WO = H, W
        patches = x_nhwc.reshape(N, H * W, Cin)
        K = 1
    else:
        patches, HO, WO = _extract_patches(x_nhwc, KH, stride, padding)
        K = KH * KW
    HW = HO * WO
    HWp = _round_up(HW, 8)                        # sublane-align LHS / stores
    if HWp != HW:
        patches = jnp.pad(patches, ((0, 0), (0, HWp - HW), (0, 0)))
    patches = patches.astype(compute_dtype)
    w = jnp.transpose(w_oihw, (2, 3, 1, 0)).reshape(K * Cin, Cout).astype(compute_dtype)
    s = bn_scale.reshape(1, Cout).astype(jnp.float32)
    b = bn_bias.reshape(1, Cout).astype(jnp.float32)

    # Tile Cout in lane-aligned 128-chunks when possible (more grid steps,
    # both axes parallel, bounded per-step VMEM).
    TC = 128 if Cout % 128 == 0 else Cout
    ncc = Cout // TC

    out = pl.pallas_call(
        _conv_bn_relu_kernel,
        out_shape=jax.ShapeDtypeStruct((N, HWp, Cout), x_nhwc.dtype),
        grid=(N, ncc),
        in_specs=[
            pl.BlockSpec((1, HWp, K * Cin), lambda n, c: (n, 0, 0)),
            pl.BlockSpec((K * Cin, TC), lambda n, c: (0, c)),
            pl.BlockSpec((1, TC), lambda n, c: (0, c)),
            pl.BlockSpec((1, TC), lambda n, c: (0, c)),
        ],
        out_specs=pl.BlockSpec((1, HWp, TC), lambda n, c: (n, 0, c)),
        compiler_params=pltpu.CompilerParams(
            dimension_semantics=("parallel", "parallel")),
    )(patches, w, s, b)
    return out[:, :HW, :].reshape(N, HO, WO, Cout)


def fused_1x1_3x3_bn_relu(x_nhwc, p1x1, p3x3, compute_dtype=COMPUTE_DTYPE):
    """Branch-2 stages 1+2 fused: 1x1 conv+BN+ReLU -> 3x3 pad-1 conv+BN+ReLU,
    with the intermediate activation kept in VMEM scratch."""
    N, H, W, Cin = x_nhwc.shape
    C1 = p1x1["w"].shape[0]
    C2 = p3x3["w"].shape[0]
    w1 = jnp.transpose(p1x1["w"], (2, 3, 1, 0)).reshape(Cin, C1).astype(compute_dtype)
    w2 = jnp.transpose(p3x3["w"], (2, 3, 1, 0)).reshape(9, C1, C2).astype(compute_dtype)
    s1 = p1x1["scale"].reshape(1, C1).astype(jnp.float32)
    b1 = p1x1["bias"].reshape(1, C1).astype(jnp.float32)
    s2 = p3x3["scale"].reshape(1, C2).astype(jnp.float32)
    b2 = p3x3["bias"].reshape(1, C2).astype(jnp.float32)

    out = pl.pallas_call(
        _fused_1x1_3x3_kernel,
        out_shape=jax.ShapeDtypeStruct((N, H * W, C2), x_nhwc.dtype),
        grid=(N,),
        in_specs=[
            pl.BlockSpec((1, H, W, Cin), lambda n: (n, 0, 0, 0)),
            pl.BlockSpec((Cin, C1), lambda n: (0, 0)),
            pl.BlockSpec((1, C1), lambda n: (0, 0)),
            pl.BlockSpec((1, C1), lambda n: (0, 0)),
            pl.BlockSpec((9, C1, C2), lambda n: (0, 0, 0)),
            pl.BlockSpec((1, C2), lambda n: (0, 0)),
            pl.BlockSpec((1, C2), lambda n: (0, 0)),
        ],
        out_specs=pl.BlockSpec((1, H * W, C2), lambda n: (n, 0, 0)),
        scratch_shapes=[pltpu.VMEM((H + 2, W + 2, C1), compute_dtype)],
        compiler_params=pltpu.CompilerParams(dimension_semantics=("parallel",)),
    )(x_nhwc.astype(compute_dtype), w1, s1, b1, w2, s2, b2)
    return out.reshape(N, H, W, C2)


def maxpool3x3_s2(x_nhwc):
    """3x3 / stride-2 VALID max pool. The 3x3 max runs in-kernel on the NHWC
    input (no 9x im2col); the stride-2 selection of the small stride-1 result
    is cheap wrapper glue."""
    N, H, W, C = x_nhwc.shape
    HO1, WO1 = H - 2, W - 2
    out = pl.pallas_call(
        _maxpool3x3_kernel,
        out_shape=jax.ShapeDtypeStruct((N, HO1, WO1, C), x_nhwc.dtype),
        grid=(N,),
        in_specs=[pl.BlockSpec((1, H, W, C), lambda n: (n, 0, 0, 0))],
        out_specs=pl.BlockSpec((1, HO1, WO1, C), lambda n: (n, 0, 0, 0)),
        compiler_params=pltpu.CompilerParams(dimension_semantics=("parallel",)),
    )(x_nhwc)
    return out[:, ::2, ::2, :]


# ----------------------------- module ------------------------------------------

def init_basic_conv(key, cin, cout, k):
    kw, kg, kb, km, kv = jax.random.split(key, 5)
    w = 0.1 * jax.random.normal(kw, (cout, cin, k, k), jnp.float32)
    gamma = 1.0 + 0.1 * jax.random.normal(kg, (cout,), jnp.float32)
    beta = 0.1 * jax.random.normal(kb, (cout,), jnp.float32)
    mean = 0.1 * jax.random.normal(km, (cout,), jnp.float32)
    var = jnp.abs(jax.random.normal(kv, (cout,), jnp.float32)) + 0.5
    eps = 1e-3                                    # BatchNorm2d eps used by inception
    scale = gamma / jnp.sqrt(var + eps)
    bias = beta - mean * scale
    return {"w": w, "scale": scale, "bias": bias}


def inception_block_b(params, x_nchw, compute_dtype=COMPUTE_DTYPE):
    x = jnp.transpose(x_nchw, (0, 2, 3, 1))       # NCHW -> NHWC
    p = params
    # branch 1: 3x3 stride-2 conv
    b1 = conv_bn_relu(x, p["b3x3"]["w"], p["b3x3"]["scale"], p["b3x3"]["bias"],
                      stride=2, padding=0, compute_dtype=compute_dtype)
    # branch 2: (1x1 -> 3x3 pad-1) fused, then 3x3 stride-2
    b2 = fused_1x1_3x3_bn_relu(x, p["dbl1"], p["dbl2"], compute_dtype=compute_dtype)
    b2 = conv_bn_relu(b2, p["dbl3"]["w"], p["dbl3"]["scale"], p["dbl3"]["bias"],
                      stride=2, padding=0, compute_dtype=compute_dtype)
    # branch 3: 3x3 stride-2 max-pool (exact, f32)
    b3 = maxpool3x3_s2(x)
    out = jnp.concatenate([b1, b2, b3], axis=-1)  # channel concat (NHWC)
    return jnp.transpose(out, (0, 3, 1, 2))       # NHWC -> NCHW


# ----------------------------- pure-JAX reference -------------------------------

def _ref_conv_bn_relu(x, w_oihw, scale, bias, stride, padding, compute_dtype):
    w = jnp.transpose(w_oihw, (2, 3, 1, 0)).astype(compute_dtype)
    y = lax.conv_general_dilated(
        x.astype(compute_dtype), w,
        window_strides=(stride, stride),
        padding=((padding, padding), (padding, padding)),
        dimension_numbers=("NHWC", "HWIO", "NHWC"),
        preferred_element_type=jnp.float32)
    return jnp.maximum(y * scale + bias, 0.0)


def reference_forward(params, x_nchw, compute_dtype=jnp.float32):
    x = jnp.transpose(x_nchw, (0, 2, 3, 1))
    p = params
    b1 = _ref_conv_bn_relu(x, p["b3x3"]["w"], p["b3x3"]["scale"], p["b3x3"]["bias"],
                           2, 0, compute_dtype)
    b2 = _ref_conv_bn_relu(x, p["dbl1"]["w"], p["dbl1"]["scale"], p["dbl1"]["bias"],
                           1, 0, compute_dtype)
    b2 = _ref_conv_bn_relu(b2, p["dbl2"]["w"], p["dbl2"]["scale"], p["dbl2"]["bias"],
                           1, 1, compute_dtype)
    b2 = _ref_conv_bn_relu(b2, p["dbl3"]["w"], p["dbl3"]["scale"], p["dbl3"]["bias"],
                           2, 0, compute_dtype)
    b3 = lax.reduce_window(x, jnp.float32(-jnp.inf), lax.max,
                           (1, 3, 3, 1), (1, 2, 2, 1), "VALID")
    out = jnp.concatenate([b1, b2, b3], axis=-1)
    return jnp.transpose(out, (0, 3, 1, 2))


# ----------------------------- main ----------------------------------------------

if __name__ == "__main__":
    key = jax.random.PRNGKey(0)
    kx, k1, k2, k3, k4 = jax.random.split(key, 5)

    in_channels = 4
    x = jax.random.normal(kx, (2, in_channels, 16, 16), jnp.float32)

    params = {
        "b3x3": init_basic_conv(k1, in_channels, 384, 3),
        "dbl1": init_basic_conv(k2, in_channels, 64, 1),
        "dbl2": init_basic_conv(k3, 64, 96, 3),
        "dbl3": init_basic_conv(k4, 96, 96, 3),
    }

    fwd = jax.jit(functools.partial(inception_block_b, params))
    out = jax.block_until_ready(fwd(x))
    assert out.shape == (2, 384 + 96 + in_channels, 7, 7), out.shape

    # Tight check vs a reference with the same bf16 matmul-operand quantization
    # (differences are only reduction-order / re-quantization noise).
    ref_q = jax.block_until_ready(reference_forward(params, x, COMPUTE_DTYPE))
    err_q = float(jnp.max(jnp.abs(out - ref_q)))
    assert jnp.allclose(out, ref_q, atol=2e-3, rtol=2e-3), err_q

    # Sanity check vs the full-f32 reference (looser: bf16 MXU operands).
    ref_f = jax.block_until_ready(reference_forward(params, x, jnp.float32))
    err_f = float(jnp.max(jnp.abs(out - ref_f)))
    assert jnp.allclose(out, ref_f, atol=1e-1, rtol=5e-2), err_f

    print("KERNEL_OK")
</pallas_src>

<mosaic_0001>
module attributes {stable_mosaic.version = 11 : i64} {
  func.func @_maxpool3x3_kernel(%arg0: i32, %arg1: memref<1x16x16x4xf32, #tpu.memory_space<vmem>>, %arg2: memref<1x14x14x4xf32, #tpu.memory_space<vmem>>) attributes {dimension_semantics = [#tpu.dimension_semantics<parallel>], iteration_bounds = array<i64: 2>, scalar_prefetch = 0 : i64, scratch_operands = 0 : i64, tpu.core_type = #tpu.core_type<tc>, window_params = [{transform_indices = @transform_0, window_bounds = array<i64: 1, 16, 16, 4>}, {transform_indices = @transform_1, window_bounds = array<i64: 1, 14, 14, 4>}]} {
    %c0 = arith.constant 0 : index
    %c0_0 = arith.constant 0 : index
    %c0_1 = arith.constant 0 : index
    %c0_2 = arith.constant 0 : index
    %0 = vector.load %arg1[%c0, %c0_0, %c0_1, %c0_2] : memref<1x16x16x4xf32, #tpu.memory_space<vmem>>, vector<1x14x14x4xf32>
    %1 = vector.shape_cast %0 : vector<1x14x14x4xf32> to vector<14x14x4xf32>
    %c0_3 = arith.constant 0 : index
    %c0_4 = arith.constant 0 : index
    %c1 = arith.constant 1 : index
    %c0_5 = arith.constant 0 : index
    %2 = vector.load %arg1[%c0_3, %c0_4, %c1, %c0_5] : memref<1x16x16x4xf32, #tpu.memory_space<vmem>>, vector<1x14x14x4xf32>
    %3 = vector.shape_cast %2 : vector<1x14x14x4xf32> to vector<14x14x4xf32>
    %4 = arith.maximumf %1, %3 : vector<14x14x4xf32>
    %c0_6 = arith.constant 0 : index
    %c0_7 = arith.constant 0 : index
    %c2 = arith.constant 2 : index
    %c0_8 = arith.constant 0 : index
    %5 = vector.load %arg1[%c0_6, %c0_7, %c2, %c0_8] : memref<1x16x16x4xf32, #tpu.memory_space<vmem>>, vector<1x14x14x4xf32>
    %6 = vector.shape_cast %5 : vector<1x14x14x4xf32> to vector<14x14x4xf32>
    %7 = arith.maximumf %4, %6 : vector<14x14x4xf32>
    %c0_9 = arith.constant 0 : index
    %c1_10 = arith.constant 1 : index
    %c0_11 = arith.constant 0 : index
    %c0_12 = arith.constant 0 : index
    %8 = vector.load %arg1[%c0_9, %c1_10, %c0_11, %c0_12] : memref<1x16x16x4xf32, #tpu.memory_space<vmem>>, vector<1x14x14x4xf32>
    %9 = vector.shape_cast %8 : vector<1x14x14x4xf32> to vector<14x14x4xf32>
    %10 = arith.maximumf %7, %9 : vector<14x14x4xf32>
    %c0_13 = arith.constant 0 : index
    %c1_14 = arith.constant 1 : index
    %c1_15 = arith.constant 1 : index
    %c0_16 = arith.constant 0 : index
    %11 = vector.load %arg1[%c0_13, %c1_14, %c1_15, %c0_16] : memref<1x16x16x4xf32, #tpu.memory_space<vmem>>, vector<1x14x14x4xf32>
    %12 = vector.shape_cast %11 : vector<1x14x14x4xf32> to vector<14x14x4xf32>
    %13 = arith.maximumf %10, %12 : vector<14x14x4xf32>
    %c0_17 = arith.constant 0 : index
    %c1_18 = arith.constant 1 : index
    %c2_19 = arith.constant 2 : index
    %c0_20 = arith.constant 0 : index
    %14 = vector.load %arg1[%c0_17, %c1_18, %c2_19, %c0_20] : memref<1x16x16x4xf32, #tpu.memory_space<vmem>>, vector<1x14x14x4xf32>
    %15 = vector.shape_cast %14 : vector<1x14x14x4xf32> to vector<14x14x4xf32>
    %16 = arith.maximumf %13, %15 : vector<14x14x4xf32>
    %c0_21 = arith.constant 0 : index
    %c2_22 = arith.constant 2 : index
    %c0_23 = arith.constant 0 : index
    %c0_24 = arith.constant 0 : index
    %17 = vector.load %arg1[%c0_21, %c2_22, %c0_23, %c0_24] : memref<1x16x16x4xf32, #tpu.memory_space<vmem>>, vector<1x14x14x4xf32>
    %18 = vector.shape_cast %17 : vector<1x14x14x4xf32> to vector<14x14x4xf32>
    %19 = arith.maximumf %16, %18 : vector<14x14x4xf32>
    %c0_25 = arith.constant 0 : index
    %c2_26 = arith.constant 2 : index
    %c1_27 = arith.constant 1 : index
    %c0_28 = arith.constant 0 : index
    %20 = vector.load %arg1[%c0_25, %c2_26, %c1_27, %c0_28] : memref<1x16x16x4xf32, #tpu.memory_space<vmem>>, vector<1x14x14x4xf32>
    %21 = vector.shape_cast %20 : vector<1x14x14x4xf32> to vector<14x14x4xf32>
    %22 = arith.maximumf %19, %21 : vector<14x14x4xf32>
    %c0_29 = arith.constant 0 : index
    %c2_30 = arith.constant 2 : index
    %c2_31 = arith.constant 2 : index
    %c0_32 = arith.constant 0 : index
    %23 = vector.load %arg1[%c0_29, %c2_30, %c2_31, %c0_32] : memref<1x16x16x4xf32, #tpu.memory_space<vmem>>, vector<1x14x14x4xf32>
    %24 = vector.shape_cast %23 : vector<1x14x14x4xf32> to vector<14x14x4xf32>
    %25 = arith.maximumf %22, %24 : vector<14x14x4xf32>
    %c0_33 = arith.constant 0 : index
    %c0_34 = arith.constant 0 : index
    %c0_35 = arith.constant 0 : index
    %c0_36 = arith.constant 0 : index
    %26 = vector.load %arg2[%c0_33, %c0_34, %c0_35, %c0_36] : memref<1x14x14x4xf32, #tpu.memory_space<vmem>>, vector<1x14x14x4xf32>
    %27 = vector.shape_cast %26 : vector<1x14x14x4xf32> to vector<14x14x4xf32>
    %28 = vector.shape_cast %25 : vector<14x14x4xf32> to vector<1x14x14x4xf32>
    tpu.vector_store %arg2[%c0_33, %c0_34, %c0_35, %c0_36], %28 {strides = array<i32>} : memref<1x14x14x4xf32, #tpu.memory_space<vmem>>, vector<1x14x14x4xf32>,
    return
  }
  func.func @transform_0(%arg0: i32) -> (i32, i32, i32, i32) {
    %c0_i32 = arith.constant 0 : i32
    %c0_i32_0 = arith.constant 0 : i32
    %c0_i32_1 = arith.constant 0 : i32
    %c0_i32_2 = arith.constant 0 : i32
    return %arg0, %c0_i32, %c0_i32_0, %c0_i32_1 : i32, i32, i32, i32
  }
  func.func @transform_1(%arg0: i32) -> (i32, i32, i32, i32) {
    %c0_i32 = arith.constant 0 : i32
    %c0_i32_0 = arith.constant 0 : i32
    %c0_i32_1 = arith.constant 0 : i32
    %c0_i32_2 = arith.constant 0 : i32
    return %arg0, %c0_i32, %c0_i32_0, %c0_i32_1 : i32, i32, i32, i32
  }
}

module attributes {stable_mosaic.version = 11 : i64} {
  func.func @_fused_1x1_3x3_kernel(%arg0: i32, %arg1: memref<1x16x16x4xbf16, #tpu.memory_space<vmem>>, %arg2: memref<4x64xbf16, #tpu.memory_space<vmem>>, %arg3: memref<1x64xf32, #tpu.memory_space<vmem>>, %arg4: memref<1x64xf32, #tpu.memory_space<vmem>>, %arg5: memref<9x64x96xbf16, #tpu.memory_space<vmem>>, %arg6: memref<1x96xf32, #tpu.memory_space<vmem>>, %arg7: memref<1x96xf32, #tpu.memory_space<vmem>>, %arg8: memref<1x256x96xf32, #tpu.memory_space<vmem>>, %arg9: memref<18x18x64xbf16, #tpu.memory_space<vmem>>) attributes {dimension_semantics = [#tpu.dimension_semantics<parallel>], iteration_bounds = array<i64: 2>, scalar_prefetch = 0 : i64, scratch_operands = 1 : i64, tpu.core_type = #tpu.core_type<tc>, window_params = [{transform_indices = @transform_0, window_bounds = array<i64: 1, 16, 16, 4>}, {pipeline_mode = #tpu.pipeline_mode<synchronous>, transform_indices = @transform_1, window_bounds = array<i64: 4, 64>}, {pipeline_mode = #tpu.pipeline_mode<synchronous>, transform_indices = @transform_2, window_bounds = array<i64: 1, 64>}, {pipeline_mode = #tpu.pipeline_mode<synchronous>, transform_indices = @transform_3, window_bounds = array<i64: 1, 64>}, {pipeline_mode = #tpu.pipeline_mode<synchronous>, transform_indices = @transform_4, window_bounds = array<i64: 9, 64, 96>}, {pipeline_mode = #tpu.pipeline_mode<synchronous>, transform_indices = @transform_5, window_bounds = array<i64: 1, 96>}, {pipeline_mode = #tpu.pipeline_mode<synchronous>, transform_indices = @transform_6, window_bounds = array<i64: 1, 96>}, {transform_indices = @transform_7, window_bounds = array<i64: 1, 256, 96>}]} {
    %c0 = arith.constant 0 : index
    %c0_0 = arith.constant 0 : index
    %c0_1 = arith.constant 0 : index
    %c0_2 = arith.constant 0 : index
    %0 = vector.load %arg1[%c0, %c0_0, %c0_1, %c0_2] : memref<1x16x16x4xbf16, #tpu.memory_space<vmem>>, vector<1x16x16x4xbf16>
    %1 = vector.shape_cast %0 : vector<1x16x16x4xbf16> to vector<16x16x4xbf16>
    %2 = vector.shape_cast %1 : vector<16x16x4xbf16> to vector<256x4xbf16>
    %c0_3 = arith.constant 0 : index
    %c0_4 = arith.constant 0 : index
    %3 = vector.load %arg2[%c0_3, %c0_4] : memref<4x64xbf16, #tpu.memory_space<vmem>>, vector<4x64xbf16>
    %cst = arith.constant dense<0.000000e+00> : vector<256x64xf32>
    %4 = tpu.matmul %2, %3, %cst {dimension_numbers = #tpu.dot_dimension_numbers<[1], [0], [0], [1], [0, 0, 1, 1], [], []>} : vector<256x4xbf16>, vector<4x64xbf16>, vector<256x64xf32> -> vector<256x64xf32>
    %c0_5 = arith.constant 0 : index
    %c0_6 = arith.constant 0 : index
    %5 = vector.load %arg3[%c0_5, %c0_6] : memref<1x64xf32, #tpu.memory_space<vmem>>, vector<1x64xf32>
    %6 = vector.broadcast %5 : vector<1x64xf32> to vector<256x64xf32>
    %7 = arith.mulf %4, %6 : vector<256x64xf32>
    %c0_7 = arith.constant 0 : index
    %c0_8 = arith.constant 0 : index
    %8 = vector.load %arg4[%c0_7, %c0_8] : memref<1x64xf32, #tpu.memory_space<vmem>>, vector<1x64xf32>
    %9 = vector.broadcast %8 : vector<1x64xf32> to vector<256x64xf32>
    %10 = arith.addf %7, %9 : vector<256x64xf32>
    %cst_9 = arith.constant 0.000000e+00 : f32
    %11 = vector.broadcast %cst_9 : f32 to vector<256x64xf32>
    %12 = arith.maximumf %10, %11 : vector<256x64xf32>
    %cst_10 = arith.constant 0.000000e+00 : bf16
    %13 = vector.broadcast %cst_10 : bf16 to vector<18x18x64xbf16>
    %c0_11 = arith.constant 0 : index
    %c0_12 = arith.constant 0 : index
    %c0_13 = arith.constant 0 : index
    %14 = vector.load %arg9[%c0_11, %c0_12, %c0_13] : memref<18x18x64xbf16, #tpu.memory_space<vmem>>, vector<18x18x64xbf16>
    tpu.vector_store %arg9[%c0_11, %c0_12, %c0_13], %13 {strides = array<i32>} : memref<18x18x64xbf16, #tpu.memory_space<vmem>>, vector<18x18x64xbf16>,
    %15 = vector.shape_cast %12 : vector<256x64xf32> to vector<16x16x64xf32>
    %16 = arith.truncf %15 : vector<16x16x64xf32> to vector<16x16x64xbf16>
    %c1 = arith.constant 1 : index
    %c1_14 = arith.constant 1 : index
    %c0_15 = arith.constant 0 : index
    %17 = vector.load %arg9[%c1, %c1_14, %c0_15] : memref<18x18x64xbf16, #tpu.memory_space<vmem>>, vector<16x16x64xbf16>
    tpu.vector_store %arg9[%c1, %c1_14, %c0_15], %16 {strides = array<i32>} : memref<18x18x64xbf16, #tpu.memory_space<vmem>>, vector<16x16x64xbf16>,
    %cst_16 = arith.constant 0.000000e+00 : f32
    %18 = vector.broadcast %cst_16 : f32 to vector<256x96xf32>
    %c0_17 = arith.constant 0 : index
    %c0_18 = arith.constant 0 : index
    %c0_19 = arith.constant 0 : index
    %19 = vector.load %arg9[%c0_17, %c0_18, %c0_19] : memref<18x18x64xbf16, #tpu.memory_space<vmem>>, vector<16x16x64xbf16>
    %20 = vector.shape_cast %19 : vector<16x16x64xbf16> to vector<256x64xbf16>
    %c0_20 = arith.constant 0 : index
    %c0_21 = arith.constant 0 : index
    %c0_22 = arith.constant 0 : index
    %21 = vector.load %arg5[%c0_20, %c0_21, %c0_22] : memref<9x64x96xbf16, #tpu.memory_space<vmem>>, vector<1x64x96xbf16>
    %22 = vector.shape_cast %21 : vector<1x64x96xbf16> to vector<64x96xbf16>
    %cst_23 = arith.constant dense<0.000000e+00> : vector<256x96xf32>
    %23 = tpu.matmul %20, %22, %cst_23 {dimension_numbers = #tpu.dot_dimension_numbers<[1], [0], [0], [1], [0, 0, 1, 1], [], []>} : vector<256x64xbf16>, vector<64x96xbf16>, vector<256x96xf32> -> vector<256x96xf32>
    %24 = arith.addf %18, %23 : vector<256x96xf32>
    %c0_24 = arith.constant 0 : index
    %c1_25 = arith.constant 1 : index
    %c0_26 = arith.constant 0 : index
    %25 = vector.load %arg9[%c0_24, %c1_25, %c0_26] : memref<18x18x64xbf16, #tpu.memory_space<vmem>>, vector<16x16x64xbf16>
    %26 = vector.shape_cast %25 : vector<16x16x64xbf16> to vector<256x64xbf16>
    %c1_27 = arith.constant 1 : index
    %c0_28 = arith.constant 0 : index
    %c0_29 = arith.constant 0 : index
    %27 = vector.load %arg5[%c1_27, %c0_28, %c0_29] : memref<9x64x96xbf16, #tpu.memory_space<vmem>>, vector<1x64x96xbf16>
    %28 = vector.shape_cast %27 : vector<1x64x96xbf16> to vector<64x96xbf16>
    %cst_30 = arith.constant dense<0.000000e+00> : vector<256x96xf32>
    %29 = tpu.matmul %26, %28, %cst_30 {dimension_numbers = #tpu.dot_dimension_numbers<[1], [0], [0], [1], [0, 0, 1, 1], [], []>} : vector<256x64xbf16>, vector<64x96xbf16>, vector<256x96xf32> -> vector<256x96xf32>
    %30 = arith.addf %24, %29 : vector<256x96xf32>
    %c0_31 = arith.constant 0 : index
    %c2 = arith.constant 2 : index
    %c0_32 = arith.constant 0 : index
    %31 = vector.load %arg9[%c0_31, %c2, %c0_32] : memref<18x18x64xbf16, #tpu.memory_space<vmem>>, vector<16x16x64xbf16>
    %32 = vector.shape_cast %31 : vector<16x16x64xbf16> to vector<256x64xbf16>
    %c2_33 = arith.constant 2 : index
    %c0_34 = arith.constant 0 : index
    %c0_35 = arith.constant 0 : index
    %33 = vector.load %arg5[%c2_33, %c0_34, %c0_35] : memref<9x64x96xbf16, #tpu.memory_space<vmem>>, vector<1x64x96xbf16>
    %34 = vector.shape_cast %33 : vector<1x64x96xbf16> to vector<64x96xbf16>
    %cst_36 = arith.constant dense<0.000000e+00> : vector<256x96xf32>
    %35 = tpu.matmul %32, %34, %cst_36 {dimension_numbers = #tpu.dot_dimension_numbers<[1], [0], [0], [1], [0, 0, 1, 1], [], []>} : vector<256x64xbf16>, vector<64x96xbf16>, vector<256x96xf32> -> vector<256x96xf32>
    %36 = arith.addf %30, %35 : vector<256x96xf32>
    %c1_37 = arith.constant 1 : index
    %c0_38 = arith.constant 0 : index
    %c0_39 = arith.constant 0 : index
    %37 = vector.load %arg9[%c1_37, %c0_38, %c0_39] : memref<18x18x64xbf16, #tpu.memory_space<vmem>>, vector<16x16x64xbf16>
    %38 = vector.shape_cast %37 : vector<16x16x64xbf16> to vector<256x64xbf16>
    %c3 = arith.constant 3 : index
    %c0_40 = arith.constant 0 : index
    %c0_41 = arith.constant 0 : index
    %39 = vector.load %arg5[%c3, %c0_40, %c0_41] : memref<9x64x96xbf16, #tpu.memory_space<vmem>>, vector<1x64x96xbf16>
    %40 = vector.shape_cast %39 : vector<1x64x96xbf16> to vector<64x96xbf16>
    %cst_42 = arith.constant dense<0.000000e+00> : vector<256x96xf32>
    %41 = tpu.matmul %38, %40, %cst_42 {dimension_numbers = #tpu.dot_dimension_numbers<[1], [0], [0], [1], [0, 0, 1, 1], [], []>} : vector<256x64xbf16>, vector<64x96xbf16>, vector<256x96xf32> -> vector<256x96xf32>
    %42 = arith.addf %36, %41 : vector<256x96xf32>
    %c1_43 = arith.constant 1 : index
    %c1_44 = arith.constant 1 : index
    %c0_45 = arith.constant 0 : index
    %43 = vector.load %arg9[%c1_43, %c1_44, %c0_45] : memref<18x18x64xbf16, #tpu.memory_space<vmem>>, vector<16x16x64xbf16>
    %44 = vector.shape_cast %43 : vector<16x16x64xbf16> to vector<256x64xbf16>
    %c4 = arith.constant 4 : index
    %c0_46 = arith.constant 0 : index
    %c0_47 = arith.constant 0 : index
    %45 = vector.load %arg5[%c4, %c0_46, %c0_47] : memref<9x64x96xbf16, #tpu.memory_space<vmem>>, vector<1x64x96xbf16>
    %46 = vector.shape_cast %45 : vector<1x64x96xbf16> to vector<64x96xbf16>
    %cst_48 = arith.constant dense<0.000000e+00> : vector<256x96xf32>
    %47 = tpu.matmul %44, %46, %cst_48 {dimension_numbers = #tpu.dot_dimension_numbers<[1], [0], [0], [1], [0, 0, 1, 1], [], []>} : vector<256x64xbf16>, vector<64x96xbf16>, vector<256x96xf32> -> vector<256x96xf32>
    %48 = arith.addf %42, %47 : vector<256x96xf32>
    %c1_49 = arith.constant 1 : index
    %c2_50 = arith.constant 2 : index
    %c0_51 = arith.constant 0 : index
    %49 = vector.load %arg9[%c1_49, %c2_50, %c0_51] : memref<18x18x64xbf16, #tpu.memory_space<vmem>>, vector<16x16x64xbf16>
    %50 = vector.shape_cast %49 : vector<16x16x64xbf16> to vector<256x64xbf16>
    %c5 = arith.constant 5 : index
    %c0_52 = arith.constant 0 : index
    %c0_53 = arith.constant 0 : index
    %51 = vector.load %arg5[%c5, %c0_52, %c0_53] : memref<9x64x96xbf16, #tpu.memory_space<vmem>>, vector<1x64x96xbf16>
    %52 = vector.shape_cast %51 : vector<1x64x96xbf16> to vector<64x96xbf16>
    %cst_54 = arith.constant dense<0.000000e+00> : vector<256x96xf32>
    %53 = tpu.matmul %50, %52, %cst_54 {dimension_numbers = #tpu.dot_dimension_numbers<[1], [0], [0], [1], [0, 0, 1, 1], [], []>} : vector<256x64xbf16>, vector<64x96xbf16>, vector<256x96xf32> -> vector<256x96xf32>
    %54 = arith.addf %48, %53 : vector<256x96xf32>
    %c2_55 = arith.constant 2 : index
    %c0_56 = arith.constant 0 : index
    %c0_57 = arith.constant 0 : index
    %55 = vector.load %arg9[%c2_55, %c0_56, %c0_57] : memref<18x18x64xbf16, #tpu.memory_space<vmem>>, vector<16x16x64xbf16>
    %56 = vector.shape_cast %55 : vector<16x16x64xbf16> to vector<256x64xbf16>
    %c6 = arith.constant 6 : index
    %c0_58 = arith.constant 0 : index
    %c0_59 = arith.constant 0 : index
    %57 = vector.load %arg5[%c6, %c0_58, %c0_59] : memref<9x64x96xbf16, #tpu.memory_space<vmem>>, vector<1x64x96xbf16>
    %58 = vector.shape_cast %57 : vector<1x64x96xbf16> to vector<64x96xbf16>
    %cst_60 = arith.constant dense<0.000000e+00> : vector<256x96xf32>
    %59 = tpu.matmul %56, %58, %cst_60 {dimension_numbers = #tpu.dot_dimension_numbers<[1], [0], [0], [1], [0, 0, 1, 1], [], []>} : vector<256x64xbf16>, vector<64x96xbf16>, vector<256x96xf32> -> vector<256x96xf32>
    %60 = arith.addf %54, %59 : vector<256x96xf32>
    %c2_61 = arith.constant 2 : index
    %c1_62 = arith.constant 1 : index
    %c0_63 = arith.constant 0 : index
    %61 = vector.load %arg9[%c2_61, %c1_62, %c0_63] : memref<18x18x64xbf16, #tpu.memory_space<vmem>>, vector<16x16x64xbf16>
    %62 = vector.shape_cast %61 : vector<16x16x64xbf16> to vector<256x64xbf16>
    %c7 = arith.constant 7 : index
    %c0_64 = arith.constant 0 : index
    %c0_65 = arith.constant 0 : index
    %63 = vector.load %arg5[%c7, %c0_64, %c0_65] : memref<9x64x96xbf16, #tpu.memory_space<vmem>>, vector<1x64x96xbf16>
    %64 = vector.shape_cast %63 : vector<1x64x96xbf16> to vector<64x96xbf16>
    %cst_66 = arith.constant dense<0.000000e+00> : vector<256x96xf32>
    %65 = tpu.matmul %62, %64, %cst_66 {dimension_numbers = #tpu.dot_dimension_numbers<[1], [0], [0], [1], [0, 0, 1, 1], [], []>} : vector<256x64xbf16>, vector<64x96xbf16>, vector<256x96xf32> -> vector<256x96xf32>
    %66 = arith.addf %60, %65 : vector<256x96xf32>
    %c2_67 = arith.constant 2 : index
    %c2_68 = arith.constant 2 : index
    %c0_69 = arith.constant 0 : index
    %67 = vector.load %arg9[%c2_67, %c2_68, %c0_69] : memref<18x18x64xbf16, #tpu.memory_space<vmem>>, vector<16x16x64xbf16>
    %68 = vector.shape_cast %67 : vector<16x16x64xbf16> to vector<256x64xbf16>
    %c8 = arith.constant 8 : index
    %c0_70 = arith.constant 0 : index
    %c0_71 = arith.constant 0 : index
    %69 = vector.load %arg5[%c8, %c0_70, %c0_71] : memref<9x64x96xbf16, #tpu.memory_space<vmem>>, vector<1x64x96xbf16>
    %70 = vector.shape_cast %69 : vector<1x64x96xbf16> to vector<64x96xbf16>
    %cst_72 = arith.constant dense<0.000000e+00> : vector<256x96xf32>
    %71 = tpu.matmul %68, %70, %cst_72 {dimension_numbers = #tpu.dot_dimension_numbers<[1], [0], [0], [1], [0, 0, 1, 1], [], []>} : vector<256x64xbf16>, vector<64x96xbf16>, vector<256x96xf32> -> vector<256x96xf32>
    %72 = arith.addf %66, %71 : vector<256x96xf32>
    %c0_73 = arith.constant 0 : index
    %c0_74 = arith.constant 0 : index
    %73 = vector.load %arg6[%c0_73, %c0_74] : memref<1x96xf32, #tpu.memory_space<vmem>>, vector<1x96xf32>
    %74 = vector.broadcast %73 : vector<1x96xf32> to vector<256x96xf32>
    %75 = arith.mulf %72, %74 : vector<256x96xf32>
    %c0_75 = arith.constant 0 : index
    %c0_76 = arith.constant 0 : index
    %76 = vector.load %arg7[%c0_75, %c0_76] : memref<1x96xf32, #tpu.memory_space<vmem>>, vector<1x96xf32>
    %77 = vector.broadcast %76 : vector<1x96xf32> to vector<256x96xf32>
    %78 = arith.addf %75, %77 : vector<256x96xf32>
    %cst_77 = arith.constant 0.000000e+00 : f32
    %79 = vector.broadcast %cst_77 : f32 to vector<256x96xf32>
    %80 = arith.maximumf %78, %79 : vector<256x96xf32>
    %c0_78 = arith.constant 0 : index
    %c0_79 = arith.constant 0 : index
    %c0_80 = arith.constant 0 : index
    %81 = vector.load %arg8[%c0_78, %c0_79, %c0_80] : memref<1x256x96xf32, #tpu.memory_space<vmem>>, vector<1x256x96xf32>
    %82 = vector.shape_cast %81 : vector<1x256x96xf32> to vector<256x96xf32>
    %83 = vector.shape_cast %80 : vector<256x96xf32> to vector<1x256x96xf32>
    tpu.vector_store %arg8[%c0_78, %c0_79, %c0_80], %83 {strides = array<i32>} : memref<1x256x96xf32, #tpu.memory_space<vmem>>, vector<1x256x96xf32>,
    return
  }
  func.func @transform_0(%arg0: i32) -> (i32, i32, i32, i32) {
    %c0_i32 = arith.constant 0 : i32
    %c0_i32_0 = arith.constant 0 : i32
    %c0_i32_1 = arith.constant 0 : i32
    %c0_i32_2 = arith.constant 0 : i32
    return %arg0, %c0_i32, %c0_i32_0, %c0_i32_1 : i32, i32, i32, i32
  }
  func.func @transform_1(%arg0: i32) -> (i32, i32) {
    %c0_i32 = arith.constant 0 : i32
    %c0_i32_0 = arith.constant 0 : i32
    %c0_i32_1 = arith.constant 0 : i32
    return %c0_i32, %c0_i32_0 : i32, i32
  }
  func.func @transform_2(%arg0: i32) -> (i32, i32) {
    %c0_i32 = arith.constant 0 : i32
    %c0_i32_0 = arith.constant 0 : i32
    %c0_i32_1 = arith.constant 0 : i32
    return %c0_i32, %c0_i32_0 : i32, i32
  }
  func.func @transform_3(%arg0: i32) -> (i32, i32) {
    %c0_i32 = arith.constant 0 : i32
    %c0_i32_0 = arith.constant 0 : i32
    %c0_i32_1 = arith.constant 0 : i32
    return %c0_i32, %c0_i32_0 : i32, i32
  }
  func.func @transform_4(%arg0: i32) -> (i32, i32, i32) {
    %c0_i32 = arith.constant 0 : i32
    %c0_i32_0 = arith.constant 0 : i32
    %c0_i32_1 = arith.constant 0 : i32
    %c0_i32_2 = arith.constant 0 : i32
    return %c0_i32, %c0_i32_0, %c0_i32_1 : i32, i32, i32
  }
  func.func @transform_5(%arg0: i32) -> (i32, i32) {
    %c0_i32 = arith.constant 0 : i32
    %c0_i32_0 = arith.constant 0 : i32
    %c0_i32_1 = arith.constant 0 : i32
    return %c0_i32, %c0_i32_0 : i32, i32
  }
  func.func @transform_6(%arg0: i32) -> (i32, i32) {
    %c0_i32 = arith.constant 0 : i32
    %c0_i32_0 = arith.constant 0 : i32
    %c0_i32_1 = arith.constant 0 : i32
    return %c0_i32, %c0_i32_0 : i32, i32
  }
  func.func @transform_7(%arg0: i32) -> (i32, i32, i32) {
    %c0_i32 = arith.constant 0 : i32
    %c0_i32_0 = arith.constant 0 : i32
    %c0_i32_1 = arith.constant 0 : i32
    return %arg0, %c0_i32, %c0_i32_0 : i32, i32, i32
  }
}

module attributes {stable_mosaic.version = 11 : i64} {
  func.func @_conv_bn_relu_kernel(%arg0: i32, %arg1: i32, %arg2: memref<1x56x864xbf16, #tpu.memory_space<vmem>>, %arg3: memref<864x96xbf16, #tpu.memory_space<vmem>>, %arg4: memref<1x96xf32, #tpu.memory_space<vmem>>, %arg5: memref<1x96xf32, #tpu.memory_space<vmem>>, %arg6: memref<1x56x96xf32, #tpu.memory_space<vmem>>) attributes {dimension_semantics = [#tpu.dimension_semantics<parallel>, #tpu.dimension_semantics<parallel>], iteration_bounds = array<i64: 2, 1>, scalar_prefetch = 0 : i64, scratch_operands = 0 : i64, tpu.core_type = #tpu.core_type<tc>, window_params = [{transform_indices = @transform_0, window_bounds = array<i64: 1, 56, 864>}, {transform_indices = @transform_1, window_bounds = array<i64: 864, 96>}, {transform_indices = @transform_2, window_bounds = array<i64: 1, 96>}, {transform_indices = @transform_3, window_bounds = array<i64: 1, 96>}, {transform_indices = @transform_4, window_bounds = array<i64: 1, 56, 96>}]} {
    %c0 = arith.constant 0 : index
    %c0_0 = arith.constant 0 : index
    %c0_1 = arith.constant 0 : index
    %0 = vector.load %arg2[%c0, %c0_0, %c0_1] : memref<1x56x864xbf16, #tpu.memory_space<vmem>>, vector<1x56x864xbf16>
    %1 = vector.shape_cast %0 : vector<1x56x864xbf16> to vector<56x864xbf16>
    %c0_2 = arith.constant 0 : index
    %c0_3 = arith.constant 0 : index
    %2 = vector.load %arg3[%c0_2, %c0_3] : memref<864x96xbf16, #tpu.memory_space<vmem>>, vector<864x96xbf16>
    %cst = arith.constant dense<0.000000e+00> : vector<56x96xf32>
    %3 = tpu.matmul %1, %2, %cst {dimension_numbers = #tpu.dot_dimension_numbers<[1], [0], [0], [1], [0, 0, 1, 1], [], []>} : vector<56x864xbf16>, vector<864x96xbf16>, vector<56x96xf32> -> vector<56x96xf32>
    %c0_4 = arith.constant 0 : index
    %c0_5 = arith.constant 0 : index
    %4 = vector.load %arg4[%c0_4, %c0_5] : memref<1x96xf32, #tpu.memory_space<vmem>>, vector<1x96xf32>
    %5 = vector.broadcast %4 : vector<1x96xf32> to vector<56x96xf32>
    %6 = arith.mulf %3, %5 : vector<56x96xf32>
    %c0_6 = arith.constant 0 : index
    %c0_7 = arith.constant 0 : index
    %7 = vector.load %arg5[%c0_6, %c0_7] : memref<1x96xf32, #tpu.memory_space<vmem>>, vector<1x96xf32>
    %8 = vector.broadcast %7 : vector<1x96xf32> to vector<56x96xf32>
    %9 = arith.addf %6, %8 : vector<56x96xf32>
    %cst_8 = arith.constant 0.000000e+00 : f32
    %10 = vector.broadcast %cst_8 : f32 to vector<56x96xf32>
    %11 = arith.maximumf %9, %10 : vector<56x96xf32>
    %c0_9 = arith.constant 0 : index
    %c0_10 = arith.constant 0 : index
    %c0_11 = arith.constant 0 : index
    %12 = vector.load %arg6[%c0_9, %c0_10, %c0_11] : memref<1x56x96xf32, #tpu.memory_space<vmem>>, vector<1x56x96xf32>
    %13 = vector.shape_cast %12 : vector<1x56x96xf32> to vector<56x96xf32>
    %14 = vector.shape_cast %11 : vector<56x96xf32> to vector<1x56x96xf32>
    tpu.vector_store %arg6[%c0_9, %c0_10, %c0_11], %14 {strides = array<i32>} : memref<1x56x96xf32, #tpu.memory_space<vmem>>, vector<1x56x96xf32>,
    return
  }
  func.func @transform_0(%arg0: i32, %arg1: i32) -> (i32, i32, i32) {
    %c0_i32 = arith.constant 0 : i32
    %c0_i32_0 = arith.constant 0 : i32
    %c0_i32_1 = arith.constant 0 : i32
    return %arg0, %c0_i32, %c0_i32_0 : i32, i32, i32
  }
  func.func @transform_1(%arg0: i32, %arg1: i32) -> (i32, i32) {
    %c0_i32 = arith.constant 0 : i32
    %c0_i32_0 = arith.constant 0 : i32
    return %c0_i32, %arg1 : i32, i32
  }
  func.func @transform_2(%arg0: i32, %arg1: i32) -> (i32, i32) {
    %c0_i32 = arith.constant 0 : i32
    %c0_i32_0 = arith.constant 0 : i32
    return %c0_i32, %arg1 : i32, i32
  }
  func.func @transform_3(%arg0: i32, %arg1: i32) -> (i32, i32) {
    %c0_i32 = arith.constant 0 : i32
    %c0_i32_0 = arith.constant 0 : i32
    return %c0_i32, %arg1 : i32, i32
  }
  func.func @transform_4(%arg0: i32, %arg1: i32) -> (i32, i32, i32) {
    %c0_i32 = arith.constant 0 : i32
    %c0_i32_0 = arith.constant 0 : i32
    return %arg0, %c0_i32, %arg1 : i32, i32, i32
  }
}

module attributes {stable_mosaic.version = 11 : i64} {
  func.func @_conv_bn_relu_kernel(%arg0: i32, %arg1: i32, %arg2: memref<1x56x36xbf16, #tpu.memory_space<vmem>>, %arg3: memref<36x128xbf16, #tpu.memory_space<vmem>>, %arg4: memref<1x128xf32, #tpu.memory_space<vmem>>, %arg5: memref<1x128xf32, #tpu.memory_space<vmem>>, %arg6: memref<1x56x128xf32, #tpu.memory_space<vmem>>) attributes {dimension_semantics = [#tpu.dimension_semantics<parallel>, #tpu.dimension_semantics<parallel>], iteration_bounds = array<i64: 2, 3>, scalar_prefetch = 0 : i64, scratch_operands = 0 : i64, tpu.core_type = #tpu.core_type<tc>, window_params = [{transform_indices = @transform_0, window_bounds = array<i64: 1, 56, 36>}, {transform_indices = @transform_1, window_bounds = array<i64: 36, 128>}, {transform_indices = @transform_2, window_bounds = array<i64: 1, 128>}, {transform_indices = @transform_3, window_bounds = array<i64: 1, 128>}, {transform_indices = @transform_4, window_bounds = array<i64: 1, 56, 128>}]} {
    %c0 = arith.constant 0 : index
    %c0_0 = arith.constant 0 : index
    %c0_1 = arith.constant 0 : index
    %0 = vector.load %arg2[%c0, %c0_0, %c0_1] : memref<1x56x36xbf16, #tpu.memory_space<vmem>>, vector<1x56x36xbf16>
    %1 = vector.shape_cast %0 : vector<1x56x36xbf16> to vector<56x36xbf16>
    %c0_2 = arith.constant 0 : index
    %c0_3 = arith.constant 0 : index
    %2 = vector.load %arg3[%c0_2, %c0_3] : memref<36x128xbf16, #tpu.memory_space<vmem>>, vector<36x128xbf16>
    %cst = arith.constant dense<0.000000e+00> : vector<56x128xf32>
    %3 = tpu.matmul %1, %2, %cst {dimension_numbers = #tpu.dot_dimension_numbers<[1], [0], [0], [1], [0, 0, 1, 1], [], []>} : vector<56x36xbf16>, vector<36x128xbf16>, vector<56x128xf32> -> vector<56x128xf32>
    %c0_4 = arith.constant 0 : index
    %c0_5 = arith.constant 0 : index
    %4 = vector.load %arg4[%c0_4, %c0_5] : memref<1x128xf32, #tpu.memory_space<vmem>>, vector<1x128xf32>
    %5 = vector.broadcast %4 : vector<1x128xf32> to vector<56x128xf32>
    %6 = arith.mulf %3, %5 : vector<56x128xf32>
    %c0_6 = arith.constant 0 : index
    %c0_7 = arith.constant 0 : index
    %7 = vector.load %arg5[%c0_6, %c0_7] : memref<1x128xf32, #tpu.memory_space<vmem>>, vector<1x128xf32>
    %8 = vector.broadcast %7 : vector<1x128xf32> to vector<56x128xf32>
    %9 = arith.addf %6, %8 : vector<56x128xf32>
    %cst_8 = arith.constant 0.000000e+00 : f32
    %10 = vector.broadcast %cst_8 : f32 to vector<56x128xf32>
    %11 = arith.maximumf %9, %10 : vector<56x128xf32>
    %c0_9 = arith.constant 0 : index
    %c0_10 = arith.constant 0 : index
    %c0_11 = arith.constant 0 : index
    %12 = vector.load %arg6[%c0_9, %c0_10, %c0_11] : memref<1x56x128xf32, #tpu.memory_space<vmem>>, vector<1x56x128xf32>
    %13 = vector.shape_cast %12 : vector<1x56x128xf32> to vector<56x128xf32>
    %14 = vector.shape_cast %11 : vector<56x128xf32> to vector<1x56x128xf32>
    tpu.vector_store %arg6[%c0_9, %c0_10, %c0_11], %14 {strides = array<i32>} : memref<1x56x128xf32, #tpu.memory_space<vmem>>, vector<1x56x128xf32>,
    return
  }
  func.func @transform_0(%arg0: i32, %arg1: i32) -> (i32, i32, i32) {
    %c0_i32 = arith.constant 0 : i32
    %c0_i32_0 = arith.constant 0 : i32
    %c0_i32_1 = arith.constant 0 : i32
    return %arg0, %c0_i32, %c0_i32_0 : i32, i32, i32
  }
  func.func @transform_1(%arg0: i32, %arg1: i32) -> (i32, i32) {
    %c0_i32 = arith.constant 0 : i32
    %c0_i32_0 = arith.constant 0 : i32
    return %c0_i32, %arg1 : i32, i32
  }
  func.func @transform_2(%arg0: i32, %arg1: i32) -> (i32, i32) {
    %c0_i32 = arith.constant 0 : i32
    %c0_i32_0 = arith.constant 0 : i32
    return %c0_i32, %arg1 : i32, i32
  }
  func.func @transform_3(%arg0: i32, %arg1: i32) -> (i32, i32) {
    %c0_i32 = arith.constant 0 : i32
    %c0_i32_0 = arith.constant 0 : i32
    return %c0_i32, %arg1 : i32, i32
  }
  func.func @transform_4(%arg0: i32, %arg1: i32) -> (i32, i32, i32) {
    %c0_i32 = arith.constant 0 : i32
    %c0_i32_0 = arith.constant 0 : i32
    return %arg0, %c0_i32, %arg1 : i32, i32, i32
  }
}

</mosaic_0001>

<bundles_post_ra>
// kernel: inception_block_b.7
= control target key start
LH: loop header
LB: loop body
LE: loop exit
PB: predicated region body
PF: predicated region fallthrough
CT: control target
= control target key end

     0   :  { %s886_s6 = smov 0   ;;  %s1171_s0 = inlined_call_operand.vmem [shape: f32[2,16,16,4], index: 0, kind: input, shape index: {}]   ;;  %s1172_s1 = inlined_call_operand.vmem [shape: f32[2,14,14,4], index: 1, kind: output, shape index: {}]  }
   0x1 LB: > { %s680_s7 = sadd.s32 4294967295, %s874_s6   ;;  %p684_p0 = scmp.ge.s32.totalorder %s874_s6, 1  ;;  %s874_s6 = sphi %s886_s6, %s11_s6  }
   0x2   : > { %p87_p1 = scmp.lt.s32.totalorder %s874_s6, 3 }
   0x4   : > { %p88_p2 = pnand %p684_p0, %p87_p1 }
   0x5   : > { %p107_p3 = scmp.lt.s32.totalorder (!%p88_p2), %s680_s7, 1 }
   0x6   : > { %91 = sbr.rel (%p88_p2) target bundleno = 90 (0x5a), region = 24 }
   0xb   : > { %s1174_s7 = smov (!%p107_p3, %s680_s7), 1  ;;  %vm595_vm0 = vcmask 31744   ;;  %vm597_vm1 = vcmask 29696  }
   0xc   : > { %s858_s8 = sshll.u32 %s1174_s7, 8  ;;  %s859_s12 = smul.u32 224, %s1174_s7 }
   0xd   : > { %s900_s11 = scalar_lea.vmem %s1171_s0, %s858_s8 }
   0xe   : > { %v117_v0 = vld [vmem:[%s900_s11] sm:$0xff]  ;;  %v688_v4 = vld [vmem:[%s900_s11 + $0x10] sm:$0xff]  ;;  %v118_v12 = vld [vmem:[%s900_s11 + $0x8] sm:$0x3f]  ;;  %s953_s15 = scalar_lea.vmem %s1172_s1, %s859_s12 }
   0xf   : > { %v145_v1 = vld [vmem:[%s900_s11 + $0x1] sm:$0xff]  ;;  %v716_v5 = vld [vmem:[%s900_s11 + $0x11] sm:$0xff]  ;;  %v146_v13 = vld [vmem:[%s900_s11 + $0x9] sm:$0x3f] }
  0x10   : > { %v201_v2 = vld [vmem:[%s900_s11 + $0x2] sm:$0xff]  ;;  %v173_v3 = vmax.f32 %v117_v0, %v145_v1  ;;  %v744_v6 = vld [vmem:[%s900_s11 + $0x12] sm:$0xff]  ;;  %v175_v10 = vmax.f32 %v688_v4, %v716_v5  ;;  %v202_v14 = vld [vmem:[%s900_s11 + $0xa] sm:$0x3f]  ;;  %v174_v16 = vmax.f32 %v118_v12, %v146_v13 }
  0x11   : > { %v772_v7 = vld [vmem:[%s900_s11 + $0x20] sm:$0xff]  ;;  %v689_v19 = vld [vmem:[%s900_s11 + $0x18] sm:$0x3f]  ;;  %v774_v24 = vld [vmem:[%s900_s11 + $0x30] sm:$0xff] }
  0x12   : > { %v910_v8 = vld [vmem:[%s900_s11 + $0x21] sm:$0xff]  ;;  %v229_v11 = vmax.f32 %v173_v3, %v201_v2  ;;  %v231_v17 = vmax.f32 %v175_v10, %v744_v6  ;;  %v717_v20 = vld [vmem:[%s900_s11 + $0x19] sm:$0x3f]  ;;  %v230_v22 = vmax.f32 %v174_v16, %v202_v14  ;;  %v924_v25 = vld [vmem:[%s900_s11 + $0x31] sm:$0xff] }
  0x13   : > { %v913_v9 = vld [vmem:[%s900_s11 + $0x22] sm:$0xff]  ;;  %v177_v15 = vmax.f32 %v772_v7, %v910_v8  ;;  %v830_v26 = vld [vmem:[%s900_s11 + $0x32] sm:$0xff]  ;;  %v204_v30 = vld [vmem:[%s900_s11 + $0x1a] sm:$0x3f]  ;;  %v179_v32 = vmax.f32 %v774_v24, %v924_v25 }
  0x14   : > { %v286_v18 = vmax.f32 %v229_v11, %v688_v4  ;;  %v288_v23 = vmax.f32 %v231_v17, %v772_v7  ;;  %v120_v28 = vld [vmem:[%s900_s11 + $0x18] sm:$0x3f]  ;;  %v287_v33 = vmax.f32 %v230_v22, %v689_v19  ;;  %v773_v38 = vld [vmem:[%s900_s11 + $0x28] sm:$0x3f]  ;;  %v776_v46 = vld [vmem:[%s900_s11 + $0x40] sm:$0xff] }
  0x15   : > { %v233_v21 = vmax.f32 %v177_v15, %v913_v9  ;;  %v148_v29 = vld [vmem:[%s900_s11 + $0x19] sm:$0x3f]  ;;  %v691_v39 = vld [vmem:[%s900_s11 + $0x28] sm:$0x3f]  ;;  %v235_v42 = vmax.f32 %v179_v32, %v830_v26  ;;  %v778_v11 = vld [vmem:[%s900_s11 + $0x50] sm:$0xff] }
  0x16   : > { %v342_v27 = vmax.f32 %v286_v18, %v716_v5  ;;  %v745_v34 = vld [vmem:[%s900_s11 + $0x1a] sm:$0x3f]  ;;  %v344_v35 = vmax.f32 %v288_v23, %v910_v8  ;;  %v176_v36 = vmax.f32 %v120_v28, %v148_v29  ;;  %v719_v40 = vld [vmem:[%s900_s11 + $0x29] sm:$0x3f]  ;;  %v343_v43 = vmax.f32 %v287_v33, %v717_v20  ;;  %v804_v47 = vld [vmem:[%s900_s11 + $0x41] sm:$0xff] }
  0x17   : > { %v290_v31 = vmax.f32 %v233_v21, %v774_v24  ;;  %v832_v48 = vld [vmem:[%s900_s11 + $0x42] sm:$0xff]  ;;  %v206_v53 = vld [vmem:[%s900_s11 + $0x2a] sm:$0x3f]  ;;  %v292_v54 = vmax.f32 %v235_v42, %v776_v46  ;;  %v181_v55 = vmax.f32 %v776_v46, %v804_v47  ;;  %v693_v1 = vld [vmem:[%s900_s11 + $0x38] sm:$0x3f] }
  0x18   : > { %v398_v37 = vmax.f32 %v342_v27, %v744_v6  ;;  %v400_v44 = vmax.f32 %v344_v35, %v913_v9  ;;  %v232_v45 = vmax.f32 %v176_v36, %v204_v30  ;;  %v122_v51 = vld [vmem:[%s900_s11 + $0x28] sm:$0x3f]  ;;  %v399_v56 = vmax.f32 %v343_v43, %v745_v34  ;;  %v721_v10 = vld [vmem:[%s900_s11 + $0x39] sm:$0x3f]  ;;  %v806_v15 = vld [vmem:[%s900_s11 + $0x51] sm:$0xff] }
  0x19   : > { %v346_v41 = vmax.f32 %v290_v31, %v924_v25  ;;  %v150_v52 = vld [vmem:[%s900_s11 + $0x29] sm:$0x3f]  ;;  %v348_v2 = vmax.f32 %v292_v54, %v804_v47  ;;  %v237_v3 = vmax.f32 %v181_v55, %v832_v48  ;;  %v124_v16 = vld [vmem:[%s900_s11 + $0x38] sm:$0x3f]  ;;  %v780_v33 = vld [vmem:[%s900_s11 + $0x60] sm:$0xff] }
  0x1a   : > { %v455_v49 = vmax.f32 %v398_v37, %v772_v7  ;;  %v801_v57 = vld [vmem:[%s900_s11 + $0x29] sm:$0x3f]  ;;  %v457_v58 = vmax.f32 %v400_v44, %v774_v24  ;;  %v289_v59 = vmax.f32 %v232_v45, %v691_v39  ;;  %v178_v60 = vmax.f32 %v122_v51, %v150_v52  ;;  %v775_v7 = vld [vmem:[%s900_s11 + $0x38] sm:$0x3f]  ;;  %v782_v52 = vld [vmem:[%s900_s11 + $0x70] sm:$0xff] }
  0x1b   : > { %v402_v50 = vmax.f32 %v346_v41, %v830_v26  ;;  %v829_v62 = vld [vmem:[%s900_s11 + $0x2a] sm:$0x3f]  ;;  %v456_v4 = vmax.f32 %v399_v56, %v773_v38  ;;  %v404_v14 = vmax.f32 %v348_v2, %v832_v48  ;;  %v152_v17 = vld [vmem:[%s900_s11 + $0x39] sm:$0x3f]  ;;  %v294_v18 = vmax.f32 %v237_v3, %v778_v11  ;;  %v808_v38 = vld [vmem:[%s900_s11 + $0x61] sm:$0xff] }
  0x1c   : > { %v511_v61 = vmax.f32 %v455_v49, %v910_v8  ;;  %v747_v63 = vld [vmem:[%s900_s11 + $0x2a] sm:$0x3f]  ;;  %v513_v5 = vmax.f32 %v457_v58, %v924_v25  ;;  %v345_v6 = vmax.f32 %v289_v59, %v719_v40  ;;  %v234_v8 = vmax.f32 %v178_v60, %v206_v53  ;;  %v803_v22 = vld [vmem:[%s900_s11 + $0x39] sm:$0x3f]  ;;  %v978_v39 = vld [vmem:[%s900_s11 + $0x62] sm:$0xff] }
  0x1d   : > { %v459_v0 = vmax.f32 %v402_v50, %v776_v46  ;;  %v512_v19 = vmax.f32 %v456_v4, %v801_v57  ;;  %v749_v24 = vld [vmem:[%s900_s11 + $0x3a] sm:$0x3f]  ;;  %v777_v28 = vld [vmem:[%s900_s11 + $0x48] sm:$0x3f]  ;;  %v461_v29 = vmax.f32 %v404_v14, %v778_v11  ;;  %v834_v30 = vld [vmem:[%s900_s11 + $0x52] sm:$0xff]  ;;  %v180_v31 = vmax.f32 %v124_v16, %v152_v17 }
  0x1e   : > { %v567_v12 = vmax.f32 %v511_v61, %v913_v9  ;;  %v569_v20 = vmax.f32 %v513_v5, %v830_v26  ;;  %v401_v21 = vmax.f32 %v345_v6, %v747_v63  ;;  %v291_v23 = vmax.f32 %v234_v8, %v693_v1  ;;  %v208_v25 = vld [vmem:[%s900_s11 + $0x3a] sm:$0x3f]  ;;  %v695_v26 = vld [vmem:[%s900_s11 + $0x48] sm:$0x3f]  ;;  %v995_v2 = vld [vmem:[%s900_s11 + $0x71] sm:$0xff] }
  0x1f   : > { %v515_v13 = vmax.f32 %v459_v0, %v804_v47  ;;  %v831_v9 = vld [vmem:[%s900_s11 + $0x3a] sm:$0x3f]  ;;  %v350_v32 = vmax.f32 %v294_v18, %v806_v15  ;;  %v568_v34 = vmax.f32 %v512_v19, %v829_v62  ;;  %v723_v37 = vld [vmem:[%s900_s11 + $0x49] sm:$0x3f]  ;;  %v183_v40 = vmax.f32 %v778_v11, %v806_v15  ;;  %v1000_v5 = vld [vmem:[%s900_s11 + $0x72] sm:$0xff] }
  0x20   : > { %596 = vst.msk [vmem:[%s953_s15] sm:$0xff] %vm595_vm0, %v567_v12  ;;  %v458_v35 = vmax.f32 %v401_v21, %v775_v7  ;;  %v347_v36 = vmax.f32 %v291_v23, %v721_v10  ;;  %v517_v41 = vmax.f32 %v461_v29, %v806_v15  ;;  %v236_v42 = vmax.f32 %v180_v31, %v208_v25  ;;  %v126_v44 = vld [vmem:[%s900_s11 + $0x48] sm:$0x3f]  ;;  %v697_v58 = vld [vmem:[%s900_s11 + $0x58] sm:$0x3f]  ;;  %v784_v31 = vld [vmem:[%s900_s11 + $0x80] sm:$0xff] }
  0x21   : > { %v571_v27 = vmax.f32 %v515_v13, %v832_v48  ;;  %599 = vst.msk [vmem:[%s953_s15 + $0x10] sm:$0xff] %vm595_vm0, %v569_v20  ;;  %v406_v43 = vmax.f32 %v350_v32, %v834_v30  ;;  %v154_v45 = vld [vmem:[%s900_s11 + $0x49] sm:$0x3f]  ;;  %v185_v46 = vmax.f32 %v780_v33, %v808_v38  ;;  %v239_v51 = vmax.f32 %v183_v40, %v834_v30  ;;  %v725_v0 = vld [vmem:[%s900_s11 + $0x59] sm:$0x3f] }
  0x22   : > { %598 = vst.msk [vmem:[%s953_s15 + $0x8] sm:$0x3f] %vm597_vm1, %v568_v34  ;;  %v514_v47 = vmax.f32 %v458_v35, %v803_v22  ;;  %v403_v48 = vmax.f32 %v347_v36, %v749_v24  ;;  %v182_v49 = vmax.f32 %v126_v44, %v154_v45  ;;  %v210_v50 = vld [vmem:[%s900_s11 + $0x4a] sm:$0x3f]  ;;  %v573_v55 = vmax.f32 %v517_v41, %v834_v30  ;;  %v128_v6 = vld [vmem:[%s900_s11 + $0x58] sm:$0x3f] }
  0x23   : > { %601 = vst.msk [vmem:[%s953_s15 + $0x20] sm:$0xff] %vm595_vm0, %v571_v27  ;;  %v805_v53 = vld [vmem:[%s900_s11 + $0x49] sm:$0x3f]  ;;  %v293_v56 = vmax.f32 %v236_v42, %v695_v26  ;;  %v463_v57 = vmax.f32 %v406_v43, %v780_v33  ;;  %v241_v59 = vmax.f32 %v185_v46, %v978_v39  ;;  %v296_v1 = vmax.f32 %v239_v51, %v780_v33  ;;  %v156_v7 = vld [vmem:[%s900_s11 + $0x59] sm:$0x3f]  ;;  %v812_v33 = vld [vmem:[%s900_s11 + $0x81] sm:$0xff] }
  0x24   : > { %v833_v54 = vld [vmem:[%s900_s11 + $0x4a] sm:$0x3f]  ;;  %v570_v60 = vmax.f32 %v514_v47, %v831_v9  ;;  %v460_v61 = vmax.f32 %v403_v48, %v777_v28  ;;  %v238_v63 = vmax.f32 %v182_v49, %v210_v50  ;;  %603 = vst.msk [vmem:[%s953_s15 + $0x30] sm:$0xff] %vm595_vm0, %v573_v55  ;;  %v187_v10 = vmax.f32 %v782_v52, %v995_v2  ;;  %v779_v12 = vld [vmem:[%s900_s11 + $0x58] sm:$0x3f]  ;;  %v840_v34 = vld [vmem:[%s900_s11 + $0x82] sm:$0xff] }
  0x25   : > { %v751_v62 = vld [vmem:[%s900_s11 + $0x4a] sm:$0x3f]  ;;  %v349_v3 = vmax.f32 %v293_v56, %v723_v37  ;;  %v519_v4 = vmax.f32 %v463_v57, %v808_v38  ;;  %v298_v8 = vmax.f32 %v241_v59, %v782_v52  ;;  %v352_v14 = vmax.f32 %v296_v1, %v808_v38  ;;  %v212_v16 = vld [vmem:[%s900_s11 + $0x5a] sm:$0x3f] }
  0x26   : > { %600 = vst.msk [vmem:[%s953_s15 + $0x18] sm:$0x3f] %vm597_vm1, %v570_v60  ;;  %v516_v11 = vmax.f32 %v460_v61, %v805_v53  ;;  %v295_v13 = vmax.f32 %v238_v63, %v697_v58  ;;  %v184_v15 = vmax.f32 %v128_v6, %v156_v7  ;;  %v807_v18 = vld [vmem:[%s900_s11 + $0x59] sm:$0x3f]  ;;  %v699_v21 = vld [vmem:[%s900_s11 + $0x68] sm:$0x3f]  ;;  %v243_v23 = vmax.f32 %v187_v10, %v1000_v5 }
  0x27   : > { %v405_v17 = vmax.f32 %v349_v3, %v751_v62  ;;  %v575_v19 = vmax.f32 %v519_v4, %v978_v39  ;;  %v753_v20 = vld [vmem:[%s900_s11 + $0x5a] sm:$0x3f]  ;;  %v354_v22 = vmax.f32 %v298_v8, %v995_v2  ;;  %v781_v27 = vld [vmem:[%s900_s11 + $0x68] sm:$0x3f]  ;;  %v408_v28 = vmax.f32 %v352_v14, %v978_v39  ;;  %v786_v62 = vld [vmem:[%s900_s11 + $0x90] sm:$0xff] }
  0x28   : > { %v572_v24 = vmax.f32 %v516_v11, %v833_v54  ;;  %v835_v25 = vld [vmem:[%s900_s11 + $0x5a] sm:$0x3f]  ;;  %v351_v9 = vmax.f32 %v295_v13, %v725_v0  ;;  %v240_v29 = vmax.f32 %v184_v15, %v212_v16  ;;  %v727_v30 = vld [vmem:[%s900_s11 + $0x69] sm:$0x3f]  ;;  %v300_v36 = vmax.f32 %v243_v23, %v784_v31  ;;  %v814_v63 = vld [vmem:[%s900_s11 + $0x91] sm:$0xff] }
  0x29   : > { %v462_v26 = vmax.f32 %v405_v17, %v779_v12  ;;  %605 = vst.msk [vmem:[%s953_s15 + $0x40] sm:$0xff] %vm595_vm0, %v575_v19  ;;  %v410_v32 = vmax.f32 %v354_v22, %v1000_v5  ;;  %v130_v35 = vld [vmem:[%s900_s11 + $0x68] sm:$0x3f]  ;;  %v465_v38 = vmax.f32 %v408_v28, %v782_v52  ;;  %v189_v42 = vmax.f32 %v784_v31, %v812_v33  ;;  %v783_v53 = vld [vmem:[%s900_s11 + $0x78] sm:$0x3f]  ;;  %v788_v19 = vld [vmem:[%s900_s11 + $0xa0] sm:$0xff] }
  0x2a   : > { %602 = vst.msk [vmem:[%s953_s15 + $0x28] sm:$0x3f] %vm597_vm1, %v572_v24  ;;  %v407_v37 = vmax.f32 %v351_v9, %v753_v20  ;;  %v297_v39 = vmax.f32 %v240_v29, %v699_v21  ;;  %v158_v40 = vld [vmem:[%s900_s11 + $0x69] sm:$0x3f]  ;;  %v356_v48 = vmax.f32 %v300_v36, %v812_v33  ;;  %v701_v54 = vld [vmem:[%s900_s11 + $0x78] sm:$0x3f]  ;;  %v191_v20 = vmax.f32 %v786_v62, %v814_v63 }
  0x2b   : > { %v214_v41 = vld [vmem:[%s900_s11 + $0x6a] sm:$0x3f]  ;;  %v518_v43 = vmax.f32 %v462_v26, %v807_v18  ;;  %v467_v46 = vmax.f32 %v410_v32, %v784_v31  ;;  %v186_v47 = vmax.f32 %v130_v35, %v158_v40  ;;  %v521_v51 = vmax.f32 %v465_v38, %v995_v2  ;;  %v811_v57 = vld [vmem:[%s900_s11 + $0x79] sm:$0x3f]  ;;  %v816_v9 = vld [vmem:[%s900_s11 + $0xa1] sm:$0xff] }
  0x2c   : > { %v809_v44 = vld [vmem:[%s900_s11 + $0x69] sm:$0x3f]  ;;  %v464_v49 = vmax.f32 %v407_v37, %v781_v27  ;;  %v353_v52 = vmax.f32 %v297_v39, %v727_v30  ;;  %v245_v55 = vmax.f32 %v189_v42, %v840_v34  ;;  %v729_v60 = vld [vmem:[%s900_s11 + $0x79] sm:$0x3f]  ;;  %v412_v61 = vmax.f32 %v356_v48, %v840_v34  ;;  %v790_v38 = vld [vmem:[%s900_s11 + $0xb0] sm:$0xff] }
  0x2d   : > { %v755_v45 = vld [vmem:[%s900_s11 + $0x6a] sm:$0x3f]  ;;  %v574_v56 = vmax.f32 %v518_v43, %v835_v25  ;;  %v523_v58 = vmax.f32 %v467_v46, %v812_v33  ;;  %v242_v59 = vmax.f32 %v186_v47, %v214_v41  ;;  %v577_v1 = vmax.f32 %v521_v51, %v1000_v5  ;;  %v132_v3 = vld [vmem:[%s900_s11 + $0x78] sm:$0x3f]  ;;  %v844_v30 = vld [vmem:[%s900_s11 + $0xa2] sm:$0xff] }
  0x2e   : > { %v837_v50 = vld [vmem:[%s900_s11 + $0x6a] sm:$0x3f]  ;;  %v520_v0 = vmax.f32 %v464_v49, %v809_v44  ;;  %v409_v2 = vmax.f32 %v353_v52, %v755_v45  ;;  %v160_v4 = vld [vmem:[%s900_s11 + $0x79] sm:$0x3f]  ;;  %v302_v7 = vmax.f32 %v245_v55, %v786_v62  ;;  %v469_v12 = vmax.f32 %v412_v61, %v786_v62 }
  0x2f   : > { %v216_v6 = vld [vmem:[%s900_s11 + $0x7a] sm:$0x3f]  ;;  %604 = vst.msk [vmem:[%s953_s15 + $0x38] sm:$0x3f] %vm597_vm1, %v574_v56  ;;  %v579_v10 = vmax.f32 %v523_v58, %v840_v34  ;;  %v299_v11 = vmax.f32 %v242_v59, %v701_v54  ;;  %v842_v13 = vld [vmem:[%s900_s11 + $0x92] sm:$0xff]  ;;  %v188_v5 = vmax.f32 %v132_v3, %v160_v4  ;;  %v193_v32 = vmax.f32 %v788_v19, %v816_v9 }
  0x30   : > { %v839_v8 = vld [vmem:[%s900_s11 + $0x7a] sm:$0x3f]  ;;  %v576_v14 = vmax.f32 %v520_v0, %v837_v50  ;;  %607 = vst.msk [vmem:[%s953_s15 + $0x50] sm:$0xff] %vm595_vm0, %v577_v1  ;;  %v466_v15 = vmax.f32 %v409_v2, %v783_v53  ;;  %v703_v17 = vld [vmem:[%s900_s11 + $0x88] sm:$0x3f]  ;;  %v358_v18 = vmax.f32 %v302_v7, %v814_v63  ;;  %v525_v23 = vmax.f32 %v469_v12, %v814_v63  ;;  %v818_v50 = vld [vmem:[%s900_s11 + $0xb1] sm:$0xff] }
  0x31   : > { %v757_v16 = vld [vmem:[%s900_s11 + $0x7a] sm:$0x3f]  ;;  %609 = vst.msk [vmem:[%s953_s15 + $0x60] sm:$0xff] %vm595_vm0, %v579_v10  ;;  %v355_v21 = vmax.f32 %v299_v11, %v729_v60  ;;  %v785_v22 = vld [vmem:[%s900_s11 + $0x88] sm:$0x3f]  ;;  %v244_v24 = vmax.f32 %v188_v5, %v216_v6  ;;  %v247_v26 = vmax.f32 %v191_v20, %v842_v13  ;;  %v249_v51 = vmax.f32 %v193_v32, %v844_v30  ;;  %v846_v55 = vld [vmem:[%s900_s11 + $0xb2] sm:$0xff] }
  0x32   : > { %v731_v25 = vld [vmem:[%s900_s11 + $0x89] sm:$0x3f]  ;;  %606 = vst.msk [vmem:[%s953_s15 + $0x48] sm:$0x3f] %vm597_vm1, %v576_v14  ;;  %v522_v27 = vmax.f32 %v466_v15, %v811_v57  ;;  %v414_v29 = vmax.f32 %v358_v18, %v842_v13  ;;  %v581_v34 = vmax.f32 %v525_v23, %v842_v13  ;;  %v787_v42 = vld [vmem:[%s900_s11 + $0x98] sm:$0x3f]  ;;  %v195_v57 = vmax.f32 %v790_v38, %v818_v50 }
  0x33   : > { %v813_v28 = vld [vmem:[%s900_s11 + $0x89] sm:$0x3f]  ;;  %v411_v33 = vmax.f32 %v355_v21, %v757_v16  ;;  %v301_v35 = vmax.f32 %v244_v24, %v703_v17  ;;  %v304_v45 = vmax.f32 %v247_v26, %v788_v19  ;;  %v705_v48 = vld [vmem:[%s900_s11 + $0x98] sm:$0x3f]  ;;  %v306_v62 = vmax.f32 %v249_v51, %v790_v38  ;;  %v792_v63 = vld [vmem:[%s900_s11 + $0xc0] sm:$0xff] }
  0x34   : > { %v134_v31 = vld [vmem:[%s900_s11 + $0x88] sm:$0x3f]  ;;  %v578_v39 = vmax.f32 %v522_v27, %v839_v8  ;;  %v471_v43 = vmax.f32 %v414_v29, %v788_v19  ;;  %611 = vst.msk [vmem:[%s953_s15 + $0x70] sm:$0xff] %vm595_vm0, %v581_v34  ;;  %v733_v49 = vld [vmem:[%s900_s11 + $0x99] sm:$0x3f]  ;;  %v251_v14 = vmax.f32 %v195_v57, %v846_v55 }
  0x35   : > { %v162_v36 = vld [vmem:[%s900_s11 + $0x89] sm:$0x3f]  ;;  %v468_v46 = vmax.f32 %v411_v33, %v785_v22  ;;  %v357_v47 = vmax.f32 %v301_v35, %v731_v25  ;;  %v360_v54 = vmax.f32 %v304_v45, %v816_v9  ;;  %v136_v56 = vld [vmem:[%s900_s11 + $0x98] sm:$0x3f]  ;;  %v362_v13 = vmax.f32 %v306_v62, %v818_v50  ;;  %v820_v5 = vld [vmem:[%s900_s11 + $0xc1] sm:$0xff] }
  0x36   : > { %v218_v37 = vld [vmem:[%s900_s11 + $0x8a] sm:$0x3f]  ;;  %v190_v44 = vmax.f32 %v134_v31, %v162_v36  ;;  %608 = vst.msk [vmem:[%s953_s15 + $0x58] sm:$0x3f] %vm597_vm1, %v578_v39  ;;  %v527_v52 = vmax.f32 %v471_v43, %v816_v9  ;;  %v164_v60 = vld [vmem:[%s900_s11 + $0x99] sm:$0x3f]  ;;  %v197_v21 = vmax.f32 %v792_v63, %v820_v5  ;;  %v308_v27 = vmax.f32 %v251_v14, %v792_v63 }
  0x37   : > { %v841_v40 = vld [vmem:[%s900_s11 + $0x8a] sm:$0x3f]  ;;  %v524_v58 = vmax.f32 %v468_v46, %v813_v28  ;;  %v220_v61 = vld [vmem:[%s900_s11 + $0x9a] sm:$0x3f]  ;;  %v416_v6 = vmax.f32 %v360_v54, %v844_v30  ;;  %v192_v7 = vmax.f32 %v136_v56, %v164_v60  ;;  %v848_v18 = vld [vmem:[%s900_s11 + $0xc2] sm:$0xff]  ;;  %v418_v24 = vmax.f32 %v362_v13, %v846_v55 }
  0x38   : > { %v759_v41 = vld [vmem:[%s900_s11 + $0x8a] sm:$0x3f]  ;;  %v246_v53 = vmax.f32 %v190_v44, %v218_v37  ;;  %v815_v0 = vld [vmem:[%s900_s11 + $0x99] sm:$0x3f]  ;;  %v583_v2 = vmax.f32 %v527_v52, %v844_v30  ;;  %v253_v33 = vmax.f32 %v197_v21, %v848_v18  ;;  %v822_v45 = vld [vmem:[%s900_s11 + $0xd1] sm:$0xff] }
  0x39   : > { %v413_v59 = vmax.f32 %v357_v47, %v759_v41  ;;  %v843_v1 = vld [vmem:[%s900_s11 + $0x9a] sm:$0x3f]  ;;  %v580_v8 = vmax.f32 %v524_v58, %v841_v40  ;;  %v789_v11 = vld [vmem:[%s900_s11 + $0xa8] sm:$0x3f]  ;;  %v473_v16 = vmax.f32 %v416_v6, %v790_v38  ;;  %v248_v17 = vmax.f32 %v192_v7, %v220_v61  ;;  %v794_v41 = vld [vmem:[%s900_s11 + $0xd0] sm:$0xff] }
  0x3a   : > { %v303_v3 = vmax.f32 %v246_v53, %v705_v48  ;;  %v761_v4 = vld [vmem:[%s900_s11 + $0x9a] sm:$0x3f]  ;;  %v707_v12 = vld [vmem:[%s900_s11 + $0xa8] sm:$0x3f]  ;;  %613 = vst.msk [vmem:[%s953_s15 + $0x80] sm:$0xff] %vm595_vm0, %v583_v2  ;;  %v475_v37 = vmax.f32 %v418_v24, %v792_v63  ;;  %v364_v40 = vmax.f32 %v308_v27, %v820_v5  ;;  %v850_v46 = vld [vmem:[%s900_s11 + $0xd2] sm:$0xff]  ;;  %v310_v48 = vmax.f32 %v253_v33, %v794_v41 }
  0x3b   : > { %v470_v10 = vmax.f32 %v413_v59, %v787_v42  ;;  %v138_v19 = vld [vmem:[%s900_s11 + $0xa8] sm:$0x3f]  ;;  %610 = vst.msk [vmem:[%s953_s15 + $0x68] sm:$0x3f] %vm597_vm1, %v580_v8  ;;  %v529_v30 = vmax.f32 %v473_v16, %v818_v50  ;;  %v305_v31 = vmax.f32 %v248_v17, %v707_v12  ;;  %v709_v32 = vld [vmem:[%s900_s11 + $0xb8] sm:$0x3f]  ;;  %v199_v54 = vmax.f32 %v794_v41, %v822_v45 }
  0x3c   : > { %v359_v15 = vmax.f32 %v303_v3, %v733_v49  ;;  %v166_v20 = vld [vmem:[%s900_s11 + $0xa9] sm:$0x3f]  ;;  %v791_v36 = vld [vmem:[%s900_s11 + $0xb8] sm:$0x3f]  ;;  %v531_v49 = vmax.f32 %v475_v37, %v820_v5  ;;  %v420_v51 = vmax.f32 %v364_v40, %v848_v18  ;;  %v366_v60 = vmax.f32 %v310_v48, %v822_v45  ;;  %v796_v61 = vld [vmem:[%s900_s11 + $0xe0] sm:$0xff] }
  0x3d   : > { %v526_v22 = vmax.f32 %v470_v10, %v815_v0  ;;  %v735_v23 = vld [vmem:[%s900_s11 + $0xa9] sm:$0x3f]  ;;  %v194_v25 = vmax.f32 %v138_v19, %v166_v20  ;;  %v737_v39 = vld [vmem:[%s900_s11 + $0xb9] sm:$0x3f]  ;;  %v585_v43 = vmax.f32 %v529_v30, %v846_v55  ;;  %v824_v13 = vld [vmem:[%s900_s11 + $0xe1] sm:$0xff] }
  0x3e   : > { %v222_v9 = vld [vmem:[%s900_s11 + $0xaa] sm:$0x3f]  ;;  %v415_v28 = vmax.f32 %v359_v15, %v761_v4  ;;  %v361_v44 = vmax.f32 %v305_v31, %v735_v23  ;;  %v140_v47 = vld [vmem:[%s900_s11 + $0xb8] sm:$0x3f]  ;;  %v587_v63 = vmax.f32 %v531_v49, %v848_v18  ;;  %v477_v2 = vmax.f32 %v420_v51, %v794_v41  ;;  %v852_v21 = vld [vmem:[%s900_s11 + $0xe2] sm:$0xff] }
  0x3f   : > { %v817_v29 = vld [vmem:[%s900_s11 + $0xa9] sm:$0x3f]  ;;  %v582_v34 = vmax.f32 %v526_v22, %v843_v1  ;;  %v250_v38 = vmax.f32 %v194_v25, %v222_v9  ;;  %v168_v52 = vld [vmem:[%s900_s11 + $0xb9] sm:$0x3f]  ;;  %615 = vst.msk [vmem:[%s953_s15 + $0x90] sm:$0xff] %vm595_vm0, %v585_v43  ;;  %v255_v4 = vmax.f32 %v199_v54, %v850_v46  ;;  %v422_v12 = vmax.f32 %v366_v60, %v850_v46  ;;  %v826_v43 = vld [vmem:[%s900_s11 + $0xf1] sm:$0xff] }
  0x40   : > { %v763_v26 = vld [vmem:[%s900_s11 + $0xaa] sm:$0x3f]  ;;  %v472_v42 = vmax.f32 %v415_v28, %v789_v11  ;;  %v224_v53 = vld [vmem:[%s900_s11 + $0xba] sm:$0x3f]  ;;  %v196_v59 = vmax.f32 %v140_v47, %v168_v52  ;;  %617 = vst.msk [vmem:[%s953_s15 + $0xa0] sm:$0xff] %vm595_vm0, %v587_v63  ;;  %v533_v14 = vmax.f32 %v477_v2, %v822_v45  ;;  %v854_v54 = vld [vmem:[%s900_s11 + $0xf2] sm:$0xff] }
  0x41   : > { %v845_v35 = vld [vmem:[%s900_s11 + $0xaa] sm:$0x3f]  ;;  %612 = vst.msk [vmem:[%s953_s15 + $0x78] sm:$0x3f] %vm597_vm1, %v582_v34  ;;  %v307_v50 = vmax.f32 %v250_v38, %v709_v32  ;;  %v417_v56 = vmax.f32 %v361_v44, %v763_v26  ;;  %v819_v57 = vld [vmem:[%s900_s11 + $0xb9] sm:$0x3f]  ;;  %v312_v17 = vmax.f32 %v255_v4, %v796_v61  ;;  %v479_v20 = vmax.f32 %v422_v12, %v796_v61 }
  0x42   : > { %v528_v55 = vmax.f32 %v472_v42, %v817_v29  ;;  %v765_v58 = vld [vmem:[%s900_s11 + $0xba] sm:$0x3f]  ;;  %v793_v1 = vld [vmem:[%s900_s11 + $0xc8] sm:$0x3f]  ;;  %v252_v10 = vmax.f32 %v196_v59, %v224_v53  ;;  %v589_v9 = vmax.f32 %v533_v14, %v850_v46 }
  0x43   : > { %v847_v62 = vld [vmem:[%s900_s11 + $0xba] sm:$0x3f]  ;;  %v363_v0 = vmax.f32 %v307_v50, %v737_v39  ;;  %v711_v3 = vld [vmem:[%s900_s11 + $0xc8] sm:$0x3f]  ;;  %v474_v7 = vmax.f32 %v417_v56, %v791_v36  ;;  %v368_v29 = vmax.f32 %v312_v17, %v824_v13  ;;  %v535_v32 = vmax.f32 %v479_v20, %v824_v13 }
  0x44   : > { %v584_v6 = vmax.f32 %v528_v55, %v845_v35  ;;  %v821_v8 = vld [vmem:[%s900_s11 + $0xc9] sm:$0x3f]  ;;  %v309_v19 = vmax.f32 %v252_v10, %v711_v3  ;;  %v713_v28 = vld [vmem:[%s900_s11 + $0xd8] sm:$0x3f]  ;;  %v798_v35 = vld [vmem:[%s900_s11 + $0xf0] sm:$0xff]  ;;  %619 = vst.msk [vmem:[%s953_s15 + $0xb0] sm:$0xff] %vm595_vm0, %v589_v9 }
  0x45   : > { %v739_v11 = vld [vmem:[%s900_s11 + $0xc9] sm:$0x3f]  ;;  %v419_v5 = vmax.f32 %v363_v0, %v765_v58  ;;  %v530_v18 = vmax.f32 %v474_v7, %v819_v57  ;;  %v795_v26 = vld [vmem:[%s900_s11 + $0xd8] sm:$0x3f]  ;;  %v424_v37 = vmax.f32 %v368_v29, %v852_v21  ;;  %v591_v41 = vmax.f32 %v535_v32, %v852_v21 }
  0x46   : > { %v142_v15 = vld [vmem:[%s900_s11 + $0xc8] sm:$0x3f]  ;;  %614 = vst.msk [vmem:[%s953_s15 + $0x88] sm:$0x3f] %vm597_vm1, %v584_v6  ;;  %v365_v31 = vmax.f32 %v309_v19, %v739_v11  ;;  %v741_v34 = vld [vmem:[%s900_s11 + $0xd9] sm:$0x3f] }
  0x47   : > { %v170_v16 = vld [vmem:[%s900_s11 + $0xc9] sm:$0x3f]  ;;  %v476_v24 = vmax.f32 %v419_v5, %v793_v1  ;;  %v586_v30 = vmax.f32 %v530_v18, %v847_v62  ;;  %v144_v38 = vld [vmem:[%s900_s11 + $0xd8] sm:$0x3f]  ;;  %v481_v49 = vmax.f32 %v424_v37, %v798_v35  ;;  %621 = vst.msk [vmem:[%s953_s15 + $0xc0] sm:$0xff] %vm595_vm0, %v591_v41 }
  0x48   : > { %v198_v22 = vmax.f32 %v142_v15, %v170_v16  ;;  %v226_v23 = vld [vmem:[%s900_s11 + $0xca] sm:$0x3f]  ;;  %v172_v39 = vld [vmem:[%s900_s11 + $0xd9] sm:$0x3f] }
  0x49   : > { %v849_v25 = vld [vmem:[%s900_s11 + $0xca] sm:$0x3f]  ;;  %v532_v36 = vmax.f32 %v476_v24, %v821_v8  ;;  %616 = vst.msk [vmem:[%s953_s15 + $0x98] sm:$0x3f] %vm597_vm1, %v586_v30  ;;  %v200_v44 = vmax.f32 %v144_v38, %v172_v39  ;;  %v228_v45 = vld [vmem:[%s900_s11 + $0xda] sm:$0x3f]  ;;  %v537_v57 = vmax.f32 %v481_v49, %v826_v43 }
  0x4a   : > { %v767_v27 = vld [vmem:[%s900_s11 + $0xca] sm:$0x3f]  ;;  %v254_v33 = vmax.f32 %v198_v22, %v226_v23  ;;  %v823_v47 = vld [vmem:[%s900_s11 + $0xd9] sm:$0x3f] }
  0x4b   : > { %v421_v40 = vmax.f32 %v365_v31, %v767_v27  ;;  %v588_v46 = vmax.f32 %v532_v36, %v849_v25  ;;  %v769_v48 = vld [vmem:[%s900_s11 + $0xda] sm:$0x3f]  ;;  %v715_v50 = vld [vmem:[%s900_s11 + $0xe8] sm:$0x3f]  ;;  %v256_v55 = vmax.f32 %v200_v44, %v228_v45  ;;  %v593_v63 = vmax.f32 %v537_v57, %v854_v54 }
  0x4c   : > { %v311_v42 = vmax.f32 %v254_v33, %v713_v28  ;;  %v851_v52 = vld [vmem:[%s900_s11 + $0xda] sm:$0x3f]  ;;  %v797_v56 = vld [vmem:[%s900_s11 + $0xe8] sm:$0x3f] }
  0x4d   : > { %v478_v51 = vmax.f32 %v421_v40, %v795_v26  ;;  %618 = vst.msk [vmem:[%s953_s15 + $0xa8] sm:$0x3f] %vm597_vm1, %v588_v46  ;;  %v743_v58 = vld [vmem:[%s900_s11 + $0xe9] sm:$0x3f]  ;;  %v313_v61 = vmax.f32 %v256_v55, %v715_v50  ;;  %v799_v6 = vld [vmem:[%s900_s11 + $0xf8] sm:$0x3f] }
  0x4e   : > { %v367_v53 = vmax.f32 %v311_v42, %v741_v34  ;;  %v825_v62 = vld [vmem:[%s900_s11 + $0xe9] sm:$0x3f]  ;;  %623 = vst.msk [vmem:[%s953_s15 + $0xd0] sm:$0xff] %vm595_vm0, %v593_v63  ;;  %v827_v10 = vld [vmem:[%s900_s11 + $0xf9] sm:$0x3f] }
  0x4f   : > { %v534_v59 = vmax.f32 %v478_v51, %v823_v47  ;;  %v771_v0 = vld [vmem:[%s900_s11 + $0xea] sm:$0x3f]  ;;  %v369_v3 = vmax.f32 %v313_v61, %v743_v58  ;;  %v855_v13 = vld [vmem:[%s900_s11 + $0xfa] sm:$0x3f] }
  0x50   : > { %v423_v60 = vmax.f32 %v367_v53, %v769_v48  ;;  %v853_v4 = vld [vmem:[%s900_s11 + $0xea] sm:$0x3f] }
  0x51   : > { %v590_v1 = vmax.f32 %v534_v59, %v851_v52  ;;  %v425_v8 = vmax.f32 %v369_v3, %v771_v0 }
  0x52   : > { %v480_v2 = vmax.f32 %v423_v60, %v797_v56 }
  0x53   : > { %620 = vst.msk [vmem:[%s953_s15 + $0xb8] sm:$0x3f] %vm597_vm1, %v590_v1  ;;  %v482_v12 = vmax.f32 %v425_v8, %v799_v6 }
  0x54   : > { %v536_v7 = vmax.f32 %v480_v2, %v825_v62 }
  0x55   : > { %v538_v5 = vmax.f32 %v482_v12, %v827_v10 }
  0x56   : > { %v592_v11 = vmax.f32 %v536_v7, %v853_v4 }
  0x57   : > { %v594_v14 = vmax.f32 %v538_v5, %v855_v13 }
  0x58   : > { %622 = vst.msk [vmem:[%s953_s15 + $0xc8] sm:$0x3f] %vm597_vm1, %v592_v11 }
  0x59   : > { %624 = vst.msk [vmem:[%s953_s15 + $0xd8] sm:$0x3f] %vm597_vm1, %v594_v14 }
  0x5a PF: > { %s11_s6 = sadd.s32 1, %s874_s6  }
  0x5b   : > { %p8_p4 = scmp.ge.s32.totalorder %s11_s6, 4  }
  0x5d   :  { %10 = sbr.rel (!%p8_p4) target bundleno = 1 (0x1), region = 56 }

// kernel: inception_block_b.6
= control target key start
LH: loop header
LB: loop body
LE: loop exit
PB: predicated region body
PF: predicated region fallthrough
CT: control target
= control target key end

     0   :  { %s1705_s15 = smov 0   ;;  %s1707_s16 = smov 0   ;;  %s2062_s0 = inlined_call_operand.vmem [shape: bf16[2,56,864], index: 0, kind: input, shape index: {}]   ;;  %s2063_s1 = inlined_call_operand.vmem [shape: bf16[864,96], index: 1, kind: input, shape index: {}]   ;;  %s2064_s2 = inlined_call_operand.vmem [shape: f32[1,96], index: 2, kind: input, shape index: {}]   ;;  %s2065_s3 = inlined_call_operand.vmem [shape: f32[1,96], index: 3, kind: input, shape index: {}]   ;;  %s2066_s4 = inlined_call_operand.vmem [shape: f32[2,56,96], index: 4, kind: output, shape index: {}]  }
   0x1   :  { %s1709_s17 = smov 0  }
   0x2 LB: > { %s26_s18 = sadd.s32 1, %s1674_s16  ;;  %p1222_p0 = scmp.ge.s32.totalorder %s1678_s17, 1  ;;  %s1678_s17 = sphi %s1709_s17, %s14_s17   ;;  %s1674_s16 = sphi %s1707_s16, %s2068_s16   ;;  %s1670_s15 = sphi %s1705_s15, %s2067_s15  }
   0x3   : > { %p28_p1 = scmp.ge.s32.totalorder %s26_s18, 2  ;;  %p201_p2 = scmp.lt.s32.totalorder %s1678_s17, 3 }
   0x5   : > { %s2070_s18 = smov (%p28_p1, %s26_s18), 0  ;;  %p202_p3 = pnand %p1222_p0, %p201_p2 }
   0x6   : > { %p240_p4 = scmp.lt.s32.totalorder (!%p202_p3), %s1670_s15, 1 }
   0x7   : > { %205 = sbr.rel (%p202_p3) target bundleno = 291 (0x123), region = 36 }
   0xc   : > { %v1559_v0 = vld [vmem:[%s2063_s1 + $0x38] sm:$0xff]  ;;  %v1558_v3 = vld [vmem:[%s2063_s1 + $0x30] sm:$0xff]  ;;  %v1557_v6 = vld [vmem:[%s2063_s1 + $0x28] sm:$0xff]  ;;  %s2072_s15 = smov (!%p240_p4, %s1670_s15), 1  ;;  %vm853_vm0 = vcmask 785408  }
   0xd   : > { %v1567_v1 = vld [vmem:[%s2063_s1 + $0x78] sm:$0xff]  ;;  %866 = vmatpush.bf16.msra.mxu0 %v1559_v0  ;;  %1606 = vmatpush.bf16.msra.mxu3 %v1559_v0  ;;  %v1566_v4 = vld [vmem:[%s2063_s1 + $0x70] sm:$0xff]  ;;  %v1565_v7 = vld [vmem:[%s2063_s1 + $0x68] sm:$0xff]  ;;  %s1628_s29 = smul.u32 196, %s2072_s15 }
   0xe   : > { %v1575_v2 = vld [vmem:[%s2063_s1 + $0xb8] sm:$0xff]  ;;  %894 = vmatpush.bf16.msra.mxu1 %v1567_v1  ;;  %v1574_v5 = vld [vmem:[%s2063_s1 + $0xb0] sm:$0xff]  ;;  %v1573_v8 = vld [vmem:[%s2063_s1 + $0xa8] sm:$0xff]  ;;  %s1629_s27 = smul.u32 56, %s2072_s15 }
   0xf   : > { %922 = vmatpush.bf16.msra.mxu2 %v1575_v2  ;;  %v1556_v9 = vld [vmem:[%s2063_s1 + $0x20] sm:$0xff]  ;;  %v1555_v12 = vld [vmem:[%s2063_s1 + $0x18] sm:$0xff]  ;;  %v1554_v15 = vld [vmem:[%s2063_s1 + $0x10] sm:$0xff]  ;;  %s1790_s12 = scalar_lea.vmem %s2062_s0, %s1628_s29 }
  0x10   : > { %v1564_v10 = vld [vmem:[%s2063_s1 + $0x60] sm:$0xff]  ;;  %v1563_v13 = vld [vmem:[%s2063_s1 + $0x58] sm:$0xff]  ;;  %v1562_v16 = vld [vmem:[%s2063_s1 + $0x50] sm:$0xff]  ;;  %s2019_s30 = scalar_lea.vmem %s2066_s4, %s1629_s27 }
  0x11   : > { %867 = vmatpush.bf16.msra.mxu0 %v1558_v3  ;;  %1607 = vmatpush.bf16.msra.mxu3 %v1558_v3  ;;  %v1572_v11 = vld [vmem:[%s2063_s1 + $0xa0] sm:$0xff]  ;;  %v1571_v14 = vld [vmem:[%s2063_s1 + $0x98] sm:$0xff]  ;;  %v1570_v17 = vld [vmem:[%s2063_s1 + $0x90] sm:$0xff] }
  0x12   : > { %895 = vmatpush.bf16.msra.mxu1 %v1566_v4  ;;  %v1553_v18 = vld [vmem:[%s2063_s1 + $0x8] sm:$0xff]  ;;  %v1552_v21 = vld [vmem:[%s2063_s1] sm:$0xff]  ;;  %v1534_v25 = vld [vmem:[%s1790_s12 + $0x18] sm:$0xf0] }
  0x13   : > { %923 = vmatpush.bf16.msra.mxu2 %v1574_v5  ;;  %v1561_v19 = vld [vmem:[%s2063_s1 + $0x48] sm:$0xff]  ;;  %v1560_v22 = vld [vmem:[%s2063_s1 + $0x40] sm:$0xff]  ;;  %v1283_v26 = vld [vmem:[%s1790_s12 + $0x70] sm:$0xf] }
  0x14   : > { %v1569_v20 = vld [vmem:[%s2063_s1 + $0x88] sm:$0xff]  ;;  %v1568_v23 = vld [vmem:[%s2063_s1 + $0x80] sm:$0xff]  ;;  %v1583_v33 = vld [vmem:[%s2063_s1 + $0xf8] sm:$0xff] }
  0x15   : > { %868 = vmatpush.bf16.msra.mxu0 %v1557_v6  ;;  %1608 = vmatpush.bf16.msra.mxu3 %v1557_v6  ;;  %v1227_v24 = vld [vmem:[%s1790_s12] sm:$0xf]  ;;  %v1548_v27 = vld [vmem:[%s1790_s12 + $0x88] sm:$0xf0]  ;;  %v1531_v28 = vld [vmem:[%s1790_s12 + $0x4] sm:$0xf] }
  0x16   : > { %896 = vmatpush.bf16.msra.mxu1 %v1565_v7  ;;  %v1229_v29 = vld [vmem:[%s1790_s12 + $0x1c] sm:$0xf0]  ;;  %v1235_v30 = vld [vmem:[%s1790_s12 + $0x8] sm:$0xf]  ;;  %v1535_v31 = vld [vmem:[%s1790_s12 + $0x20] sm:$0xf0]  ;;  %v1228_v34 = vor.u32 %v1534_v25, %v1227_v24  ;;  %v1284_v35 = vor.u32 %v1548_v27, %v1283_v26 }
  0x17   : > { %924 = vmatpush.bf16.msra.mxu2 %v1573_v8  ;;  %v1818_v32 = vld [vmem:[%s2063_s1 + $0x1a8] sm:$0xff]  ;;  %v1232_v36 = vor.u32 %v1531_v28, %v1229_v29  ;;  %v1236_v37 = vor.u32 %v1535_v31, %v1235_v30  ;;  %v1591_v38 = vld [vmem:[%s2063_s1 + $0x138] sm:$0xff]  ;;  %v1582_v40 = vld [vmem:[%s2063_s1 + $0xf0] sm:$0xff] }
  0x18   : > { %v1829_v39 = vld [vmem:[%s2063_s1 + $0x178] sm:$0xff]  ;;  %v1838_v41 = vld [vmem:[%s2063_s1 + $0x1a0] sm:$0xff]  ;;  %v1590_v42 = vld [vmem:[%s2063_s1 + $0x130] sm:$0xff] }
  0x19   : > { %869 = vmatpush.bf16.msra.mxu0 %v1556_v9  ;;  %1609 = vmatpush.bf16.msra.mxu3 %v1556_v9  ;;  %v1847_v43 = vld [vmem:[%s2063_s1 + $0x170] sm:$0xff]  ;;  %v1581_v44 = vld [vmem:[%s2063_s1 + $0xe8] sm:$0xff]  ;;  %v1856_v45 = vld [vmem:[%s2063_s1 + $0x198] sm:$0xff] }
  0x1a   : > { %897 = vmatpush.bf16.msra.mxu1 %v1564_v10  ;;  %v1859_v46 = vld [vmem:[%s1790_s12 + $0xa8] sm:$0xff]  ;;  %v1580_v49 = vld [vmem:[%s2063_s1 + $0xe0] sm:$0xff]  ;;  %v1877_v50 = vld [vmem:[%s2063_s1 + $0x190] sm:$0xff] }
  0x1b   : > { %925 = vmatpush.bf16.msra.mxu2 %v1572_v11  ;;  %v1589_v47 = vld [vmem:[%s2063_s1 + $0x128] sm:$0xff]  ;;  %v1588_v51 = vld [vmem:[%s2063_s1 + $0x120] sm:$0xff]  ;;  %v1255_v52 = vld [vmem:[%s1790_s12 + $0x38] sm:$0xf]  ;;  %v470_v53 = vunpack.c.l.b16 %v1859_v46  ;;  %v471_v27 = vunpack.c.h.b16 %v1859_v46 }
  0x1c   : > { %v1868_v48 = vld [vmem:[%s2063_s1 + $0x168] sm:$0xff]  ;;  %v1541_v54 = vld [vmem:[%s1790_s12 + $0x50] sm:$0xf0]  ;;  %v1538_v55 = vld [vmem:[%s1790_s12 + $0x3c] sm:$0xf] }
  0x1d   : > { %870 = vmatpush.bf16.msra.mxu0 %v1555_v12  ;;  %1610 = vmatpush.bf16.msra.mxu3 %v1555_v12  ;;  %v1257_v56 = vld [vmem:[%s1790_s12 + $0x54] sm:$0xf0]  ;;  %v1263_v57 = vld [vmem:[%s1790_s12 + $0x40] sm:$0xf]  ;;  %v1542_v58 = vld [vmem:[%s1790_s12 + $0x58] sm:$0xf0]  ;;  %v1256_v62 = vor.u32 %v1541_v54, %v1255_v52  ;;  %v498_v63 = vpack.c.b16 %v470_v53, %v470_v53 }
  0x1e   : > { %898 = vmatpush.bf16.msra.mxu1 %v1563_v13  ;;  %v1893_v59 = vld [vmem:[%s2063_s1 + $0x160] sm:$0xff]  ;;  %v1579_v60 = vld [vmem:[%s2063_s1 + $0xd8] sm:$0xff]  ;;  %v1902_v61 = vld [vmem:[%s2063_s1 + $0x188] sm:$0xff]  ;;  %v1260_v0 = vor.u32 %v1538_v55, %v1257_v56  ;;  %v1264_v1 = vor.u32 %v1542_v58, %v1263_v57 }
  0x1f   : > { %926 = vmatpush.bf16.msra.mxu2 %v1571_v14  ;;  %v1587_v2 = vld [vmem:[%s2063_s1 + $0x118] sm:$0xff]  ;;  %v1578_v4 = vld [vmem:[%s2063_s1 + $0xd0] sm:$0xff]  ;;  %v1600_v7 = vld [vmem:[%s2063_s1 + $0x180] sm:$0xff] }
  0x20   : > { %v1911_v3 = vld [vmem:[%s2063_s1 + $0x158] sm:$0xff]  ;;  %v1586_v5 = vld [vmem:[%s2063_s1 + $0x110] sm:$0xff]  ;;  %v1577_v8 = vld [vmem:[%s2063_s1 + $0xc8] sm:$0xff] }
  0x21   : > { %871 = vmatpush.bf16.msra.mxu0 %v1554_v15  ;;  %1611 = vmatpush.bf16.msra.mxu3 %v1554_v15  ;;  %v1594_v6 = vld [vmem:[%s2063_s1 + $0x150] sm:$0xff]  ;;  %v1585_v9 = vld [vmem:[%s2063_s1 + $0x108] sm:$0xff]  ;;  %v1576_v11 = vld [vmem:[%s2063_s1 + $0xc0] sm:$0xff] }
  0x22   : > { %899 = vmatpush.bf16.msra.mxu1 %v1562_v16  ;;  %v1593_v10 = vld [vmem:[%s2063_s1 + $0x148] sm:$0xff]  ;;  %v1584_v12 = vld [vmem:[%s2063_s1 + $0x100] sm:$0xff]  ;;  %v1545_v13 = vld [vmem:[%s1790_s12 + $0x74] sm:$0xf] }
  0x23   : > { %927 = vmatpush.bf16.msra.mxu2 %v1570_v17  ;;  %v1285_v14 = vld [vmem:[%s1790_s12 + $0x8c] sm:$0xf0]  ;;  %v1532_v15 = vld [vmem:[%s1790_s12 + $0xc] sm:$0xf]  ;;  %v1237_v16 = vld [vmem:[%s1790_s12 + $0x24] sm:$0xf0] }
  0x24   : > { %v1291_v17 = vld [vmem:[%s1790_s12 + $0x78] sm:$0xf]  ;;  %v289_v26 = vld [vmem:[%s1790_s12 + $0xb0] sm:$0xff]  ;;  %v1539_v29 = vld [vmem:[%s1790_s12 + $0x44] sm:$0xf] }
  0x25   : > { %872 = vmatpush.bf16.msra.mxu0 %v1553_v18  ;;  %1612 = vmatpush.bf16.msra.mxu3 %v1553_v18  ;;  %v1549_v18 = vld [vmem:[%s1790_s12 + $0x90] sm:$0xf0]  ;;  %v472_v28 = vunpack.c.l.b16 %v289_v26  ;;  %v1265_v30 = vld [vmem:[%s1790_s12 + $0x5c] sm:$0xf0]  ;;  %v1271_v31 = vld [vmem:[%s1790_s12 + $0x48] sm:$0xf] }
  0x26   : > { %900 = vmatpush.bf16.msra.mxu1 %v1561_v19  ;;  %v1592_v19 = vld [vmem:[%s2063_s1 + $0x140] sm:$0xff]  ;;  %v1292_v24 = vor.u32 %v1549_v18, %v1291_v17  ;;  %v1279_v54 = vld [vmem:[%s1790_s12 + $0x50] sm:$0xf]  ;;  %v1544_v55 = vld [vmem:[%s1790_s12 + $0x68] sm:$0xf0] }
  0x27   : > { %928 = vmatpush.bf16.msra.mxu2 %v1569_v20  ;;  %v1243_v20 = vld [vmem:[%s1790_s12 + $0x10] sm:$0xf]  ;;  %v1301_v53 = vld [vmem:[%s1790_s12 + $0x9c] sm:$0xf0]  ;;  %v1280_v58 = vor.u32 %v1544_v55, %v1279_v54 }
  0x29   : > { %873 = vmatpush.bf16.msra.mxu0 %v1552_v21  ;;  %1613 = vmatpush.bf16.msra.mxu3 %v1552_v21  ;;  %v1536_v21 = vld [vmem:[%s1790_s12 + $0x28] sm:$0xf0] }
  0x2a   : > { %901 = vmatpush.bf16.msra.mxu1 %v1560_v22  ;;  %v1240_v22 = vor.u32 %v1532_v15, %v1237_v16  ;;  %v1244_v25 = vor.u32 %v1536_v21, %v1243_v20 }
  0x2b   : > { %929 = vmatpush.bf16.msra.mxu2 %v1568_v23  ;;  %v1288_v23 = vor.u32 %v1545_v13, %v1285_v14 }
  0x2c   : > { %874 = vmatmul.bf16.vlgmr.msra.gmra.mxu0 %v1228_v34  ;;  %884 = vmatmul.bf16.vlgmr.msra.gmra.mxu3 %v1284_v35  ;;  %v499_v34 = vpack.c.b16 %v471_v27, %v471_v27  ;;  %v500_v35 = vpack.c.b16 %v472_v28, %v472_v28 }
  0x2d   : > { %950 = vmatpush.bf16.msrb.mxu3 %v1583_v33  ;;  %902 = vmatmul.bf16.vlgmr.msra.gmra.mxu1 %v1232_v36  ;;  %v1268_v33 = vor.u32 %v1539_v29, %v1265_v30 }
  0x2e   : > { %930 = vmatmul.bf16.vlgmr.msra.gmra.mxu2 %v1236_v37  ;;  %978 = vmatpush.bf16.msrb.mxu0 %v1591_v38  ;;  %v1546_v37 = vld [vmem:[%s1790_s12 + $0x7c] sm:$0xf]  ;;  %v1293_v38 = vld [vmem:[%s1790_s12 + $0x94] sm:$0xf0] }
  0x2f   : > { %1036 = vmatpush.bf16.msrb.mxu2 %v1818_v32  ;;  %1614 = vmatpush.bf16.msrb.mxu1 %v1829_v39 }
  0x31   : > { %951 = vmatpush.bf16.msrb.mxu3 %v1582_v40  ;;  %v1273_v40 = vld [vmem:[%s1790_s12 + $0x64] sm:$0xf0] }
  0x32   : > { %979 = vmatpush.bf16.msrb.mxu0 %v1590_v42  ;;  %v1537_v42 = vld [vmem:[%s1790_s12 + $0x30] sm:$0xf0] }
  0x33   : > { %1037 = vmatpush.bf16.msrb.mxu2 %v1838_v41  ;;  %1615 = vmatpush.bf16.msrb.mxu1 %v1847_v43 }
  0x35   : > { %952 = vmatpush.bf16.msrb.mxu3 %v1581_v44  ;;  %v1550_v44 = vld [vmem:[%s1790_s12 + $0x98] sm:$0xf0] }
  0x36   : > { %980 = vmatpush.bf16.msrb.mxu0 %v1589_v47 }
  0x37   : > { %1038 = vmatpush.bf16.msrb.mxu2 %v1856_v45  ;;  %1616 = vmatpush.bf16.msrb.mxu1 %v1868_v48 }
  0x39   : > { %953 = vmatpush.bf16.msrb.mxu3 %v1580_v49  ;;  %v290_v49 = vld [vmem:[%s1790_s12 + $0xb8] sm:$0xff] }
  0x3a   : > { %981 = vmatpush.bf16.msrb.mxu0 %v1588_v51  ;;  %v1547_v51 = vld [vmem:[%s1790_s12 + $0x84] sm:$0xf]  ;;  %v474_v52 = vunpack.c.l.b16 %v290_v49 }
  0x3b   : > { %1039 = vmatpush.bf16.msrb.mxu2 %v1877_v50  ;;  %1617 = vmatpush.bf16.msrb.mxu1 %v1893_v59  ;;  %v1304_v57 = vor.u32 %v1547_v51, %v1301_v53 }
  0x3c   : > { %879 = vmatmul.bf16.gmra.mxu0 %v1256_v62  ;;  %889 = vmatmul.bf16.gmra.mxu3 %v498_v63  ;;  %v475_v62 = vunpack.c.h.b16 %v290_v49  ;;  %v1307_v63 = vld [vmem:[%s1790_s12 + $0x88] sm:$0xf] }
  0x3d   : > { %954 = vmatpush.bf16.msrb.mxu3 %v1579_v60  ;;  %907 = vmatmul.bf16.gmra.mxu1 %v1260_v0  ;;  %v291_v60 = vld [vmem:[%s1790_s12 + $0xc0] sm:$0xf]  ;;  %v1551_v0 = vld [vmem:[%s1790_s12 + $0xa0] sm:$0xf0] }
  0x3e   : > { %935 = vmatmul.bf16.gmra.mxu2 %v1264_v1  ;;  %982 = vmatpush.bf16.msrb.mxu0 %v1587_v2  ;;  %v1533_v1 = vld [vmem:[%s1790_s12 + $0x14] sm:$0xf]  ;;  %v1245_v2 = vld [vmem:[%s1790_s12 + $0x2c] sm:$0xf0] }
  0x3f   : > { %1040 = vmatpush.bf16.msrb.mxu2 %v1902_v61  ;;  %1618 = vmatpush.bf16.msrb.mxu1 %v1911_v3 }
  0x41   : > { %955 = vmatpush.bf16.msrb.mxu3 %v1578_v4  ;;  %v503_v4 = vpack.c.b16 %v475_v62, %v475_v62 }
  0x42   : > { %983 = vmatpush.bf16.msrb.mxu0 %v1586_v5  ;;  %v1308_v5 = vor.u32 %v1551_v0, %v1307_v63 }
  0x43   : > { %1041 = vmatpush.bf16.msrb.mxu2 %v1600_v7  ;;  %1619 = vmatpush.bf16.msrb.mxu1 %v1594_v6 }
  0x45   : > { %956 = vmatpush.bf16.msrb.mxu3 %v1577_v8 }
  0x46   : > { %984 = vmatpush.bf16.msrb.mxu0 %v1585_v9 }
  0x47   : > { %1620 = vmatpush.bf16.msrb.mxu1 %v1593_v10 }
  0x49   : > { %957 = vmatpush.bf16.msrb.mxu3 %v1576_v11 }
  0x4a   : > { %985 = vmatpush.bf16.msrb.mxu0 %v1584_v12 }
  0x4b   : > { %1621 = vmatpush.bf16.msrb.mxu1 %v1592_v19 }
  0x4c   : > { %958 = vmatmul.bf16.vlgmr.msrb.gmra.mxu3 %v1240_v22 }
  0x4d   : > { %1622 = vmatpush.bf16.msra.mxu3 %v1818_v32  ;;  %912 = vmatmul.bf16.gmra.mxu1 %v1288_v23  ;;  %v1543_v32 = vld [vmem:[%s1790_s12 + $0x60] sm:$0xf0] }
  0x4e   : > { %1006 = vmatpush.bf16.msra.mxu0 %v1829_v39  ;;  %940 = vmatmul.bf16.gmra.mxu2 %v1292_v24  ;;  %v1272_v36 = vor.u32 %v1543_v32, %v1271_v31  ;;  %v1540_v39 = vld [vmem:[%s1790_s12 + $0x4c] sm:$0xf] }
  0x4f   : > { %986 = vmatmul.bf16.vlgmr.msrb.gmra.mxu0 %v1244_v25  ;;  %v1276_v46 = vor.u32 %v1540_v39, %v1273_v40 }
  0x51   : > { %1623 = vmatpush.bf16.msra.mxu3 %v1838_v41  ;;  %v1251_v41 = vld [vmem:[%s1790_s12 + $0x18] sm:$0xf] }
  0x52   : > { %1007 = vmatpush.bf16.msra.mxu0 %v1847_v43  ;;  %v1299_v43 = vld [vmem:[%s1790_s12 + $0x80] sm:$0xf]  ;;  %v1252_v47 = vor.u32 %v1537_v42, %v1251_v41 }
  0x55   : > { %1624 = vmatpush.bf16.msra.mxu3 %v1856_v45  ;;  %v1296_v45 = vor.u32 %v1546_v37, %v1293_v38 }
  0x56   : > { %1008 = vmatpush.bf16.msra.mxu0 %v1868_v48  ;;  %v1300_v48 = vor.u32 %v1550_v44, %v1299_v43 }
  0x59   : > { %1625 = vmatpush.bf16.msra.mxu3 %v1877_v50  ;;  %v473_v50 = vunpack.c.h.b16 %v289_v26 }
  0x5a   : > { %1009 = vmatpush.bf16.msra.mxu0 %v1893_v59  ;;  %v502_v59 = vpack.c.b16 %v474_v52, %v474_v52 }
  0x5b   : > { %v501_v56 = vpack.c.b16 %v473_v50, %v473_v50 }
  0x5c   : > { %963 = vmatmul.bf16.gmra.mxu3 %v1268_v33 }
  0x5d   : > { %1626 = vmatpush.bf16.msra.mxu3 %v1902_v61  ;;  %917 = vmatmul.bf16.gmra.mxu1 %v499_v34  ;;  %v476_v61 = vunpack.c.l.b16 %v291_v60 }
  0x5e   : > { %1010 = vmatpush.bf16.msra.mxu0 %v1911_v3  ;;  %945 = vmatmul.bf16.gmra.mxu2 %v500_v35 }
  0x5f   : > { %991 = vmatmul.bf16.gmra.mxu0 %v1272_v36  ;;  %v504_v3 = vpack.c.b16 %v476_v61, %v476_v61  ;;  %v2006_v61 = vld [vmem:[%s2064_s2] ss:$0 sm:$0xff] }
  0x61   : > { %1627 = vmatpush.bf16.msra.mxu3 %v1600_v7 }
  0x62   : > { %1011 = vmatpush.bf16.msra.mxu0 %v1594_v6  ;;  %v1248_v6 = vor.u32 %v1533_v1, %v1245_v2  ;;  %v2011_v1 = vld [vmem:[%s2065_s3] ss:$0 sm:$0xff] }
  0x66   : > { %1012 = vmatpush.bf16.msra.mxu0 %v1593_v10 }
  0x6a   : > { %1013 = vmatpush.bf16.msra.mxu0 %v1592_v19 }
  0x6c   : > { %968 = vmatmul.bf16.gmra.mxu3 %v1296_v45 }
  0x6d   : > { %1019 = vmatmul.bf16.vlgmr.msrb.gmra.mxu1 %v1276_v46 }
  0x6e   : > { %1525 = vmatmul.msk.bf16.vlgmr.msrb.gmra.mxu2 %vm853_vm0, %v1252_v47 }
  0x6f   : > { %996 = vmatmul.bf16.gmra.mxu0 %v1300_v48 }
  0x7c   : > { %973 = vmatmul.bf16.gmra.mxu3 %v501_v56 }
  0x7d   : > { %1024 = vmatmul.bf16.gmra.mxu1 %v1304_v57 }
  0x7e   : > { %1526 = vmatmul.msk.bf16.gmra.mxu2 %vm853_vm0, %v1280_v58 }
  0x7f   : > { %1001 = vmatmul.bf16.gmra.mxu0 %v502_v59 }
  0x8c   : > { %1528 = vmatmul.msk.bf16.vlgmr.msra.gmra.mxu3 %vm853_vm0, %v504_v3 }
  0x8d   : > { %1029 = vmatmul.bf16.gmra.mxu1 %v503_v4 }
  0x8e   : > { %1527 = vmatmul.msk.bf16.gmra.mxu2 %vm853_vm0, %v1308_v5 }
  0x8f   : > { %1014 = vmatmul.bf16.vlgmr.msra.gmra.mxu0 %v1248_v6 }
  0xa9   : > { %v875_v7 = vpop.f32.mrf.mxu0 }
  0xaa   : > { %v903_v8 = vpop.f32.mrf.mxu1 }
  0xab   : > { %v904_v9 = vadd.f32 %v903_v8, %v875_v7 }
  0xaf   : > { %v885_v10 = vpop.f32.mrf.mxu3 }
  0xb1   : > { %v931_v11 = vpop.f32.mrf.mxu2  ;;  %v877_v13 = vpop.f32.mrf.mxu0 }
  0xb2   : > { %v932_v12 = vadd.f32 %v931_v11, %v904_v9  ;;  %v905_v14 = vpop.f32.mrf.mxu1 }
  0xb3   : > { %v906_v15 = vadd.f32 %v905_v14, %v877_v13 }
  0xb7   : > { %v1991_v16 = vpop.f32.mrf.mxu3 }
  0xb9   : > { %v933_v17 = vpop.f32.mrf.mxu2  ;;  %v880_v19 = vpop.f32.mrf.mxu0 }
  0xba   : > { %v1993_v18 = vadd.f32 %v933_v17, %v906_v15  ;;  %v908_v20 = vpop.f32.mrf.mxu1 }
  0xbb   : > { %v909_v48 = vadd.f32 %v908_v20, %v880_v19 }
  0xbf   : > { %v890_v21 = vpop.f32.mrf.mxu3 }
  0xc1   : > { %v936_v22 = vpop.f32.mrf.mxu2  ;;  %v882_v23 = vpop.f32.mrf.mxu0 }
  0xc2   : > { %v910_v24 = vpop.f32.mrf.mxu1  ;;  %v937_v50 = vadd.f32 %v936_v22, %v909_v48 }
  0xc3   : > { %v911_v56 = vadd.f32 %v910_v24, %v882_v23 }
  0xc7   : > { %v892_v25 = vpop.f32.mrf.mxu3 }
  0xc9   : > { %v938_v26 = vpop.f32.mrf.mxu2 }
  0xca   : > { %v913_v27 = vpop.f32.mrf.mxu1  ;;  %v939_v58 = vadd.f32 %v938_v26, %v911_v56 }
  0xcb   : > { %v914_v6 = vadd.f32 %v913_v27, %v885_v10 }
  0xcc   : > { %v987_v28 = vpop.f32.mrf.mxu0 }
  0xcf   : > { %v959_v29 = vpop.f32.mrf.mxu3 }
  0xd0   : > { %v960_v9 = vadd.f32 %v959_v29, %v932_v12 }
  0xd1   : > { %v941_v30 = vpop.f32.mrf.mxu2 }
  0xd2   : > { %v915_v31 = vpop.f32.mrf.mxu1  ;;  %v942_v13 = vadd.f32 %v941_v30, %v914_v6 }
  0xd3   : > { %v916_v27 = vadd.f32 %v915_v31, %v1991_v16 }
  0xd4   : > { %v1995_v32 = vpop.f32.mrf.mxu0 }
  0xd7   : > { %v961_v33 = vpop.f32.mrf.mxu3 }
  0xd9   : > { %v1997_v34 = vpop.f32.mrf.mxu2 }
  0xda   : > { %v918_v35 = vpop.f32.mrf.mxu1 }
  0xdb   : > { %v919_v5 = vadd.f32 %v918_v35, %v890_v21  ;;  %v988_v21 = vadd.f32 %v987_v28, %v960_v9  ;;  %v962_v35 = vadd.f32 %v961_v33, %v1993_v18 }
  0xdc   : > { %v992_v36 = vpop.f32.mrf.mxu0 }
  0xdd   : > { %v990_v33 = vadd.f32 %v1995_v32, %v962_v35 }
  0xdf   : > { %v964_v37 = vpop.f32.mrf.mxu3 }
  0xe0   : > { %v965_v53 = vadd.f32 %v964_v37, %v937_v50 }
  0xe1   : > { %v946_v38 = vpop.f32.mrf.mxu2 }
  0xe2   : > { %v920_v39 = vpop.f32.mrf.mxu1  ;;  %v993_v57 = vadd.f32 %v992_v36, %v965_v53  ;;  %v947_v11 = vadd.f32 %v946_v38, %v919_v5  ;;  %v944_v38 = vadd.f32 %v1997_v34, %v916_v27 }
  0xe4   : > { %v994_v40 = vpop.f32.mrf.mxu0 }
  0xe7   : > { %v966_v41 = vpop.f32.mrf.mxu3 }
  0xe8   : > { %v967_v63 = vadd.f32 %v966_v41, %v939_v58 }
  0xe9   : > { %v948_v42 = vpop.f32.mrf.mxu2 }
  0xea   : > { %v1020_v43 = vpop.f32.mrf.mxu1  ;;  %v995_v7 = vadd.f32 %v994_v40, %v967_v63 }
  0xeb   : > { %v1021_v59 = vadd.f32 %v1020_v43, %v993_v57 }
  0xec   : > { %v997_v44 = vpop.f32.mrf.mxu0 }
  0xef   : > { %v969_v45 = vpop.f32.mrf.mxu3 }
  0xf0   : > { %v970_v22 = vadd.f32 %v969_v45, %v942_v13 }
  0xf1   : > { %v1043_v46 = vpop.f32.mrf.mxu2 }
  0xf2   : > { %v1022_v47 = vpop.f32.mrf.mxu1  ;;  %v998_v29 = vadd.f32 %v997_v44, %v970_v22 }
  0xf3   : > { %v1023_v14 = vadd.f32 %v1022_v47, %v995_v7 }
  0xf4   : > { %v1999_v49 = vpop.f32.mrf.mxu0 }
  0xf7   : > { %v971_v51 = vpop.f32.mrf.mxu3 }
  0xf8   : > { %v972_v45 = vadd.f32 %v971_v51, %v944_v38 }
  0xf9   : > { %v2001_v52 = vpop.f32.mrf.mxu2 }
  0xfa   : > { %v1025_v54 = vpop.f32.mrf.mxu1  ;;  %v1000_v51 = vadd.f32 %v1999_v49, %v972_v45 }
  0xfb   : > { %v1026_v39 = vadd.f32 %v1025_v54, %v998_v29 }
  0xfc   : > { %v1002_v55 = vpop.f32.mrf.mxu0 }
  0xff   : > { %v974_v60 = vpop.f32.mrf.mxu3 }
 0x100   : > { %v975_v19 = vadd.f32 %v974_v60, %v947_v11 }
 0x101   : > { %v1048_v62 = vpop.f32.mrf.mxu2 }
 0x102   : > { %v1049_v0 = vadd.f32 %v1048_v62, %v1021_v59  ;;  %v1027_v2 = vpop.f32.mrf.mxu1  ;;  %v1003_v26 = vadd.f32 %v1002_v55, %v975_v19 }
 0x103   : > { %v1028_v55 = vadd.f32 %v1027_v2, %v1000_v51 }
 0x104   : > { %v1068_v3 = vmul.f32 %v2006_v61, %v1049_v0  ;;  %v1004_v4 = vpop.f32.mrf.mxu0 }
 0x106   : > { %v1079_v8 = vadd.f32 %v2011_v1, %v1068_v3 }
 0x107   : > { %v976_v17 = vpop.f32.mrf.mxu3 }
 0x108   : > { %v1086_v15 = vmax.f32 %v1079_v8, 0.0 }
 0x109   : > { %v1050_v20 = vpop.f32.mrf.mxu2 }
 0x10a   : > { %1093 = vst.msk [vmem:[%s2019_s30 + $0x10] sm:$0xff] %vm853_vm0, %v1086_v15  ;;  %v1051_v10 = vadd.f32 %v1050_v20, %v1023_v14  ;;  %v1030_v23 = vpop.f32.mrf.mxu1 }
 0x10b   : > { %v1031_v37 = vadd.f32 %v1030_v23, %v1003_v26 }
 0x10c   : > { %v1069_v12 = vmul.f32 %v2006_v61, %v1051_v10  ;;  %v1015_v24 = vpop.f32.mrf.mxu0 }
 0x10d   : > { %v1016_v25 = vadd.f32 %v1015_v24, %v988_v21 }
 0x10e   : > { %v1080_v30 = vadd.f32 %v2011_v1, %v1069_v12 }
 0x10f   : > { %v1044_v36 = vadd.f32 %v1043_v46, %v1016_v25  ;;  %v1058_v40 = vpop.f32.mrf.mxu3 }
 0x110   : > { %v1087_v28 = vmax.f32 %v1080_v30, 0.0  ;;  %v1059_v43 = vadd.f32 %v1058_v40, %v1031_v37 }
 0x111   : > { %v1066_v41 = vmul.f32 %v2006_v61, %v1044_v36  ;;  %v1053_v42 = vpop.f32.mrf.mxu2 }
 0x112   : > { %1094 = vst.msk [vmem:[%s2019_s30 + $0x18] sm:$0xff] %vm853_vm0, %v1087_v28  ;;  %v1054_v16 = vadd.f32 %v1053_v42, %v1026_v39  ;;  %v1072_v18 = vmul.f32 %v2006_v61, %v1059_v43  ;;  %v1032_v34 = vpop.f32.mrf.mxu1 }
 0x113   : > { %v1077_v31 = vadd.f32 %v2011_v1, %v1066_v41 }
 0x114   : > { %v1070_v44 = vmul.f32 %v2006_v61, %v1054_v16  ;;  %v1017_v46 = vpop.f32.mrf.mxu0  ;;  %v1083_v48 = vadd.f32 %v2011_v1, %v1072_v18 }
 0x115   : > { %v1084_v47 = vmax.f32 %v1077_v31, 0.0  ;;  %v1018_v50 = vadd.f32 %v1017_v46, %v990_v33 }
 0x116   : > { %v1081_v53 = vadd.f32 %v2011_v1, %v1070_v44  ;;  %v1090_v54 = vmax.f32 %v1083_v48, 0.0 }
 0x117   : > { %1091 = vst.msk [vmem:[%s2019_s30] sm:$0xff] %vm853_vm0, %v1084_v47  ;;  %v1046_v32 = vadd.f32 %v2001_v52, %v1018_v50  ;;  %v1060_v57 = vpop.f32.mrf.mxu3 }
 0x118   : > { %v1088_v56 = vmax.f32 %v1081_v53, 0.0  ;;  %1097 = vst.msk [vmem:[%s2019_s30 + $0x30] sm:$0xff] %vm853_vm0, %v1090_v54 }
 0x119   : > { %v1067_v58 = vmul.f32 %v2006_v61, %v1046_v32  ;;  %v1055_v59 = vpop.f32.mrf.mxu2 }
 0x11a   : > { %1095 = vst.msk [vmem:[%s2019_s30 + $0x20] sm:$0xff] %vm853_vm0, %v1088_v56  ;;  %v1056_v49 = vadd.f32 %v1055_v59, %v1028_v55 }
 0x11b   : > { %v1078_v60 = vadd.f32 %v2011_v1, %v1067_v58 }
 0x11c   : > { %v1071_v62 = vmul.f32 %v2006_v61, %v1056_v49 }
 0x11d   : > { %v1085_v63 = vmax.f32 %v1078_v60, 0.0 }
 0x11e   : > { %v1082_v0 = vadd.f32 %v2011_v1, %v1071_v62 }
 0x11f   : > { %1092 = vst.msk [vmem:[%s2019_s30 + $0x8] sm:$0xff] %vm853_vm0, %v1085_v63 }
 0x120   : > { %v1089_v52 = vmax.f32 %v1082_v0, 0.0 }
 0x122   : > { %1096 = vst.msk [vmem:[%s2019_s30 + $0x28] sm:$0xff] %vm853_vm0, %v1089_v52 }
 0x123 PF: > { %s14_s17 = sadd.s32 1, %s1678_s17   ;;  %s2067_s15 = smov %s1674_s16 }
 0x124   : > { %p11_p5 = scmp.ge.s32.totalorder %s14_s17, 4   ;;  %s2068_s16 = smov %s2070_s18 }
 0x126   :  { %13 = sbr.rel (!%p11_p5) target bundleno = 2 (0x2), region = 75 }

// kernel: inception_block_b.4
= control target key start
LH: loop header
LB: loop body
LE: loop exit
PB: predicated region body
PF: predicated region fallthrough
CT: control target
= control target key end

     0   :  { %s832_s15 = smov 0   ;;  %s834_s16 = smov 0   ;;  %s983_s0 = inlined_call_operand.vmem [shape: bf16[2,56,36], index: 0, kind: input, shape index: {}]   ;;  %s984_s1 = inlined_call_operand.vmem [shape: bf16[36,384], index: 1, kind: input, shape index: {}]   ;;  %s985_s2 = inlined_call_operand.vmem [shape: f32[1,384], index: 2, kind: input, shape index: {}]   ;;  %s986_s3 = inlined_call_operand.vmem [shape: f32[1,384], index: 3, kind: input, shape index: {}]   ;;  %s987_s4 = inlined_call_operand.vmem [shape: f32[2,56,384], index: 4, kind: output, shape index: {}]  }
   0x1   :  { %s836_s17 = smov 0   ;;  %s838_s18 = smov 0  }
   0x2   :  { %s840_s19 = smov 0   ;;  %s842_s20 = smov 0  }
   0x3   :  { %s844_s21 = smov 0   ;;  %s846_s22 = smov 0  }
   0x4   :  { %s848_s23 = smov 0  }
   0x5 LB: > { %s608_s24 = sadd.s32 4294967295, %s805_s23   ;;  %s23_s25 = sadd.s32 1, %s797_s21  ;;  %s805_s23 = sphi %s848_s23, %s14_s23   ;;  %s801_s22 = sphi %s846_s22, %s996_s22   ;;  %s797_s21 = sphi %s844_s21, %s995_s21   ;;  %s793_s20 = sphi %s842_s20, %s994_s20   ;;  %s789_s19 = sphi %s840_s19, %s993_s19   ;;  %s785_s18 = sphi %s838_s18, %s992_s18   ;;  %s781_s17 = sphi %s836_s17, %s991_s17   ;;  %s777_s16 = sphi %s834_s16, %s990_s16   ;;  %s773_s15 = sphi %s832_s15, %s989_s15  }
   0x6   : > { %p24_p0 = scmp.ge.s32.totalorder %s23_s25, 3  ;;  %s26_s26 = sadd.s32 1, %s801_s22 }
   0x7   : > { %s59_s27 = sadd.s32 1, %s785_s18  ;;  %p66_p1 = scmp.ne.s32.totalorder %s785_s18, %s781_s17 }
   0x8   : > { %s998_s25 = smov (%p24_p0, %s23_s25), 0  ;;  %s1000_s26 = smov (!%p24_p0, %s26_s26), %s801_s22 }
   0x9   : > { %s56_s28 = ssub.s32 %s797_s21, %s998_s25  ;;  %p67_p2 = scmp.eq.s32.totalorder %s805_s23, 0 }
   0xa   : > { %p28_p3 = scmp.ge.s32.totalorder %s1000_s26, 2  ;;  %p57_p4 = scmp.eq.s32.totalorder %s56_s28, 0 }
   0xb   : > { %p68_p5 = por %p67_p2, %p66_p1  ;;  %s139_s29 = sadd.s32 1, %s777_s16 }
   0xc   : > { %s1002_s26 = smov (%p28_p3, %s1000_s26), 0  ;;  %p149_p6 = scmp.ne.s32.totalorder %s777_s16, %s773_s15 }
   0xd   : > { %s893_s30 = scalar_select %p57_p4, %s785_s18, %s59_s27  }
   0xe   : > { %s134_s5 = ssub.s32 %s801_s22, %s1002_s26  ;;  %p150_p7 = scmp.eq.s32.totalorder %s608_s24, 5 }
   0xf   : > { %s136_s6 = sor.u32 %s134_s5, %s56_s28  ;;  %p611_p10 = scmp.ge.s32.totalorder %s805_s23, 6 }
  0x10   : > { %p137_p8 = scmp.eq.s32.totalorder %s136_s6, 0  ;;  %p899_p9 = por %p150_p7, %p149_p6 }
  0x11   : > { %172 = sbr.rel (%p611_p10) target bundleno = 32 (0x20), region = 16 }
  0x12   : > { %s904_s8 = scalar_select %p137_p8, %s777_s16, %s139_s29  }
  0x16   : > { %183 = sbr.rel (!%p68_p5) target bundleno = 32 (0x20), region = 24  ;;  %s185_s9 = sand.u32 (%p68_p5), 1, %s785_s18  }
  0x17   : > { %s612_s10 = sshll.u32 (%p68_p5), %s797_s21, 2  ;;  %s656_s11 = smul.u32 (%p68_p5), 20, %s185_s9 }
  0x18   : > { %s189_s14 = scalar_lea.vmem (%p68_p5), %s984_s1, %s612_s10 }
  0x19   : > { %v206_v0 = vld [vmem:[%s189_s14] sm:$0xf] (%p68_p5)  ;;  %v208_v1 = vld [vmem:[%s189_s14 + $0xc] sm:$0xf] (%p68_p5)  ;;  %v210_v2 = vld [vmem:[%s189_s14 + $0x18] sm:$0xf] (%p68_p5) }
  0x1a   : > { %s187_s24 = scalar_lea.vmem (%p68_p5), [#allocation2], %s656_s11  ;;  %v212_v3 = vld [vmem:[%s189_s14 + $0x24] sm:$0xf] (%p68_p5)  ;;  %v214_v4 = vld [vmem:[%s189_s14 + $0x30] sm:$0xf] (%p68_p5) }
  0x1b   : > { %207 = vst [vmem:[%s187_s24] sm:$0xf] %v206_v0 }
  0x1c   : > { %209 = vst [vmem:[%s187_s24 + $0x4] sm:$0xf] %v208_v1 }
  0x1d   : > { %211 = vst [vmem:[%s187_s24 + $0x8] sm:$0xf] %v210_v2 }
  0x1e   : > { %213 = vst [vmem:[%s187_s24 + $0xc] sm:$0xf] %v212_v3 }
  0x1f   : > { %215 = vst [vmem:[%s187_s24 + $0x10] sm:$0xf] %v214_v4 }
  0x20 PF: > { %p613_p11 = scmp.ge.s32.totalorder %s805_s23, 1  ;;  %p260_p12 = scmp.lt.s32.totalorder %s805_s23, 7 }
  0x22   : > { %p261_p13 = pnand %p613_p11, %p260_p12 }
  0x23   : > { %s267_s27 = sand.u32 (!%p261_p13), 1, %s781_s17   ;;  %p302_p0 = scmp.lt.s32.totalorder (!%p261_p13), %s793_s20, 1 }
  0x24   : > { %264 = sbr.rel (%p261_p13) target bundleno = 214 (0xd6), region = 73  ;;  %p307_p1 = scmp.lt.s32.totalorder (!%p261_p13), %s789_s19, 2 }
  0x25   : > { %s657_s28 = smul.u32 (!%p261_p13), 20, %s267_s27 }
  0x27   : > { %s269_s5 = scalar_lea.vmem (!%p261_p13), [#allocation2], %s657_s28 }
  0x29   : > { %s303_s29 = scalar_select %p302_p0, %s793_s20, 1  ;;  %v325_v5 = vld [vmem:[%s269_s5 + $0x10] sm:$0x3]  ;;  %vm372_vm0 = vcmask 1041408   ;;  %v646_v9 = vld [vmem:[%s269_s5 + $0x8] sm:$0xff]  ;;  %v645_v11 = vld [vmem:[%s269_s5] sm:$0xff] }
  0x2a   : > { %v353_v6 = vunpack.c.l.b16 %v325_v5  ;;  %s919_s9 = scalar_select %p307_p1, %s789_s19, 2  ;;  %vm359_vm1 = vcmask 293888  }
  0x2b   : > { %s659_s6 = smul.u32 28, %s303_s29  ;;  %s299_s29 = sand.u32 1, %s773_s15  }
  0x2c   : > { %v356_v7 = vpack.c.b16 %v353_v6, %v353_v6  ;;  %s309_s14 = scalar_lea.vmem %s985_s2, %s919_s9  ;;  %s312_s28 = scalar_lea.vmem %s986_s3, %s919_s9 }
  0x2d   : > { %s306_s12 = scalar_lea.vmem %s983_s0, %s659_s6  ;;  %v733_v17 = vld [vmem:[%s309_s14] ss:$0 sm:$0xff]  ;;  %s658_s5 = smul.u32 56, %s299_s29 }
  0x2e   : > { %v374_v8 = vsel %vm372_vm0, %v356_v7, 0  ;;  %v320_v10 = vld [vmem:[%s306_s12 + $0x18] sm:$0xf]  ;;  %v642_v13 = vld [vmem:[%s306_s12] sm:$0xff]  ;;  %v643_v14 = vld [vmem:[%s306_s12 + $0x8] sm:$0xff]  ;;  %s660_s15 = smul.u32 (%p899_p9), 21, %s793_s20 }
  0x2f   : > { %381 = vmatpush.bf16.msra.mxu0 %v374_v8  ;;  %647 = vmatpush.bf16.msra.mxu1 %v374_v8  ;;  %v339_v12 = vunpack.c.l.b16 %v320_v10  ;;  %v644_v15 = vld [vmem:[%s306_s12 + $0x10] sm:$0xff]  ;;  %v734_v18 = vld [vmem:[%s312_s28] ss:$0 sm:$0xff]  ;;  %s933_s6 = scalar_lea.vmem [#allocation3], %s658_s5 }
  0x30   : > { %648 = vmatpush.bf16.msra.mxu2 %v374_v8  ;;  %649 = vmatpush.bf16.msra.mxu3 %v374_v8  ;;  %s448_s9 = sadd.s32 (%p899_p9), %s789_s19, %s660_s15 }
  0x31   : > { %v343_v16 = vpack.c.b16 %v339_v12, %v339_v12  ;;  %s639_s10 = sshll.u32 (%p899_p9), %s448_s9, 3 }
  0x32   : > { %s450_s17 = scalar_lea.vmem (%p899_p9), %s987_s4, %s639_s10 }
  0x33   : > { %382 = vmatpush.bf16.msra.mxu0 %v646_v9  ;;  %650 = vmatpush.bf16.msra.mxu1 %v646_v9 }
  0x34   : > { %651 = vmatpush.bf16.msra.mxu2 %v646_v9  ;;  %652 = vmatpush.bf16.msra.mxu3 %v646_v9 }
  0x37   : > { %383 = vmatpush.bf16.msra.mxu0 %v645_v11  ;;  %653 = vmatpush.bf16.msra.mxu1 %v645_v11 }
  0x38   : > { %654 = vmatpush.bf16.msra.mxu2 %v645_v11  ;;  %655 = vmatpush.bf16.msra.mxu3 %v645_v11 }
  0x3a   : > { %635 = vmatmul.msk.bf16.vlgmr.msra.gmra.mxu0 %vm359_vm1, %v642_v13  ;;  %636 = vmatmul.msk.bf16.vlgmr.msra.gmra.mxu1 %vm359_vm1, %v643_v14 }
  0x3b   : > { %637 = vmatmul.msk.bf16.vlgmr.msra.gmra.mxu2 %vm359_vm1, %v644_v15  ;;  %638 = vmatmul.msk.bf16.vlgmr.msra.gmra.mxu3 %vm359_vm1, %v343_v16 }
  0xb7   : > { %v385_v19 = vpop.f32.mrf.mxu0  ;;  %v390_v20 = vpop.f32.mrf.mxu1 }
  0xb8   : > { %v408_v21 = vmul.f32 %v733_v17, %v385_v19  ;;  %v410_v22 = vmul.f32 %v733_v17, %v390_v20 }
  0xba   : > { %v419_v23 = vadd.f32 %v734_v18, %v408_v21  ;;  %v421_v24 = vadd.f32 %v734_v18, %v410_v22 }
  0xbc   : > { %v426_v25 = vmax.f32 %v419_v23, 0.0  ;;  %v428_v26 = vmax.f32 %v421_v24, 0.0 }
  0xbe   : > { %433 = vst [vmem:[%s933_s6] sm:$0xff] %v426_v25  ;;  %v395_v27 = vpop.f32.mrf.mxu2  ;;  %v400_v28 = vpop.f32.mrf.mxu3 }
  0xbf   : > { %435 = vst [vmem:[%s933_s6 + $0x10] sm:$0xff] %v428_v26  ;;  %v412_v29 = vmul.f32 %v733_v17, %v395_v27  ;;  %v414_v30 = vmul.f32 %v733_v17, %v400_v28  ;;  %v387_v31 = vpop.f32.mrf.mxu0  ;;  %v392_v32 = vpop.f32.mrf.mxu1 }
  0xc0   : > { %v409_v33 = vmul.f32 %v733_v17, %v387_v31  ;;  %v411_v34 = vmul.f32 %v733_v17, %v392_v32 }
  0xc1   : > { %v423_v35 = vadd.f32 %v734_v18, %v412_v29  ;;  %v425_v36 = vadd.f32 %v734_v18, %v414_v30 }
  0xc2   : > { %v420_v37 = vadd.f32 %v734_v18, %v409_v33  ;;  %v422_v38 = vadd.f32 %v734_v18, %v411_v34 }
  0xc3   : > { %v430_v39 = vmax.f32 %v423_v35, 0.0  ;;  %v432_v40 = vmax.f32 %v425_v36, 0.0 }
  0xc4   : > { %v427_v41 = vmax.f32 %v420_v37, 0.0  ;;  %v429_v42 = vmax.f32 %v422_v38, 0.0 }
  0xc5   : > { %437 = vst [vmem:[%s933_s6 + $0x20] sm:$0xff] %v430_v39  ;;  %v491_v48 = vld [vmem:[%s933_s6] sm:$0xff] (%p899_p9) }
  0xc6   : > { %439 = vst [vmem:[%s933_s6 + $0x30] sm:$0xff] %v432_v40  ;;  %v397_v43 = vpop.f32.mrf.mxu2  ;;  %v402_v44 = vpop.f32.mrf.mxu3  ;;  %v495_v50 = vld [vmem:[%s933_s6 + $0x10] sm:$0xff] (%p899_p9) }
  0xc7   : > { %434 = vst [vmem:[%s933_s6 + $0x8] sm:$0xff] %v427_v41  ;;  %v413_v45 = vmul.f32 %v733_v17, %v397_v43 }
  0xc8   : > { %436 = vst [vmem:[%s933_s6 + $0x18] sm:$0xff] %v429_v42 }
  0xc9   : > { %v424_v46 = vadd.f32 %v734_v18, %v413_v45  ;;  %446 = sbr.rel (!%p899_p9) target bundleno = 214 (0xd6), region = 81  ;;  %492 = vst [vmem:[%s450_s17] sm:$0xff] (%p899_p9), %v491_v48 }
  0xca   : > { %496 = vst [vmem:[%s450_s17 + $0x30] sm:$0xff] (%p899_p9), %v495_v50 }
  0xcb   : > { %v431_v47 = vmax.f32 %v424_v46, 0.0 }
  0xcc   : > { %v499_v52 = vld [vmem:[%s933_s6 + $0x20] sm:$0xff] (%p899_p9) }
  0xcd   : > { %438 = vst [vmem:[%s933_s6 + $0x28] sm:$0xff] %v431_v47  ;;  %v503_v54 = vld [vmem:[%s933_s6 + $0x30] sm:$0xff] (%p899_p9) }
  0xce   : > { %v493_v49 = vld [vmem:[%s933_s6 + $0x8] sm:$0xff]  ;;  %500 = vst [vmem:[%s450_s17 + $0x60] sm:$0xff] %v499_v52 }
  0xcf   : > { %v497_v51 = vld [vmem:[%s933_s6 + $0x18] sm:$0xff]  ;;  %494 = vst [vmem:[%s450_s17 + $0x18] sm:$0xff] %v493_v49 }
  0xd0   : > { %498 = vst [vmem:[%s450_s17 + $0x48] sm:$0xff] %v497_v51 }
  0xd1   : > { %504 = vst [vmem:[%s450_s17 + $0x90] sm:$0xff] %v503_v54 }
  0xd4   : > { %v501_v53 = vld [vmem:[%s933_s6 + $0x28] sm:$0xff] }
  0xd5   : > { %502 = vst [vmem:[%s450_s17 + $0x78] sm:$0xff] %v501_v53 }
  0xd6 PF: > { %s14_s23 = sadd.s32 1, %s805_s23   ;;  %s989_s15 = smov %s777_s16 }
  0xd7   : > { %p11_p2 = scmp.ge.s32.totalorder %s14_s23, 8   ;;  %s990_s16 = smov %s904_s8 }
  0xd8   : > { %s991_s17 = smov %s785_s18  ;;  %s992_s18 = smov %s893_s30 }
  0xd9   : > { %s993_s19 = smov %s797_s21  ;;  %s994_s20 = smov %s801_s22 }
  0xda   : > { %s995_s21 = smov %s998_s25  ;;  %s996_s22 = smov %s1002_s26 }
  0xdb   :  { %13 = sbr.rel (!%p11_p2) target bundleno = 5 (0x5), region = 159 }

// kernel: inception_block_b.5
= control target key start
LH: loop header
LB: loop body
LE: loop exit
PB: predicated region body
PF: predicated region fallthrough
CT: control target
= control target key end

     0   :  { %s6409_s24 = smov 0   ;;  %s8573_s0 = inlined_call_operand.vmem [shape: bf16[2,16,16,4], index: 0, kind: input, shape index: {}]   ;;  %s8574_s1 = inlined_call_operand.vmem [shape: bf16[4,64], index: 1, kind: input, shape index: {}]   ;;  %s8575_s2 = inlined_call_operand.vmem [shape: f32[1,64], index: 2, kind: input, shape index: {}]   ;;  %s8576_s3 = inlined_call_operand.vmem [shape: f32[1,64], index: 3, kind: input, shape index: {}]   ;;  %s8577_s4 = inlined_call_operand.vmem [shape: bf16[9,64,96], index: 4, kind: input, shape index: {}]   ;;  %s8578_s5 = inlined_call_operand.vmem [shape: f32[1,96], index: 5, kind: input, shape index: {}]   ;;  %s8579_s6 = inlined_call_operand.vmem [shape: f32[1,96], index: 6, kind: input, shape index: {}]   ;;  %s8580_s7 = inlined_call_operand.vmem [shape: f32[2,256,96], index: 7, kind: output, shape index: {}]  }
   0x1 LB: > { %s5521_s25 = sadd.s32 4294967295, %s6366_s24   ;;  %p5525_p0 = scmp.ge.s32.totalorder %s6366_s24, 1  ;;  %s6366_s24 = sphi %s6409_s24, %s17_s24  }
   0x2   : > { %p237_p1 = scmp.lt.s32.totalorder %s6366_s24, 3 }
   0x4   : > { %p238_p2 = pnand %p5525_p0, %p237_p1 }
   0x6   : > { %241 = sbr.rel (%p238_p2) target bundleno = 1089 (0x441), region = 48 }
   0xb   : > { %v312_v0 = vld [vmem:[%s8574_s1] sm:$0x3]  ;;  %vm442_vm0 = vcmask 1041408   ;;  %p269_p3 = scmp.lt.s32.totalorder %s5521_s25, 1  ;;  %vm393_vm1 = vcmask 31744   ;;  %vm639_vm2 = vcmask 519168  }
   0xc   : > { %v444_v1 = vsel %vm442_vm0, %v312_v0, 0  ;;  %v6368_v15 = vmov 0   ;;  %v6249_v17 = vld [vmem:[%s8577_s4 + $0x58] sm:$0xff]  ;;  %v6248_v19 = vld [vmem:[%s8577_s4 + $0x50] sm:$0xff]  ;;  %v6247_v22 = vld [vmem:[%s8577_s4 + $0x48] sm:$0xff]  ;;  %vm642_vm3 = vcmask 516096  }
   0xd   : > { %453 = vmatpush.bf16.msra.mxu0 %v444_v1  ;;  %s8856_s25 = smov (!%p269_p3, %s5521_s25), 1  ;;  %6306 = vmatpush.bf16.msra.mxu3 %v444_v1  ;;  %644 = vst.msk [vmem:[#allocation2 + $0xc] sm:$0xf] %vm639_vm2, %v6368_v15  ;;  %v6245_v18 = vld [vmem:[%s8577_s4 + $0x38] sm:$0xff]  ;;  %v6244_v21 = vld [vmem:[%s8577_s4 + $0x30] sm:$0xff]  ;;  %v6243_v24 = vld [vmem:[%s8577_s4 + $0x28] sm:$0xff] }
   0xe   : > { %s6204_s28 = sshll.u32 %s8856_s25, 7  ;;  %640 = vst.msk [vmem:[#allocation2] sm:$0xf] %vm639_vm2, %v6368_v15  ;;  %1745 = vmatpush.bf16.msra.mxu1 %v6245_v18  ;;  %6307 = vmatpush.bf16.msra.mxu2 %v6245_v18  ;;  %v6269_v23 = vld [vmem:[%s8577_s4 + $0x78] sm:$0xff]  ;;  %v6246_v25 = vld [vmem:[%s8577_s4 + $0x40] sm:$0xff]  ;;  %v6268_v26 = vld [vmem:[%s8577_s4 + $0x70] sm:$0xff] }
   0xf   : > { %s6426_s8 = scalar_lea.vmem %s8573_s0, %s6204_s28  ;;  %641 = vst.msk [vmem:[#allocation2 + $0x4] sm:$0xf] %vm639_vm2, %v6368_v15  ;;  %v6242_v27 = vld [vmem:[%s8577_s4 + $0x20] sm:$0xff]  ;;  %v6267_v28 = vld [vmem:[%s8577_s4 + $0x68] sm:$0xff]  ;;  %vm1052_vm4 = vsmask.f32 7938 }
  0x10   : > { %v6206_v2 = vld [vmem:[%s6426_s8] sm:$0xff]  ;;  %v6215_v3 = vld [vmem:[%s6426_s8 + $0x48] sm:$0xff]  ;;  %v6216_v5 = vld [vmem:[%s6426_s8 + $0x50] sm:$0xff]  ;;  %645 = vst.msk [vmem:[#allocation2 + $0x10] sm:$0xf] %vm639_vm2, %v6368_v15  ;;  %vm2119_vm5 = vcmask 1042432  }
  0x11   : > { %5594 = vmatmul.msk.bf16.vlgmr.msra.gmra.mxu0 %vm393_vm1, %v6206_v2  ;;  %5603 = vmatmul.msk.bf16.vlgmr.msra.gmra.mxu3 %vm393_vm1, %v6215_v3  ;;  %v6207_v4 = vld [vmem:[%s6426_s8 + $0x8] sm:$0xff]  ;;  %v6208_v6 = vld [vmem:[%s6426_s8 + $0x10] sm:$0xff]  ;;  %v6217_v7 = vld [vmem:[%s6426_s8 + $0x58] sm:$0xff]  ;;  %647 = vst.msk [vmem:[#allocation2 + $0x18] sm:$0xf] %vm639_vm2, %v6368_v15  ;;  %vm2120_vm6 = vcmask 1046532  }
  0x12   : > { %v6209_v8 = vld [vmem:[%s6426_s8 + $0x18] sm:$0xff]  ;;  %v6218_v9 = vld [vmem:[%s6426_s8 + $0x60] sm:$0xff]  ;;  %v6219_v11 = vld [vmem:[%s6426_s8 + $0x68] sm:$0xff]  ;;  %648 = vst.msk [vmem:[#allocation2 + $0x1c] sm:$0xf] %vm639_vm2, %v6368_v15  ;;  %2367 = vmatpush.bf16.msrb.mxu3 %v6249_v17  ;;  %1746 = vmatpush.bf16.msra.mxu1 %v6244_v21  ;;  %vm1692_vm0 = vcmask 523264  }
  0x13   : > { %v6210_v10 = vld [vmem:[%s6426_s8 + $0x20] sm:$0xff]  ;;  %v6211_v12 = vld [vmem:[%s6426_s8 + $0x28] sm:$0xff]  ;;  %v6220_v13 = vld [vmem:[%s6426_s8 + $0x70] sm:$0xff]  ;;  %650 = vst.msk [vmem:[#allocation2 + $0x24] sm:$0xf] %vm639_vm2, %v6368_v15  ;;  %2681 = vmatpush.bf16.msrb.mxu0 %v6269_v23  ;;  %6308 = vmatpush.bf16.msra.mxu2 %v6244_v21  ;;  %s6205_s10 = sshll.u32 %s8856_s25, 8 }
  0x14   : > { %v6212_v14 = vld [vmem:[%s6426_s8 + $0x30] sm:$0xff]  ;;  %v6221_v16 = vld [vmem:[%s6426_s8 + $0x78] sm:$0xff]  ;;  %651 = vst.msk [vmem:[#allocation2 + $0x28] sm:$0xf] %vm639_vm2, %v6368_v15  ;;  %v6540_v29 = vld [vmem:[%s8575_s2] ss:$0 sm:$0xff]  ;;  %s8148_s25 = scalar_lea.vmem %s8580_s7, %s6205_s10 }
  0x15   : > { %653 = vst.msk [vmem:[#allocation2 + $0x30] sm:$0xf] %vm639_vm2, %v6368_v15  ;;  %v6213_v20 = vld [vmem:[%s6426_s8 + $0x38] sm:$0xff]  ;;  %v6266_v30 = vld [vmem:[%s8577_s4 + $0x60] sm:$0xff]  ;;  %vm6590_vm7 = vmand %vm639_vm2, %vm1052_vm4  ;;  %vm1224_vm9 = vsmask.f32 3328 }
  0x16   : > { %654 = vst.msk [vmem:[#allocation2 + $0x34] sm:$0xf] %vm639_vm2, %v6368_v15  ;;  %2368 = vmatpush.bf16.msrb.mxu3 %v6248_v19  ;;  %1747 = vmatpush.bf16.msra.mxu1 %v6243_v24  ;;  %v6552_v31 = vld [vmem:[%s8576_s3] ss:$0 sm:$0xff]  ;;  %v1169_v37 = vld [vmem:[#allocation2 + $0x4] sm:$0xf]  ;;  %vm6601_vm8 = vmor %vm2119_vm5, %vm2120_vm6 }
  0x17   : > { %656 = vst.msk [vmem:[#allocation2 + $0x3c] sm:$0xf] %vm639_vm2, %v6368_v15  ;;  %2682 = vmatpush.bf16.msrb.mxu0 %v6268_v26  ;;  %6309 = vmatpush.bf16.msra.mxu2 %v6243_v24  ;;  %v6214_v32 = vld [vmem:[%s6426_s8 + $0x40] sm:$0xff]  ;;  %v1237_v41 = vshll.u32 %v1169_v37, 16  ;;  %v1241_v42 = vshrl.u32 %v1169_v37, 16  ;;  %v2124_v61 = vrot.slane %v1169_v37, 5 }
  0x18   : > { %657 = vst.msk [vmem:[#allocation2 + $0x40] sm:$0xf] %vm639_vm2, %v6368_v15  ;;  %v1168_v35 = vld [vmem:[#allocation2] sm:$0xf]  ;;  %v1054_v56 = vld [vmem:[#allocation2 + $0xc] sm:$0xf] }
  0x19   : > { %659 = vst.msk [vmem:[#allocation2 + $0x48] sm:$0xf] %vm639_vm2, %v6368_v15  ;;  %v1228_v38 = vshrl.u32 %v1168_v35, 16  ;;  %v1231_v39 = vshll.u32 %v1168_v35, 16  ;;  %v2071_v49 = vld [vmem:[#allocation2] sm:$0xe] }
  0x1a   : > { %660 = vst.msk [vmem:[#allocation2 + $0x4c] sm:$0xf] %vm639_vm2, %v6368_v15  ;;  %2369 = vmatpush.bf16.msrb.mxu3 %v6247_v22  ;;  %1748 = vmatpush.bf16.msra.mxu1 %v6242_v27  ;;  %v6583_v50 = vrot.slane %v1237_v41, 5  ;;  %v1243_v51 = vrot.slane %v1241_v42, 4  ;;  %v5746_v60 = vrot.slane %v2071_v49, 9 }
  0x1b   : > { %662 = vst.msk [vmem:[#allocation2 + $0x54] sm:$0xf] %vm639_vm2, %v6368_v15  ;;  %2683 = vmatpush.bf16.msrb.mxu0 %v6267_v28  ;;  %6310 = vmatpush.bf16.msra.mxu2 %v6242_v27  ;;  %v1230_v45 = vrot.slane %v1228_v38, 4  ;;  %v1233_v46 = vrot.slane %v1231_v39, 5  ;;  %vm1225_vm10 = vsmask.f32 7440 }
  0x1c   : > { %663 = vst.msk [vmem:[#allocation2 + $0x58] sm:$0xf] %vm639_vm2, %v6368_v15  ;;  %v1244_v63 = vor.u32 %v1243_v51, %v6583_v50  ;;  %vm727_vm11 = vsmask.f32 256  ;;  %vm728_vm12 = vsmask.f32 4368  ;;  %vm6617_vm13 = vmor %vm1224_vm9, %vm1225_vm10 }
  0x1d   : > { %665 = vst.msk [vmem:[#allocation2 + $0x60] sm:$0xf] %vm639_vm2, %v6368_v15  ;;  %v1234_v57 = vor.u32 %v1233_v46, %v1230_v45  ;;  %vm6624_vm14 = vmor %vm727_vm11, %vm728_vm12 }
  0x1e   : > { %666 = vst.msk [vmem:[#allocation2 + $0x64] sm:$0xf] %vm639_vm2, %v6368_v15  ;;  %2370 = vmatpush.bf16.msrb.mxu3 %v6246_v25  ;;  %vm6633_vm15 = vmand %vm642_vm3, %vm727_vm11 }
  0x1f   : > { %668 = vst.msk [vmem:[#allocation2 + $0x6c] sm:$0xf] %vm639_vm2, %v6368_v15  ;;  %2684 = vmatpush.bf16.msrb.mxu0 %v6266_v30  ;;  %v1235_v3 = vrot.slane %v1234_v57, 4 }
  0x20   : > { %669 = vst.msk [vmem:[#allocation2 + $0x70] sm:$0xf] %vm639_vm2, %v6368_v15 }
  0x21   : > { %5595 = vmatmul.msk.bf16.gmra.mxu0 %vm393_vm1, %v6207_v4  ;;  %5604 = vmatmul.msk.bf16.gmra.mxu3 %vm393_vm1, %v6216_v5  ;;  %671 = vst.msk [vmem:[#allocation2 + $0x78] sm:$0xf] %vm639_vm2, %v6368_v15  ;;  %v1240_v22 = vsel %vm6617_vm13, %v1235_v3, %v6583_v50 }
  0x22   : > { %672 = vst.msk [vmem:[#allocation2 + $0x7c] sm:$0xf] %vm639_vm2, %v6368_v15  ;;  %v1620_v35 = vunpack.c.l.b16 %v1240_v22 }
  0x23   : > { %674 = vst.msk [vmem:[#allocation2 + $0x84] sm:$0xf] %vm639_vm2, %v6368_v15 }
  0x24   : > { %675 = vst.msk [vmem:[#allocation2 + $0x88] sm:$0xf] %vm639_vm2, %v6368_v15 }
  0x25   : > { %677 = vst.msk [vmem:[#allocation2 + $0x90] sm:$0xf] %vm639_vm2, %v6368_v15 }
  0x26   : > { %678 = vst.msk [vmem:[#allocation2 + $0x94] sm:$0xf] %vm639_vm2, %v6368_v15 }
  0x27   : > { %680 = vst.msk [vmem:[#allocation2 + $0x9c] sm:$0xf] %vm639_vm2, %v6368_v15 }
  0x28   : > { %681 = vst.msk [vmem:[#allocation2 + $0xa0] sm:$0xf] %vm639_vm2, %v6368_v15 }
  0x29   : > { %683 = vst.msk [vmem:[#allocation2 + $0xa8] sm:$0xf] %vm639_vm2, %v6368_v15 }
  0x2a   : > { %684 = vst.msk [vmem:[#allocation2 + $0xac] sm:$0xf] %vm639_vm2, %v6368_v15 }
  0x2b   : > { %686 = vst.msk [vmem:[#allocation2 + $0xb4] sm:$0xf] %vm639_vm2, %v6368_v15 }
  0x2c   : > { %687 = vst.msk [vmem:[#allocation2 + $0xb8] sm:$0xf] %vm639_vm2, %v6368_v15 }
  0x2d   : > { %689 = vst.msk [vmem:[#allocation2 + $0xc0] sm:$0xf] %vm639_vm2, %v6368_v15 }
  0x2e   : > { %690 = vst.msk [vmem:[#allocation2 + $0xc4] sm:$0xf] %vm639_vm2, %v6368_v15 }
  0x2f   : > { %692 = vst.msk [vmem:[#allocation2 + $0xcc] sm:$0xf] %vm639_vm2, %v6368_v15 }
  0x30   : > { %693 = vst.msk [vmem:[#allocation2 + $0xd0] sm:$0xf] %vm639_vm2, %v6368_v15 }
  0x31   : > { %5596 = vmatmul.msk.bf16.gmra.mxu0 %vm393_vm1, %v6208_v6  ;;  %5605 = vmatmul.msk.bf16.gmra.mxu3 %vm393_vm1, %v6217_v7  ;;  %646 = vst.msk [vmem:[#allocation2 + $0x14] sm:$0x1] %vm642_vm3, %v6368_v15  ;;  %v2125_v7 = vsel %vm6601_vm8, %v5746_v60, %v2124_v61 }
  0x32   : > { %643 = vst.msk [vmem:[#allocation2 + $0x8] sm:$0x1] %vm642_vm3, %v6368_v15  ;;  %v2243_v21 = vunpack.c.l.b16 %v2125_v7 }
  0x33   : > { %649 = vst.msk [vmem:[#allocation2 + $0x20] sm:$0x1] %vm642_vm3, %v6368_v15 }
  0x34   : > { %652 = vst.msk [vmem:[#allocation2 + $0x2c] sm:$0x1] %vm642_vm3, %v6368_v15 }
  0x35   : > { %655 = vst.msk [vmem:[#allocation2 + $0x38] sm:$0x1] %vm642_vm3, %v6368_v15 }
  0x36   : > { %658 = vst.msk [vmem:[#allocation2 + $0x44] sm:$0x1] %vm642_vm3, %v6368_v15 }
  0x37   : > { %661 = vst.msk [vmem:[#allocation2 + $0x50] sm:$0x1] %vm642_vm3, %v6368_v15 }
  0x38   : > { %664 = vst.msk [vmem:[#allocation2 + $0x5c] sm:$0x1] %vm642_vm3, %v6368_v15 }
  0x39   : > { %667 = vst.msk [vmem:[#allocation2 + $0x68] sm:$0x1] %vm642_vm3, %v6368_v15 }
  0x3a   : > { %670 = vst.msk [vmem:[#allocation2 + $0x74] sm:$0x1] %vm642_vm3, %v6368_v15 }
  0x3b   : > { %673 = vst.msk [vmem:[#allocation2 + $0x80] sm:$0x1] %vm642_vm3, %v6368_v15 }
  0x3c   : > { %676 = vst.msk [vmem:[#allocation2 + $0x8c] sm:$0x1] %vm642_vm3, %v6368_v15 }
  0x3d   : > { %679 = vst.msk [vmem:[#allocation2 + $0x98] sm:$0x1] %vm642_vm3, %v6368_v15 }
  0x3e   : > { %682 = vst.msk [vmem:[#allocation2 + $0xa4] sm:$0x1] %vm642_vm3, %v6368_v15 }
  0x3f   : > { %685 = vst.msk [vmem:[#allocation2 + $0xb0] sm:$0x1] %vm642_vm3, %v6368_v15 }
  0x40   : > { %688 = vst.msk [vmem:[#allocation2 + $0xbc] sm:$0x1] %vm642_vm3, %v6368_v15 }
  0x41   : > { %5597 = vmatmul.msk.bf16.gmra.mxu0 %vm393_vm1, %v6209_v8  ;;  %5606 = vmatmul.msk.bf16.gmra.mxu3 %vm393_vm1, %v6218_v9  ;;  %v2126_v8 = vrot.slane %v2124_v61, 4  ;;  %v8587_v9 = vmov 0  ;;  %691 = vst.msk [vmem:[#allocation2 + $0xc8] sm:$0x1] %vm642_vm3, %v6368_v15 }
  0x42   : > { %v8588_v9 = vsel %vm6617_vm13, 4294967295, %v8587_v9  ;;  %694 = vst.msk [vmem:[#allocation2 + $0xd4] sm:$0x1] %vm642_vm3, %v6368_v15 }
  0x43   : > { %8589 = vst [vmem:[#allocation3_spill] sm:$0xff] %v8588_v9 }
  0x51   : > { %5598 = vmatmul.msk.bf16.gmra.mxu0 %vm393_vm1, %v6210_v10  ;;  %5607 = vmatmul.msk.bf16.gmra.mxu3 %vm393_vm1, %v6219_v11  ;;  %v1208_v10 = vld [vmem:[#allocation2 + $0x8] sm:$0x1]  ;;  %v1245_v11 = vrot.slane %v1244_v63, 4 }
  0x52   : > { %v2127_v17 = vrot.slane %v1208_v10, 5  ;;  %v1247_v23 = vshll.u32 %v1208_v10, 16 }
  0x54   : > { %v2128_v27 = vsel %vm6601_vm8, %v2126_v8, %v2127_v17  ;;  %v1249_v30 = vrot.slane %v1247_v23, 5 }
  0x55   : > { %v2244_v28 = vunpack.c.l.b16 %v2128_v27  ;;  %v1067_v27 = vld [vmem:[#allocation2 + $0x20] sm:$0x1] }
  0x56   : > { %v1250_v38 = vsel %vm6617_vm13, %v1245_v11, %v1249_v30 }
  0x57   : > { %v2275_v37 = vpack.c.b16 %v2244_v28, %v2243_v21  ;;  %v1621_v42 = vunpack.c.l.b16 %v1250_v38 }
  0x59   : > { %v1652_v51 = vpack.c.b16 %v1621_v42, %v1620_v35 }
  0x5b   : > { %5634 = vmatmul.msk.bf16.vlgmr.msra.gmra.mxu1 %vm1692_vm0, %v1652_v51 }
  0x61   : > { %5599 = vmatmul.msk.bf16.gmra.mxu0 %vm393_vm1, %v6211_v12  ;;  %5608 = vmatmul.msk.bf16.gmra.mxu3 %vm393_vm1, %v6220_v13 }
  0x71   : > { %5600 = vmatmul.msk.bf16.gmra.mxu0 %vm393_vm1, %v6212_v14  ;;  %5609 = vmatmul.msk.bf16.gmra.mxu3 %vm393_vm1, %v6221_v16 }
  0x81   : > { %5601 = vmatmul.msk.bf16.gmra.mxu0 %vm393_vm1, %v6213_v20  ;;  %v1060_v20 = vld [vmem:[#allocation2 + $0x14] sm:$0x1]  ;;  %5786 = vmatmul.msk.bf16.vlgmr.msrb.gmra.mxu3 %vm1692_vm0, %v2275_v37 }
  0x8e   : > { %v455_v33 = vpop.f32.mrf.mxu0 }
  0x8f   : > { %v539_v34 = vmul.f32 %v6540_v29, %v455_v33 }
  0x91   : > { %v575_v36 = vadd.f32 %v6552_v31, %v539_v34  ;;  %5602 = vmatmul.msk.bf16.gmra.mxu0 %vm393_vm1, %v6214_v32  ;;  %vm5433_vm1 = vcmask 785408  }
  0x93   : > { %v607_v40 = vmax.f32 %v575_v36, 0.0 }
  0x94   : > { %v500_v4 = vpop.f32.mrf.mxu3 }
  0x95   : > { %v695_v43 = vpack.c.bf16 %v607_v40, %v607_v40 }
  0x96   : > { %v457_v44 = vpop.f32.mrf.mxu0 }
  0x97   : > { %v731_v47 = vshrl.u32 %v695_v43, 16  ;;  %v540_v48 = vmul.f32 %v6540_v29, %v457_v44  ;;  %v734_v53 = vshll.u32 %v695_v43, 16  ;;  %v557_v44 = vmul.f32 %v6540_v29, %v500_v4 }
  0x99   : > { %v733_v52 = vrot.slane %v731_v47, 7  ;;  %v576_v54 = vadd.f32 %v6552_v31, %v540_v48 }
  0x9b   : > { %v736_v58 = vor.u32 %v734_v53, %v733_v52  ;;  %v608_v59 = vmax.f32 %v576_v54, 0.0  ;;  %v737_v18 = vrot.slane %v733_v52, 4  ;;  %v1063_v53 = vld [vmem:[#allocation2 + $0x18] sm:$0xf]  ;;  %v593_v54 = vadd.f32 %v6552_v31, %v557_v44 }
  0x9c   : > { %v502_v47 = vpop.f32.mrf.mxu3 }
  0x9d   : > { %v1055_v0 = vsel %vm6590_vm7, %v736_v58, %v1054_v56  ;;  %v696_v1 = vpack.c.bf16 %v608_v59, %v608_v59  ;;  %v625_v61 = vmax.f32 %v593_v54, 0.0 }
  0x9e   : > { %1056 = vst [vmem:[#allocation2 + $0xc] sm:$0xf] %v1055_v0  ;;  %v460_v2 = vpop.f32.mrf.mxu0 }
  0x9f   : > { %v739_v5 = vshrl.u32 %v696_v1, 16  ;;  %v541_v6 = vmul.f32 %v6540_v29, %v460_v2  ;;  %v742_v14 = vshll.u32 %v696_v1, 16  ;;  %v713_v11 = vpack.c.bf16 %v625_v61, %v625_v61 }
  0xa1   : > { %v741_v13 = vrot.slane %v739_v5, 7  ;;  %v577_v16 = vadd.f32 %v6552_v31, %v541_v6  ;;  %v884_v21 = vshrl.u32 %v713_v11, 16  ;;  %v887_v22 = vshll.u32 %v713_v11, 16 }
  0xa3   : > { %v744_v24 = vor.u32 %v742_v14, %v741_v13  ;;  %v746_v25 = vrot.slane %v741_v13, 4  ;;  %v609_v26 = vmax.f32 %v577_v16, 0.0  ;;  %v6686_v30 = vrot.slane %v884_v21, 7 }
  0xa5   : > { %v745_v32 = vsel %vm6624_vm14, %v737_v18, %v744_v24  ;;  %v1061_v33 = vsel %vm6633_vm15, %v746_v25, %v1060_v20  ;;  %v697_v34 = vpack.c.bf16 %v609_v26, %v609_v26  ;;  %v1170_v39 = vld [vmem:[#allocation2 + $0xc] sm:$0xf] }
  0xa6   : > { %1057 = vst.msk [vmem:[#allocation2 + $0x10] sm:$0xf] %vm639_vm2, %v745_v32  ;;  %v462_v36 = vpop.f32.mrf.mxu0  ;;  %v2072_v43 = vld [vmem:[#allocation2 + $0xc] sm:$0xe]  ;;  %v1252_v45 = vshrl.u32 %v1170_v39, 16  ;;  %v1255_v46 = vshll.u32 %v1170_v39, 16 }
  0xa7   : > { %1062 = vst [vmem:[#allocation2 + $0x14] sm:$0x1] %v1061_v33  ;;  %v748_v40 = vshrl.u32 %v697_v34, 16  ;;  %v542_v41 = vmul.f32 %v6540_v29, %v462_v36  ;;  %v751_v49 = vshll.u32 %v697_v34, 16  ;;  %v6665_v52 = vld [vmem:[#allocation2 + $0xc] sm:$0xf]  ;;  %v505_v34 = vpop.f32.mrf.mxu3 }
  0xa8   : > { %v1254_v56 = vrot.slane %v1252_v45, 4  ;;  %v1257_v57 = vrot.slane %v1255_v46, 5  ;;  %v5747_v60 = vrot.slane %v2072_v43, 9  ;;  %v2847_v0 = vshrl.u32 %v6665_v52, 16  ;;  %v1119_v39 = vld [vmem:[#allocation2 + $0x78] sm:$0xf] }
  0xa9   : > { %v750_v48 = vrot.slane %v748_v40, 7  ;;  %v578_v50 = vadd.f32 %v6552_v31, %v542_v41  ;;  %v2850_v6 = vshll.u32 %v6665_v52, 16  ;;  %v889_v40 = vor.u32 %v887_v22, %v6686_v30 }
  0xaa   : > { %v1258_v63 = vor.u32 %v1257_v57, %v1254_v56  ;;  %v558_v43 = vmul.f32 %v6540_v29, %v502_v47  ;;  %v6698_v56 = vrot.slane %v2847_v0, 4 }
  0xab   : > { %v753_v58 = vor.u32 %v751_v49, %v750_v48  ;;  %v610_v59 = vmax.f32 %v578_v50, 0.0  ;;  %v754_v1 = vrot.slane %v750_v48, 4  ;;  %v890_v50 = vrot.slane %v6686_v30, 4 }
  0xac   : > { %v1259_v15 = vrot.slane %v1258_v63, 4  ;;  %v1120_v51 = vsel %vm6590_vm7, %v889_v40, %v1119_v39  ;;  %v594_v63 = vadd.f32 %v6552_v31, %v558_v43 }
  0xad   : > { %v1064_v2 = vsel %vm6590_vm7, %v753_v58, %v1063_v53  ;;  %v698_v3 = vpack.c.bf16 %v610_v59, %v610_v59  ;;  %v6250_v4 = vld [vmem:[#allocation2 + $0xc] sm:$0xff]  ;;  %1121 = vst [vmem:[#allocation2 + $0x78] sm:$0xf] %v1120_v51 }
  0xae   : > { %v1171_v5 = vld [vmem:[#allocation2 + $0x10] sm:$0xf]  ;;  %1065 = vst [vmem:[#allocation2 + $0x18] sm:$0xf] %v1064_v2  ;;  %v465_v7 = vpop.f32.mrf.mxu0  ;;  %v1209_v8 = vld [vmem:[#allocation2 + $0x14] sm:$0x1]  ;;  %5890 = vmatmul.msk.bf16.vlgmr.msrb.gmra.mxu0 %vm1692_vm0, %v6250_v4  ;;  %v559_v2 = vmul.f32 %v6540_v29, %v505_v34 }
  0xaf   : > { %v2131_v10 = vrot.slane %v1171_v5, 5  ;;  %v756_v13 = vshrl.u32 %v698_v3, 16  ;;  %v759_v14 = vshll.u32 %v698_v3, 16  ;;  %v543_v16 = vmul.f32 %v6540_v29, %v465_v7  ;;  %v1070_v7 = vld [vmem:[#allocation2 + $0x24] sm:$0xf] }
  0xb0   : > { %v2134_v17 = vrot.slane %v1209_v8, 5  ;;  %v1261_v26 = vshll.u32 %v1171_v5, 16  ;;  %v1265_v32 = vshrl.u32 %v1171_v5, 16  ;;  %v1271_v33 = vshll.u32 %v1209_v8, 16 }
  0xb1   : > { %v2132_v18 = vsel %vm6601_vm8, %v5747_v60, %v2131_v10  ;;  %v2133_v20 = vrot.slane %v2131_v10, 4  ;;  %v758_v23 = vrot.slane %v756_v13, 7  ;;  %v579_v24 = vadd.f32 %v6552_v31, %v543_v16 }
  0xb2   : > { %v2245_v25 = vunpack.c.l.b16 %v2132_v18  ;;  %v1263_v41 = vrot.slane %v1261_v26, 5  ;;  %v1267_v42 = vrot.slane %v1265_v32, 4  ;;  %v1273_v59 = vrot.slane %v1271_v33, 5 }
  0xb3   : > { %v2135_v28 = vsel %vm6601_vm8, %v2133_v20, %v2134_v17  ;;  %v761_v35 = vor.u32 %v759_v14, %v758_v23  ;;  %v763_v36 = vrot.slane %v758_v23, 4  ;;  %v611_v37 = vmax.f32 %v579_v24, 0.0  ;;  %v6710_v23 = vpop.f32.mrf.mxu3 }
  0xb4   : > { %v2246_v38 = vunpack.c.l.b16 %v2135_v28  ;;  %v1268_v53 = vor.u32 %v1267_v42, %v1263_v41  ;;  %v1264_v58 = vsel %vm6617_vm13, %v1259_v15, %v1263_v41  ;;  %v626_v11 = vmax.f32 %v594_v63, 0.0 }
  0xb5   : > { %v762_v44 = vsel %vm6624_vm14, %v754_v1, %v761_v35  ;;  %v1068_v45 = vsel %vm6633_vm15, %v763_v36, %v1067_v27  ;;  %v699_v46 = vpack.c.bf16 %v611_v37, %v611_v37  ;;  %v1172_v54 = vld [vmem:[#allocation2 + $0x18] sm:$0xf]  ;;  %v1622_v10 = vunpack.c.l.b16 %v1264_v58 }
  0xb6   : > { %v2276_v48 = vpack.c.b16 %v2246_v38, %v2245_v25  ;;  %1066 = vst.msk [vmem:[#allocation2 + $0x1c] sm:$0xf] %vm639_vm2, %v762_v44  ;;  %v467_v49 = vpop.f32.mrf.mxu0  ;;  %v1269_v61 = vrot.slane %v1268_v53, 4  ;;  %v2073_v1 = vld [vmem:[#allocation2 + $0x18] sm:$0xe]  ;;  %v1276_v4 = vshrl.u32 %v1172_v54, 16  ;;  %v595_v15 = vadd.f32 %v6552_v31, %v559_v2 }
  0xb7   : > { %1069 = vst [vmem:[#allocation2 + $0x20] sm:$0x1] %v1068_v45  ;;  %v765_v47 = vshrl.u32 %v699_v46, 16  ;;  %v544_v57 = vmul.f32 %v6540_v29, %v467_v49  ;;  %v768_v60 = vshll.u32 %v699_v46, 16  ;;  %v1279_v5 = vshll.u32 %v1172_v54, 16 }
  0xb8   : > { %5787 = vmatmul.msk.bf16.gmra.mxu3 %vm1692_vm0, %v2276_v48  ;;  %v1274_v8 = vsel %vm6617_vm13, %v1269_v61, %v1273_v59  ;;  %v5748_v17 = vrot.slane %v2073_v1, 9  ;;  %v714_v20 = vpack.c.bf16 %v626_v11, %v626_v11  ;;  %v627_v21 = vmax.f32 %v595_v15, 0.0  ;;  %v1074_v53 = vld [vmem:[#allocation2 + $0x2c] sm:$0x1]  ;;  %v1126_v2 = vld [vmem:[#allocation2 + $0x84] sm:$0xf] }
  0xb9   : > { %v767_v0 = vrot.slane %v765_v47, 7  ;;  %v580_v3 = vadd.f32 %v6552_v31, %v544_v57  ;;  %v1623_v16 = vunpack.c.l.b16 %v1274_v8  ;;  %v1278_v22 = vrot.slane %v1276_v4, 4  ;;  %v1123_v57 = vld [vmem:[#allocation2 + $0x80] sm:$0x1] }
  0xba   : > { %v1281_v32 = vrot.slane %v1279_v5, 5  ;;  %v892_v34 = vshrl.u32 %v714_v20, 16  ;;  %v895_v35 = vshll.u32 %v714_v20, 16  ;;  %v715_v37 = vpack.c.bf16 %v627_v21, %v627_v21 }
  0xbb   : > { %v770_v13 = vor.u32 %v768_v60, %v767_v0  ;;  %v612_v14 = vmax.f32 %v580_v3, 0.0  ;;  %v771_v18 = vrot.slane %v767_v0, 4  ;;  %v1653_v26 = vpack.c.b16 %v1623_v16, %v1622_v10  ;;  %v510_v16 = vpop.f32.mrf.mxu3 }
  0xbc   : > { %v894_v42 = vrot.slane %v892_v34, 7  ;;  %v901_v44 = vshrl.u32 %v715_v37, 16  ;;  %v904_v45 = vshll.u32 %v715_v37, 16  ;;  %v1282_v59 = vor.u32 %v1281_v32, %v1278_v22  ;;  %v1077_v34 = vld [vmem:[#allocation2 + $0x30] sm:$0xf] }
  0xbd   : > { %v1071_v24 = vsel %vm6590_vm7, %v770_v13, %v1070_v7  ;;  %v700_v25 = vpack.c.bf16 %v612_v14, %v612_v14  ;;  %v6251_v27 = vld [vmem:[#allocation2 + $0x18] sm:$0xff]  ;;  %5635 = vmatmul.msk.bf16.gmra.mxu1 %vm1692_vm0, %v1653_v26 }
  0xbe   : > { %v6714_v28 = vld [vmem:[#allocation2 + $0x1c] sm:$0xf]  ;;  %1072 = vst [vmem:[#allocation2 + $0x24] sm:$0xf] %v1071_v24  ;;  %v470_v33 = vpop.f32.mrf.mxu0  ;;  %v6716_v36 = vld [vmem:[#allocation2 + $0x20] sm:$0x1]  ;;  %5891 = vmatmul.msk.bf16.gmra.mxu0 %vm1692_vm0, %v6251_v27  ;;  %v897_v54 = vor.u32 %v895_v35, %v894_v42  ;;  %v560_v27 = vmul.f32 %v6540_v29, %v6710_v23 }
  0xbf   : > { %v773_v38 = vshrl.u32 %v700_v25, 16  ;;  %v776_v39 = vshll.u32 %v700_v25, 16  ;;  %v545_v40 = vmul.f32 %v6540_v29, %v470_v33  ;;  %v2138_v41 = vrot.slane %v6714_v28, 5 }
  0xc0   : > { %v2141_v43 = vrot.slane %v6716_v36, 5  ;;  %v899_v47 = vrot.slane %v894_v42, 4  ;;  %v6726_v58 = vrot.slane %v901_v44, 7  ;;  %v898_v0 = vsel %vm6624_vm14, %v890_v50, %v897_v54 }
  0xc1   : > { %v775_v46 = vrot.slane %v773_v38, 7  ;;  %v581_v48 = vadd.f32 %v6552_v31, %v545_v40  ;;  %v2139_v49 = vsel %vm6601_vm8, %v5748_v17, %v2138_v41  ;;  %v2140_v51 = vrot.slane %v2138_v41, 4  ;;  %1122 = vst.msk [vmem:[#allocation2 + $0x7c] sm:$0xf] %vm639_vm2, %v898_v0 }
  0xc2   : > { %v2247_v3 = vunpack.c.l.b16 %v2139_v49  ;;  %v906_v5 = vor.u32 %v904_v45, %v6726_v58  ;;  %v1124_v11 = vsel %vm6633_vm15, %v899_v47, %v1123_v57  ;;  %v1285_v13 = vshll.u32 %v6714_v28, 16 }
  0xc3   : > { %v778_v60 = vor.u32 %v776_v39, %v775_v46  ;;  %v780_v61 = vrot.slane %v775_v46, 4  ;;  %v613_v63 = vmax.f32 %v581_v48, 0.0  ;;  %v2142_v1 = vsel %vm6601_vm8, %v2140_v51, %v2141_v43  ;;  %1125 = vst [vmem:[#allocation2 + $0x80] sm:$0x1] %v1124_v11 }
  0xc4   : > { %v2248_v4 = vunpack.c.l.b16 %v2142_v1  ;;  %v1127_v15 = vsel %vm6590_vm7, %v906_v5, %v1126_v2  ;;  %v6748_v17 = vrot.slane %v2850_v6, 5  ;;  %v1283_v21 = vrot.slane %v1282_v59, 4 }
  0xc5   : > { %v779_v7 = vsel %vm6624_vm14, %v771_v18, %v778_v60  ;;  %v1075_v8 = vsel %vm6633_vm15, %v780_v61, %v1074_v53  ;;  %v701_v10 = vpack.c.bf16 %v613_v63, %v613_v63  ;;  %v2074_v14 = vld [vmem:[#allocation2 + $0x24] sm:$0xe]  ;;  %v1289_v22 = vshrl.u32 %v6714_v28, 16  ;;  %1128 = vst [vmem:[#allocation2 + $0x84] sm:$0xf] %v1127_v15 }
  0xc6   : > { %1073 = vst.msk [vmem:[#allocation2 + $0x28] sm:$0xf] %vm639_vm2, %v779_v7  ;;  %v472_v30 = vpop.f32.mrf.mxu0  ;;  %v2277_v50 = vpack.c.b16 %v2248_v4, %v2247_v3  ;;  %v1287_v25 = vrot.slane %v1285_v13, 5  ;;  %v1295_v26 = vshll.u32 %v6716_v36, 16  ;;  %v561_v33 = vmul.f32 %v6540_v29, %v510_v16  ;;  %v6764_v38 = vld [vmem:[#allocation2 + $0x24] sm:$0xf] }
  0xc7   : > { %1076 = vst [vmem:[#allocation2 + $0x2c] sm:$0x1] %v1075_v8  ;;  %v782_v18 = vshrl.u32 %v701_v10, 16  ;;  %v546_v20 = vmul.f32 %v6540_v29, %v472_v30  ;;  %v785_v24 = vshll.u32 %v701_v10, 16  ;;  %v1291_v32 = vrot.slane %v1289_v22, 4  ;;  %v512_v8 = vpop.f32.mrf.mxu3 }
  0xc8   : > { %5788 = vmatmul.msk.bf16.gmra.mxu3 %vm1692_vm0, %v2277_v50  ;;  %v907_v28 = vrot.slane %v6726_v58, 4  ;;  %v1288_v35 = vsel %vm6617_vm13, %v1283_v21, %v1287_v25  ;;  %v596_v37 = vadd.f32 %v6552_v31, %v560_v27  ;;  %v5749_v36 = vrot.slane %v2074_v14, 9  ;;  %v1081_v15 = vld [vmem:[#allocation2 + $0x38] sm:$0x1] }
  0xc9   : > { %v6756_v52 = vrot.slane %v782_v18, 7  ;;  %v582_v6 = vadd.f32 %v6552_v31, %v546_v20  ;;  %v1292_v40 = vor.u32 %v1291_v32, %v1287_v25  ;;  %v1297_v41 = vrot.slane %v1295_v26, 5 }
  0xca   : > { %v628_v43 = vmax.f32 %v596_v37, 0.0  ;;  %v597_v44 = vadd.f32 %v6552_v31, %v561_v33  ;;  %v1300_v45 = vshrl.u32 %v6764_v38, 16  ;;  %v1303_v54 = vshll.u32 %v6764_v38, 16 }
  0xcb   : > { %v787_v23 = vor.u32 %v785_v24, %v6756_v52  ;;  %v614_v39 = vmax.f32 %v582_v6, 0.0  ;;  %v788_v42 = vrot.slane %v6756_v52, 4  ;;  %v1293_v49 = vrot.slane %v1292_v40, 4  ;;  %v1130_v24 = vld [vmem:[#allocation2 + $0x8c] sm:$0x1] }
  0xcc   : > { %v1624_v47 = vunpack.c.l.b16 %v1288_v35  ;;  %v716_v58 = vpack.c.bf16 %v628_v43, %v628_v43  ;;  %v629_v61 = vmax.f32 %v597_v44, 0.0  ;;  %v1302_v43 = vrot.slane %v1300_v45, 4  ;;  %v1084_v45 = vld [vmem:[#allocation2 + $0x3c] sm:$0xf] }
  0xcd   : > { %v1078_v46 = vsel %vm6590_vm7, %v787_v23, %v1077_v34  ;;  %v702_v48 = vpack.c.bf16 %v614_v39, %v614_v39  ;;  %v6252_v51 = vld [vmem:[#allocation2 + $0x24] sm:$0xff]  ;;  %v1298_v2 = vsel %vm6617_vm13, %v1293_v49, %v1297_v41 }
  0xce   : > { %v6772_v53 = vld [vmem:[#allocation2 + $0x28] sm:$0xf]  ;;  %1079 = vst [vmem:[#allocation2 + $0x30] sm:$0xf] %v1078_v46  ;;  %v475_v57 = vpop.f32.mrf.mxu0  ;;  %v6775_v59 = vld [vmem:[#allocation2 + $0x2c] sm:$0x1]  ;;  %5892 = vmatmul.msk.bf16.gmra.mxu0 %vm1692_vm0, %v6252_v51  ;;  %v1625_v3 = vunpack.c.l.b16 %v1298_v2  ;;  %v717_v18 = vpack.c.bf16 %v629_v61, %v629_v61 }
  0xcf   : > { %v2145_v60 = vrot.slane %v6772_v53, 5  ;;  %v790_v63 = vshrl.u32 %v702_v48, 16  ;;  %v793_v1 = vshll.u32 %v702_v48, 16  ;;  %v547_v0 = vmul.f32 %v6540_v29, %v475_v57 }
  0xd0   : > { %v909_v4 = vshrl.u32 %v716_v58, 16  ;;  %v912_v5 = vshll.u32 %v716_v58, 16  ;;  %v2148_v50 = vrot.slane %v6775_v59, 5  ;;  %v1654_v13 = vpack.c.b16 %v1625_v3, %v1624_v47 }
  0xd1   : > { %v2146_v7 = vsel %vm6601_vm8, %v5749_v36, %v2145_v60  ;;  %v792_v10 = vrot.slane %v790_v63, 7  ;;  %v583_v11 = vadd.f32 %v6552_v31, %v547_v0  ;;  %v2147_v30 = vrot.slane %v2145_v60, 4 }
  0xd2   : > { %v911_v14 = vrot.slane %v909_v4, 7  ;;  %v2249_v16 = vunpack.c.l.b16 %v2146_v7  ;;  %5636 = vmatmul.msk.bf16.gmra.mxu1 %vm1692_vm0, %v1654_v13  ;;  %v918_v6 = vshrl.u32 %v717_v18, 16  ;;  %v921_v35 = vshll.u32 %v717_v18, 16 }
  0xd3   : > { %v795_v20 = vor.u32 %v793_v1, %v792_v10  ;;  %v797_v21 = vrot.slane %v792_v10, 4  ;;  %v615_v22 = vmax.f32 %v583_v11, 0.0  ;;  %v2149_v25 = vsel %vm6601_vm8, %v2147_v30, %v2148_v50  ;;  %v515_v1 = vpop.f32.mrf.mxu3 }
  0xd4   : > { %v914_v26 = vor.u32 %v912_v5, %v911_v14  ;;  %v916_v27 = vrot.slane %v911_v14, 4  ;;  %v2250_v52 = vunpack.c.l.b16 %v2149_v25  ;;  %v6798_v39 = vrot.slane %v918_v6, 7 }
  0xd5   : > { %v796_v32 = vsel %vm6624_vm14, %v788_v42, %v795_v20  ;;  %v1082_v33 = vsel %vm6633_vm15, %v797_v21, %v1081_v15  ;;  %v703_v34 = vpack.c.bf16 %v615_v22, %v615_v22  ;;  %v1133_v42 = vld [vmem:[#allocation2 + $0x90] sm:$0xf]  ;;  %v1305_v46 = vrot.slane %v1303_v54, 5 }
  0xd6   : > { %1080 = vst.msk [vmem:[#allocation2 + $0x34] sm:$0xf] %vm639_vm2, %v796_v32  ;;  %v915_v37 = vsel %vm6624_vm14, %v907_v28, %v914_v26  ;;  %v1131_v36 = vsel %vm6633_vm15, %v916_v27, %v1130_v24  ;;  %v477_v38 = vpop.f32.mrf.mxu0  ;;  %v2278_v23 = vpack.c.b16 %v2250_v52, %v2249_v16  ;;  %v923_v28 = vor.u32 %v921_v35, %v6798_v39  ;;  %v2075_v54 = vld [vmem:[#allocation2 + $0x30] sm:$0xe] }
  0xd7   : > { %1083 = vst [vmem:[#allocation2 + $0x38] sm:$0x1] %v1082_v33  ;;  %v799_v40 = vshrl.u32 %v703_v34, 16  ;;  %v548_v41 = vmul.f32 %v6540_v29, %v477_v38  ;;  %v802_v44 = vshll.u32 %v703_v34, 16  ;;  %v1309_v48 = vshll.u32 %v6772_v53, 16 }
  0xd8   : > { %1129 = vst.msk [vmem:[#allocation2 + $0x88] sm:$0xf] %vm639_vm2, %v915_v37  ;;  %5789 = vmatmul.msk.bf16.gmra.mxu3 %vm1692_vm0, %v2278_v23  ;;  %v1313_v47 = vshrl.u32 %v6772_v53, 16  ;;  %v1319_v57 = vshll.u32 %v6775_v59, 16  ;;  %v1134_v58 = vsel %vm6590_vm7, %v923_v28, %v1133_v42  ;;  %v1306_v60 = vor.u32 %v1305_v46, %v1302_v43  ;;  %v1176_v42 = vld [vmem:[#allocation2 + $0x30] sm:$0xf] }
  0xd9   : > { %v6805_v49 = vrot.slane %v799_v40, 7  ;;  %1132 = vst [vmem:[#allocation2 + $0x8c] sm:$0x1] %v1131_v36  ;;  %v584_v51 = vadd.f32 %v6552_v31, %v548_v41  ;;  %v1311_v61 = vrot.slane %v1309_v48, 5  ;;  %v562_v63 = vmul.f32 %v6540_v29, %v512_v8  ;;  %v1088_v36 = vld [vmem:[#allocation2 + $0x44] sm:$0x1] }
  0xda   : > { %v924_v3 = vrot.slane %v6798_v39, 4  ;;  %1135 = vst [vmem:[#allocation2 + $0x90] sm:$0xf] %v1134_v58  ;;  %v1315_v4 = vrot.slane %v1313_v47, 4  ;;  %v1307_v59 = vrot.slane %v1306_v60, 4  ;;  %v1321_v5 = vrot.slane %v1319_v57, 5 }
  0xdb   : > { %v804_v2 = vor.u32 %v802_v44, %v6805_v49  ;;  %v616_v0 = vmax.f32 %v584_v51, 0.0  ;;  %v805_v53 = vrot.slane %v6805_v49, 4  ;;  %v598_v7 = vadd.f32 %v6552_v31, %v562_v63  ;;  %v517_v57 = vpop.f32.mrf.mxu3  ;;  %v1137_v60 = vld [vmem:[#allocation2 + $0x98] sm:$0x1] }
  0xdc   : > { %v1316_v8 = vor.u32 %v1315_v4, %v1311_v61  ;;  %v5750_v15 = vrot.slane %v2075_v54, 9  ;;  %v1312_v13 = vsel %vm6617_vm13, %v1307_v59, %v1311_v61  ;;  %v563_v21 = vmul.f32 %v6540_v29, %v515_v1 }
  0xdd   : > { %v1085_v10 = vsel %vm6590_vm7, %v804_v2, %v1084_v45  ;;  %v704_v11 = vpack.c.bf16 %v616_v0, %v616_v0  ;;  %v6253_v30 = vld [vmem:[#allocation2 + $0x30] sm:$0xff]  ;;  %v630_v16 = vmax.f32 %v598_v7, 0.0  ;;  %v1626_v26 = vunpack.c.l.b16 %v1312_v13 }
  0xde   : > { %v6819_v50 = vld [vmem:[#allocation2 + $0x34] sm:$0xf]  ;;  %1086 = vst [vmem:[#allocation2 + $0x3c] sm:$0xf] %v1085_v10  ;;  %v480_v14 = vpop.f32.mrf.mxu0  ;;  %v6823_v18 = vld [vmem:[#allocation2 + $0x38] sm:$0x1]  ;;  %5893 = vmatmul.msk.bf16.gmra.mxu0 %vm1692_vm0, %v6253_v30  ;;  %v599_v46 = vadd.f32 %v6552_v31, %v563_v21 }
  0xdf   : > { %v2152_v20 = vrot.slane %v6819_v50, 5  ;;  %v807_v22 = vshrl.u32 %v704_v11, 16  ;;  %v810_v24 = vshll.u32 %v704_v11, 16  ;;  %v1317_v25 = vrot.slane %v1316_v8, 4 }
  0xe0   : > { %v549_v27 = vmul.f32 %v6540_v29, %v480_v14  ;;  %v718_v52 = vpack.c.bf16 %v630_v16, %v630_v16  ;;  %v2155_v35 = vrot.slane %v6823_v18, 5  ;;  %v631_v61 = vmax.f32 %v599_v46, 0.0 }
  0xe1   : > { %v2153_v6 = vsel %vm6601_vm8, %v5750_v15, %v2152_v20  ;;  %v2154_v32 = vrot.slane %v2152_v20, 4  ;;  %v809_v33 = vrot.slane %v807_v22, 7  ;;  %v1322_v34 = vsel %vm6617_vm13, %v1317_v25, %v1321_v5  ;;  %v1091_v22 = vld [vmem:[#allocation2 + $0x48] sm:$0xf] }
  0xe2   : > { %v2251_v37 = vunpack.c.l.b16 %v2153_v6  ;;  %v1627_v38 = vunpack.c.l.b16 %v1322_v34  ;;  %v585_v23 = vadd.f32 %v6552_v31, %v549_v27  ;;  %v926_v40 = vshrl.u32 %v718_v52, 16 }
  0xe3   : > { %v929_v41 = vshll.u32 %v718_v52, 16  ;;  %v812_v43 = vor.u32 %v810_v24, %v809_v33  ;;  %v814_v44 = vrot.slane %v809_v33, 4  ;;  %v2156_v28 = vsel %vm6601_vm8, %v2154_v32, %v2155_v35  ;;  %v1140_v32 = vld [vmem:[#allocation2 + $0x9c] sm:$0xf]  ;;  %v520_v46 = vpop.f32.mrf.mxu3 }
  0xe4   : > { %v1655_v48 = vpack.c.b16 %v1627_v38, %v1626_v26  ;;  %v617_v49 = vmax.f32 %v585_v23, 0.0  ;;  %v928_v51 = vrot.slane %v926_v40, 7  ;;  %v2252_v47 = vunpack.c.l.b16 %v2156_v28 }
  0xe5   : > { %v813_v45 = vsel %vm6624_vm14, %v805_v53, %v812_v43  ;;  %v1089_v58 = vsel %vm6633_vm15, %v814_v44, %v1088_v36  ;;  %v1324_v63 = vshrl.u32 %v1176_v42, 16  ;;  %v719_v5 = vpack.c.bf16 %v631_v61, %v631_v61 }
  0xe6   : > { %1087 = vst.msk [vmem:[#allocation2 + $0x40] sm:$0xf] %vm639_vm2, %v813_v45  ;;  %5637 = vmatmul.msk.bf16.gmra.mxu1 %vm1692_vm0, %v1655_v48  ;;  %v705_v54 = vpack.c.bf16 %v617_v49, %v617_v49  ;;  %v931_v1 = vor.u32 %v929_v41, %v928_v51  ;;  %v933_v2 = vrot.slane %v928_v51, 4  ;;  %v482_v0 = vpop.f32.mrf.mxu0  ;;  %v2279_v4 = vpack.c.b16 %v2252_v47, %v2251_v37 }
  0xe7   : > { %1090 = vst [vmem:[#allocation2 + $0x44] sm:$0x1] %v1089_v58  ;;  %v550_v59 = vmul.f32 %v6540_v29, %v482_v0  ;;  %v1326_v53 = vrot.slane %v1324_v63, 4  ;;  %v1327_v7 = vshll.u32 %v1176_v42, 16  ;;  %v935_v13 = vshrl.u32 %v719_v5, 16 }
  0xe8   : > { %v816_v10 = vshrl.u32 %v705_v54, 16  ;;  %v819_v11 = vshll.u32 %v705_v54, 16  ;;  %v932_v8 = vsel %vm6624_vm14, %v924_v3, %v931_v1  ;;  %v1138_v30 = vsel %vm6633_vm15, %v933_v2, %v1137_v60  ;;  %5790 = vmatmul.msk.bf16.gmra.mxu3 %vm1692_vm0, %v2279_v4  ;;  %v1095_v2 = vld [vmem:[#allocation2 + $0x50] sm:$0x1] }
  0xe9   : > { %1136 = vst.msk [vmem:[#allocation2 + $0x94] sm:$0xf] %vm639_vm2, %v932_v8  ;;  %v586_v15 = vadd.f32 %v6552_v31, %v550_v59  ;;  %v938_v14 = vshll.u32 %v719_v5, 16  ;;  %v1329_v16 = vrot.slane %v1327_v7, 5  ;;  %v1333_v21 = vshll.u32 %v6819_v50, 16 }
  0xea   : > { %v818_v20 = vrot.slane %v816_v10, 7  ;;  %1139 = vst [vmem:[#allocation2 + $0x98] sm:$0x1] %v1138_v30  ;;  %v1337_v39 = vshrl.u32 %v6819_v50, 16  ;;  %v1343_v3 = vshll.u32 %v6823_v18, 16  ;;  %v6857_v25 = vrot.slane %v935_v13, 7 }
  0xeb   : > { %v618_v24 = vmax.f32 %v586_v15, 0.0  ;;  %v1330_v26 = vor.u32 %v1329_v16, %v1326_v53  ;;  %v564_v27 = vmul.f32 %v6540_v29, %v517_v57  ;;  %v1335_v33 = vrot.slane %v1333_v21, 5  ;;  %v2076_v18 = vld [vmem:[#allocation2 + $0x3c] sm:$0xe] }
  0xec   : > { %v821_v52 = vor.u32 %v819_v11, %v818_v20  ;;  %v822_v6 = vrot.slane %v818_v20, 4  ;;  %v1339_v34 = vrot.slane %v1337_v39, 4  ;;  %v940_v37 = vor.u32 %v938_v14, %v6857_v25  ;;  %v1178_v14 = vld [vmem:[#allocation2 + $0x3c] sm:$0xf] }
  0xed   : > { %v706_v35 = vpack.c.bf16 %v618_v24, %v618_v24  ;;  %v941_v36 = vrot.slane %v6857_v25, 4  ;;  %v1331_v50 = vrot.slane %v1330_v26, 4  ;;  %v6254_v38 = vld [vmem:[#allocation2 + $0x3c] sm:$0xff]  ;;  %v1345_v41 = vrot.slane %v1343_v3, 5 }
  0xee   : > { %v1092_v23 = vsel %vm6590_vm7, %v821_v52, %v1091_v22  ;;  %v1340_v40 = vor.u32 %v1339_v34, %v1335_v33  ;;  %v485_v42 = vpop.f32.mrf.mxu0  ;;  %v600_v43 = vadd.f32 %v6552_v31, %v564_v27  ;;  %v6865_v44 = vld [vmem:[#allocation2 + $0x40] sm:$0xf]  ;;  %v6867_v28 = vld [vmem:[#allocation2 + $0x44] sm:$0x1]  ;;  %v1141_v51 = vsel %vm6590_vm7, %v940_v37, %v1140_v32  ;;  %5894 = vmatmul.msk.bf16.gmra.mxu0 %vm1692_vm0, %v6254_v38 }
  0xef   : > { %1093 = vst [vmem:[#allocation2 + $0x48] sm:$0xf] %v1092_v23  ;;  %v824_v48 = vshrl.u32 %v706_v35, 16  ;;  %v827_v49 = vshll.u32 %v706_v35, 16  ;;  %v1336_v47 = vsel %vm6617_vm13, %v1331_v50, %v1335_v33  ;;  %v551_v58 = vmul.f32 %v6540_v29, %v485_v42  ;;  %v6893_v24 = vld [vmem:[%s8576_s3] ss:$0 sm:$0xff] }
  0xf0   : > { %1142 = vst [vmem:[#allocation2 + $0x9c] sm:$0xf] %v1141_v51  ;;  %v1341_v57 = vrot.slane %v1340_v40, 4  ;;  %v1628_v45 = vunpack.c.l.b16 %v1336_v47  ;;  %v632_v60 = vmax.f32 %v600_v43, 0.0  ;;  %v5751_v63 = vrot.slane %v2076_v18, 9  ;;  %v522_v18 = vpop.f32.mrf.mxu3 }
  0xf1   : > { %v826_v61 = vrot.slane %v824_v48, 7  ;;  %v2159_v54 = vrot.slane %v6865_v44, 5  ;;  %v2162_v1 = vrot.slane %v6867_v28, 5  ;;  %v587_v4 = vadd.f32 %v6552_v31, %v551_v58  ;;  %v1144_v27 = vld [vmem:[#allocation2 + $0xa4] sm:$0x1] }
  0xf2   : > { %v1346_v0 = vsel %vm6617_vm13, %v1341_v57, %v1345_v41  ;;  %v720_v59 = vpack.c.bf16 %v632_v60, %v632_v60  ;;  %v565_v5 = vmul.f32 %v6540_v29, %v520_v46  ;;  %v6900_v52 = vld [vmem:[%s8575_s2] ss:$0 sm:$0xff]  ;;  %v1348_v33 = vshrl.u32 %v1178_v14, 16  ;;  %v6904_v43 = vld [vmem:[#allocation2 + $0x10] sm:$0xf] }
  0xf3   : > { %v829_v53 = vor.u32 %v827_v49, %v826_v61  ;;  %v831_v7 = vrot.slane %v826_v61, 4  ;;  %v1629_v10 = vunpack.c.l.b16 %v1346_v0  ;;  %v2160_v11 = vsel %vm6601_vm8, %v5751_v63, %v2159_v54  ;;  %v1098_v48 = vld [vmem:[#allocation2 + $0x54] sm:$0xf] }
  0xf4   : > { %v619_v8 = vmax.f32 %v587_v4, 0.0  ;;  %v943_v30 = vshrl.u32 %v720_v59, 16  ;;  %v946_v15 = vshll.u32 %v720_v59, 16  ;;  %v2161_v13 = vrot.slane %v2159_v54, 4 }
  0xf5   : > { %v830_v16 = vsel %vm6624_vm14, %v822_v6, %v829_v53  ;;  %v1096_v31 = vsel %vm6633_vm15, %v831_v7, %v1095_v2  ;;  %v1656_v20 = vpack.c.b16 %v1629_v10, %v1628_v45  ;;  %v2253_v21 = vunpack.c.l.b16 %v2160_v11 }
  0xf6   : > { %1094 = vst.msk [vmem:[#allocation2 + $0x4c] sm:$0xf] %vm639_vm2, %v830_v16  ;;  %v707_v29 = vpack.c.bf16 %v619_v8, %v619_v8  ;;  %v945_v39 = vrot.slane %v943_v30, 7  ;;  %v487_v3 = vpop.f32.mrf.mxu0  ;;  %v2163_v22 = vsel %vm6601_vm8, %v2161_v13, %v2162_v1  ;;  %v601_v26 = vadd.f32 %v6893_v24, %v565_v5  ;;  %v2077_v59 = vld [vmem:[#allocation2 + $0x48] sm:$0xe] }
  0xf7   : > { %1097 = vst [vmem:[#allocation2 + $0x50] sm:$0x1] %v1096_v31  ;;  %5638 = vmatmul.msk.bf16.gmra.mxu1 %vm1692_vm0, %v1656_v20  ;;  %v552_v6 = vmul.f32 %v6900_v52, %v487_v3  ;;  %v2254_v32 = vunpack.c.l.b16 %v2163_v22  ;;  %v1351_v34 = vshll.u32 %v1178_v14, 16  ;;  %v1350_v42 = vrot.slane %v1348_v33, 4  ;;  %v1147_v14 = vld [vmem:[#allocation2 + $0xa8] sm:$0xf] }
  0xf8   : > { %v833_v35 = vshrl.u32 %v707_v29, 16  ;;  %v836_v37 = vshll.u32 %v707_v29, 16  ;;  %v948_v50 = vor.u32 %v946_v15, %v945_v39  ;;  %v950_v38 = vrot.slane %v945_v39, 4 }
  0xf9   : > { %v588_v23 = vadd.f32 %v6893_v24, %v552_v6  ;;  %v2280_v40 = vpack.c.b16 %v2254_v32, %v2253_v21  ;;  %v633_v41 = vmax.f32 %v601_v26, 0.0  ;;  %v1353_v47 = vrot.slane %v1351_v34, 5  ;;  %v1102_v26 = vld [vmem:[#allocation2 + $0x5c] sm:$0x1]  ;;  %v525_v34 = vpop.f32.mrf.mxu3 }
  0xfa   : > { %v835_v46 = vrot.slane %v833_v35, 7  ;;  %v949_v49 = vsel %vm6624_vm14, %v941_v36, %v948_v50  ;;  %v1145_v51 = vsel %vm6633_vm15, %v950_v38, %v1144_v27  ;;  %v1357_v58 = vshll.u32 %v6865_v44, 16 }
  0xfb   : > { %1143 = vst.msk [vmem:[#allocation2 + $0xa0] sm:$0xf] %vm639_vm2, %v949_v49  ;;  %v620_v57 = vmax.f32 %v588_v23, 0.0  ;;  %5791 = vmatmul.msk.bf16.gmra.mxu3 %vm1692_vm0, %v2280_v40  ;;  %v721_v45 = vpack.c.bf16 %v633_v41, %v633_v41  ;;  %v1361_v60 = vshrl.u32 %v6865_v44, 16  ;;  %v1354_v25 = vor.u32 %v1353_v47, %v1350_v42 }
  0xfc   : > { %v838_v61 = vor.u32 %v836_v37, %v835_v46  ;;  %1146 = vst [vmem:[#allocation2 + $0xa4] sm:$0x1] %v1145_v51  ;;  %v1367_v63 = vshll.u32 %v6867_v28, 16  ;;  %v2856_v36 = vshll.u32 %v6904_v43, 16  ;;  %v1359_v0 = vrot.slane %v1357_v58, 5 }
  0xfd   : > { %v708_v54 = vpack.c.bf16 %v620_v57, %v620_v57  ;;  %v952_v1 = vshrl.u32 %v721_v45, 16  ;;  %v955_v2 = vshll.u32 %v721_v45, 16  ;;  %v6255_v4 = vld [vmem:[#allocation2 + $0x48] sm:$0xff]  ;;  %v839_v5 = vrot.slane %v835_v46, 4 }
  0xfe   : > { %v1099_v53 = vsel %vm6590_vm7, %v838_v61, %v1098_v48  ;;  %v1355_v7 = vrot.slane %v1354_v25, 4  ;;  %v1363_v10 = vrot.slane %v1361_v60, 4  ;;  %v490_v44 = vpop.f32.mrf.mxu0  ;;  %v6920_v11 = vld [vmem:[#allocation2 + $0x4c] sm:$0xf]  ;;  %v1369_v30 = vrot.slane %v1367_v63, 5  ;;  %5895 = vmatmul.msk.bf16.gmra.mxu0 %vm1692_vm0, %v6255_v4 }
  0xff   : > { %1100 = vst [vmem:[#allocation2 + $0x54] sm:$0xf] %v1099_v53  ;;  %v841_v8 = vshrl.u32 %v708_v54, 16  ;;  %v6922_v28 = vrot.slane %v952_v1, 7  ;;  %v553_v15 = vmul.f32 %v6900_v52, %v490_v44  ;;  %v844_v13 = vshll.u32 %v708_v54, 16 }
 0x100   : > { %v1360_v16 = vsel %vm6617_vm13, %v1355_v7, %v1359_v0  ;;  %v1364_v31 = vor.u32 %v1363_v10, %v1359_v0  ;;  %v566_v20 = vmul.f32 %v6900_v52, %v522_v18  ;;  %v6929_v21 = vld [vmem:[#allocation2 + $0x50] sm:$0x1]  ;;  %v5752_v22 = vrot.slane %v2077_v59, 9  ;;  %v1180_v51 = vld [vmem:[#allocation2 + $0x48] sm:$0xf] }
 0x101   : > { %v843_v29 = vrot.slane %v841_v8, 7  ;;  %v957_v39 = vor.u32 %v955_v2, %v6922_v28  ;;  %v1630_v3 = vunpack.c.l.b16 %v1360_v16  ;;  %v589_v6 = vadd.f32 %v6893_v24, %v553_v15  ;;  %v1105_v44 = vld [vmem:[#allocation2 + $0x60] sm:$0xf]  ;;  %v1151_v15 = vld [vmem:[#allocation2 + $0xb0] sm:$0x1] }
 0x102   : > { %v1365_v27 = vrot.slane %v1364_v31, 4  ;;  %v602_v32 = vadd.f32 %v6893_v24, %v566_v20  ;;  %v2166_v33 = vrot.slane %v6920_v11, 5  ;;  %v2169_v38 = vrot.slane %v6929_v21, 5 }
 0x103   : > { %v846_v35 = vor.u32 %v844_v13, %v843_v29  ;;  %v848_v37 = vrot.slane %v843_v29, 4  ;;  %v1148_v50 = vsel %vm6590_vm7, %v957_v39, %v1147_v14  ;;  %v621_v23 = vmax.f32 %v589_v6, 0.0 }
 0x104   : > { %1149 = vst [vmem:[#allocation2 + $0xa8] sm:$0xf] %v1148_v50  ;;  %v1370_v18 = vsel %vm6617_vm13, %v1365_v27, %v1369_v30  ;;  %v634_v40 = vmax.f32 %v602_v32, 0.0  ;;  %v2167_v41 = vsel %vm6601_vm8, %v5752_v22, %v2166_v33  ;;  %v2168_v49 = vrot.slane %v2166_v33, 4  ;;  %v527_v22 = vpop.f32.mrf.mxu3 }
 0x105   : > { %v847_v42 = vsel %vm6624_vm14, %v839_v5, %v846_v35  ;;  %v1103_v46 = vsel %vm6633_vm15, %v848_v37, %v1102_v26  ;;  %v1631_v48 = vunpack.c.l.b16 %v1370_v18  ;;  %v958_v47 = vrot.slane %v6922_v28, 4 }
 0x106   : > { %1101 = vst.msk [vmem:[#allocation2 + $0x58] sm:$0xf] %vm639_vm2, %v847_v42  ;;  %v709_v57 = vpack.c.bf16 %v621_v23, %v621_v23  ;;  %v722_v45 = vpack.c.bf16 %v634_v40, %v634_v40  ;;  %v492_v58 = vpop.f32.mrf.mxu0  ;;  %v567_v60 = vmul.f32 %v6900_v52, %v525_v34  ;;  %v2170_v63 = vsel %vm6601_vm8, %v2168_v49, %v2169_v38 }
 0x107   : > { %1104 = vst [vmem:[#allocation2 + $0x5c] sm:$0x1] %v1103_v46  ;;  %v1657_v61 = vpack.c.b16 %v1631_v48, %v1630_v3  ;;  %v554_v25 = vmul.f32 %v6900_v52, %v492_v58  ;;  %v2255_v54 = vunpack.c.l.b16 %v2167_v41  ;;  %v1372_v4 = vshrl.u32 %v1180_v51, 16  ;;  %v1109_v41 = vld [vmem:[#allocation2 + $0x68] sm:$0x1] }
 0x108   : > { %v850_v1 = vshrl.u32 %v709_v57, 16  ;;  %v960_v2 = vshrl.u32 %v722_v45, 16  ;;  %v963_v0 = vshll.u32 %v722_v45, 16  ;;  %v853_v59 = vshll.u32 %v709_v57, 16 }
 0x109   : > { %5639 = vmatmul.msk.bf16.gmra.mxu1 %vm1692_vm0, %v1657_v61  ;;  %v590_v5 = vadd.f32 %v6893_v24, %v554_v25  ;;  %v2256_v53 = vunpack.c.l.b16 %v2170_v63  ;;  %v603_v7 = vadd.f32 %v6893_v24, %v567_v60  ;;  %v1375_v28 = vshll.u32 %v1180_v51, 16  ;;  %v2078_v51 = vld [vmem:[#allocation2 + $0x54] sm:$0xe] }
 0x10a   : > { %v6955_v10 = vrot.slane %v850_v1, 7  ;;  %v962_v8 = vrot.slane %v960_v2, 7  ;;  %v1381_v30 = vshll.u32 %v6920_v11, 16  ;;  %v1385_v31 = vshrl.u32 %v6920_v11, 16  ;;  %v1154_v61 = vld [vmem:[#allocation2 + $0xb4] sm:$0xf] }
 0x10b   : > { %v622_v13 = vmax.f32 %v590_v5, 0.0  ;;  %v2281_v14 = vpack.c.b16 %v2256_v53, %v2255_v54  ;;  %v635_v16 = vmax.f32 %v603_v7, 0.0  ;;  %v1374_v3 = vrot.slane %v1372_v4, 4  ;;  %v6272_v1 = vld [vmem:[%s8577_s4 + $0x90] sm:$0xff] }
 0x10c   : > { %v855_v20 = vor.u32 %v853_v59, %v6955_v10  ;;  %v965_v29 = vor.u32 %v963_v0, %v962_v8  ;;  %v967_v39 = vrot.slane %v962_v8, 4  ;;  %v1377_v6 = vrot.slane %v1375_v28, 5 }
 0x10d   : > { %v710_v26 = vpack.c.bf16 %v622_v13, %v622_v13  ;;  %5792 = vmatmul.msk.bf16.gmra.mxu3 %vm1692_vm0, %v2281_v14  ;;  %v723_v27 = vpack.c.bf16 %v635_v16, %v635_v16  ;;  %v1383_v32 = vrot.slane %v1381_v30, 5  ;;  %v6256_v33 = vld [vmem:[#allocation2 + $0x54] sm:$0xff]  ;;  %v1387_v37 = vrot.slane %v1385_v31, 4 }
 0x10e   : > { %v1106_v34 = vsel %vm6590_vm7, %v855_v20, %v1105_v44  ;;  %v966_v35 = vsel %vm6624_vm14, %v958_v47, %v965_v29  ;;  %v1152_v11 = vsel %vm6633_vm15, %v967_v39, %v1151_v15  ;;  %v495_v50 = vpop.f32.mrf.mxu0  ;;  %v856_v38 = vrot.slane %v6955_v10, 4  ;;  %5896 = vmatmul.msk.bf16.gmra.mxu0 %vm1692_vm0, %v6256_v33  ;;  %v6273_v47 = vld [vmem:[%s8577_s4 + $0x98] sm:$0xff]  ;;  %v6998_v14 = vld [vmem:[#allocation2 + $0x54] sm:$0xf] }
 0x10f   : > { %1107 = vst [vmem:[#allocation2 + $0x60] sm:$0xf] %v1106_v34  ;;  %v858_v18 = vshrl.u32 %v710_v26, 16  ;;  %v969_v23 = vshrl.u32 %v723_v27, 16  ;;  %v972_v40 = vshll.u32 %v723_v27, 16  ;;  %v1378_v42 = vor.u32 %v1377_v6, %v1374_v3  ;;  %3363 = vmatpush.bf16.msrb.mxu1 %v6273_v47  ;;  %v530_v3 = vpop.f32.mrf.mxu3 }
 0x110   : > { %1150 = vst.msk [vmem:[#allocation2 + $0xac] sm:$0xf] %vm639_vm2, %v966_v35  ;;  %v1388_v46 = vor.u32 %v1387_v37, %v1383_v32  ;;  %v1391_v48 = vshll.u32 %v6929_v21, 16  ;;  %v555_v49 = vmul.f32 %v6900_v52, %v495_v50  ;;  %v861_v45 = vshll.u32 %v710_v26, 16  ;;  %v6983_v59 = vld [vmem:[#allocation2 + $0x58] sm:$0xf] }
 0x111   : > { %1153 = vst [vmem:[#allocation2 + $0xb0] sm:$0x1] %v1152_v11  ;;  %v860_v57 = vrot.slane %v858_v18, 7  ;;  %v6975_v58 = vrot.slane %v969_v23, 7  ;;  %v568_v60 = vmul.f32 %v6900_v52, %v527_v22  ;;  %v1379_v25 = vrot.slane %v1378_v42, 4  ;;  %v6241_v37 = vld [vmem:[%s8577_s4 + $0x18] sm:$0xff] }
 0x112   : > { %v1389_v63 = vrot.slane %v1388_v46, 4  ;;  %v1393_v54 = vrot.slane %v1391_v48, 5  ;;  %v591_v21 = vadd.f32 %v6893_v24, %v555_v49  ;;  %v5753_v5 = vrot.slane %v2078_v51, 9  ;;  %v6990_v8 = vld [vmem:[#allocation2 + $0x5c] sm:$0x1]  ;;  %1986 = vmatpush.bf16.msrb.mxu2 %v6241_v37 }
 0x113   : > { %v863_v2 = vor.u32 %v861_v45, %v860_v57  ;;  %v865_v0 = vrot.slane %v860_v57, 4  ;;  %v974_v4 = vor.u32 %v972_v40, %v6975_v58  ;;  %v1384_v53 = vsel %vm6617_vm13, %v1379_v25, %v1383_v32  ;;  %3364 = vmatpush.bf16.msrb.mxu1 %v6272_v1  ;;  %v6271_v32 = vld [vmem:[%s8577_s4 + $0x88] sm:$0xff]  ;;  %v6270_v45 = vld [vmem:[%s8577_s4 + $0x80] sm:$0xff] }
 0x114   : > { %v1394_v7 = vsel %vm6617_vm13, %v1389_v63, %v1393_v54  ;;  %v623_v10 = vmax.f32 %v591_v21, 0.0  ;;  %v604_v44 = vadd.f32 %v6893_v24, %v568_v60  ;;  %v1632_v13 = vunpack.c.l.b16 %v1384_v53  ;;  %v1112_v48 = vld [vmem:[#allocation2 + $0x6c] sm:$0xf]  ;;  %v1158_v63 = vld [vmem:[#allocation2 + $0xbc] sm:$0x1] }
 0x115   : > { %v864_v28 = vsel %vm6624_vm14, %v856_v38, %v863_v2  ;;  %v1110_v30 = vsel %vm6633_vm15, %v865_v0, %v1109_v41  ;;  %v1155_v15 = vsel %vm6590_vm7, %v974_v4, %v1154_v61  ;;  %v1633_v16 = vunpack.c.l.b16 %v1394_v7 }
 0x116   : > { %1108 = vst.msk [vmem:[#allocation2 + $0x64] sm:$0xf] %vm639_vm2, %v864_v28  ;;  %v711_v31 = vpack.c.bf16 %v623_v10, %v623_v10  ;;  %v636_v20 = vmax.f32 %v604_v44, 0.0  ;;  %v497_v29 = vpop.f32.mrf.mxu0  ;;  %v2173_v39 = vrot.slane %v6983_v59, 5  ;;  %v975_v22 = vrot.slane %v6975_v58, 4 }
 0x117   : > { %1111 = vst [vmem:[#allocation2 + $0x68] sm:$0x1] %v1110_v30  ;;  %v556_v26 = vmul.f32 %v6900_v52, %v497_v29  ;;  %v2176_v27 = vrot.slane %v6990_v8, 5  ;;  %v569_v6 = vmul.f32 %v6900_v52, %v530_v3  ;;  %v1658_v33 = vpack.c.b16 %v1633_v16, %v1632_v13  ;;  %3365 = vmatpush.bf16.msrb.mxu1 %v6271_v32  ;;  %v2079_v29 = vld [vmem:[#allocation2 + $0x60] sm:$0xe] }
 0x118   : > { %1156 = vst [vmem:[#allocation2 + $0xb4] sm:$0xf] %v1155_v15  ;;  %v867_v34 = vshrl.u32 %v711_v31, 16  ;;  %v724_v35 = vpack.c.bf16 %v636_v20, %v636_v20  ;;  %v1396_v11 = vshrl.u32 %v6998_v14, 16  ;;  %v2174_v38 = vsel %vm6601_vm8, %v5753_v5, %v2173_v39 }
 0x119   : > { %v592_v50 = vadd.f32 %v6893_v24, %v556_v26  ;;  %v2175_v18 = vrot.slane %v2173_v39, 4  ;;  %v605_v23 = vadd.f32 %v6893_v24, %v569_v6  ;;  %5640 = vmatmul.msk.bf16.gmra.mxu1 %vm1692_vm0, %v1658_v33  ;;  %v870_v41 = vshll.u32 %v711_v31, 16  ;;  %v1116_v31 = vld [vmem:[#allocation2 + $0x74] sm:$0x1]  ;;  %v532_v6 = vpop.f32.mrf.mxu3 }
 0x11a   : > { %v7018_v40 = vrot.slane %v867_v34, 7  ;;  %v977_v42 = vshrl.u32 %v724_v35, 16  ;;  %v980_v46 = vshll.u32 %v724_v35, 16  ;;  %v2257_v47 = vunpack.c.l.b16 %v2174_v38 }
 0x11b   : > { %v624_v49 = vmax.f32 %v592_v50, 0.0  ;;  %v2177_v51 = vsel %vm6601_vm8, %v2175_v18, %v2176_v27  ;;  %v637_v57 = vmax.f32 %v605_v23, 0.0  ;;  %v1398_v25 = vrot.slane %v1396_v11, 4  ;;  %3366 = vmatpush.bf16.msrb.mxu1 %v6270_v45  ;;  %v1184_v18 = vld [vmem:[#allocation2 + $0x60] sm:$0xf] }
 0x11c   : > { %v872_v58 = vor.u32 %v870_v41, %v7018_v40  ;;  %v979_v60 = vrot.slane %v977_v42, 7  ;;  %v2258_v61 = vunpack.c.l.b16 %v2177_v51  ;;  %v1399_v1 = vshll.u32 %v6998_v14, 16 }
 0x11d   : > { %v712_v54 = vpack.c.bf16 %v624_v49, %v624_v49  ;;  %v725_v21 = vpack.c.bf16 %v637_v57, %v637_v57  ;;  %v1405_v2 = vshll.u32 %v6983_v59, 16  ;;  %v6257_v0 = vld [vmem:[#allocation2 + $0x60] sm:$0xff]  ;;  %v873_v44 = vrot.slane %v7018_v40, 4 }
 0x11e   : > { %v1113_v4 = vsel %vm6590_vm7, %v872_v58, %v1112_v48  ;;  %v982_v5 = vor.u32 %v980_v46, %v979_v60  ;;  %v984_v53 = vrot.slane %v979_v60, 4  ;;  %v2282_v7 = vpack.c.b16 %v2258_v61, %v2257_v47  ;;  %v7030_v10 = vld [vmem:[#allocation2 + $0x64] sm:$0xf]  ;;  %5897 = vmatmul.msk.bf16.gmra.mxu0 %vm1692_vm0, %v6257_v0  ;;  %v1216_v41 = vld [vmem:[#allocation2 + $0x68] sm:$0x1] }
 0x11f   : > { %1114 = vst [vmem:[#allocation2 + $0x6c] sm:$0xf] %v1113_v4  ;;  %v875_v28 = vshrl.u32 %v712_v54, 16  ;;  %v986_v30 = vshrl.u32 %v725_v21, 16  ;;  %v989_v15 = vshll.u32 %v725_v21, 16  ;;  %v878_v16 = vshll.u32 %v712_v54, 16  ;;  %v7062_v21 = vpop.f32.mrf.mxu1 }
 0x120   : > { %v983_v13 = vsel %vm6624_vm14, %v975_v22, %v982_v5  ;;  %v1159_v14 = vsel %vm6633_vm15, %v984_v53, %v1158_v63  ;;  %5793 = vmatmul.msk.bf16.gmra.mxu3 %vm1692_vm0, %v2282_v7  ;;  %v1401_v20 = vrot.slane %v1399_v1, 5  ;;  %v1409_v26 = vshrl.u32 %v6983_v59, 16  ;;  %v1161_v22 = vld [vmem:[#allocation2 + $0xc0] sm:$0xf] }
 0x121   : > { %1157 = vst.msk [vmem:[#allocation2 + $0xb8] sm:$0xf] %vm639_vm2, %v983_v13  ;;  %v877_v39 = vrot.slane %v875_v28, 7  ;;  %v7040_v3 = vrot.slane %v986_v30, 7  ;;  %v1415_v27 = vshll.u32 %v6990_v8, 16  ;;  %v1407_v33 = vrot.slane %v1405_v2, 5  ;;  %v7067_v28 = vpop.f32.mrf.mxu3 }
 0x122   : > { %1160 = vst [vmem:[#allocation2 + $0xbc] sm:$0x1] %v1159_v14  ;;  %v1402_v32 = vor.u32 %v1401_v20, %v1398_v25  ;;  %v570_v34 = vmul.f32 %v6900_v52, %v532_v6  ;;  %v2180_v35 = vrot.slane %v7030_v10, 5  ;;  %v5754_v38 = vrot.slane %v2079_v29, 9  ;;  %v2800_v14 = vld [vmem:[#allocation2 + $0x14] sm:$0x1] }
 0x123   : > { %v880_v11 = vor.u32 %v878_v16, %v877_v39  ;;  %v882_v37 = vrot.slane %v877_v39, 4  ;;  %v991_v50 = vor.u32 %v989_v15, %v7040_v3  ;;  %v1411_v40 = vrot.slane %v1409_v26, 4  ;;  %v1165_v26 = vld [vmem:[#allocation2 + $0xc8] sm:$0x1] }
 0x124   : > { %v1403_v23 = vrot.slane %v1402_v32, 4  ;;  %v1417_v59 = vrot.slane %v1415_v27, 5  ;;  %v606_v8 = vadd.f32 %v6893_v24, %v570_v34  ;;  %v2181_v48 = vsel %vm6601_vm8, %v5754_v38, %v2180_v35 }
 0x125   : > { %v881_v42 = vsel %vm6624_vm14, %v873_v44, %v880_v11  ;;  %v1117_v52 = vsel %vm6633_vm15, %v882_v37, %v1116_v31  ;;  %v1162_v46 = vsel %vm6590_vm7, %v991_v50, %v1161_v22  ;;  %v1412_v51 = vor.u32 %v1411_v40, %v1407_v33 }
 0x126   : > { %1115 = vst.msk [vmem:[#allocation2 + $0x70] sm:$0xf] %vm639_vm2, %v881_v42  ;;  %v1408_v49 = vsel %vm6617_vm13, %v1403_v23, %v1407_v33  ;;  %v638_v24 = vmax.f32 %v606_v8, 0.0  ;;  %v2182_v47 = vrot.slane %v2180_v35, 4  ;;  %v2183_v45 = vrot.slane %v1216_v41, 5 }
 0x127   : > { %1118 = vst [vmem:[#allocation2 + $0x74] sm:$0x1] %v1117_v52  ;;  %v1634_v57 = vunpack.c.l.b16 %v1408_v49  ;;  %v2259_v58 = vunpack.c.l.b16 %v2181_v48  ;;  %v1420_v60 = vshrl.u32 %v1184_v18, 16  ;;  %v1413_v61 = vrot.slane %v1412_v51, 4  ;;  %v2080_v23 = vld [vmem:[#allocation2 + $0x6c] sm:$0xe] }
 0x128   : > { %1163 = vst [vmem:[#allocation2 + $0xc0] sm:$0xf] %v1162_v46  ;;  %v726_v55 = vpack.c.bf16 %v638_v24, %v638_v24  ;;  %v1423_v25 = vshll.u32 %v1184_v18, 16  ;;  %v1429_v63 = vshll.u32 %v7030_v10, 16  ;;  %v2184_v54 = vsel %vm6601_vm8, %v2182_v47, %v2183_v45  ;;  %v7092_v46 = vpop.f32.mrf.mxu1 }
 0x129   : > { %v1422_v1 = vrot.slane %v1420_v60, 4  ;;  %v1433_v2 = vshrl.u32 %v7030_v10, 16  ;;  %v1439_v0 = vshll.u32 %v1216_v41, 16  ;;  %v1418_v4 = vsel %vm6617_vm13, %v1413_v61, %v1417_v59  ;;  %v7094_v48 = vpop.f32.mrf.mxu3 }
 0x12a   : > { %v994_v5 = vshrl.u32 %v726_v55, 16  ;;  %v997_v53 = vshll.u32 %v726_v55, 16  ;;  %v2260_v7 = vunpack.c.l.b16 %v2184_v54  ;;  %v1635_v44 = vunpack.c.l.b16 %v1418_v4  ;;  %v2801_v54 = vld [vmem:[#allocation2 + $0x18] sm:$0xf]  ;;  %v2802_v4 = vld [vmem:[#allocation2 + $0x1c] sm:$0xf] }
 0x12b   : > { %v1425_v30 = vrot.slane %v1423_v25, 5  ;;  %v1431_v15 = vrot.slane %v1429_v63, 5  ;;  %v1435_v13 = vrot.slane %v1433_v2, 4  ;;  %v992_v16 = vrot.slane %v7040_v3, 4  ;;  %v7074_v29 = vpop.f32.mrf.mxu0 }
 0x12c   : > { %v996_v31 = vrot.slane %v994_v5, 7  ;;  %v2283_v20 = vpack.c.b16 %v2260_v7, %v2259_v58  ;;  %v7072_v10 = vrot.slane %v2856_v36, 5  ;;  %v1659_v39 = vpack.c.b16 %v1635_v44, %v1634_v57  ;;  %v6240_v5 = vld [vmem:[%s8577_s4 + $0x10] sm:$0xff] }
 0x12d   : > { %v1426_v27 = vor.u32 %v1425_v30, %v1422_v1  ;;  %v1436_v6 = vor.u32 %v1435_v13, %v1431_v15  ;;  %v2860_v22 = vshrl.u32 %v6904_v43, 16  ;;  %v6258_v32 = vld [vmem:[#allocation2 + $0x6c] sm:$0xff]  ;;  %v2853_v3 = vor.u32 %v6748_v17, %v6698_v56  ;;  %1987 = vmatpush.bf16.msrb.mxu2 %v6240_v5 }
 0x12e   : > { %v999_v33 = vor.u32 %v997_v53, %v996_v31  ;;  %v1001_v34 = vrot.slane %v996_v31, 4  ;;  %v2866_v35 = vshll.u32 %v2800_v14, 16  ;;  %5641 = vmatmul.msk.bf16.gmra.mxu1 %vm1692_vm0, %v1659_v39  ;;  %v1441_v37 = vrot.slane %v1439_v0, 5  ;;  %5898 = vmatmul.msk.bf16.gmra.mxu0 %vm1692_vm0, %v6258_v32  ;;  %v1187_v18 = vld [vmem:[#allocation2 + $0x70] sm:$0xf] }
 0x12f   : > { %v1427_v11 = vrot.slane %v1426_v27, 4  ;;  %v1437_v36 = vrot.slane %v1436_v6, 4  ;;  %v2862_v50 = vrot.slane %v2860_v22, 4  ;;  %v1186_v56 = vld [vmem:[#allocation2 + $0x6c] sm:$0xf]  ;;  %v2854_v19 = vrot.slane %v2853_v3, 4 }
 0x130   : > { %v1000_v38 = vsel %vm6624_vm14, %v992_v16, %v999_v33  ;;  %v1166_v43 = vsel %vm6633_vm15, %v1001_v34, %v1165_v26  ;;  %5794 = vmatmul.msk.bf16.gmra.mxu3 %vm1692_vm0, %v2283_v20  ;;  %v2868_v41 = vrot.slane %v2866_v35, 5  ;;  %v1217_v42 = vld [vmem:[#allocation2 + $0x74] sm:$0x1]  ;;  %v5755_v49 = vrot.slane %v2080_v23, 9 }
 0x131   : > { %1164 = vst.msk [vmem:[#allocation2 + $0xc4] sm:$0xf] %vm639_vm2, %v1000_v38  ;;  %v1432_v17 = vsel %vm6617_vm13, %v1427_v11, %v1431_v15  ;;  %v1442_v40 = vsel %vm6617_vm13, %v1437_v36, %v1441_v37  ;;  %v2863_v59 = vor.u32 %v2862_v50, %v7072_v10  ;;  %v2187_v51 = vrot.slane %v1187_v18, 5  ;;  %v2803_v11 = vld [vmem:[#allocation2 + $0x20] sm:$0x1] }
 0x132   : > { %1167 = vst [vmem:[#allocation2 + $0xc8] sm:$0x1] %v1166_v43  ;;  %v1636_v12 = vunpack.c.l.b16 %v1432_v17  ;;  %v1637_v8 = vunpack.c.l.b16 %v1442_v40  ;;  %v1444_v24 = vshrl.u32 %v1186_v56, 16  ;;  %v1447_v45 = vshll.u32 %v1186_v56, 16  ;;  %v1188_v50 = vld [vmem:[#allocation2 + $0x78] sm:$0xf] }
 0x133   : > { %v2864_v52 = vrot.slane %v2863_v59, 4  ;;  %v7096_v57 = vpop.f32.mrf.mxu0  ;;  %v1453_v58 = vshll.u32 %v1187_v18, 16  ;;  %v1457_v60 = vshrl.u32 %v1187_v18, 16  ;;  %v2189_v55 = vrot.slane %v2187_v51, 4  ;;  %v6259_v17 = vld [vmem:[#allocation2 + $0x78] sm:$0xff] }
 0x134   : > { %v1660_v47 = vpack.c.b16 %v1637_v8, %v1636_v12  ;;  %v2190_v25 = vrot.slane %v1217_v42, 5  ;;  %v1446_v63 = vrot.slane %v1444_v24, 4  ;;  %v2859_v1 = vsel %vm6617_vm13, %v2854_v19, %v7072_v10  ;;  %v1189_v12 = vld [vmem:[#allocation2 + $0x7c] sm:$0xf] }
 0x135   : > { %v2869_v61 = vsel %vm6617_vm13, %v2864_v52, %v2868_v41  ;;  %v1449_v2 = vrot.slane %v1447_v45, 5  ;;  %v1455_v0 = vrot.slane %v1453_v58, 5  ;;  %v2188_v53 = vsel %vm6601_vm8, %v5755_v49, %v2187_v51  ;;  %v1218_v49 = vld [vmem:[#allocation2 + $0x80] sm:$0x1]  ;;  %v2081_v51 = vld [vmem:[#allocation2 + $0x78] sm:$0xe] }
 0x136   : > { %5642 = vmatmul.msk.bf16.vlgmr.msra.gmra.mxu2 %vm1692_vm0, %v1660_v47  ;;  %v2191_v7 = vsel %vm6601_vm8, %v2189_v55, %v2190_v25  ;;  %v1459_v44 = vrot.slane %v1457_v60, 4  ;;  %v1463_v30 = vshll.u32 %v1217_v42, 16  ;;  %v3240_v15 = vunpack.c.l.b16 %v2869_v61 }
 0x137   : > { %v2262_v13 = vunpack.c.l.b16 %v2191_v7  ;;  %v1450_v14 = vor.u32 %v1449_v2, %v1446_v63  ;;  %v2871_v31 = vshrl.u32 %v2801_v54, 16  ;;  %v2874_v20 = vshll.u32 %v2801_v54, 16 }
 0x138   : > { %v1460_v16 = vor.u32 %v1459_v44, %v1455_v0  ;;  %v2880_v10 = vshll.u32 %v2802_v4, 16  ;;  %v3239_v39 = vunpack.c.l.b16 %v2859_v1  ;;  %v2261_v26 = vunpack.c.l.b16 %v2188_v53 }
 0x139   : > { %v2884_v27 = vshrl.u32 %v2802_v4, 16  ;;  %v1451_v22 = vrot.slane %v1450_v14, 4  ;;  %v1465_v33 = vrot.slane %v1463_v30, 5  ;;  %v2873_v23 = vrot.slane %v2871_v31, 4 }
 0x13a   : > { %v1461_v32 = vrot.slane %v1460_v16, 4  ;;  %v7113_v34 = vrot.slane %v2880_v10, 5  ;;  %v3271_v3 = vpack.c.b16 %v3240_v15, %v3239_v39  ;;  %v2284_v35 = vpack.c.b16 %v2262_v13, %v2261_v26  ;;  %v7117_v38 = vpop.f32.mrf.mxu1  ;;  %v2804_v13 = vld [vmem:[#allocation2 + $0x24] sm:$0xf] }
 0x13b   : > { %v7111_v6 = vpop.f32.mrf.mxu3  ;;  %v2886_v36 = vrot.slane %v2884_v27, 4  ;;  %v7115_v37 = vpop.f32.mrf.mxu0  ;;  %v1456_v43 = vsel %vm6617_vm13, %v1451_v22, %v1455_v0  ;;  %v2876_v56 = vrot.slane %v2874_v20, 5  ;;  %v2890_v8 = vshll.u32 %v2803_v11, 16  ;;  %v2805_v0 = vld [vmem:[#allocation2 + $0x28] sm:$0xf] }
 0x13c   : > { %v1466_v18 = vsel %vm6617_vm13, %v1461_v32, %v1465_v33  ;;  %v2194_v19 = vrot.slane %v1189_v12, 5  ;;  %v1468_v41 = vshrl.u32 %v1188_v50, 16  ;;  %v1471_v42 = vshll.u32 %v1188_v50, 16  ;;  %v1190_v50 = vld [vmem:[#allocation2 + $0x84] sm:$0xf] }
 0x13d   : > { %v1639_v40 = vunpack.c.l.b16 %v1466_v18  ;;  %v2887_v59 = vor.u32 %v2886_v36, %v7113_v34  ;;  %v1638_v52 = vunpack.c.l.b16 %v1456_v43  ;;  %v2877_v24 = vor.u32 %v2876_v56, %v2873_v23  ;;  %v1191_v56 = vld [vmem:[#allocation2 + $0x88] sm:$0xf] }
 0x13e   : > { %5930 = vmatmul.msk.bf16.vlgmr.msrb.gmra.mxu1 %vm1692_vm0, %v3271_v3  ;;  %5899 = vmatmul.msk.bf16.gmra.mxu0 %vm1692_vm0, %v6259_v17  ;;  %v1470_v45 = vrot.slane %v1468_v41, 4  ;;  %v1473_v58 = vrot.slane %v1471_v42, 5  ;;  %v1477_v61 = vshll.u32 %v1189_v12, 16  ;;  %v1481_v55 = vshrl.u32 %v1189_v12, 16 }
 0x13f   : > { %v2888_v47 = vrot.slane %v2887_v59, 4  ;;  %v1661_v60 = vpack.c.b16 %v1639_v40, %v1638_v52  ;;  %v2892_v25 = vrot.slane %v2890_v8, 5  ;;  %v5756_v54 = vrot.slane %v2081_v51, 9  ;;  %v2806_v40 = vld [vmem:[#allocation2 + $0x2c] sm:$0x1]  ;;  %v6260_v51 = vld [vmem:[#allocation2 + $0x84] sm:$0xff] }
 0x140   : > { %5795 = vmatmul.msk.bf16.gmra.mxu3 %vm1692_vm0, %v2284_v35  ;;  %v2196_v1 = vrot.slane %v2194_v19, 4  ;;  %v2197_v2 = vrot.slane %v1218_v49, 5  ;;  %v1474_v5 = vor.u32 %v1473_v58, %v1470_v45  ;;  %v1479_v53 = vrot.slane %v1477_v61, 5 }
 0x141   : > { %v1483_v7 = vrot.slane %v1481_v55, 4  ;;  %v2878_v44 = vrot.slane %v2877_v24, 4  ;;  %v2893_v30 = vsel %vm6617_vm13, %v2888_v47, %v2892_v25  ;;  %v1487_v15 = vshll.u32 %v1218_v49, 16 }
 0x142   : > { %v2904_v16 = vshll.u32 %v2805_v0, 16  ;;  %v2908_v31 = vshrl.u32 %v2805_v0, 16  ;;  %v7137_v10 = vpop.f32.mrf.mxu1  ;;  %v2195_v39 = vsel %vm6601_vm8, %v5756_v54, %v2194_v19  ;;  %v2198_v26 = vsel %vm6601_vm8, %v2196_v1, %v2197_v2  ;;  %v1219_v54 = vld [vmem:[#allocation2 + $0x8c] sm:$0x1] }
 0x143   : > { %v7127_v63 = vpop.f32.mrf.mxu3  ;;  %v7129_v4 = vpop.f32.mrf.mxu0  ;;  %v1484_v14 = vor.u32 %v1483_v7, %v1479_v53  ;;  %v2883_v20 = vsel %vm6617_vm13, %v2878_v44, %v7113_v34  ;;  %v3242_v27 = vunpack.c.l.b16 %v2893_v30  ;;  %v1475_v22 = vrot.slane %v1474_v5, 4  ;;  %v2808_v30 = vld [vmem:[#allocation2 + $0x34] sm:$0xf] }
 0x144   : > { %v2895_v32 = vshrl.u32 %v2804_v13, 16  ;;  %v2898_v33 = vshll.u32 %v2804_v13, 16  ;;  %v1489_v35 = vrot.slane %v1487_v15, 5  ;;  %v7143_v11 = vrot.slane %v2904_v16, 5 }
 0x145   : > { %v1485_v3 = vrot.slane %v1484_v14, 4  ;;  %v2910_v36 = vrot.slane %v2908_v31, 4  ;;  %v3241_v43 = vunpack.c.l.b16 %v2883_v20  ;;  %v2263_v34 = vunpack.c.l.b16 %v2195_v39  ;;  %v2807_v20 = vld [vmem:[#allocation2 + $0x30] sm:$0xf] }
 0x146   : > { %5643 = vmatmul.msk.bf16.gmra.mxu2 %vm1692_vm0, %v1661_v60  ;;  %v2264_v18 = vunpack.c.l.b16 %v2198_v26  ;;  %v2897_v59 = vrot.slane %v2895_v32, 4  ;;  %v1492_v8 = vshrl.u32 %v1190_v50, 16  ;;  %v1495_v19 = vshll.u32 %v1190_v50, 16  ;;  %v2082_v60 = vld [vmem:[#allocation2 + $0x84] sm:$0xe] }
 0x147   : > { %v3272_v17 = vpack.c.b16 %v3242_v27, %v3241_v43  ;;  %v1480_v41 = vsel %vm6617_vm13, %v1475_v22, %v1479_v53  ;;  %v1490_v42 = vsel %vm6617_vm13, %v1485_v3, %v1489_v35  ;;  %v2900_v52 = vrot.slane %v2898_v33, 5 }
 0x148   : > { %v2911_v49 = vor.u32 %v2910_v36, %v7143_v11  ;;  %v2285_v24 = vpack.c.b16 %v2264_v18, %v2263_v34  ;;  %v1501_v47 = vshll.u32 %v1191_v56, 16  ;;  %v1505_v45 = vshrl.u32 %v1191_v56, 16  ;;  %v6239_v18 = vld [vmem:[%s8577_s4 + $0x8] sm:$0xff] }
 0x149   : > { %v2914_v58 = vshll.u32 %v2806_v40, 16  ;;  %v2201_v61 = vrot.slane %v1191_v56, 5  ;;  %v1640_v55 = vunpack.c.l.b16 %v1480_v41  ;;  %v1641_v25 = vunpack.c.l.b16 %v1490_v42  ;;  %1988 = vmatpush.bf16.msrb.mxu2 %v6239_v18 }
 0x14a   : > { %v1494_v1 = vrot.slane %v1492_v8, 4  ;;  %v1497_v2 = vrot.slane %v1495_v19, 5  ;;  %v2901_v5 = vor.u32 %v2900_v52, %v2897_v59  ;;  %v2912_v53 = vrot.slane %v2911_v49, 4 }
 0x14b   : > { %v7145_v23 = vpop.f32.mrf.mxu3  ;;  %v7147_v12 = vpop.f32.mrf.mxu0  ;;  %v1503_v7 = vrot.slane %v1501_v47, 5  ;;  %v1507_v44 = vrot.slane %v1505_v45, 4  ;;  %v5757_v15 = vrot.slane %v2082_v60, 9  ;;  %v2916_v13 = vrot.slane %v2914_v58, 5 }
 0x14c   : > { %8594 = vst [vmem:[#allocation4_spill] sm:$0xff] %v7147_v12  ;;  %v2203_v16 = vrot.slane %v2201_v61, 4  ;;  %v2204_v31 = vrot.slane %v1219_v54, 5  ;;  %v1662_v39 = vpack.c.b16 %v1641_v25, %v1640_v55  ;;  %v1498_v27 = vor.u32 %v1497_v2, %v1494_v1  ;;  %v2809_v25 = vld [vmem:[#allocation2 + $0x38] sm:$0x1] }
 0x14d   : > { %v2928_v22 = vshll.u32 %v2808_v30, 16  ;;  %v2932_v32 = vshrl.u32 %v2808_v30, 16  ;;  %v2902_v33 = vrot.slane %v2901_v5, 4  ;;  %v2917_v3 = vsel %vm6617_vm13, %v2912_v53, %v2916_v13  ;;  %v6261_v53 = vld [vmem:[#allocation2 + $0x90] sm:$0xff] }
 0x14e   : > { %5931 = vmatmul.msk.bf16.gmra.mxu1 %vm1692_vm0, %v3272_v17  ;;  %5900 = vmatmul.msk.bf16.gmra.mxu0 %vm1692_vm0, %v6260_v51  ;;  %v1508_v35 = vor.u32 %v1507_v44, %v1503_v7  ;;  %v1511_v36 = vshll.u32 %v1219_v54, 16  ;;  %v2202_v50 = vsel %vm6601_vm8, %v5757_v15, %v2201_v61  ;;  %v2919_v43 = vshrl.u32 %v2807_v20, 16  ;;  %v1192_v51 = vld [vmem:[#allocation2 + $0x90] sm:$0xf] }
 0x14f   : > { %v7157_v0 = vpop.f32.mrf.mxu1  ;;  %v2922_v34 = vshll.u32 %v2807_v20, 16  ;;  %v2907_v56 = vsel %vm6617_vm13, %v2902_v33, %v7143_v11  ;;  %v2205_v17 = vsel %vm6601_vm8, %v2203_v16, %v2204_v31  ;;  %v3244_v40 = vunpack.c.l.b16 %v2917_v3  ;;  %v1193_v11 = vld [vmem:[#allocation2 + $0x94] sm:$0xf] }
 0x150   : > { %5796 = vmatmul.msk.bf16.gmra.mxu3 %vm1692_vm0, %v2285_v24  ;;  %v1499_v59 = vrot.slane %v1498_v27, 4  ;;  %v7176_v8 = vrot.slane %v2928_v22, 5  ;;  %v2934_v19 = vrot.slane %v2932_v32, 4  ;;  %v2265_v42 = vunpack.c.l.b16 %v2202_v50  ;;  %v1220_v22 = vld [vmem:[#allocation2 + $0x98] sm:$0x1] }
 0x151   : > { %v1509_v52 = vrot.slane %v1508_v35, 4  ;;  %v1513_v49 = vrot.slane %v1511_v36, 5  ;;  %v3243_v24 = vunpack.c.l.b16 %v2907_v56  ;;  %v2266_v47 = vunpack.c.l.b16 %v2205_v17  ;;  %v2083_v32 = vld [vmem:[#allocation2 + $0x90] sm:$0xe] }
 0x152   : > { %v2921_v45 = vrot.slane %v2919_v43, 4  ;;  %v2924_v58 = vrot.slane %v2922_v34, 5  ;;  %v1504_v55 = vsel %vm6617_vm13, %v1499_v59, %v1503_v7  ;;  %v2935_v54 = vor.u32 %v2934_v19, %v7176_v8 }
 0x153   : > { %v7159_v14 = vpop.f32.mrf.mxu3  ;;  %v7161_v26 = vpop.f32.mrf.mxu0  ;;  %v3273_v61 = vpack.c.b16 %v3244_v40, %v3243_v24  ;;  %v1516_v2 = vshrl.u32 %v1192_v51, 16  ;;  %v1514_v5 = vsel %vm6617_vm13, %v1509_v52, %v1513_v49  ;;  %v1519_v44 = vshll.u32 %v1192_v51, 16  ;;  %v2811_v40 = vld [vmem:[#allocation2 + $0x40] sm:$0xf] }
 0x154   : > { %8595 = vst [vmem:[#allocation5_spill] sm:$0xff] %v7159_v14  ;;  %v1525_v30 = vshll.u32 %v1193_v11, 16  ;;  %v1529_v15 = vshrl.u32 %v1193_v11, 16  ;;  %v2286_v13 = vpack.c.b16 %v2266_v47, %v2265_v42  ;;  %v2925_v16 = vor.u32 %v2924_v58, %v2921_v45  ;;  %v2810_v47 = vld [vmem:[#allocation2 + $0x3c] sm:$0xf] }
 0x155   : > { %8596 = vst [vmem:[#allocation6_spill] sm:$0xff] %v7161_v26  ;;  %v2938_v31 = vshll.u32 %v2809_v25, 16  ;;  %v2208_v7 = vrot.slane %v1193_v11, 5  ;;  %v1642_v20 = vunpack.c.l.b16 %v1504_v55  ;;  %v2936_v27 = vrot.slane %v2935_v54, 4 }
 0x156   : > { %5644 = vmatmul.msk.bf16.gmra.mxu2 %vm1692_vm0, %v1662_v39  ;;  %v1643_v39 = vunpack.c.l.b16 %v1514_v5  ;;  %v1518_v33 = vrot.slane %v1516_v2, 4  ;;  %v1521_v3 = vrot.slane %v1519_v44, 5  ;;  %v1527_v35 = vrot.slane %v1525_v30, 5  ;;  %v1195_v2 = vld [vmem:[#allocation2 + $0xa0] sm:$0xf] }
 0x157   : > { %v7178_v41 = vpop.f32.mrf.mxu1  ;;  %v1531_v36 = vrot.slane %v1529_v15, 4  ;;  %v2926_v50 = vrot.slane %v2925_v16, 4  ;;  %v2940_v34 = vrot.slane %v2938_v31, 5  ;;  %v5758_v18 = vrot.slane %v2083_v32, 9  ;;  %v1194_v5 = vld [vmem:[#allocation2 + $0x9c] sm:$0xf] }
 0x158   : > { %8597 = vst [vmem:[#allocation7_spill] sm:$0xff] %v7178_v41  ;;  %v2210_v56 = vrot.slane %v2208_v7, 4  ;;  %v2211_v17 = vrot.slane %v1220_v22, 5  ;;  %v1663_v59 = vpack.c.b16 %v1643_v39, %v1642_v20  ;;  %v1522_v49 = vor.u32 %v1521_v3, %v1518_v33 }
 0x159   : > { %v2931_v19 = vsel %vm6617_vm13, %v2926_v50, %v7176_v8  ;;  %v2941_v52 = vsel %vm6617_vm13, %v2936_v27, %v2940_v34  ;;  %v1532_v51 = vor.u32 %v1531_v36, %v1527_v35  ;;  %v1535_v24 = vshll.u32 %v1220_v22, 16  ;;  %v2812_v50 = vld [vmem:[#allocation2 + $0x44] sm:$0x1] }
 0x15a   : > { %v2952_v58 = vshll.u32 %v2811_v40, 16  ;;  %v2956_v11 = vshrl.u32 %v2811_v40, 16  ;;  %v2212_v8 = vsel %vm6601_vm8, %v2210_v56, %v2211_v17  ;;  %v3245_v55 = vunpack.c.l.b16 %v2931_v19  ;;  %v6262_v56 = vld [vmem:[#allocation2 + $0x9c] sm:$0xff] }
 0x15b   : > { %v7180_v60 = vpop.f32.mrf.mxu3  ;;  %v7185_v1 = vpop.f32.mrf.mxu0  ;;  %v3246_v25 = vunpack.c.l.b16 %v2941_v52  ;;  %v2943_v54 = vshrl.u32 %v2810_v47, 16  ;;  %v1533_v44 = vrot.slane %v1532_v51, 4  ;;  %v1537_v30 = vrot.slane %v1535_v24, 5  ;;  %v2084_v19 = vld [vmem:[#allocation2 + $0x9c] sm:$0xe] }
 0x15c   : > { %8598 = vst [vmem:[#allocation8_spill] sm:$0xff] %v7180_v60  ;;  %v2946_v15 = vshll.u32 %v2810_v47, 16  ;;  %v2268_v16 = vunpack.c.l.b16 %v2212_v8  ;;  %v7208_v31 = vrot.slane %v2952_v58, 5  ;;  %v2958_v20 = vrot.slane %v2956_v11, 4 }
 0x15d   : > { %8599 = vst [vmem:[#allocation9_spill] sm:$0xff] %v7185_v1  ;;  %v1543_v27 = vshll.u32 %v1194_v5, 16  ;;  %v1549_v22 = vshll.u32 %v1195_v2, 16  ;;  %v1553_v32 = vshrl.u32 %v1195_v2, 16  ;;  %v3274_v33 = vpack.c.b16 %v3246_v25, %v3245_v55  ;;  %v2814_v55 = vld [vmem:[#allocation2 + $0x4c] sm:$0xf] }
 0x15e   : > { %5932 = vmatmul.msk.bf16.gmra.mxu1 %vm1692_vm0, %v3273_v61  ;;  %5901 = vmatmul.msk.bf16.gmra.mxu0 %vm1692_vm0, %v6261_v53  ;;  %v2209_v61 = vsel %vm6601_vm8, %v5758_v18, %v2208_v7  ;;  %v1523_v53 = vrot.slane %v1522_v49, 4  ;;  %v1540_v7 = vshrl.u32 %v1194_v5, 16  ;;  %v1538_v36 = vsel %vm6617_vm13, %v1533_v44, %v1537_v30  ;;  %v1221_v49 = vld [vmem:[#allocation2 + $0xa4] sm:$0x1]  ;;  %v2813_v30 = vld [vmem:[#allocation2 + $0x48] sm:$0xf] }
 0x15f   : > { %v2945_v34 = vrot.slane %v2943_v54, 4  ;;  %v2948_v18 = vrot.slane %v2946_v15, 5  ;;  %v2215_v52 = vrot.slane %v1195_v2, 5  ;;  %v1545_v51 = vrot.slane %v1543_v27, 5 }
 0x160   : > { %5797 = vmatmul.msk.bf16.gmra.mxu3 %vm1692_vm0, %v2286_v13  ;;  %v2267_v13 = vunpack.c.l.b16 %v2209_v61  ;;  %v1528_v3 = vsel %vm6617_vm13, %v1523_v53, %v1527_v35  ;;  %v1542_v35 = vrot.slane %v1540_v7, 4  ;;  %v1551_v24 = vrot.slane %v1549_v22, 5 }
 0x161   : > { %v1555_v47 = vrot.slane %v1553_v32, 4  ;;  %v1644_v58 = vunpack.c.l.b16 %v1528_v3  ;;  %v1645_v11 = vunpack.c.l.b16 %v1538_v36  ;;  %v2962_v61 = vshll.u32 %v2812_v50, 16 }
 0x162   : > { %v2287_v17 = vpack.c.b16 %v2268_v16, %v2267_v13  ;;  %v2949_v25 = vor.u32 %v2948_v18, %v2945_v34  ;;  %v5759_v54 = vrot.slane %v2084_v19, 9  ;;  %v2217_v5 = vrot.slane %v2215_v52, 4 }
 0x163   : > { %v7192_v43 = vpop.f32.mrf.mxu1  ;;  %v7197_v42 = vpop.f32.mrf.mxu3  ;;  %v2218_v53 = vrot.slane %v1221_v49, 5  ;;  %v1559_v44 = vshll.u32 %v1221_v49, 16  ;;  %v1546_v15 = vor.u32 %v1545_v51, %v1542_v35  ;;  %v1556_v13 = vor.u32 %v1555_v47, %v1551_v24  ;;  %v1197_v47 = vld [vmem:[#allocation2 + $0xac] sm:$0xf] }
 0x164   : > { %8600 = vst [vmem:[#allocation10_spill] sm:$0xff] %v7192_v43  ;;  %v7202_v45 = vpop.f32.mrf.mxu0  ;;  %v2976_v16 = vshll.u32 %v2814_v55, 16  ;;  %v1664_v27 = vpack.c.b16 %v1645_v11, %v1644_v58  ;;  %v2964_v22 = vrot.slane %v2962_v61, 5  ;;  %v2950_v32 = vrot.slane %v2949_v25, 4  ;;  %v1196_v58 = vld [vmem:[#allocation2 + $0xa8] sm:$0xf] }
 0x165   : > { %8601 = vst [vmem:[#allocation11_spill] sm:$0xff] %v7197_v42  ;;  %v2967_v3 = vshrl.u32 %v2813_v30, 16  ;;  %v2219_v50 = vsel %vm6601_vm8, %v2217_v5, %v2218_v53  ;;  %v1561_v34 = vrot.slane %v1559_v44, 5  ;;  %v2970_v18 = vshll.u32 %v2813_v30, 16  ;;  %v2815_v25 = vld [vmem:[#allocation2 + $0x50] sm:$0x1] }
 0x166   : > { %5645 = vmatmul.msk.bf16.gmra.mxu2 %vm1692_vm0, %v1663_v59  ;;  %8602 = vst [vmem:[#allocation12_spill] sm:$0xff] %v7202_v45  ;;  %v2959_v59 = vor.u32 %v2958_v20, %v7208_v31  ;;  %v2980_v20 = vshrl.u32 %v2814_v55, 16  ;;  %v2955_v49 = vsel %vm6617_vm13, %v2950_v32, %v7208_v31  ;;  %v2270_v55 = vunpack.c.l.b16 %v2219_v50  ;;  %v6263_v32 = vld [vmem:[#allocation2 + $0xa8] sm:$0xff] }
 0x167   : > { %v3247_v5 = vunpack.c.l.b16 %v2955_v49 }
 0x168   : > { %v2960_v2 = vrot.slane %v2959_v59, 4  ;;  %v7233_v59 = vrot.slane %v2976_v16, 5  ;;  %v2982_v19 = vrot.slane %v2980_v20, 4  ;;  %v1573_v16 = vshll.u32 %v1197_v47, 16 }
 0x169   : > { %v1577_v20 = vshrl.u32 %v1197_v47, 16 }
 0x16a   : > { %v2965_v36 = vsel %vm6617_vm13, %v2960_v2, %v2964_v22  ;;  %v2972_v2 = vrot.slane %v2970_v18, 5  ;;  %v2983_v44 = vor.u32 %v2982_v19, %v7233_v59  ;;  %v2986_v22 = vshll.u32 %v2815_v25, 16  ;;  %v2085_v18 = vld [vmem:[#allocation2 + $0xa8] sm:$0xe] }
 0x16b   : > { %v7210_v39 = vpop.f32.mrf.mxu1  ;;  %v7216_v40 = vpop.f32.mrf.mxu3  ;;  %v3248_v51 = vunpack.c.l.b16 %v2965_v36  ;;  %v1579_v49 = vrot.slane %v1577_v20, 4  ;;  %v5760_v25 = vrot.slane %v2085_v18, 9 }
 0x16c   : > { %8603 = vst [vmem:[#allocation13_spill] sm:$0xff] %v7210_v39  ;;  %v7222_v8 = vpop.f32.mrf.mxu0  ;;  %v2984_v50 = vrot.slane %v2983_v44, 4 }
 0x16d   : > { %8604 = vst [vmem:[#allocation14_spill] sm:$0xff] %v7216_v40 }
 0x16e   : > { %5933 = vmatmul.msk.bf16.gmra.mxu1 %vm1692_vm0, %v3274_v33  ;;  %5902 = vmatmul.msk.bf16.gmra.mxu0 %vm1692_vm0, %v6262_v56  ;;  %8605 = vst [vmem:[#allocation15_spill] sm:$0xff] %v7222_v8  ;;  %v2216_v33 = vsel %vm6601_vm8, %v5759_v54, %v2215_v52  ;;  %v1547_v56 = vrot.slane %v1546_v15, 4  ;;  %v6238_v52 = vld [vmem:[%s8577_s4] sm:$0xff]  ;;  %v2969_v54 = vrot.slane %v2967_v3, 4  ;;  %v1564_v15 = vshrl.u32 %v1196_v58, 16 }
 0x16f   : > { %1989 = vmatpush.bf16.msrb.mxu2 %v6238_v52  ;;  %v2269_v61 = vunpack.c.l.b16 %v2216_v33  ;;  %v7255_v52 = vrot.slane %v1573_v16, 5 }
 0x170   : > { %5798 = vmatmul.msk.bf16.gmra.mxu3 %vm1692_vm0, %v2287_v17  ;;  %v1557_v17 = vrot.slane %v1556_v13, 4  ;;  %v1552_v53 = vsel %vm6617_vm13, %v1547_v56, %v1551_v24  ;;  %v1567_v13 = vshll.u32 %v1196_v58, 16  ;;  %v2973_v3 = vor.u32 %v2972_v2, %v2969_v54 }
 0x171   : > { %v2288_v33 = vpack.c.b16 %v2270_v55, %v2269_v61  ;;  %v1646_v36 = vunpack.c.l.b16 %v1552_v53  ;;  %v2222_v56 = vrot.slane %v1197_v47, 5  ;;  %v2988_v58 = vrot.slane %v2986_v22, 5  ;;  %v2816_v47 = vld [vmem:[#allocation2 + $0x54] sm:$0xf] }
 0x172   : > { %v1562_v31 = vsel %vm6617_vm13, %v1557_v17, %v1561_v34  ;;  %v1222_v34 = vld [vmem:[#allocation2 + $0xb0] sm:$0x1]  ;;  %v1566_v17 = vrot.slane %v1564_v15, 4  ;;  %v1569_v19 = vrot.slane %v1567_v13, 5  ;;  %v2974_v55 = vrot.slane %v2973_v3, 4 }
 0x173   : > { %v7241_v35 = vpop.f32.mrf.mxu3  ;;  %v1647_v24 = vunpack.c.l.b16 %v1562_v31  ;;  %v2225_v54 = vrot.slane %v1222_v34, 5  ;;  %v2224_v53 = vrot.slane %v2222_v56, 4  ;;  %v1580_v13 = vor.u32 %v1579_v49, %v7255_v52  ;;  %v4221_v49 = vld [vmem:[#allocation2 + $0x18] sm:$0xf] }
 0x174   : > { %v7224_v7 = vpop.f32.mrf.mxu1  ;;  %8607 = vst [vmem:[#allocation17_spill] sm:$0xff] %v7241_v35  ;;  %v7243_v11 = vpop.f32.mrf.mxu0  ;;  %v1570_v15 = vor.u32 %v1569_v19, %v1566_v17  ;;  %v1583_v16 = vshll.u32 %v1222_v34, 16  ;;  %v2979_v22 = vsel %vm6617_vm13, %v2974_v55, %v7233_v59  ;;  %v7276_v59 = vld [vmem:[#allocation2 + $0xb8] sm:$0xf]  ;;  %v7278_v55 = vld [vmem:[#allocation2 + $0x1c] sm:$0xf] }
 0x175   : > { %8606 = vst [vmem:[#allocation16_spill] sm:$0xff] %v7224_v7  ;;  %v1665_v2 = vpack.c.b16 %v1647_v24, %v1646_v36  ;;  %v2223_v36 = vsel %vm6601_vm8, %v5760_v25, %v2222_v56  ;;  %v2226_v24 = vsel %vm6601_vm8, %v2224_v53, %v2225_v54  ;;  %v1581_v18 = vrot.slane %v1580_v13, 4 }
 0x176   : > { %5646 = vmatmul.msk.bf16.gmra.mxu2 %vm1692_vm0, %v1664_v27  ;;  %8608 = vst [vmem:[#allocation18_spill] sm:$0xff] %v7243_v11  ;;  %v3275_v27 = vpack.c.b16 %v3248_v51, %v3247_v5  ;;  %v2817_v51 = vld [vmem:[#allocation2 + $0x58] sm:$0xf]  ;;  %v2989_v5 = vsel %vm6617_vm13, %v2984_v50, %v2988_v58  ;;  %v1571_v34 = vrot.slane %v1570_v15, 4  ;;  %v1585_v17 = vrot.slane %v1583_v16, 5 }
 0x177   : > { %v3000_v31 = vshll.u32 %v2817_v51, 16  ;;  %v3004_v20 = vshrl.u32 %v2817_v51, 16  ;;  %v3250_v3 = vunpack.c.l.b16 %v2989_v5  ;;  %v3249_v51 = vunpack.c.l.b16 %v2979_v22  ;;  %v2818_v5 = vld [vmem:[#allocation2 + $0x5c] sm:$0x1]  ;;  %v6264_v22 = vld [vmem:[#allocation2 + $0xb4] sm:$0xff] }
 0x178   : > { %v2271_v58 = vunpack.c.l.b16 %v2223_v36  ;;  %v4270_v25 = vshrl.u32 %v4221_v49, 16  ;;  %v1586_v15 = vsel %vm6617_vm13, %v1581_v18, %v1585_v17  ;;  %v6297_v16 = vld [vmem:[%s8577_s4 + $0xd8] sm:$0xff]  ;;  %v1601_v36 = vshrl.u32 %v7276_v59, 16 }
 0x179   : > { %v7274_v50 = vrot.slane %v3000_v31, 5  ;;  %v3006_v19 = vrot.slane %v3004_v20, 4  ;;  %v3276_v54 = vpack.c.b16 %v3250_v3, %v3249_v51  ;;  %v1576_v31 = vsel %vm6617_vm13, %v1571_v34, %v7255_v52  ;;  %v1198_v20 = vld [vmem:[#allocation2 + $0xb4] sm:$0xf]  ;;  %4104 = vmatpush.bf16.msra.mxu3 %v6297_v16  ;;  %v2819_v51 = vld [vmem:[#allocation2 + $0x60] sm:$0xf] }
 0x17a   : > { %v1597_v3 = vshll.u32 %v7276_v59, 16  ;;  %v3010_v18 = vshll.u32 %v2818_v5, 16  ;;  %v4279_v17 = vshll.u32 %v7278_v55, 16  ;;  %v1223_v16 = vld [vmem:[#allocation2 + $0xbc] sm:$0x1]  ;;  %v3018_v35 = vshll.u32 %v2819_v51, 16 }
 0x17b   : > { %v3007_v13 = vor.u32 %v3006_v19, %v7274_v50 }
 0x17c   : > { %v7250_v30 = vpop.f32.mrf.mxu1  ;;  %v7261_v44 = vpop.f32.mrf.mxu0  ;;  %v3012_v11 = vrot.slane %v3010_v18, 5 }
 0x17d   : > { %8609 = vst [vmem:[#allocation19_spill] sm:$0xff] %v7250_v30  ;;  %v3008_v5 = vrot.slane %v3007_v13, 4 }
 0x17e   : > { %5934 = vmatmul.msk.bf16.gmra.mxu1 %vm1692_vm0, %v3275_v27  ;;  %5903 = vmatmul.msk.bf16.gmra.mxu0 %vm1692_vm0, %v6263_v32  ;;  %v7257_v61 = vpop.f32.mrf.mxu3  ;;  %8611 = vst [vmem:[#allocation21_spill] sm:$0xff] %v7261_v44  ;;  %v2991_v32 = vshrl.u32 %v2816_v47, 16  ;;  %v4273_v44 = vshll.u32 %v4221_v49, 16  ;;  %v2229_v49 = vrot.slane %v7276_v59, 5  ;;  %v1603_v59 = vrot.slane %v1601_v36, 4 }
 0x17f   : > { %8610 = vst [vmem:[#allocation20_spill] sm:$0xff] %v7257_v61  ;;  %v2820_v61 = vld [vmem:[#allocation2 + $0x64] sm:$0xf] }
 0x180   : > { %5799 = vmatmul.msk.bf16.gmra.mxu3 %vm1692_vm0, %v2288_v33  ;;  %v2994_v33 = vshll.u32 %v2816_v47, 16  ;;  %v2993_v47 = vrot.slane %v2991_v32, 4  ;;  %v1588_v32 = vshrl.u32 %v1198_v20, 16  ;;  %v3024_v40 = vshll.u32 %v2820_v61, 16 }
 0x182   : > { %v2996_v56 = vrot.slane %v2994_v33, 5  ;;  %v1591_v33 = vshll.u32 %v1198_v20, 16  ;;  %v6296_v20 = vld [vmem:[%s8577_s4 + $0xd0] sm:$0xff] }
 0x183   : > { %4105 = vmatpush.bf16.msra.mxu3 %v6296_v20 }
 0x184   : > { %v7295_v52 = vpop.f32.mrf.mxu0  ;;  %v2997_v19 = vor.u32 %v2996_v56, %v2993_v47  ;;  %v4275_v47 = vrot.slane %v4273_v44, 5  ;;  %v1590_v56 = vrot.slane %v1588_v32, 4  ;;  %v3028_v44 = vshrl.u32 %v2820_v61, 16  ;;  %v6295_v32 = vld [vmem:[%s8577_s4 + $0xc8] sm:$0xff] }
 0x185   : > { %8615 = vst [vmem:[#allocation25_spill] sm:$0xff] %v7295_v52  ;;  %v4283_v52 = vshrl.u32 %v7278_v55, 16 }
 0x186   : > { %v7264_v27 = vpop.f32.mrf.mxu1  ;;  %5647 = vmatmul.msk.bf16.gmra.mxu2 %vm1692_vm0, %v1665_v2  ;;  %v2272_v2 = vunpack.c.l.b16 %v2226_v24  ;;  %v7280_v53 = vpop.f32.mrf.mxu3  ;;  %v2998_v30 = vrot.slane %v2997_v19, 4 }
 0x187   : > { %8612 = vst [vmem:[#allocation22_spill] sm:$0xff] %v7264_v27  ;;  %v3015_v27 = vshrl.u32 %v2819_v51, 16  ;;  %4106 = vmatpush.bf16.msra.mxu3 %v6295_v32 }
 0x188   : > { %8613 = vst [vmem:[#allocation23_spill] sm:$0xff] %v7280_v53  ;;  %v2289_v34 = vpack.c.b16 %v2272_v2, %v2271_v58  ;;  %v4272_v53 = vrot.slane %v4270_v25, 4  ;;  %v1648_v58 = vunpack.c.l.b16 %v1576_v31  ;;  %v1649_v2 = vunpack.c.l.b16 %v1586_v15 }
 0x189   : > { %v7308_v25 = vrot.slane %v4279_v17, 5  ;;  %v2232_v31 = vrot.slane %v1223_v16, 5  ;;  %v4285_v15 = vrot.slane %v4283_v52, 4  ;;  %v1607_v17 = vshll.u32 %v1223_v16, 16  ;;  %v7319_v52 = vld [vmem:[#allocation2 + $0x20] sm:$0x1] }
 0x18a   : > { %v1666_v13 = vpack.c.b16 %v1649_v2, %v1648_v58  ;;  %v3003_v61 = vsel %vm6617_vm13, %v2998_v30, %v7274_v50  ;;  %v3017_v51 = vrot.slane %v3015_v27, 4  ;;  %v4276_v20 = vor.u32 %v4275_v47, %v4272_v53  ;;  %v6300_v16 = vld [vmem:[%s8577_s4 + $0xf0] sm:$0xff] }
 0x18b   : > { %v4286_v30 = vor.u32 %v4285_v15, %v7308_v25  ;;  %v7342_v53 = vrot.slane %v3024_v40, 5  ;;  %v3030_v47 = vrot.slane %v3028_v44, 4  ;;  %v7345_v15 = vld [vmem:[#allocation2 + $0x24] sm:$0xf] }
 0x18d   : > { %v3031_v44 = vor.u32 %v3030_v47, %v7342_v53 }
 0x18e   : > { %v7293_v24 = vpop.f32.mrf.mxu1  ;;  %5935 = vmatmul.msk.bf16.gmra.mxu1 %vm1692_vm0, %v3276_v54  ;;  %5904 = vmatmul.msk.bf16.gmra.mxu0 %vm1692_vm0, %v6264_v22  ;;  %v2086_v54 = vld [vmem:[#allocation2 + $0xb4] sm:$0xe]  ;;  %v1593_v22 = vrot.slane %v1591_v33, 5  ;;  %v6301_v33 = vld [vmem:[%s8577_s4 + $0xf8] sm:$0xff] }
 0x18f   : > { %8614 = vst [vmem:[#allocation24_spill] sm:$0xff] %v7293_v24  ;;  %v7306_v24 = vrot.slane %v1597_v3, 5  ;;  %v5761_v8 = vrot.slane %v2086_v54, 9  ;;  %v3013_v3 = vsel %vm6617_vm13, %v3008_v5, %v3012_v11  ;;  %v6294_v11 = vld [vmem:[%s8577_s4 + $0xc0] sm:$0xff]  ;;  %v3020_v5 = vrot.slane %v3018_v35, 5  ;;  %4786 = vmatpush.bf16.msra.mxu0 %v6301_v33  ;;  %v7340_v54 = vpop.f32.mrf.mxu0 }
 0x190   : > { %5800 = vmatmul.msk.bf16.gmra.mxu3 %vm1692_vm0, %v2289_v34  ;;  %v2231_v34 = vrot.slane %v2229_v49, 4  ;;  %v1594_v36 = vor.u32 %v1593_v22, %v1590_v56  ;;  %v7321_v19 = vpop.f32.mrf.mxu3  ;;  %v3252_v50 = vunpack.c.l.b16 %v3013_v3  ;;  %8618 = vst [vmem:[#allocation28_spill] sm:$0xff] %v7340_v54  ;;  %v1609_v35 = vrot.slane %v1607_v17, 5  ;;  %v6265_v33 = vld [vmem:[#allocation2 + $0xc0] sm:$0xff] }
 0x191   : > { %v1604_v18 = vor.u32 %v1603_v59, %v7306_v24  ;;  %8616 = vst [vmem:[#allocation26_spill] sm:$0xff] %v7321_v19  ;;  %v2230_v58 = vsel %vm6601_vm8, %v5761_v8, %v2229_v49  ;;  %v4289_v8 = vshll.u32 %v7319_v52, 16  ;;  %v3251_v22 = vunpack.c.l.b16 %v3003_v61  ;;  %4107 = vmatpush.bf16.msra.mxu3 %v6294_v11 }
 0x192   : > { %v2233_v2 = vsel %vm6601_vm8, %v2231_v34, %v2232_v31  ;;  %v1595_v49 = vrot.slane %v1594_v36, 4  ;;  %v2273_v59 = vunpack.c.l.b16 %v2230_v58  ;;  %v2821_v31 = vld [vmem:[#allocation2 + $0x68] sm:$0x1]  ;;  %v3021_v32 = vor.u32 %v3020_v5, %v3017_v51  ;;  %v4903_v58 = vld [vmem:[#allocation2 + $0x18] sm:$0xe] }
 0x193   : > { %v1605_v56 = vrot.slane %v1604_v18, 4  ;;  %v2274_v34 = vunpack.c.l.b16 %v2233_v2  ;;  %4787 = vmatpush.bf16.msra.mxu0 %v6300_v16  ;;  %v4287_v3 = vrot.slane %v4286_v30, 4  ;;  %v3277_v40 = vpack.c.b16 %v3252_v50, %v3251_v22  ;;  %v6299_v36 = vld [vmem:[%s8577_s4 + $0xe8] sm:$0xff]  ;;  %v4904_v22 = vld [vmem:[#allocation2 + $0x24] sm:$0xe] }
 0x194   : > { %v4291_v17 = vrot.slane %v4289_v8, 5  ;;  %v1600_v61 = vsel %vm6617_vm13, %v1595_v49, %v7306_v24  ;;  %v3034_v11 = vshll.u32 %v2821_v31, 16  ;;  %v4225_v5 = vld [vmem:[#allocation2 + $0x28] sm:$0xf]  ;;  %v4969_v16 = vrot.slane %v7278_v55, 5  ;;  %v6277_v24 = vld [vmem:[%s8577_s4 + $0xb8] sm:$0xff] }
 0x195   : > { %v1610_v51 = vsel %vm6617_vm13, %v1605_v56, %v1609_v35  ;;  %v2290_v2 = vpack.c.b16 %v2274_v34, %v2273_v59  ;;  %v7362_v30 = vrot.slane %v3021_v32, 4  ;;  %v1650_v55 = vunpack.c.l.b16 %v1600_v61  ;;  %v6298_v56 = vld [vmem:[%s8577_s4 + $0xe0] sm:$0xff]  ;;  %v2822_v31 = vld [vmem:[#allocation2 + $0x6c] sm:$0xf]  ;;  %3789 = vmatpush.bf16.msra.mxu2 %v6277_v24  ;;  %v6305_v24 = vld [vmem:[%s8577_s4 + $0x118] sm:$0xff] }
 0x196   : > { %5648 = vmatmul.msk.bf16.gmra.mxu2 %vm1692_vm0, %v1666_v13  ;;  %v7338_v27 = vpop.f32.mrf.mxu1  ;;  %v4277_v13 = vrot.slane %v4276_v20, 4  ;;  %v4294_v20 = vshrl.u32 %v7345_v15, 16  ;;  %v1651_v8 = vunpack.c.l.b16 %v1610_v51  ;;  %v3032_v49 = vrot.slane %v3031_v44, 4  ;;  %v7390_v44 = vld [vmem:[#allocation2 + $0x2c] sm:$0x1]  ;;  %5212 = vmatpush.bf16.msra.mxu1 %v6305_v24 }
 0x197   : > { %8617 = vst [vmem:[#allocation27_spill] sm:$0xff] %v7338_v27  ;;  %4788 = vmatpush.bf16.msra.mxu0 %v6299_v36  ;;  %v6146_v35 = vrot.slane %v4903_v58, 9  ;;  %v3027_v59 = vsel %vm6617_vm13, %v7362_v30, %v7342_v53  ;;  %v3036_v34 = vrot.slane %v3034_v11, 5  ;;  %v4976_v32 = vrot.slane %v4225_v5, 5  ;;  %v2827_v27 = vld [vmem:[#allocation2 + $0x80] sm:$0x1] }
 0x198   : > { %v4282_v18 = vsel %vm6617_vm13, %v4277_v13, %v7308_v25  ;;  %v4292_v25 = vsel %vm6617_vm13, %v4287_v3, %v4291_v17  ;;  %v7372_v47 = vpop.f32.mrf.mxu3  ;;  %v7382_v13 = vrot.slane %v4294_v20, 4  ;;  %v7386_v3 = vpop.f32.mrf.mxu0  ;;  %v4972_v53 = vrot.slane %v7319_v52, 5  ;;  %v2823_v17 = vld [vmem:[#allocation2 + $0x70] sm:$0xf] }
 0x199   : > { %v7370_v50 = vunpack.c.l.b16 %v4282_v18  ;;  %8619 = vst [vmem:[#allocation29_spill] sm:$0xff] %v7372_v47  ;;  %v4970_v36 = vsel %vm6601_vm8, %v6146_v35, %v4969_v16  ;;  %v4971_v18 = vrot.slane %v4969_v16, 4  ;;  %v4297_v61 = vshll.u32 %v7345_v15, 16  ;;  %v4905_v16 = vld [vmem:[#allocation2 + $0x30] sm:$0xe] }
 0x19a   : > { %8621 = vst [vmem:[#allocation31_spill] sm:$0xff] %v7386_v3  ;;  %v4303_v51 = vshll.u32 %v4225_v5, 16  ;;  %v4307_v11 = vshrl.u32 %v4225_v5, 16  ;;  %v6147_v20 = vrot.slane %v4904_v22, 9  ;;  %v1667_v58 = vpack.c.b16 %v1651_v8, %v1650_v55  ;;  %v7408_v22 = vld [vmem:[#allocation2 + $0x38] sm:$0x1] }
 0x19b   : > { %v3039_v30 = vshrl.u32 %v2822_v31, 16  ;;  %4789 = vmatpush.bf16.msra.mxu0 %v6298_v56  ;;  %v4973_v52 = vsel %vm6601_vm8, %v4971_v18, %v4972_v53  ;;  %v5088_v15 = vunpack.c.l.b16 %v4970_v36  ;;  %v4978_v55 = vrot.slane %v4976_v32, 4 }
 0x19c   : > { %v5089_v35 = vunpack.c.l.b16 %v4973_v52  ;;  %v4977_v5 = vsel %vm6601_vm8, %v6147_v20, %v4976_v32  ;;  %v3042_v8 = vshll.u32 %v2822_v31, 16  ;;  %v3052_v56 = vshrl.u32 %v2823_v17, 16 }
 0x19d   : > { %v7411_v3 = vrot.slane %v4303_v51, 5  ;;  %v6148_v36 = vrot.slane %v4905_v16, 9  ;;  %v4309_v20 = vrot.slane %v4307_v11, 4  ;;  %v5090_v31 = vunpack.c.l.b16 %v4977_v5 }
 0x19e   : > { %5936 = vmatmul.msk.bf16.gmra.mxu1 %vm1692_vm0, %v3277_v40  ;;  %5905 = vmatmul.msk.bf16.gmra.mxu0 %vm1692_vm0, %v6265_v33  ;;  %v7384_v33 = vpop.f32.mrf.mxu1  ;;  %v7388_v40 = vunpack.c.l.b16 %v4292_v25  ;;  %v7401_v25 = vld [vmem:[#allocation2 + $0x34] sm:$0xf]  ;;  %v7413_v18 = vpack.c.b16 %v5089_v35, %v5088_v15  ;;  %v4986_v47 = vrot.slane %v7408_v22, 5  ;;  %v3253_v15 = vunpack.c.l.b16 %v3027_v59 }
 0x19f   : > { %8620 = vst [vmem:[#allocation30_spill] sm:$0xff] %v7384_v33  ;;  %v4983_v53 = vrot.slane %v7401_v25, 5  ;;  %v3054_v16 = vrot.slane %v3052_v56, 4  ;;  %v4299_v54 = vrot.slane %v4297_v61, 5  ;;  %v3044_v11 = vrot.slane %v3042_v8, 5 }
 0x1a0   : > { %5801 = vmatmul.msk.bf16.gmra.mxu3 %vm1692_vm0, %v2290_v2  ;;  %v3037_v2 = vsel %vm6617_vm13, %v3032_v49, %v3036_v34  ;;  %v3048_v49 = vshll.u32 %v2823_v17, 16  ;;  %v4979_v34 = vrot.slane %v7390_v44, 5  ;;  %v4694_v59 = vpack.c.b16 %v7388_v40, %v7370_v50  ;;  %v4227_v50 = vld [vmem:[#allocation2 + $0x30] sm:$0xf] }
 0x1a1   : > { %v3254_v52 = vunpack.c.l.b16 %v3037_v2  ;;  %v4984_v17 = vsel %vm6601_vm8, %v6148_v36, %v4983_v53  ;;  %v4985_v24 = vrot.slane %v4983_v53, 4  ;;  %v3041_v2 = vrot.slane %v3039_v30, 4  ;;  %v6278_v30 = vld [vmem:[#allocation2 + $0x18] sm:$0xff] }
 0x1a2   : > { %v4980_v32 = vsel %vm6601_vm8, %v4978_v55, %v4979_v34  ;;  %v7423_v35 = vrot.slane %v3048_v49, 5  ;;  %v7431_v34 = vpop.f32.mrf.mxu0  ;;  %v5092_v36 = vunpack.c.l.b16 %v4984_v17  ;;  %v4310_v61 = vor.u32 %v4309_v20, %v7411_v3  ;;  %v7444_v20 = vld [vmem:[#allocation2 + $0x40] sm:$0xf] }
 0x1a3   : > { %v7421_v51 = vpop.f32.mrf.mxu3  ;;  %v4987_v5 = vsel %vm6601_vm8, %v4985_v24, %v4986_v47  ;;  %8624 = vst [vmem:[#allocation34_spill] sm:$0xff] %v7431_v34  ;;  %v3045_v47 = vor.u32 %v3044_v11, %v3041_v2  ;;  %v4300_v56 = vor.u32 %v4299_v54, %v7382_v13  ;;  %v2825_v24 = vld [vmem:[#allocation2 + $0x78] sm:$0xf]  ;;  %v4321_v34 = vshll.u32 %v4227_v50, 16 }
 0x1a4   : > { %8622 = vst [vmem:[#allocation32_spill] sm:$0xff] %v7421_v51  ;;  %v5093_v53 = vunpack.c.l.b16 %v4987_v5  ;;  %v2824_v51 = vld [vmem:[#allocation2 + $0x74] sm:$0x1]  ;;  %v3055_v8 = vor.u32 %v3054_v16, %v7423_v35  ;;  %v4311_v40 = vrot.slane %v4310_v61, 4  ;;  %v2826_v5 = vld [vmem:[#allocation2 + $0x7c] sm:$0xf] }
 0x1a5   : > { %v3046_v16 = vrot.slane %v3045_v47, 4  ;;  %v4301_v2 = vrot.slane %v4300_v56, 4  ;;  %v3063_v61 = vshrl.u32 %v2825_v24, 16 }
 0x1a6   : > { %5649 = vmatmul.msk.bf16.gmra.mxu2 %vm1692_vm0, %v1667_v58  ;;  %v5091_v58 = vunpack.c.l.b16 %v4980_v32  ;;  %v3278_v32 = vpack.c.b16 %v3254_v52, %v3253_v15  ;;  %v7437_v49 = vpack.c.b16 %v5093_v53, %v5092_v36  ;;  %v4313_v52 = vshll.u32 %v7390_v44, 16  ;;  %v4906_v15 = vld [vmem:[#allocation2 + $0x3c] sm:$0xe] }
 0x1a7   : > { %v3056_v17 = vrot.slane %v3055_v8, 4  ;;  %v4318_v36 = vshrl.u32 %v4227_v50, 16  ;;  %v4327_v44 = vshll.u32 %v7401_v25, 16  ;;  %v6149_v47 = vrot.slane %v4906_v15, 9 }
 0x1a8   : > { %v7425_v33 = vpack.c.b16 %v5091_v58, %v5090_v31  ;;  %v3058_v31 = vshll.u32 %v2824_v51, 16  ;;  %v6222_v58 = vld [vmem:[#allocation2] sm:$0xff]  ;;  %v4315_v11 = vrot.slane %v4313_v52, 5  ;;  %v4331_v51 = vshrl.u32 %v7401_v25, 16 }
 0x1a9   : > { %v4306_v25 = vsel %vm6617_vm13, %v4301_v2, %v7411_v3 }
 0x1aa   : > { %v3060_v13 = vrot.slane %v3058_v31, 5  ;;  %v4316_v8 = vsel %vm6617_vm13, %v4311_v40, %v4315_v11  ;;  %v7457_v56 = vpop.f32.mrf.mxu0  ;;  %v3072_v31 = vshll.u32 %v2826_v5, 16  ;;  %v7471_v11 = vrot.slane %v4327_v44, 5 }
 0x1ab   : > { %v7429_v55 = vpop.f32.mrf.mxu1  ;;  %v7448_v54 = vpop.f32.mrf.mxu3  ;;  %8627 = vst [vmem:[#allocation37_spill] sm:$0xff] %v7457_v56  ;;  %v4665_v15 = vunpack.c.l.b16 %v4316_v8  ;;  %v3065_v56 = vrot.slane %v3063_v61, 4  ;;  %v4664_v45 = vunpack.c.l.b16 %v4306_v25  ;;  %v7492_v25 = vld [vmem:[#allocation2 + $0x4c] sm:$0xf] }
 0x1ac   : > { %8623 = vst [vmem:[#allocation33_spill] sm:$0xff] %v7429_v55  ;;  %v3061_v52 = vsel %vm6617_vm13, %v3056_v17, %v3060_v13  ;;  %v4333_v17 = vrot.slane %v4331_v51, 4  ;;  %v3074_v2 = vrot.slane %v3072_v31, 5 }
 0x1ad   : > { %8626 = vst [vmem:[#allocation36_spill] sm:$0xff] %v7448_v54  ;;  %v3076_v54 = vshrl.u32 %v2826_v5, 16  ;;  %v3256_v5 = vunpack.c.l.b16 %v3061_v52  ;;  %v4695_v52 = vpack.c.b16 %v4665_v15, %v4664_v45 }
 0x1ae   : > { %5937 = vmatmul.msk.bf16.gmra.mxu1 %vm1692_vm0, %v3278_v32  ;;  %6130 = vmatmul.msk.bf16.vlgmr.msra.gmra.mxu0 %vm1692_vm0, %v4694_v59  ;;  %v7452_v32 = vld [vmem:[#allocation2 + $0x44] sm:$0x1]  ;;  %v4990_v59 = vrot.slane %v7444_v20, 5  ;;  %v4334_v51 = vor.u32 %v4333_v17, %v7471_v11  ;;  %v4907_v17 = vld [vmem:[#allocation2 + $0x48] sm:$0xe] }
 0x1af   : > { %v4993_v40 = vrot.slane %v7452_v32, 5 }
 0x1b0   : > { %6090 = vmatmul.msk.bf16.vlgmr.msra.gmra.mxu3 %vm1692_vm0, %v6278_v30  ;;  %v3066_v30 = vshll.u32 %v2825_v24, 16  ;;  %v4991_v24 = vsel %vm6601_vm8, %v6149_v47, %v4990_v59 }
 0x1b1   : > { %v5094_v47 = vunpack.c.l.b16 %v4991_v24 }
 0x1b2   : > { %v3068_v3 = vrot.slane %v3066_v30, 5 }
 0x1b3   : > { %v7446_v53 = vpop.f32.mrf.mxu1  ;;  %v7483_v31 = vpop.f32.mrf.mxu3 }
 0x1b4   : > { %8625 = vst [vmem:[#allocation35_spill] sm:$0xff] %v7446_v53  ;;  %v4992_v53 = vrot.slane %v4990_v59, 4  ;;  %v3078_v59 = vrot.slane %v3076_v54, 4  ;;  %v3069_v30 = vor.u32 %v3068_v3, %v3065_v56  ;;  %v6279_v54 = vld [vmem:[#allocation2 + $0x24] sm:$0xff] }
 0x1b5   : > { %8629 = vst [vmem:[#allocation39_spill] sm:$0xff] %v7483_v31 }
 0x1b6   : > { %5730 = vmatmul.msk.bf16.vlgmr.msrb.gmra.mxu2 %vm1692_vm0, %v6222_v58  ;;  %v3051_v58 = vsel %vm6617_vm13, %v3046_v16, %v7423_v35  ;;  %v4994_v50 = vsel %vm6601_vm8, %v4992_v53, %v4993_v40  ;;  %v4320_v35 = vrot.slane %v4318_v36, 4  ;;  %v4323_v16 = vrot.slane %v4321_v34, 5  ;;  %v7487_v36 = vpop.f32.mrf.mxu0 }
 0x1b7   : > { %v5095_v55 = vunpack.c.l.b16 %v4994_v50  ;;  %v3255_v19 = vunpack.c.l.b16 %v3051_v58  ;;  %v4337_v53 = vshll.u32 %v7408_v22, 16  ;;  %v3079_v24 = vor.u32 %v3078_v59, %v3074_v2  ;;  %8630 = vst [vmem:[#allocation40_spill] sm:$0xff] %v7487_v36 }
 0x1b8   : > { %v3082_v40 = vshll.u32 %v2827_v27, 16  ;;  %v4324_v34 = vor.u32 %v4323_v16, %v4320_v35  ;;  %v3070_v45 = vrot.slane %v3069_v30, 4  ;;  %v2828_v27 = vld [vmem:[#allocation2 + $0x84] sm:$0xf]  ;;  %v4351_v16 = vshll.u32 %v7444_v20, 16 }
 0x1b9   : > { %v7473_v13 = vpop.f32.mrf.mxu2  ;;  %v7480_v8 = vpack.c.b16 %v5095_v55, %v5094_v47  ;;  %v3279_v61 = vpack.c.b16 %v3256_v5, %v3255_v19  ;;  %v4335_v55 = vrot.slane %v4334_v51, 4  ;;  %v4230_v19 = vld [vmem:[#allocation2 + $0x3c] sm:$0xf]  ;;  %v4339_v22 = vrot.slane %v4337_v53, 5  ;;  %v2829_v5 = vld [vmem:[#allocation2 + $0x88] sm:$0xf] }
 0x1ba   : > { %8628 = vst [vmem:[#allocation38_spill] sm:$0xff] %v7473_v13  ;;  %v3080_v58 = vrot.slane %v3079_v24, 4  ;;  %v3084_v15 = vrot.slane %v3082_v40, 5  ;;  %v4325_v3 = vrot.slane %v4324_v34, 4  ;;  %v4342_v50 = vshrl.u32 %v4230_v19, 16  ;;  %v6223_v47 = vld [vmem:[#allocation2 + $0xc] sm:$0xff] }
 0x1bb   : > { %v7477_v44 = vpop.f32.mrf.mxu1  ;;  %v4340_v35 = vsel %vm6617_vm13, %v4335_v55, %v4339_v22  ;;  %v4355_v51 = vshrl.u32 %v7444_v20, 16  ;;  %v4997_v30 = vrot.slane %v7492_v25, 5  ;;  %v3087_v53 = vshrl.u32 %v2828_v27, 16 }
 0x1bc   : > { %v6150_v24 = vrot.slane %v4907_v17, 9  ;;  %v3085_v40 = vsel %vm6617_vm13, %v3080_v58, %v3084_v15  ;;  %v3096_v34 = vshll.u32 %v2829_v5, 16  ;;  %v3100_v55 = vshrl.u32 %v2829_v5, 16 }
 0x1bd   : > { %v4330_v20 = vsel %vm6617_vm13, %v4325_v3, %v7471_v11  ;;  %v4345_v22 = vshll.u32 %v4230_v19, 16  ;;  %v4667_v17 = vunpack.c.l.b16 %v4340_v35  ;;  %v4357_v58 = vrot.slane %v4355_v51, 4  ;;  %v4233_v51 = vld [vmem:[#allocation2 + $0x48] sm:$0xf] }
 0x1be   : > { %5938 = vmatmul.msk.bf16.gmra.mxu1 %vm1692_vm0, %v3279_v61  ;;  %6131 = vmatmul.msk.bf16.gmra.mxu0 %vm1692_vm0, %v4695_v52  ;;  %v7500_v61 = vld [vmem:[#allocation2 + $0x50] sm:$0x1]  ;;  %v3075_v52 = vsel %vm6617_vm13, %v3070_v45, %v3074_v2  ;;  %v4998_v36 = vsel %vm6601_vm8, %v6150_v24, %v4997_v30  ;;  %v7514_v45 = vpop.f32.mrf.mxu3  ;;  %v3258_v15 = vunpack.c.l.b16 %v3085_v40  ;;  %v3089_v31 = vrot.slane %v3087_v53, 4  ;;  %v7522_v19 = vpop.f32.mrf.mxu0 }
 0x1bf   : > { %v5000_v2 = vrot.slane %v7500_v61, 5  ;;  %8632 = vst [vmem:[#allocation42_spill] sm:$0xff] %v7514_v45  ;;  %v3098_v3 = vrot.slane %v3096_v34, 5  ;;  %v5096_v24 = vunpack.c.l.b16 %v4998_v36  ;;  %v2830_v45 = vld [vmem:[#allocation2 + $0x8c] sm:$0x1]  ;;  %v4347_v36 = vrot.slane %v4345_v22, 5 }
 0x1c0   : > { %6091 = vmatmul.msk.bf16.gmra.mxu3 %vm1692_vm0, %v6279_v54  ;;  %v3090_v54 = vshll.u32 %v2828_v27, 16  ;;  %v3257_v27 = vunpack.c.l.b16 %v3075_v52  ;;  %8634 = vst [vmem:[#allocation44_spill] sm:$0xff] %v7522_v19  ;;  %v4666_v52 = vunpack.c.l.b16 %v4330_v20  ;;  %v3106_v34 = vshll.u32 %v2830_v45, 16 }
 0x1c1   : > { %v7490_v56 = vpop.f32.mrf.mxu2  ;;  %v4366_v20 = vshrl.u32 %v4233_v51, 16 }
 0x1c2   : > { %8631 = vst [vmem:[#allocation41_spill] sm:$0xff] %v7490_v56  ;;  %v4999_v56 = vrot.slane %v4997_v30, 4  ;;  %v3092_v13 = vrot.slane %v3090_v54, 5  ;;  %v3102_v30 = vrot.slane %v3100_v55, 4  ;;  %v3280_v53 = vpack.c.b16 %v3258_v15, %v3257_v27  ;;  %v2831_v15 = vld [vmem:[#allocation2 + $0x90] sm:$0xf] }
 0x1c3   : > { %v7494_v59 = vpop.f32.mrf.mxu1  ;;  %v4344_v55 = vrot.slane %v4342_v50, 4  ;;  %v3108_v45 = vrot.slane %v3106_v34, 5 }
 0x1c4   : > { %v5001_v11 = vsel %vm6601_vm8, %v4999_v56, %v5000_v2  ;;  %v3093_v54 = vor.u32 %v3092_v13, %v3089_v31  ;;  %v4361_v56 = vshll.u32 %v7452_v32, 16  ;;  %v6280_v2 = vld [vmem:[#allocation2 + $0x30] sm:$0xff]  ;;  %v3103_v19 = vor.u32 %v3102_v30, %v3098_v3 }
 0x1c5   : > { %v5097_v7 = vunpack.c.l.b16 %v5001_v11  ;;  %v4379_v13 = vshrl.u32 %v7492_v25, 16  ;;  %v4908_v11 = vld [vmem:[#allocation2 + $0x54] sm:$0xe] }
 0x1c6   : > { %5731 = vmatmul.msk.bf16.gmra.mxu2 %vm1692_vm0, %v6223_v47  ;;  %v7516_v47 = vrot.slane %v4351_v16, 5  ;;  %v3094_v32 = vrot.slane %v3093_v54, 4  ;;  %v4363_v27 = vrot.slane %v4361_v56, 5  ;;  %v7539_v50 = vpop.f32.mrf.mxu3  ;;  %v3104_v22 = vrot.slane %v3103_v19, 4  ;;  %v2832_v30 = vld [vmem:[#allocation2 + $0x94] sm:$0xf] }
 0x1c7   : > { %v7527_v40 = vpack.c.b16 %v5097_v7, %v5096_v24  ;;  %v4375_v7 = vshll.u32 %v7492_v25, 16  ;;  %8636 = vst [vmem:[#allocation46_spill] sm:$0xff] %v7539_v50  ;;  %v7541_v24 = vrot.slane %v4366_v20, 4  ;;  %v7551_v19 = vld [vmem:[#allocation2 + $0x5c] sm:$0x1]  ;;  %v6151_v20 = vrot.slane %v4908_v11, 9 }
 0x1c8   : > { %v4358_v16 = vor.u32 %v4357_v58, %v7516_v47  ;;  %v5007_v42 = vrot.slane %v7551_v19, 5 }
 0x1c9   : > { %v7518_v5 = vpop.f32.mrf.mxu2  ;;  %v7549_v56 = vrot.slane %v4375_v7, 5 }
 0x1ca   : > { %8633 = vst [vmem:[#allocation43_spill] sm:$0xff] %v7518_v5  ;;  %v4696_v5 = vpack.c.b16 %v4667_v17, %v4666_v52  ;;  %v4359_v58 = vrot.slane %v4358_v16, 4  ;;  %v7537_v17 = vld [vmem:[#allocation2 + $0x58] sm:$0xf]  ;;  %v4369_v52 = vshll.u32 %v4233_v51, 16  ;;  %v7543_v16 = vpop.f32.mrf.mxu0  ;;  %v3114_v51 = vshll.u32 %v2831_v15, 16 }
 0x1cb   : > { %v7524_v35 = vpop.f32.mrf.mxu1  ;;  %8637 = vst [vmem:[#allocation47_spill] sm:$0xff] %v7543_v16  ;;  %v5004_v34 = vrot.slane %v7537_v17, 5  ;;  %v3109_v16 = vsel %vm6617_vm13, %v3104_v22, %v3108_v45 }
 0x1cc   : > { %v4364_v54 = vsel %vm6617_vm13, %v4359_v58, %v4363_v27  ;;  %v3124_v58 = vshrl.u32 %v2832_v30, 16  ;;  %v4371_v27 = vrot.slane %v4369_v52, 5  ;;  %v3260_v11 = vunpack.c.l.b16 %v3109_v16 }
 0x1cd   : > { %v5006_v50 = vrot.slane %v5004_v34, 4  ;;  %v4385_v16 = vshll.u32 %v7500_v61, 16  ;;  %v6276_v61 = vld [vmem:[%s8577_s4 + $0xb0] sm:$0xff] }
 0x1ce   : > { %5939 = vmatmul.msk.bf16.gmra.mxu1 %vm1692_vm0, %v3280_v53  ;;  %6132 = vmatmul.msk.bf16.gmra.mxu0 %vm1692_vm0, %v4696_v5  ;;  %v4348_v5 = vor.u32 %v4347_v36, %v4344_v55  ;;  %v6224_v53 = vld [vmem:[#allocation2 + $0x18] sm:$0xff]  ;;  %v3099_v55 = vsel %vm6617_vm13, %v3094_v32, %v3098_v3  ;;  %v3111_v36 = vshrl.u32 %v2831_v15, 16  ;;  %v4669_v32 = vunpack.c.l.b16 %v4364_v54  ;;  %v7572_v60 = vpop.f32.mrf.mxu3 }
 0x1cf   : > { %v3259_v1 = vunpack.c.l.b16 %v3099_v55  ;;  %8640 = vst [vmem:[#allocation50_spill] sm:$0xff] %v7572_v60  ;;  %3790 = vmatpush.bf16.msra.mxu2 %v6276_v61 }
 0x1d0   : > { %6092 = vmatmul.msk.bf16.gmra.mxu3 %vm1692_vm0, %v6280_v2  ;;  %v4381_v2 = vrot.slane %v4379_v13, 4  ;;  %v4349_v7 = vrot.slane %v4348_v5, 4  ;;  %v5005_v13 = vsel %vm6601_vm8, %v6151_v20, %v5004_v34  ;;  %v3113_v45 = vrot.slane %v3111_v36, 4  ;;  %v2833_v20 = vld [vmem:[#allocation2 + $0x98] sm:$0x1] }
 0x1d1   : > { %v7535_v31 = vpop.f32.mrf.mxu2  ;;  %v3116_v5 = vrot.slane %v3114_v51, 5  ;;  %v5098_v34 = vunpack.c.l.b16 %v5005_v13 }
 0x1d2   : > { %8635 = vst [vmem:[#allocation45_spill] sm:$0xff] %v7535_v31  ;;  %v3120_v31 = vshll.u32 %v2832_v30, 16  ;;  %v4354_v3 = vsel %vm6617_vm13, %v4349_v7, %v7516_v47  ;;  %v4382_v15 = vor.u32 %v4381_v2, %v7549_v56  ;;  %v5008_v30 = vsel %vm6601_vm8, %v5006_v50, %v5007_v42  ;;  %v7579_v7 = vpop.f32.mrf.mxu0  ;;  %v6281_v42 = vld [vmem:[#allocation2 + $0x3c] sm:$0xff] }
 0x1d3   : > { %v7545_v25 = vpop.f32.mrf.mxu1  ;;  %v5099_v55 = vunpack.c.l.b16 %v5008_v30  ;;  %v4668_v39 = vunpack.c.l.b16 %v4354_v3  ;;  %v3281_v2 = vpack.c.b16 %v3260_v11, %v3259_v1  ;;  %v3117_v36 = vor.u32 %v3116_v5, %v3113_v45  ;;  %8642 = vst [vmem:[#allocation52_spill] sm:$0xff] %v7579_v7  ;;  %v2834_v1 = vld [vmem:[#allocation2 + $0x9c] sm:$0xf]  ;;  %v7589_v3 = vld [vmem:[#allocation2 + $0x64] sm:$0xf] }
 0x1d4   : > { %8638 = vst [vmem:[#allocation48_spill] sm:$0xff] %v7545_v25  ;;  %v7570_v52 = vrot.slane %v3120_v31, 5  ;;  %v3130_v50 = vshll.u32 %v2833_v20, 16  ;;  %v4383_v13 = vrot.slane %v4382_v15, 4  ;;  %v2835_v45 = vld [vmem:[#allocation2 + $0xa0] sm:$0xf] }
 0x1d5   : > { %v7577_v54 = vpack.c.b16 %v5099_v55, %v5098_v34  ;;  %v4697_v51 = vpack.c.b16 %v4669_v32, %v4668_v39  ;;  %v4387_v39 = vrot.slane %v4385_v16, 5  ;;  %v3118_v11 = vrot.slane %v3117_v36, 4  ;;  %v6225_v36 = vld [vmem:[#allocation2 + $0x24] sm:$0xff] }
 0x1d6   : > { %5732 = vmatmul.msk.bf16.gmra.mxu2 %vm1692_vm0, %v6224_v53  ;;  %v3126_v53 = vrot.slane %v3124_v58, 4  ;;  %v4372_v58 = vor.u32 %v4371_v27, %v7541_v24  ;;  %v4909_v24 = vld [vmem:[#allocation2 + $0x60] sm:$0xe]  ;;  %v3132_v15 = vrot.slane %v3130_v50, 5  ;;  %v3135_v34 = vshrl.u32 %v2834_v1, 16 }
 0x1d7   : > { %v4388_v30 = vsel %vm6617_vm13, %v4383_v13, %v4387_v39  ;;  %v3138_v55 = vshll.u32 %v2834_v1, 16  ;;  %v4399_v20 = vshll.u32 %v7537_v17, 16  ;;  %v4403_v16 = vshrl.u32 %v7537_v17, 16 }
 0x1d8   : > { %v3127_v31 = vor.u32 %v3126_v53, %v7570_v52  ;;  %v4373_v5 = vrot.slane %v4372_v58, 4  ;;  %v4236_v53 = vld [vmem:[#allocation2 + $0x54] sm:$0xf]  ;;  %v3148_v61 = vshrl.u32 %v2835_v45, 16  ;;  %v6152_v50 = vrot.slane %v4909_v24, 9 }
 0x1d9   : > { %v7566_v22 = vpop.f32.mrf.mxu2  ;;  %v5011_v58 = vrot.slane %v7589_v3, 5  ;;  %v3123_v13 = vsel %vm6617_vm13, %v3118_v11, %v7570_v52  ;;  %v4390_v1 = vshrl.u32 %v4236_v53, 16  ;;  %v4393_v39 = vshll.u32 %v4236_v53, 16 }
 0x1da   : > { %8639 = vst [vmem:[#allocation49_spill] sm:$0xff] %v7566_v22  ;;  %v3128_v27 = vrot.slane %v3127_v31, 4  ;;  %v6304_v31 = vld [vmem:[%s8577_s4 + $0x110] sm:$0xff]  ;;  %v4378_v17 = vsel %vm6617_vm13, %v4373_v5, %v7549_v56  ;;  %v3137_v11 = vrot.slane %v3135_v34, 4  ;;  %v4671_v22 = vunpack.c.l.b16 %v4388_v30  ;;  %v7621_v5 = vpop.f32.mrf.mxu0 }
 0x1db   : > { %v7574_v47 = vpop.f32.mrf.mxu1  ;;  %5213 = vmatpush.bf16.msra.mxu1 %v6304_v31  ;;  %v5012_v24 = vsel %vm6601_vm8, %v6152_v50, %v5011_v58  ;;  %v5013_v7 = vrot.slane %v5011_v58, 4  ;;  %v7619_v60 = vrot.slane %v4399_v20, 5  ;;  %v4405_v56 = vrot.slane %v4403_v16, 4  ;;  %8646 = vst [vmem:[#allocation56_spill] sm:$0xff] %v7621_v5  ;;  %v2836_v58 = vld [vmem:[#allocation2 + $0xa4] sm:$0x1] }
 0x1dc   : > { %8641 = vst [vmem:[#allocation51_spill] sm:$0xff] %v7574_v47  ;;  %v3140_v53 = vrot.slane %v3138_v55, 5  ;;  %v4670_v30 = vunpack.c.l.b16 %v4378_v17  ;;  %v4392_v20 = vrot.slane %v4390_v1, 4  ;;  %v4395_v26 = vrot.slane %v4393_v39, 5 }
 0x1dd   : > { %v4406_v16 = vor.u32 %v4405_v56, %v7619_v60 }
 0x1de   : > { %5940 = vmatmul.msk.bf16.gmra.mxu1 %vm1692_vm0, %v3281_v2  ;;  %6133 = vmatmul.msk.bf16.gmra.mxu0 %vm1692_vm0, %v4697_v51  ;;  %v7597_v2 = vld [vmem:[#allocation2 + $0x68] sm:$0x1]  ;;  %v4396_v17 = vor.u32 %v4395_v26, %v4392_v20  ;;  %v6226_v20 = vld [vmem:[#allocation2 + $0x30] sm:$0xff] }
 0x1df   : > { %v5014_v52 = vrot.slane %v7597_v2, 5  ;;  %v4407_v1 = vrot.slane %v4406_v16, 4 }
 0x1e0   : > { %6093 = vmatmul.msk.bf16.gmra.mxu3 %vm1692_vm0, %v6281_v42  ;;  %v3144_v42 = vshll.u32 %v2835_v45, 16  ;;  %v3133_v45 = vsel %vm6617_vm13, %v3128_v27, %v3132_v15  ;;  %v3261_v15 = vunpack.c.l.b16 %v3123_v13 }
 0x1e1   : > { %v7591_v32 = vpop.f32.mrf.mxu2  ;;  %v5015_v27 = vsel %vm6601_vm8, %v5013_v7, %v5014_v52  ;;  %v3262_v31 = vunpack.c.l.b16 %v3133_v45  ;;  %v3154_v7 = vshll.u32 %v2836_v58, 16  ;;  %v4698_v45 = vpack.c.b16 %v4671_v22, %v4670_v30  ;;  %v4239_v58 = vld [vmem:[#allocation2 + $0x60] sm:$0xf] }
 0x1e2   : > { %8643 = vst [vmem:[#allocation53_spill] sm:$0xff] %v7591_v32  ;;  %v7611_v32 = vpop.f32.mrf.mxu3  ;;  %v5101_v34 = vunpack.c.l.b16 %v5015_v27  ;;  %v4409_v52 = vshll.u32 %v7551_v19, 16  ;;  %v7645_v19 = vpop.f32.mrf.mxu0  ;;  %v2838_v27 = vld [vmem:[#allocation2 + $0xac] sm:$0xf] }
 0x1e3   : > { %v7599_v51 = vpop.f32.mrf.mxu1  ;;  %8645 = vst [vmem:[#allocation55_spill] sm:$0xff] %v7611_v32  ;;  %v7623_v32 = vrot.slane %v3144_v42, 5  ;;  %v3141_v42 = vor.u32 %v3140_v53, %v3137_v11  ;;  %v3282_v13 = vpack.c.b16 %v3262_v31, %v3261_v15  ;;  %v3156_v11 = vrot.slane %v3154_v7, 5  ;;  %v2837_v53 = vld [vmem:[#allocation2 + $0xa8] sm:$0xf] }
 0x1e4   : > { %8644 = vst [vmem:[#allocation54_spill] sm:$0xff] %v7599_v51  ;;  %v5100_v51 = vunpack.c.l.b16 %v5012_v24  ;;  %v4411_v22 = vrot.slane %v4409_v52, 5  ;;  %v4910_v15 = vld [vmem:[#allocation2 + $0x6c] sm:$0xe]  ;;  %v4397_v31 = vrot.slane %v4396_v17, 4  ;;  %v3168_v52 = vshll.u32 %v2838_v27, 16 }
 0x1e5   : > { %8651 = vst [vmem:[#allocation61_spill] sm:$0xff] %v7645_v19  ;;  %v7658_v7 = vld [vmem:[#allocation2 + $0x74] sm:$0x1]  ;;  %v3172_v17 = vshrl.u32 %v2838_v27, 16 }
 0x1e6   : > { %5733 = vmatmul.msk.bf16.gmra.mxu2 %vm1692_vm0, %v6225_v36  ;;  %v3150_v36 = vrot.slane %v3148_v61, 4  ;;  %v7630_v5 = vpack.c.b16 %v5101_v34, %v5100_v51  ;;  %v3142_v51 = vrot.slane %v3141_v42, 4  ;;  %v4412_v26 = vsel %vm6617_vm13, %v4407_v1, %v4411_v22 }
 0x1e7   : > { %v4427_v34 = vshrl.u32 %v7589_v3, 16  ;;  %v6153_v1 = vrot.slane %v4910_v15, 9  ;;  %v4673_v22 = vunpack.c.l.b16 %v4412_v26 }
 0x1e8   : > { %v3151_v61 = vor.u32 %v3150_v36, %v7623_v32  ;;  %v7643_v36 = vld [vmem:[#allocation2 + $0x70] sm:$0xf]  ;;  %v3147_v16 = vsel %vm6617_vm13, %v3142_v51, %v7623_v32  ;;  %v4414_v32 = vshrl.u32 %v4239_v58, 16  ;;  %v4417_v51 = vshll.u32 %v4239_v58, 16 }
 0x1e9   : > { %v7627_v50 = vpop.f32.mrf.mxu2  ;;  %v3263_v19 = vunpack.c.l.b16 %v3147_v16  ;;  %v2839_v58 = vld [vmem:[#allocation2 + $0xb0] sm:$0x1] }
 0x1ea   : > { %8647 = vst [vmem:[#allocation57_spill] sm:$0xff] %v7627_v50  ;;  %v6282_v50 = vld [vmem:[#allocation2 + $0x48] sm:$0xff]  ;;  %v7638_v39 = vpop.f32.mrf.mxu3  ;;  %v3152_v24 = vrot.slane %v3151_v61, 4  ;;  %v3159_v61 = vshrl.u32 %v2837_v53, 16  ;;  %v4416_v43 = vrot.slane %v4414_v32, 4  ;;  %v7676_v47 = vpop.f32.mrf.mxu0 }
 0x1eb   : > { %v7632_v55 = vpop.f32.mrf.mxu1  ;;  %8649 = vst [vmem:[#allocation59_spill] sm:$0xff] %v7638_v39  ;;  %v4429_v39 = vrot.slane %v4427_v34, 4 }
 0x1ec   : > { %8648 = vst [vmem:[#allocation58_spill] sm:$0xff] %v7632_v55  ;;  %v3157_v42 = vsel %vm6617_vm13, %v3152_v24, %v3156_v11  ;;  %v3161_v15 = vrot.slane %v3159_v61, 4  ;;  %v3170_v55 = vrot.slane %v3168_v52, 5 }
 0x1ed   : > { %v3264_v27 = vunpack.c.l.b16 %v3157_v42  ;;  %8655 = vst [vmem:[#allocation65_spill] sm:$0xff] %v7676_v47  ;;  %v4419_v42 = vrot.slane %v4417_v51, 5 }
 0x1ee   : > { %5941 = vmatmul.msk.bf16.gmra.mxu1 %vm1692_vm0, %v3282_v13  ;;  %6134 = vmatmul.msk.bf16.gmra.mxu0 %vm1692_vm0, %v4698_v45  ;;  %v5018_v13 = vrot.slane %v7643_v36, 5  ;;  %v3162_v45 = vshll.u32 %v2837_v53, 16  ;;  %v5021_v53 = vrot.slane %v7658_v7, 5 }
 0x1ef   : > { %v3283_v52 = vpack.c.b16 %v3264_v27, %v3263_v19  ;;  %v4242_v19 = vld [vmem:[#allocation2 + $0x6c] sm:$0xf]  ;;  %v2840_v27 = vld [vmem:[#allocation2 + $0xb4] sm:$0xf] }
 0x1f0   : > { %6094 = vmatmul.msk.bf16.gmra.mxu3 %vm1692_vm0, %v6282_v50  ;;  %v4423_v50 = vshll.u32 %v7589_v3, 16  ;;  %v4402_v3 = vsel %vm6617_vm13, %v4397_v31, %v7619_v60  ;;  %v5019_v24 = vsel %vm6601_vm8, %v6153_v1, %v5018_v13  ;;  %v5020_v11 = vrot.slane %v5018_v13, 4 }
 0x1f1   : > { %v7641_v56 = vpop.f32.mrf.mxu2  ;;  %v3174_v60 = vrot.slane %v3172_v17, 4  ;;  %v5102_v1 = vunpack.c.l.b16 %v5019_v24 }
 0x1f2   : > { %8650 = vst [vmem:[#allocation60_spill] sm:$0xff] %v7641_v56  ;;  %v7665_v56 = vrot.slane %v4423_v50, 5  ;;  %v5022_v31 = vsel %vm6601_vm8, %v5020_v11, %v5021_v53  ;;  %v7674_v26 = vpop.f32.mrf.mxu3  ;;  %v4672_v50 = vunpack.c.l.b16 %v4402_v3  ;;  %v3178_v53 = vshll.u32 %v2839_v58, 16 }
 0x1f3   : > { %v7651_v30 = vpop.f32.mrf.mxu1  ;;  %8654 = vst [vmem:[#allocation64_spill] sm:$0xff] %v7674_v26  ;;  %v5103_v13 = vunpack.c.l.b16 %v5022_v31  ;;  %v3175_v11 = vor.u32 %v3174_v60, %v3170_v55  ;;  %v4433_v3 = vshll.u32 %v7597_v2, 16  ;;  %v4447_v60 = vshll.u32 %v7643_v36, 16 }
 0x1f4   : > { %8652 = vst [vmem:[#allocation62_spill] sm:$0xff] %v7651_v30  ;;  %v3164_v30 = vrot.slane %v3162_v45, 5  ;;  %v4699_v16 = vpack.c.b16 %v4673_v22, %v4672_v50  ;;  %v4430_v34 = vor.u32 %v4429_v39, %v7665_v56  ;;  %v4420_v22 = vor.u32 %v4419_v42, %v4416_v43  ;;  %v6227_v50 = vld [vmem:[#allocation2 + $0x3c] sm:$0xff] }
 0x1f5   : > { %v7679_v61 = vpack.c.b16 %v5103_v13, %v5102_v1  ;;  %v3176_v51 = vrot.slane %v3175_v11, 4  ;;  %v3180_v24 = vrot.slane %v3178_v53, 5  ;;  %v4451_v2 = vshrl.u32 %v7643_v36, 16 }
 0x1f6   : > { %5734 = vmatmul.msk.bf16.gmra.mxu2 %vm1692_vm0, %v6226_v20  ;;  %v3165_v17 = vor.u32 %v3164_v30, %v3161_v15  ;;  %v4431_v31 = vrot.slane %v4430_v34, 4  ;;  %v4435_v30 = vrot.slane %v4433_v3, 5  ;;  %v2841_v15 = vld [vmem:[#allocation2 + $0xb8] sm:$0xf]  ;;  %v4421_v1 = vrot.slane %v4420_v22, 4  ;;  %v7699_v34 = vpop.f32.mrf.mxu0 }
 0x1f7   : > { %v3181_v13 = vsel %vm6617_vm13, %v3176_v51, %v3180_v24  ;;  %v4441_v42 = vshll.u32 %v4242_v19, 16  ;;  %8659 = vst [vmem:[#allocation69_spill] sm:$0xff] %v7699_v34  ;;  %v3183_v36 = vshrl.u32 %v2840_v27, 16  ;;  %v3196_v11 = vshrl.u32 %v2841_v15, 16 }
 0x1f8   : > { %v3166_v39 = vrot.slane %v3165_v17, 4  ;;  %v3192_v17 = vshll.u32 %v2841_v15, 16  ;;  %v4449_v3 = vrot.slane %v4447_v60, 5  ;;  %v4453_v22 = vrot.slane %v4451_v2, 4  ;;  %v2842_v15 = vld [vmem:[#allocation2 + $0xbc] sm:$0x1] }
 0x1f9   : > { %v7670_v20 = vpop.f32.mrf.mxu2  ;;  %v3266_v24 = vunpack.c.l.b16 %v3181_v13  ;;  %v3198_v34 = vrot.slane %v3196_v11, 4 }
 0x1fa   : > { %8653 = vst [vmem:[#allocation63_spill] sm:$0xff] %v7670_v20  ;;  %v6283_v20 = vld [vmem:[#allocation2 + $0x54] sm:$0xff]  ;;  %v7691_v58 = vpop.f32.mrf.mxu3  ;;  %v3171_v43 = vsel %vm6617_vm13, %v3166_v39, %v3170_v55  ;;  %v4426_v55 = vsel %vm6617_vm13, %v4421_v1, %v7665_v56  ;;  %v4454_v47 = vor.u32 %v4453_v22, %v4449_v3  ;;  %v6284_v1 = vld [vmem:[#allocation2 + $0x60] sm:$0xff] }
 0x1fb   : > { %v7681_v45 = vpop.f32.mrf.mxu1  ;;  %8658 = vst [vmem:[#allocation68_spill] sm:$0xff] %v7691_v58  ;;  %v3265_v51 = vunpack.c.l.b16 %v3171_v43  ;;  %v4674_v58 = vunpack.c.l.b16 %v4426_v55 }
 0x1fc   : > { %8656 = vst [vmem:[#allocation66_spill] sm:$0xff] %v7681_v45 }
 0x1fd   : > { %v3284_v60 = vpack.c.b16 %v3266_v24, %v3265_v51 }
 0x1fe   : > { %5942 = vmatmul.msk.bf16.gmra.mxu1 %vm1692_vm0, %v3283_v52  ;;  %6135 = vmatmul.msk.bf16.gmra.mxu0 %vm1692_vm0, %v4699_v16  ;;  %v4436_v16 = vsel %vm6617_vm13, %v4431_v31, %v4435_v30  ;;  %v3186_v52 = vshll.u32 %v2840_v27, 16  ;;  %v4443_v30 = vrot.slane %v4441_v42, 5  ;;  %v3194_v27 = vrot.slane %v3192_v17, 5  ;;  %v7714_v42 = vpop.f32.mrf.mxu0  ;;  %v2844_v17 = vld [vmem:[#allocation2 + $0xc4] sm:$0xf] }
 0x1ff   : > { %v4675_v39 = vunpack.c.l.b16 %v4436_v16  ;;  %v3202_v16 = vshll.u32 %v2842_v15, 16  ;;  %8663 = vst [vmem:[#allocation73_spill] sm:$0xff] %v7714_v42 }
 0x200   : > { %6095 = vmatmul.msk.bf16.gmra.mxu3 %vm1692_vm0, %v6283_v20  ;;  %v4438_v20 = vshrl.u32 %v4242_v19, 16  ;;  %v3199_v13 = vor.u32 %v3198_v34, %v3194_v27 }
 0x201   : > { %v7687_v32 = vpop.f32.mrf.mxu2  ;;  %v4700_v2 = vpack.c.b16 %v4675_v39, %v4674_v58  ;;  %v3204_v55 = vrot.slane %v3202_v16, 5  ;;  %v4246_v39 = vld [vmem:[#allocation2 + $0x7c] sm:$0xf] }
 0x202   : > { %8657 = vst [vmem:[#allocation67_spill] sm:$0xff] %v7687_v32  ;;  %v4440_v19 = vrot.slane %v4438_v20, 4  ;;  %v3188_v32 = vrot.slane %v3186_v52, 5  ;;  %v7710_v56 = vpop.f32.mrf.mxu3  ;;  %v4455_v20 = vrot.slane %v4454_v47, 4  ;;  %v3200_v22 = vrot.slane %v3199_v13, 4 }
 0x203   : > { %v7702_v53 = vpop.f32.mrf.mxu1  ;;  %8662 = vst [vmem:[#allocation72_spill] sm:$0xff] %v7710_v56 }
 0x204   : > { %8660 = vst [vmem:[#allocation70_spill] sm:$0xff] %v7702_v53  ;;  %v4444_v26 = vor.u32 %v4443_v30, %v4440_v19  ;;  %v4457_v53 = vshll.u32 %v7658_v7, 16  ;;  %v2843_v7 = vld [vmem:[#allocation2 + $0xc0] sm:$0xf]  ;;  %v6228_v30 = vld [vmem:[#allocation2 + $0x48] sm:$0xff] }
 0x205   : > { %v3210_v15 = vshll.u32 %v2843_v7, 16 }
 0x206   : > { %5735 = vmatmul.msk.bf16.gmra.mxu2 %vm1692_vm0, %v6227_v50  ;;  %v3185_v50 = vrot.slane %v3183_v36, 4  ;;  %v4245_v36 = vld [vmem:[#allocation2 + $0x78] sm:$0xf]  ;;  %v4445_v11 = vrot.slane %v4444_v26, 4  ;;  %v6303_v26 = vld [vmem:[%s8577_s4 + $0x108] sm:$0xff] }
 0x207   : > { %v4462_v24 = vshrl.u32 %v4245_v36, 16  ;;  %v4465_v19 = vshll.u32 %v4245_v36, 16  ;;  %5214 = vmatpush.bf16.msra.mxu1 %v6303_v26 }
 0x208   : > { %v3189_v43 = vor.u32 %v3188_v32, %v3185_v50  ;;  %v4459_v32 = vrot.slane %v4457_v53, 5  ;;  %v4450_v47 = vsel %vm6617_vm13, %v4445_v11, %v4449_v3  ;;  %v3207_v50 = vshrl.u32 %v2843_v7, 16 }
 0x209   : > { %v7707_v31 = vpop.f32.mrf.mxu2  ;;  %v4471_v53 = vshll.u32 %v4246_v39, 16  ;;  %v4676_v13 = vunpack.c.l.b16 %v4450_v47  ;;  %v4464_v36 = vrot.slane %v4462_v24, 4  ;;  %v4467_v7 = vrot.slane %v4465_v19, 5  ;;  %v7737_v47 = vpop.f32.mrf.mxu0 }
 0x20a   : > { %8661 = vst [vmem:[#allocation71_spill] sm:$0xff] %v7707_v31  ;;  %v3190_v34 = vrot.slane %v3189_v43, 4  ;;  %v4460_v51 = vsel %vm6617_vm13, %v4455_v20, %v4459_v32  ;;  %v3205_v43 = vsel %vm6617_vm13, %v3200_v22, %v3204_v55  ;;  %v4247_v20 = vld [vmem:[#allocation2 + $0x80] sm:$0x1]  ;;  %v7733_v11 = vpop.f32.mrf.mxu3  ;;  %v3209_v32 = vrot.slane %v3207_v50, 4 }
 0x20b   : > { %v7717_v58 = vpop.f32.mrf.mxu1  ;;  %v4677_v16 = vunpack.c.l.b16 %v4460_v51  ;;  %8666 = vst [vmem:[#allocation76_spill] sm:$0xff] %v7733_v11  ;;  %v4473_v22 = vrot.slane %v4471_v53, 5  ;;  %v4468_v26 = vor.u32 %v4467_v7, %v4464_v36  ;;  %v4481_v50 = vshll.u32 %v4247_v20, 16  ;;  %v6275_v53 = vld [vmem:[%s8577_s4 + $0xa8] sm:$0xff] }
 0x20c   : > { %8664 = vst [vmem:[#allocation74_spill] sm:$0xff] %v7717_v58  ;;  %v3195_v3 = vsel %vm6617_vm13, %v3190_v34, %v3194_v27  ;;  %v3268_v58 = vunpack.c.l.b16 %v3205_v43  ;;  %v2845_v34 = vld [vmem:[#allocation2 + $0xc8] sm:$0x1]  ;;  %3791 = vmatpush.bf16.msra.mxu2 %v6275_v53 }
 0x20d   : > { %v3267_v56 = vunpack.c.l.b16 %v3195_v3  ;;  %8668 = vst [vmem:[#allocation78_spill] sm:$0xff] %v7737_v47  ;;  %v3226_v11 = vshll.u32 %v2845_v34, 16  ;;  %v6302_v3 = vld [vmem:[%s8577_s4 + $0x100] sm:$0xff]  ;;  %v4483_v34 = vrot.slane %v4481_v50, 5 }
 0x20e   : > { %5943 = vmatmul.msk.bf16.gmra.mxu1 %vm1692_vm0, %v3284_v60  ;;  %6136 = vmatmul.msk.bf16.gmra.mxu0 %vm1692_vm0, %v4700_v2  ;;  %v3216_v60 = vshll.u32 %v2844_v17, 16  ;;  %v3220_v2 = vshrl.u32 %v2844_v17, 16  ;;  %v5025_v17 = vrot.slane %v4246_v39, 5 }
 0x20f   : > { %v3285_v43 = vpack.c.b16 %v3268_v58, %v3267_v56  ;;  %5215 = vmatpush.bf16.msra.mxu1 %v6302_v3  ;;  %v3228_v7 = vrot.slane %v3226_v11, 5  ;;  %v4469_v58 = vrot.slane %v4468_v26, 4  ;;  %v6229_v3 = vld [vmem:[#allocation2 + $0x54] sm:$0xff] }
 0x210   : > { %6096 = vmatmul.msk.bf16.gmra.mxu3 %vm1692_vm0, %v6284_v1  ;;  %v4475_v1 = vshrl.u32 %v4246_v39, 16  ;;  %v3218_v31 = vrot.slane %v3216_v60, 5  ;;  %v3222_v42 = vrot.slane %v3220_v2, 4  ;;  %v5027_v24 = vrot.slane %v5025_v17, 4 }
 0x211   : > { %v7719_v52 = vpop.f32.mrf.mxu2  ;;  %v4701_v39 = vpack.c.b16 %v4677_v16, %v4676_v13  ;;  %v4474_v26 = vsel %vm6617_vm13, %v4469_v58, %v4473_v22 }
 0x212   : > { %8665 = vst [vmem:[#allocation75_spill] sm:$0xff] %v7719_v52  ;;  %v3212_v52 = vrot.slane %v3210_v15, 5  ;;  %v4477_v55 = vrot.slane %v4475_v1, 4  ;;  %v5028_v15 = vrot.slane %v4247_v20, 5  ;;  %v3223_v2 = vor.u32 %v3222_v42, %v3218_v31 }
 0x213   : > { %v7739_v19 = vpop.f32.mrf.mxu1 }
 0x214   : > { %8669 = vst [vmem:[#allocation79_spill] sm:$0xff] %v7739_v19  ;;  %v3213_v60 = vor.u32 %v3212_v52, %v3209_v32  ;;  %v5029_v13 = vsel %vm6601_vm8, %v5027_v24, %v5028_v15  ;;  %v6285_v52 = vld [vmem:[#allocation2 + $0x6c] sm:$0xff]  ;;  %v3224_v36 = vrot.slane %v3223_v2, 4  ;;  %v4249_v24 = vld [vmem:[#allocation2 + $0x88] sm:$0xf]  ;;  %v7760_v15 = vpop.f32.mrf.mxu0 }
 0x215   : > { %v5105_v42 = vunpack.c.l.b16 %v5029_v13  ;;  %8672 = vst [vmem:[#allocation82_spill] sm:$0xff] %v7760_v15 }
 0x216   : > { %5736 = vmatmul.msk.bf16.gmra.mxu2 %vm1692_vm0, %v6228_v30  ;;  %v4911_v30 = vld [vmem:[#allocation2 + $0x78] sm:$0xe]  ;;  %v3214_v20 = vrot.slane %v3213_v60, 4  ;;  %v3229_v11 = vsel %vm6617_vm13, %v3224_v36, %v3228_v7  ;;  %v4912_v7 = vld [vmem:[#allocation2 + $0x84] sm:$0xe] }
 0x217   : > { %v6154_v51 = vrot.slane %v4911_v30, 9  ;;  %v4478_v30 = vor.u32 %v4477_v55, %v4473_v22  ;;  %v4248_v55 = vld [vmem:[#allocation2 + $0x84] sm:$0xf]  ;;  %v3270_v13 = vunpack.c.l.b16 %v3229_v11  ;;  %v6155_v58 = vrot.slane %v4912_v7, 9 }
 0x218   : > { %v4486_v60 = vshrl.u32 %v4248_v55, 16  ;;  %v4489_v2 = vshll.u32 %v4248_v55, 16 }
 0x219   : > { %v7735_v27 = vpop.f32.mrf.mxu2  ;;  %v5026_v1 = vsel %vm6601_vm8, %v6154_v51, %v5025_v17  ;;  %v4479_v32 = vrot.slane %v4478_v30, 4  ;;  %v7758_v51 = vpop.f32.mrf.mxu3 }
 0x21a   : > { %8667 = vst [vmem:[#allocation77_spill] sm:$0xff] %v7735_v27  ;;  %v5104_v16 = vunpack.c.l.b16 %v5026_v1  ;;  %v4495_v1 = vshll.u32 %v4249_v24, 16  ;;  %v4491_v36 = vrot.slane %v4489_v2, 5 }
 0x21b   : > { %8671 = vst [vmem:[#allocation81_spill] sm:$0xff] %v7758_v51  ;;  %v7766_v53 = vpop.f32.mrf.mxu1  ;;  %v4484_v50 = vsel %vm6617_vm13, %v4479_v32, %v4483_v34 }
 0x21c   : > { %v7754_v17 = vpack.c.b16 %v5105_v42, %v5104_v16  ;;  %8673 = vst [vmem:[#allocation83_spill] sm:$0xff] %v7766_v53  ;;  %v5032_v16 = vrot.slane %v4249_v24, 5  ;;  %v4679_v42 = vunpack.c.l.b16 %v4484_v50 }
 0x21e   : > { %5944 = vmatmul.msk.bf16.gmra.mxu1 %vm1692_vm0, %v3285_v43  ;;  %6137 = vmatmul.msk.bf16.gmra.mxu0 %vm1692_vm0, %v4701_v39  ;;  %v3219_v39 = vsel %vm6617_vm13, %v3214_v20, %v3218_v31  ;;  %v4499_v43 = vshrl.u32 %v4249_v24, 16  ;;  %v4250_v31 = vld [vmem:[#allocation2 + $0x8c] sm:$0x1]  ;;  %v4488_v20 = vrot.slane %v4486_v60, 4  ;;  %v5034_v27 = vrot.slane %v5032_v16, 4 }
 0x21f   : > { %v3269_v30 = vunpack.c.l.b16 %v3219_v39  ;;  %v5035_v32 = vrot.slane %v4250_v31, 5 }
 0x220   : > { %6097 = vmatmul.msk.bf16.gmra.mxu3 %vm1692_vm0, %v6285_v52  ;;  %v4678_v52 = vunpack.c.l.b16 %v4474_v26  ;;  %v4501_v22 = vrot.slane %v4499_v43, 4  ;;  %v4492_v24 = vor.u32 %v4491_v36, %v4488_v20  ;;  %v4505_v26 = vshll.u32 %v4250_v31, 16  ;;  %v6286_v43 = vld [vmem:[#allocation2 + $0x78] sm:$0xff]  ;;  %v6230_v20 = vld [vmem:[#allocation2 + $0x60] sm:$0xff] }
 0x221   : > { %v7756_v56 = vpop.f32.mrf.mxu2  ;;  %v3286_v34 = vpack.c.b16 %v3270_v13, %v3269_v30  ;;  %v7777_v39 = vpop.f32.mrf.mxu3  ;;  %v5036_v60 = vsel %vm6601_vm8, %v5034_v27, %v5035_v32 }
 0x222   : > { %8670 = vst [vmem:[#allocation80_spill] sm:$0xff] %v7756_v56  ;;  %v4497_v56 = vrot.slane %v4495_v1, 5  ;;  %v4702_v11 = vpack.c.b16 %v4679_v42, %v4678_v52  ;;  %v7781_v1 = vpop.f32.mrf.mxu0  ;;  %v4493_v27 = vrot.slane %v4492_v24, 4  ;;  %v4507_v31 = vrot.slane %v4505_v26, 5  ;;  %v4251_v52 = vld [vmem:[#allocation2 + $0x90] sm:$0xf] }
 0x223   : > { %8675 = vst [vmem:[#allocation85_spill] sm:$0xff] %v7777_v39  ;;  %v7783_v7 = vpop.f32.mrf.mxu1  ;;  %v4252_v42 = vld [vmem:[#allocation2 + $0x94] sm:$0xf]  ;;  %v4510_v36 = vshrl.u32 %v4251_v52, 16  ;;  %v4253_v26 = vld [vmem:[#allocation2 + $0x98] sm:$0x1] }
 0x224   : > { %v4502_v2 = vor.u32 %v4501_v22, %v4497_v56  ;;  %8676 = vst [vmem:[#allocation86_spill] sm:$0xff] %v7781_v1  ;;  %v4513_v22 = vshll.u32 %v4251_v52, 16  ;;  %v4913_v52 = vld [vmem:[#allocation2 + $0x90] sm:$0xe]  ;;  %v6287_v39 = vld [vmem:[#allocation2 + $0x84] sm:$0xff] }
 0x225   : > { %8677 = vst [vmem:[#allocation87_spill] sm:$0xff] %v7783_v7 }
 0x226   : > { %5737 = vmatmul.msk.bf16.gmra.mxu2 %vm1692_vm0, %v6229_v3  ;;  %v5033_v3 = vsel %vm6601_vm8, %v6155_v58, %v5032_v16  ;;  %v4503_v16 = vrot.slane %v4502_v2, 4  ;;  %v4498_v58 = vsel %vm6617_vm13, %v4493_v27, %v4497_v56 }
 0x227   : > { %v5106_v50 = vunpack.c.l.b16 %v5033_v3 }
 0x228   : > { %v4508_v32 = vsel %vm6617_vm13, %v4503_v16, %v4507_v31  ;;  %v6156_v31 = vrot.slane %v4913_v52, 9 }
 0x229   : > { %v7773_v55 = vpop.f32.mrf.mxu2  ;;  %v7796_v3 = vpop.f32.mrf.mxu3  ;;  %v4681_v2 = vunpack.c.l.b16 %v4508_v32  ;;  %v4529_v32 = vshll.u32 %v4253_v26, 16 }
 0x22a   : > { %8674 = vst [vmem:[#allocation84_spill] sm:$0xff] %v7773_v55  ;;  %v5107_v55 = vunpack.c.l.b16 %v5036_v60  ;;  %v7799_v24 = vpop.f32.mrf.mxu0  ;;  %v4680_v60 = vunpack.c.l.b16 %v4498_v58 }
 0x22b   : > { %8679 = vst [vmem:[#allocation89_spill] sm:$0xff] %v7796_v3 }
 0x22c   : > { %v7787_v30 = vpack.c.b16 %v5107_v55, %v5106_v50  ;;  %v4519_v55 = vshll.u32 %v4252_v42, 16  ;;  %8680 = vst [vmem:[#allocation90_spill] sm:$0xff] %v7799_v24  ;;  %v4512_v50 = vrot.slane %v4510_v36, 4  ;;  %v4703_v3 = vpack.c.b16 %v4681_v2, %v4680_v60 }
 0x22e   : > { %5945 = vmatmul.msk.bf16.gmra.mxu1 %vm1692_vm0, %v3286_v34  ;;  %6138 = vmatmul.msk.bf16.gmra.mxu0 %vm1692_vm0, %v4702_v11  ;;  %v4523_v34 = vshrl.u32 %v4252_v42, 16  ;;  %v5039_v11 = vrot.slane %v4252_v42, 5  ;;  %v4521_v27 = vrot.slane %v4519_v55, 5  ;;  %v5042_v42 = vrot.slane %v4253_v26, 5 }
 0x22f   : > { %v4531_v26 = vrot.slane %v4529_v32, 5  ;;  %v4256_v32 = vld [vmem:[#allocation2 + $0xa4] sm:$0x1] }
 0x230   : > { %6098 = vmatmul.msk.bf16.gmra.mxu3 %vm1692_vm0, %v6286_v43  ;;  %v4515_v43 = vrot.slane %v4513_v22, 5  ;;  %v4525_v16 = vrot.slane %v4523_v34, 4  ;;  %v5041_v1 = vrot.slane %v5039_v11, 4 }
 0x231   : > { %v7790_v13 = vpop.f32.mrf.mxu2  ;;  %v7812_v55 = vpop.f32.mrf.mxu3 }
 0x232   : > { %8678 = vst [vmem:[#allocation88_spill] sm:$0xff] %v7790_v13  ;;  %v7801_v13 = vpop.f32.mrf.mxu1  ;;  %v4516_v24 = vor.u32 %v4515_v43, %v4512_v50  ;;  %v4526_v58 = vor.u32 %v4525_v16, %v4521_v27  ;;  %v5043_v36 = vsel %vm6601_vm8, %v5041_v1, %v5042_v42  ;;  %v4254_v1 = vld [vmem:[#allocation2 + $0x9c] sm:$0xf]  ;;  %v7819_v50 = vpop.f32.mrf.mxu0  ;;  %v4255_v43 = vld [vmem:[#allocation2 + $0xa0] sm:$0xf] }
 0x233   : > { %8681 = vst [vmem:[#allocation91_spill] sm:$0xff] %v7801_v13  ;;  %v5109_v15 = vunpack.c.l.b16 %v5043_v36  ;;  %v4534_v16 = vshrl.u32 %v4254_v1, 16 }
 0x234   : > { %8682 = vst [vmem:[#allocation92_spill] sm:$0xff] %v7812_v55  ;;  %v4517_v60 = vrot.slane %v4516_v24, 4  ;;  %v4527_v2 = vrot.slane %v4526_v58, 4  ;;  %v5046_v24 = vrot.slane %v4255_v43, 5 }
 0x235   : > { %8683 = vst [vmem:[#allocation93_spill] sm:$0xff] %v7819_v50  ;;  %v4536_v36 = vrot.slane %v4534_v16, 4  ;;  %v4914_v50 = vld [vmem:[#allocation2 + $0x9c] sm:$0xe] }
 0x236   : > { %5738 = vmatmul.msk.bf16.gmra.mxu2 %vm1692_vm0, %v6230_v20  ;;  %v5040_v20 = vsel %vm6601_vm8, %v6156_v31, %v5039_v11  ;;  %v4522_v31 = vsel %vm6617_vm13, %v4517_v60, %v4521_v27  ;;  %v6157_v47 = vrot.slane %v4914_v50, 9  ;;  %v5048_v27 = vrot.slane %v5046_v24, 4  ;;  %v6288_v50 = vld [vmem:[#allocation2 + $0x90] sm:$0xff] }
 0x237   : > { %v5108_v22 = vunpack.c.l.b16 %v5040_v20  ;;  %v4547_v20 = vshrl.u32 %v4255_v43, 16  ;;  %v4682_v42 = vunpack.c.l.b16 %v4522_v31 }
 0x239   : > { %v7803_v56 = vpop.f32.mrf.mxu2  ;;  %v7815_v34 = vpack.c.b16 %v5109_v15, %v5108_v22  ;;  %v4532_v15 = vsel %vm6617_vm13, %v4527_v2, %v4531_v26  ;;  %v4549_v51 = vrot.slane %v4547_v20, 4  ;;  %v7830_v60 = vpop.f32.mrf.mxu3  ;;  %v5047_v2 = vsel %vm6601_vm8, %v6157_v47, %v5046_v24 }
 0x23a   : > { %v7821_v52 = vpop.f32.mrf.mxu1  ;;  %v4683_v58 = vunpack.c.l.b16 %v4532_v15  ;;  %8685 = vst [vmem:[#allocation95_spill] sm:$0xff] %v7830_v60  ;;  %v5049_v26 = vrot.slane %v4256_v32, 5  ;;  %v5110_v20 = vunpack.c.l.b16 %v5047_v2 }
 0x23b   : > { %8684 = vst [vmem:[#allocation94_spill] sm:$0xff] %v7821_v52 }
 0x23e   : > { %6186 = vmatmul.msk.bf16.vlgmr.msra.gmra.mxu1 %vm1692_vm0, %v7413_v18  ;;  %6139 = vmatmul.msk.bf16.gmra.mxu0 %vm1692_vm0, %v4703_v3  ;;  %v6231_v18 = vld [vmem:[#allocation2 + $0x6c] sm:$0xff]  ;;  %v4537_v3 = vshll.u32 %v4254_v1, 16 }
 0x240   : > { %6099 = vmatmul.msk.bf16.gmra.mxu3 %vm1692_vm0, %v6287_v39  ;;  %v4543_v39 = vshll.u32 %v4255_v43, 16  ;;  %v4539_v22 = vrot.slane %v4537_v3, 5  ;;  %v4704_v43 = vpack.c.b16 %v4683_v58, %v4682_v42  ;;  %v4553_v3 = vshll.u32 %v4256_v32, 16  ;;  %v4257_v32 = vld [vmem:[#allocation2 + $0xa8] sm:$0xf] }
 0x241   : > { %v7817_v11 = vpop.f32.mrf.mxu2 }
 0x242   : > { %v4545_v1 = vrot.slane %v4543_v39, 5  ;;  %v4540_v31 = vor.u32 %v4539_v22, %v4536_v36  ;;  %v7836_v15 = vpop.f32.mrf.mxu1  ;;  %v5050_v39 = vsel %vm6601_vm8, %v5048_v27, %v5049_v26  ;;  %v4555_v58 = vrot.slane %v4553_v3, 5  ;;  %v4258_v36 = vld [vmem:[#allocation2 + $0xac] sm:$0xf]  ;;  %v7848_v22 = vpop.f32.mrf.mxu3  ;;  %v6232_v27 = vld [vmem:[#allocation2 + $0x78] sm:$0xff] }
 0x243   : > { %8687 = vst [vmem:[#allocation97_spill] sm:$0xff] %v7836_v15  ;;  %v5111_v52 = vunpack.c.l.b16 %v5050_v39  ;;  %v4561_v26 = vshll.u32 %v4257_v32, 16 }
 0x244   : > { %v4550_v16 = vor.u32 %v4549_v51, %v4545_v1  ;;  %v4541_v47 = vrot.slane %v4540_v31, 4  ;;  %8688 = vst [vmem:[#allocation98_spill] sm:$0xff] %v7848_v22 }
 0x245   : > { %v7844_v24 = vpack.c.b16 %v5111_v52, %v5110_v20  ;;  %v4571_v52 = vshrl.u32 %v4258_v36, 16  ;;  %v4563_v60 = vrot.slane %v4561_v26, 5 }
 0x246   : > { %5739 = vmatmul.msk.bf16.gmra.mxu2 %vm1692_vm0, %v6231_v18  ;;  %v7834_v18 = vpop.f32.mrf.mxu0  ;;  %v4551_v51 = vrot.slane %v4550_v16, 4  ;;  %v4546_v2 = vsel %vm6617_vm13, %v4541_v47, %v4545_v1  ;;  %v4259_v16 = vld [vmem:[#allocation2 + $0xb0] sm:$0x1]  ;;  %v4915_v47 = vld [vmem:[#allocation2 + $0xa8] sm:$0xe] }
 0x247   : > { %8686 = vst [vmem:[#allocation96_spill] sm:$0xff] %v7834_v18  ;;  %v4684_v20 = vunpack.c.l.b16 %v4546_v2  ;;  %v4573_v15 = vrot.slane %v4571_v52, 4  ;;  %v6158_v13 = vrot.slane %v4915_v47, 9  ;;  %v6289_v47 = vld [vmem:[#allocation2 + $0x9c] sm:$0xff] }
 0x248   : > { %v4556_v31 = vsel %vm6617_vm13, %v4551_v51, %v4555_v58  ;;  %v5056_v58 = vrot.slane %v4259_v16, 5 }
 0x249   : > { %v7828_v55 = vpop.f32.mrf.mxu2  ;;  %v4685_v22 = vunpack.c.l.b16 %v4556_v31 }
 0x24a   : > { %v7857_v3 = vpop.f32.mrf.mxu1  ;;  %v7868_v52 = vpop.f32.mrf.mxu3 }
 0x24b   : > { %8690 = vst [vmem:[#allocation100_spill] sm:$0xff] %v7857_v3  ;;  %v4705_v26 = vpack.c.b16 %v4685_v22, %v4684_v20  ;;  %v4577_v3 = vshll.u32 %v4259_v16, 16  ;;  %v4260_v16 = vld [vmem:[#allocation2 + $0xb4] sm:$0xf]  ;;  %v4261_v20 = vld [vmem:[#allocation2 + $0xb8] sm:$0xf] }
 0x24d   : > { %v4579_v22 = vrot.slane %v4577_v3, 5 }
 0x24e   : > { %6187 = vmatmul.msk.bf16.gmra.mxu1 %vm1692_vm0, %v7425_v33  ;;  %6140 = vmatmul.msk.bf16.gmra.mxu0 %vm1692_vm0, %v4704_v43  ;;  %v4558_v33 = vshrl.u32 %v4257_v32, 16  ;;  %v4567_v43 = vshll.u32 %v4258_v36, 16  ;;  %v7854_v39 = vpop.f32.mrf.mxu0 }
 0x24f   : > { %8689 = vst [vmem:[#allocation99_spill] sm:$0xff] %v7854_v39 }
 0x250   : > { %6100 = vmatmul.msk.bf16.gmra.mxu3 %vm1692_vm0, %v6288_v50  ;;  %v5053_v50 = vrot.slane %v4258_v36, 5  ;;  %v4560_v18 = vrot.slane %v4558_v33, 4  ;;  %v4569_v1 = vrot.slane %v4567_v43, 5  ;;  %v6274_v36 = vld [vmem:[%s8577_s4 + $0xa0] sm:$0xff] }
 0x251   : > { %v7846_v42 = vpop.f32.mrf.mxu2  ;;  %3792 = vmatpush.bf16.msra.mxu2 %v6274_v36  ;;  %v4585_v36 = vshll.u32 %v4260_v16, 16 }
 0x252   : > { %v5055_v51 = vrot.slane %v5053_v50, 4  ;;  %v5054_v39 = vsel %vm6601_vm8, %v6158_v13, %v5053_v50  ;;  %v4564_v43 = vor.u32 %v4563_v60, %v4560_v18  ;;  %v4574_v31 = vor.u32 %v4573_v15, %v4569_v1  ;;  %v6233_v50 = vld [vmem:[#allocation2 + $0x84] sm:$0xff] }
 0x253   : > { %v5112_v2 = vunpack.c.l.b16 %v5054_v39  ;;  %v7878_v39 = vpop.f32.mrf.mxu1 }
 0x254   : > { %8691 = vst [vmem:[#allocation101_spill] sm:$0xff] %v7878_v39  ;;  %v4565_v18 = vrot.slane %v4564_v43, 4  ;;  %v4575_v15 = vrot.slane %v4574_v31, 4  ;;  %v7887_v43 = vpop.f32.mrf.mxu3  ;;  %v4916_v31 = vld [vmem:[#allocation2 + $0xb4] sm:$0xe] }
 0x255   : > { %v6159_v53 = vrot.slane %v4916_v31, 9  ;;  %v6290_v31 = vld [vmem:[#allocation2 + $0xa8] sm:$0xff] }
 0x256   : > { %5740 = vmatmul.msk.bf16.gmra.mxu2 %vm1692_vm0, %v6232_v27  ;;  %v5057_v27 = vsel %vm6601_vm8, %v5055_v51, %v5056_v58  ;;  %v7875_v13 = vpop.f32.mrf.mxu0  ;;  %v4570_v51 = vsel %vm6617_vm13, %v4565_v18, %v4569_v1  ;;  %v4262_v58 = vld [vmem:[#allocation2 + $0xbc] sm:$0x1] }
 0x257   : > { %v5113_v33 = vunpack.c.l.b16 %v5057_v27  ;;  %v4582_v27 = vshrl.u32 %v4260_v16, 16  ;;  %v4686_v3 = vunpack.c.l.b16 %v4570_v51  ;;  %v5063_v18 = vrot.slane %v4262_v58, 5 }
 0x258   : > { %v4601_v41 = vshll.u32 %v4262_v58, 16 }
 0x259   : > { %v7859_v32 = vpop.f32.mrf.mxu2  ;;  %v7870_v7 = vpack.c.b16 %v5113_v33, %v5112_v2  ;;  %v4591_v2 = vshll.u32 %v4261_v20, 16  ;;  %v4595_v33 = vshrl.u32 %v4261_v20, 16 }
 0x25b   : > { %v4597_v45 = vrot.slane %v4595_v33, 4  ;;  %v7893_v16 = vpop.f32.mrf.mxu1 }
 0x25c   : > { %8694 = vst [vmem:[#allocation104_spill] sm:$0xff] %v7893_v16 }
 0x25e   : > { %6188 = vmatmul.msk.bf16.gmra.mxu1 %vm1692_vm0, %v7437_v49  ;;  %6141 = vmatmul.msk.bf16.gmra.mxu0 %vm1692_vm0, %v4705_v26  ;;  %v4580_v49 = vsel %vm6617_vm13, %v4575_v15, %v4579_v22  ;;  %v5060_v26 = vrot.slane %v4261_v20, 5  ;;  %v7891_v19 = vpop.f32.mrf.mxu0  ;;  %v4584_v15 = vrot.slane %v4582_v27, 4  ;;  %v4587_v22 = vrot.slane %v4585_v36, 5  ;;  %v7907_v27 = vpop.f32.mrf.mxu3 }
 0x25f   : > { %v4687_v39 = vunpack.c.l.b16 %v4580_v49 }
 0x260   : > { %6101 = vmatmul.msk.bf16.gmra.mxu3 %vm1692_vm0, %v6289_v47  ;;  %v5062_v1 = vrot.slane %v5060_v26, 4  ;;  %v5061_v20 = vsel %vm6601_vm8, %v6159_v53, %v5060_v26  ;;  %v4588_v12 = vor.u32 %v4587_v22, %v4584_v15  ;;  %v6235_v22 = vld [vmem:[#allocation2 + $0x9c] sm:$0xff] }
 0x261   : > { %v7880_v60 = vpop.f32.mrf.mxu2  ;;  %v5114_v14 = vunpack.c.l.b16 %v5061_v20  ;;  %v4706_v49 = vpack.c.b16 %v4687_v39, %v4686_v3  ;;  %v4603_v39 = vrot.slane %v4601_v41, 5  ;;  %v7932_v20 = vld [vmem:[#allocation2 + $0xc4] sm:$0xf] }
 0x262   : > { %8692 = vst [vmem:[#allocation102_spill] sm:$0xff] %v7880_v60  ;;  %v5064_v51 = vsel %vm6601_vm8, %v5062_v1, %v5063_v18  ;;  %v4589_v36 = vrot.slane %v4588_v12, 4  ;;  %v6291_v1 = vld [vmem:[#allocation2 + $0xb4] sm:$0xff] }
 0x263   : > { %v7911_v58 = vpop.f32.mrf.mxu1 }
 0x264   : > { %8695 = vst [vmem:[#allocation105_spill] sm:$0xff] %v7911_v58 }
 0x266   : > { %5741 = vmatmul.msk.bf16.gmra.mxu2 %vm1692_vm0, %v6233_v50  ;;  %v4593_v50 = vrot.slane %v4591_v2, 5  ;;  %v7909_v33 = vpop.f32.mrf.mxu0  ;;  %v7920_v12 = vpop.f32.mrf.mxu3 }
 0x268   : > { %v4598_v60 = vor.u32 %v4597_v45, %v4593_v50  ;;  %v6234_v45 = vld [vmem:[#allocation2 + $0x90] sm:$0xff] }
 0x269   : > { %v7889_v47 = vpop.f32.mrf.mxu2 }
 0x26a   : > { %8693 = vst [vmem:[#allocation103_spill] sm:$0xff] %v7889_v47  ;;  %v5115_v47 = vunpack.c.l.b16 %v5064_v51  ;;  %v4599_v2 = vrot.slane %v4598_v60, 4  ;;  %v7934_v51 = vld [vmem:[#allocation2 + $0xc8] sm:$0x1] }
 0x26b   : > { %v7924_v18 = vpop.f32.mrf.mxu1 }
 0x26c   : > { %v7899_v25 = vpack.c.b16 %v5115_v47, %v5114_v14  ;;  %v4594_v14 = vsel %vm6617_vm13, %v4589_v36, %v4593_v50  ;;  %8696 = vst [vmem:[#allocation106_spill] sm:$0xff] %v7924_v18  ;;  %v4263_v50 = vld [vmem:[#allocation2 + $0xc0] sm:$0xf]  ;;  %v4615_v36 = vshll.u32 %v7932_v20, 16 }
 0x26d   : > { %v4688_v3 = vunpack.c.l.b16 %v4594_v14 }
 0x26e   : > { %6189 = vmatmul.msk.bf16.gmra.mxu1 %vm1692_vm0, %v7480_v8  ;;  %6142 = vmatmul.msk.bf16.gmra.mxu0 %vm1692_vm0, %v4706_v49  ;;  %v4604_v8 = vsel %vm6617_vm13, %v4599_v2, %v4603_v39  ;;  %v7922_v60 = vpop.f32.mrf.mxu0  ;;  %v4606_v49 = vshrl.u32 %v4263_v50, 16  ;;  %v4619_v2 = vshrl.u32 %v7932_v20, 16  ;;  %v7938_v39 = vpop.f32.mrf.mxu3 }
 0x26f   : > { %v4689_v47 = vunpack.c.l.b16 %v4604_v8  ;;  %v4617_v8 = vrot.slane %v4615_v36, 5 }
 0x270   : > { %6102 = vmatmul.msk.bf16.gmra.mxu3 %vm1692_vm0, %v6290_v31  ;;  %v4609_v31 = vshll.u32 %v4263_v50, 16 }
 0x271   : > { %v7905_v53 = vpop.f32.mrf.mxu2  ;;  %v4707_v41 = vpack.c.b16 %v4689_v47, %v4688_v3  ;;  %v4621_v3 = vrot.slane %v4619_v2, 4 }
 0x272   : > { %v4611_v14 = vrot.slane %v4609_v31, 5  ;;  %v6292_v31 = vld [vmem:[#allocation2 + $0xc0] sm:$0xff] }
 0x273   : > { %v4622_v18 = vor.u32 %v4621_v3, %v4617_v8  ;;  %v6326_v3 = vld [vmem:[#allocation2 + $0x10] sm:$0xf] }
 0x276   : > { %5742 = vmatmul.msk.bf16.gmra.mxu2 %vm1692_vm0, %v6234_v45  ;;  %v4608_v45 = vrot.slane %v4606_v49, 4  ;;  %v7942_v47 = vpop.f32.mrf.mxu0 }
 0x278   : > { %v4612_v50 = vor.u32 %v4611_v14, %v4608_v45 }
 0x279   : > { %v7918_v26 = vpop.f32.mrf.mxu2 }
 0x27a   : > { %v4613_v16 = vrot.slane %v4612_v50, 4  ;;  %v3546_v50 = vrot.slane %v6326_v3, 5 }
 0x27e   : > { %6190 = vmatmul.msk.bf16.gmra.mxu1 %vm1692_vm0, %v7527_v40  ;;  %6143 = vmatmul.msk.bf16.gmra.mxu0 %vm1692_vm0, %v4707_v41  ;;  %v4625_v40 = vshll.u32 %v7934_v51, 16  ;;  %v7944_v41 = vpop.f32.mrf.mxu1 }
 0x27f   : > { %8698 = vst [vmem:[#allocation108_spill] sm:$0xff] %v7944_v41  ;;  %v7954_v41 = vpop.f32.mrf.mxu3 }
 0x280   : > { %6103 = vmatmul.msk.bf16.gmra.mxu3 %vm1692_vm0, %v6291_v1  ;;  %v4627_v58 = vrot.slane %v4625_v40, 5 }
 0x281   : > { %v7930_v15 = vpop.f32.mrf.mxu2 }
 0x282   : > { %8697 = vst [vmem:[#allocation107_spill] sm:$0xff] %v7930_v15  ;;  %v4623_v15 = vrot.slane %v4622_v18, 4  ;;  %v7959_v18 = vpop.f32.mrf.mxu0 }
 0x284   : > { %v4628_v49 = vsel %vm6617_vm13, %v4623_v15, %v4627_v58  ;;  %v6236_v58 = vld [vmem:[#allocation2 + $0xa8] sm:$0xff] }
 0x285   : > { %v4691_v2 = vunpack.c.l.b16 %v4628_v49  ;;  %v3548_v49 = vrot.slane %v3546_v50, 4 }
 0x286   : > { %5743 = vmatmul.msk.bf16.gmra.mxu2 %vm1692_vm0, %v6235_v22  ;;  %v4618_v22 = vsel %vm6617_vm13, %v4613_v16, %v4617_v8  ;;  %v7962_v16 = vpop.f32.mrf.mxu1  ;;  %v6237_v8 = vld [vmem:[#allocation2 + $0xb4] sm:$0xff] }
 0x287   : > { %v4690_v36 = vunpack.c.l.b16 %v4618_v22  ;;  %8699 = vst [vmem:[#allocation109_spill] sm:$0xff] %v7962_v16 }
 0x289   : > { %v7946_v1 = vpop.f32.mrf.mxu2  ;;  %v4708_v45 = vpack.c.b16 %v4691_v2, %v4690_v36  ;;  %v3480_v36 = vld [vmem:[#allocation2 + $0xc] sm:$0xe]  ;;  %v6327_v2 = vld [vmem:[#allocation2 + $0x14] sm:$0x1] }
 0x28e   : > { %6191 = vmatmul.msk.bf16.gmra.mxu1 %vm1692_vm0, %v7577_v54  ;;  %6144 = vmatmul.msk.bf16.gmra.mxu0 %vm1692_vm0, %v4708_v45  ;;  %v7967_v14 = vpop.f32.mrf.mxu1  ;;  %v3549_v45 = vrot.slane %v6327_v2, 5  ;;  %v3481_v2 = vld [vmem:[#allocation2 + $0x18] sm:$0xe] }
 0x28f   : > { %8701 = vst [vmem:[#allocation111_spill] sm:$0xff] %v7967_v14 }
 0x290   : > { %6104 = vmatmul.msk.bf16.gmra.mxu3 %vm1692_vm0, %v6292_v31  ;;  %v3550_v14 = vsel %vm6601_vm8, %v3548_v49, %v3549_v45  ;;  %v6329_v45 = vld [vmem:[#allocation2 + $0x20] sm:$0x1] }
 0x291   : > { %v7957_v40 = vpop.f32.mrf.mxu2  ;;  %v3666_v3 = vunpack.c.l.b16 %v3550_v14 }
 0x296   : > { %5744 = vmatmul.msk.bf16.gmra.mxu2 %vm1692_vm0, %v6236_v58  ;;  %v7974_v22 = vpop.f32.mrf.mxu1  ;;  %v5946_v58 = vrot.slane %v3480_v36, 9 }
 0x297   : > { %8703 = vst [vmem:[#allocation113_spill] sm:$0xff] %v7974_v22 }
 0x299   : > { %v7965_v15 = vpop.f32.mrf.mxu2 }
 0x29a   : > { %8700 = vst [vmem:[#allocation110_spill] sm:$0xff] %v7965_v15 }
 0x29e   : > { %6192 = vmatmul.msk.bf16.gmra.mxu1 %vm1692_vm0, %v7630_v5  ;;  %v3547_v5 = vsel %vm6601_vm8, %v5946_v58, %v3546_v50  ;;  %v5947_v50 = vrot.slane %v3481_v2, 9 }
 0x29f   : > { %v3665_v16 = vunpack.c.l.b16 %v3547_v5 }
 0x2a1   : > { %v7971_v54 = vpop.f32.mrf.mxu2  ;;  %v3697_v9 = vpack.c.b16 %v3666_v3, %v3665_v16 }
 0x2a2   : > { %8702 = vst [vmem:[#allocation112_spill] sm:$0xff] %v7971_v54 }
 0x2a6   : > { %5745 = vmatmul.msk.bf16.gmra.mxu2 %vm1692_vm0, %v6237_v8  ;;  %v7984_v8 = vpop.f32.mrf.mxu1 }
 0x2a7   : > { %8705 = vst [vmem:[#allocation115_spill] sm:$0xff] %v7984_v8 }
 0x2a9   : > { %v7976_v31 = vpop.f32.mrf.mxu2 }
 0x2aa   : > { %8704 = vst [vmem:[#allocation114_spill] sm:$0xff] %v7976_v31  ;;  %v6328_v31 = vld [vmem:[#allocation2 + $0x1c] sm:$0xf] }
 0x2ab   : > { %v3553_v54 = vrot.slane %v6328_v31, 5 }
 0x2ad   : > { %v3555_v49 = vrot.slane %v3553_v54, 4  ;;  %v3554_v16 = vsel %vm6601_vm8, %v5947_v50, %v3553_v54 }
 0x2ae   : > { %6193 = vmatmul.msk.bf16.gmra.mxu1 %vm1692_vm0, %v7679_v61  ;;  %v3556_v61 = vrot.slane %v6329_v45, 5  ;;  %v7991_v15 = vpop.f32.mrf.mxu1  ;;  %v3667_v58 = vunpack.c.l.b16 %v3554_v16  ;;  %v6330_v45 = vld [vmem:[#allocation2 + $0x28] sm:$0xf] }
 0x2af   : > { %8707 = vst [vmem:[#allocation117_spill] sm:$0xff] %v7991_v15  ;;  %v3560_v8 = vrot.slane %v6330_v45, 5  ;;  %v6331_v15 = vld [vmem:[#allocation2 + $0x2c] sm:$0x1]  ;;  %v6332_v45 = vld [vmem:[#allocation2 + $0x34] sm:$0xf] }
 0x2b0   : > { %v3557_v14 = vsel %vm6601_vm8, %v3555_v49, %v3556_v61  ;;  %v3482_v61 = vld [vmem:[#allocation2 + $0x24] sm:$0xe] }
 0x2b1   : > { %v7986_v22 = vpop.f32.mrf.mxu2  ;;  %v3668_v31 = vunpack.c.l.b16 %v3557_v14  ;;  %v3562_v49 = vrot.slane %v3560_v8, 4 }
 0x2b3   : > { %v3698_v5 = vpack.c.b16 %v3668_v31, %v3667_v58 }
 0x2b6   : > { %5986 = vmatmul.msk.bf16.vlgmr.msra.gmra.mxu2 %vm1692_vm0, %v3697_v9  ;;  %v8001_v3 = vpop.f32.mrf.mxu1 }
 0x2b7   : > { %8708 = vst [vmem:[#allocation118_spill] sm:$0xff] %v8001_v3  ;;  %v3567_v3 = vrot.slane %v6332_v45, 5  ;;  %v6334_v45 = vld [vmem:[#allocation2 + $0x40] sm:$0xf] }
 0x2b9   : > { %v7989_v36 = vpop.f32.mrf.mxu2 }
 0x2ba   : > { %8706 = vst [vmem:[#allocation116_spill] sm:$0xff] %v7989_v36  ;;  %v5948_v36 = vrot.slane %v3482_v61, 9  ;;  %v3569_v61 = vrot.slane %v3567_v3, 4 }
 0x2bc   : > { %v3561_v14 = vsel %vm6601_vm8, %v5948_v36, %v3560_v8 }
 0x2bd   : > { %v3669_v58 = vunpack.c.l.b16 %v3561_v14 }
 0x2be   : > { %6194 = vmatmul.msk.bf16.gmra.mxu1 %vm1692_vm0, %v7754_v17  ;;  %v3563_v17 = vrot.slane %v6331_v15, 5  ;;  %v8008_v50 = vpop.f32.mrf.mxu1 }
 0x2bf   : > { %8710 = vst [vmem:[#allocation120_spill] sm:$0xff] %v8008_v50  ;;  %v6333_v50 = vld [vmem:[#allocation2 + $0x38] sm:$0x1] }
 0x2c0   : > { %v3564_v54 = vsel %vm6601_vm8, %v3562_v49, %v3563_v17  ;;  %v3483_v17 = vld [vmem:[#allocation2 + $0x30] sm:$0xe] }
 0x2c1   : > { %v7999_v9 = vpop.f32.mrf.mxu2  ;;  %v3670_v16 = vunpack.c.l.b16 %v3564_v54 }
 0x2c6   : > { %5987 = vmatmul.msk.bf16.gmra.mxu2 %vm1692_vm0, %v3698_v5  ;;  %v3699_v5 = vpack.c.b16 %v3670_v16, %v3669_v58  ;;  %v8017_v15 = vpop.f32.mrf.mxu1 }
 0x2c7   : > { %8712 = vst [vmem:[#allocation122_spill] sm:$0xff] %v8017_v15  ;;  %v3574_v15 = vrot.slane %v6334_v45, 5  ;;  %v6336_v45 = vld [vmem:[#allocation2 + $0x4c] sm:$0xf] }
 0x2c9   : > { %v8004_v2 = vpop.f32.mrf.mxu2 }
 0x2ca   : > { %8709 = vst [vmem:[#allocation119_spill] sm:$0xff] %v8004_v2  ;;  %v5949_v2 = vrot.slane %v3483_v17, 9  ;;  %v3484_v17 = vld [vmem:[#allocation2 + $0x3c] sm:$0xe] }
 0x2cc   : > { %v3568_v36 = vsel %vm6601_vm8, %v5949_v2, %v3567_v3  ;;  %v5950_v3 = vrot.slane %v3484_v17, 9 }
 0x2cd   : > { %v3671_v16 = vunpack.c.l.b16 %v3568_v36 }
 0x2ce   : > { %6195 = vmatmul.msk.bf16.gmra.mxu1 %vm1692_vm0, %v7787_v30  ;;  %v3570_v30 = vrot.slane %v6333_v50, 5  ;;  %v8029_v58 = vpop.f32.mrf.mxu1 }
 0x2cf   : > { %8715 = vst [vmem:[#allocation125_spill] sm:$0xff] %v8029_v58  ;;  %v3581_v58 = vrot.slane %v6336_v45, 5  ;;  %v6338_v45 = vld [vmem:[#allocation2 + $0x58] sm:$0xf] }
 0x2d0   : > { %v3571_v8 = vsel %vm6601_vm8, %v3569_v61, %v3570_v30  ;;  %v3576_v61 = vrot.slane %v3574_v15, 4  ;;  %v6335_v30 = vld [vmem:[#allocation2 + $0x44] sm:$0x1] }
 0x2d1   : > { %v8014_v31 = vpop.f32.mrf.mxu2  ;;  %v3672_v54 = vunpack.c.l.b16 %v3571_v8  ;;  %v3575_v8 = vsel %vm6601_vm8, %v5950_v3, %v3574_v15 }
 0x2d2   : > { %8711 = vst [vmem:[#allocation121_spill] sm:$0xff] %v8014_v31 }
 0x2d6   : > { %5988 = vmatmul.msk.bf16.gmra.mxu2 %vm1692_vm0, %v3699_v5  ;;  %v3700_v5 = vpack.c.b16 %v3672_v54, %v3671_v16  ;;  %v3673_v16 = vunpack.c.l.b16 %v3575_v8 }
 0x2d9   : > { %v8019_v49 = vpop.f32.mrf.mxu2 }
 0x2da   : > { %8713 = vst [vmem:[#allocation123_spill] sm:$0xff] %v8019_v49  ;;  %v8034_v49 = vpop.f32.mrf.mxu1 }
 0x2de   : > { %6196 = vmatmul.msk.bf16.gmra.mxu1 %vm1692_vm0, %v7815_v34  ;;  %v3577_v34 = vrot.slane %v6335_v30, 5 }
 0x2e0   : > { %v3578_v2 = vsel %vm6601_vm8, %v3576_v61, %v3577_v34  ;;  %v3583_v61 = vrot.slane %v3581_v58, 4  ;;  %v3485_v34 = vld [vmem:[#allocation2 + $0x48] sm:$0xe] }
 0x2e1   : > { %v8027_v14 = vpop.f32.mrf.mxu2  ;;  %v3674_v36 = vunpack.c.l.b16 %v3578_v2 }
 0x2e2   : > { %8714 = vst [vmem:[#allocation124_spill] sm:$0xff] %v8027_v14  ;;  %v8045_v30 = vpop.f32.mrf.mxu1  ;;  %v5951_v14 = vrot.slane %v3485_v34, 9  ;;  %v3486_v34 = vld [vmem:[#allocation2 + $0x54] sm:$0xe] }
 0x2e4   : > { %v3582_v3 = vsel %vm6601_vm8, %v5951_v14, %v3581_v58  ;;  %v5952_v14 = vrot.slane %v3486_v34, 9  ;;  %v5070_v34 = vrot.slane %v7934_v51, 5  ;;  %v6341_v51 = vld [vmem:[#allocation2 + $0x68] sm:$0x1] }
 0x2e6   : > { %5989 = vmatmul.msk.bf16.gmra.mxu2 %vm1692_vm0, %v3700_v5  ;;  %v3701_v5 = vpack.c.b16 %v3674_v36, %v3673_v16  ;;  %v3675_v16 = vunpack.c.l.b16 %v3582_v3 }
 0x2e9   : > { %v8032_v50 = vpop.f32.mrf.mxu2 }
 0x2ea   : > { %8716 = vst [vmem:[#allocation126_spill] sm:$0xff] %v8032_v50  ;;  %v6337_v50 = vld [vmem:[#allocation2 + $0x50] sm:$0x1]  ;;  %v8055_v8 = vpop.f32.mrf.mxu1 }
 0x2ee   : > { %6197 = vmatmul.msk.bf16.gmra.mxu1 %vm1692_vm0, %v7844_v24  ;;  %v3584_v24 = vrot.slane %v6337_v50, 5 }
 0x2f0   : > { %v3585_v15 = vsel %vm6601_vm8, %v3583_v61, %v3584_v24 }
 0x2f1   : > { %v8042_v54 = vpop.f32.mrf.mxu2  ;;  %v3676_v2 = vunpack.c.l.b16 %v3585_v15  ;;  %v5067_v15 = vrot.slane %v7932_v20, 5 }
 0x2f2   : > { %8717 = vst [vmem:[#allocation127_spill] sm:$0xff] %v8042_v54  ;;  %v8062_v24 = vpop.f32.mrf.mxu1 }
 0x2f6   : > { %5990 = vmatmul.msk.bf16.gmra.mxu2 %vm1692_vm0, %v3701_v5  ;;  %v3702_v5 = vpack.c.b16 %v3676_v2, %v3675_v16  ;;  %v4917_v2 = vld [vmem:[#allocation2 + $0xc0] sm:$0xe] }
 0x2f9   : > { %v8047_v17 = vpop.f32.mrf.mxu2 }
 0x2fa   : > { %8718 = vst [vmem:[#allocation128_spill] sm:$0xff] %v8047_v17  ;;  %v3588_v17 = vrot.slane %v6338_v45, 5  ;;  %v8074_v31 = vpop.f32.mrf.mxu1 }
 0x2fc   : > { %v3590_v61 = vrot.slane %v3588_v17, 4  ;;  %v3589_v3 = vsel %vm6601_vm8, %v5952_v14, %v3588_v17 }
 0x2fd   : > { %v3677_v45 = vunpack.c.l.b16 %v3589_v3 }
 0x2fe   : > { %6198 = vmatmul.msk.bf16.gmra.mxu1 %vm1692_vm0, %v7870_v7  ;;  %v6339_v7 = vld [vmem:[#allocation2 + $0x5c] sm:$0x1] }
 0x2ff   : > { %v3591_v54 = vrot.slane %v6339_v7, 5 }
 0x301   : > { %v8057_v36 = vpop.f32.mrf.mxu2  ;;  %v3592_v58 = vsel %vm6601_vm8, %v3590_v61, %v3591_v54  ;;  %v6340_v54 = vld [vmem:[#allocation2 + $0x64] sm:$0xf] }
 0x302   : > { %8719 = vst [vmem:[#allocation129_spill] sm:$0xff] %v8057_v36  ;;  %v3678_v16 = vunpack.c.l.b16 %v3592_v58  ;;  %v5069_v36 = vrot.slane %v5067_v15, 4  ;;  %v3595_v20 = vrot.slane %v6340_v54, 5 }
 0x304   : > { %v3703_v7 = vpack.c.b16 %v3678_v16, %v3677_v45  ;;  %v5071_v17 = vsel %vm6601_vm8, %v5069_v36, %v5070_v34  ;;  %v3597_v3 = vrot.slane %v3595_v20, 4  ;;  %v3598_v16 = vrot.slane %v6341_v51, 5 }
 0x305   : > { %v5117_v14 = vunpack.c.l.b16 %v5071_v17  ;;  %v6342_v17 = vld [vmem:[#allocation2 + $0x70] sm:$0xf] }
 0x306   : > { %5991 = vmatmul.msk.bf16.gmra.mxu2 %vm1692_vm0, %v3702_v5  ;;  %v3599_v54 = vsel %vm6601_vm8, %v3597_v3, %v3598_v16  ;;  %v3488_v3 = vld [vmem:[#allocation2 + $0x6c] sm:$0xe]  ;;  %v1992_v16 = vadd.f32 %v7803_v56, %v7062_v21  ;;  %v3489_v21 = vld [vmem:[#allocation2 + $0x78] sm:$0xe]  ;;  %v6344_v56 = vld [vmem:[#allocation2 + $0x7c] sm:$0xf] }
 0x309   : > { %v8060_v50 = vpop.f32.mrf.mxu2 }
 0x30a   : > { %8720 = vst [vmem:[#allocation130_spill] sm:$0xff] %v8060_v50  ;;  %v6160_v50 = vrot.slane %v4917_v2, 9  ;;  %v3487_v2 = vld [vmem:[#allocation2 + $0x60] sm:$0xe] }
 0x30e   : > { %6199 = vmatmul.msk.bf16.gmra.mxu1 %vm1692_vm0, %v7899_v25  ;;  %v5068_v25 = vsel %vm6601_vm8, %v6160_v50, %v5067_v15  ;;  %v3680_v50 = vunpack.c.l.b16 %v3599_v54  ;;  %v2452_v54 = vadd.f32 %v7067_v28, %v1992_v16  ;;  %v6345_v16 = vld [vmem:[#allocation2 + $0x80] sm:$0x1] }
 0x30f   : > { %v5116_v61 = vunpack.c.l.b16 %v5068_v25 }
 0x311   : > { %v8071_v5 = vpop.f32.mrf.mxu2  ;;  %v5134_v45 = vpack.c.b16 %v5117_v14, %v5116_v61 }
 0x312   : > { %8721 = vst [vmem:[#allocation131_spill] sm:$0xff] %v8071_v5  ;;  %v5953_v5 = vrot.slane %v3487_v2, 9  ;;  %v6343_v2 = vld [vmem:[#allocation2 + $0x74] sm:$0x1] }
 0x313   : > { %v3605_v51 = vrot.slane %v6343_v2, 5  ;;  %v2766_v2 = vadd.f32 %v7074_v29, %v2452_v54  ;;  %v8120_v54 = vpop.f32.mrf.mxu0 }
 0x314   : > { %v3596_v36 = vsel %vm6601_vm8, %v5953_v5, %v3595_v20 }
 0x315   : > { %v3679_v34 = vunpack.c.l.b16 %v3596_v36  ;;  %v3448_v28 = vadd.f32 %v7477_v44, %v2766_v2 }
 0x316   : > { %5992 = vmatmul.msk.bf16.gmra.mxu2 %vm1692_vm0, %v3703_v7  ;;  %v8085_v7 = vpop.f32.mrf.mxu1 }
 0x317   : > { %v3704_v25 = vpack.c.b16 %v3680_v50, %v3679_v34 }
 0x319   : > { %v8081_v58 = vpop.f32.mrf.mxu2 }
 0x31a   : > { %8722 = vst [vmem:[#allocation132_spill] sm:$0xff] %v8081_v58  ;;  %v3602_v58 = vrot.slane %v6342_v17, 5 }
 0x31c   : > { %v3604_v14 = vrot.slane %v3602_v58, 4 }
 0x31e   : > { %6200 = vmatmul.msk.bf16.gmra.mxu1 %vm1692_vm0, %v5134_v45  ;;  %v5954_v45 = vrot.slane %v3488_v3, 9  ;;  %v3606_v5 = vsel %vm6601_vm8, %v3604_v14, %v3605_v51  ;;  %v3609_v3 = vrot.slane %v6344_v56, 5  ;;  %v5955_v14 = vrot.slane %v3489_v21, 9 }
 0x31f   : > { %v3682_v36 = vunpack.c.l.b16 %v3606_v5 }
 0x320   : > { %v3603_v20 = vsel %vm6601_vm8, %v5954_v45, %v3602_v58  ;;  %v3611_v51 = vrot.slane %v3609_v3, 4  ;;  %v3612_v45 = vrot.slane %v6345_v16, 5  ;;  %v3610_v29 = vsel %vm6601_vm8, %v5955_v14, %v3609_v3  ;;  %v6346_v14 = vld [vmem:[#allocation2 + $0x88] sm:$0xf]  ;;  %v3490_v16 = vld [vmem:[#allocation2 + $0x84] sm:$0xe] }
 0x321   : > { %v8090_v15 = vpop.f32.mrf.mxu2  ;;  %v3681_v34 = vunpack.c.l.b16 %v3603_v20 }
 0x322   : > { %v3613_v44 = vsel %vm6601_vm8, %v3611_v51, %v3612_v45 }
 0x323   : > { %v3705_v17 = vpack.c.b16 %v3682_v36, %v3681_v34  ;;  %v8126_v34 = vld [vmem:[%s8578_s5] ss:$0 sm:$0xff] }
 0x326   : > { %5993 = vmatmul.msk.bf16.gmra.mxu2 %vm1692_vm0, %v3704_v25  ;;  %v1994_v25 = vadd.f32 %v7817_v11, %v7092_v46  ;;  %v1997_v46 = vadd.f32 %v7828_v55, %v7117_v38  ;;  %v3684_v38 = vunpack.c.l.b16 %v3613_v44 }
 0x328   : > { %v2453_v58 = vadd.f32 %v7094_v48, %v1994_v25  ;;  %v8128_v25 = vpop.f32.mrf.mxu1  ;;  %v2454_v55 = vadd.f32 %v7111_v6, %v1997_v46  ;;  %v1999_v6 = vadd.f32 %v7846_v42, %v7137_v10  ;;  %v8154_v10 = vpop.f32.mrf.mxu0  ;;  %v5956_v42 = vrot.slane %v3490_v16, 9  ;;  %v8725_v16 = vld [vmem:[#allocation7_spill] sm:$0xff] }
 0x329   : > { %v8093_v61 = vpop.f32.mrf.mxu2 }
 0x32a   : > { %v2767_v48 = vadd.f32 %v7096_v57, %v2453_v58  ;;  %v3616_v58 = vrot.slane %v6346_v14, 5  ;;  %v2768_v51 = vadd.f32 %v7115_v37, %v2454_v55  ;;  %v6347_v37 = vld [vmem:[#allocation2 + $0x8c] sm:$0x1] }
 0x331   : > { %v8102_v50 = vpop.f32.mrf.mxu2 }
 0x332   : > { %8723 = vst [vmem:[#allocation133_spill] sm:$0xff] %v8102_v50  ;;  %v8110_v50 = vpop.f32.mrf.mxu3 }
 0x336   : > { %5994 = vmatmul.msk.bf16.gmra.mxu2 %vm1692_vm0, %v3705_v17  ;;  %v3683_v17 = vunpack.c.l.b16 %v3610_v29  ;;  %v2455_v29 = vadd.f32 %v7127_v63, %v1999_v6  ;;  %v2002_v63 = vadd.f32 %v7859_v32, %v7157_v0  ;;  %v8724_v0 = vld [vmem:[#allocation48_spill] sm:$0xff] }
 0x338   : > { %v3706_v3 = vpack.c.b16 %v3684_v38, %v3683_v17  ;;  %v3617_v17 = vsel %vm6601_vm8, %v5956_v42, %v3616_v58  ;;  %v2769_v55 = vadd.f32 %v7129_v4, %v2455_v29  ;;  %v8727_v42 = vld [vmem:[#allocation4_spill] sm:$0xff] }
 0x339   : > { %v3794_v5 = vpop.f32.mrf.mxu2 }
 0x33a   : > { %v3874_v20 = vadd.f32 %v3794_v5, %v3448_v28  ;;  %v3451_v32 = vadd.f32 %v8724_v0, %v2769_v55 }
 0x33c   : > { %v4189_v11 = vadd.f32 %v7868_v52, %v3874_v20  ;;  %v8135_v52 = vld [vmem:[%s8579_s6] ss:$0 sm:$0xff]  ;;  %v3619_v20 = vrot.slane %v6347_v37, 5  ;;  %v3491_v37 = vld [vmem:[#allocation2 + $0x90] sm:$0xe] }
 0x33e   : > { %v4871_v36 = vadd.f32 %v7875_v13, %v4189_v11  ;;  %v3449_v13 = vadd.f32 %v7494_v59, %v2767_v48  ;;  %v8150_v59 = vpop.f32.mrf.mxu3  ;;  %v3450_v11 = vadd.f32 %v7524_v35, %v2768_v51  ;;  %v8161_v48 = vpop.f32.mrf.mxu1 }
 0x340   : > { %v5297_v57 = vadd.f32 %v8034_v49, %v4871_v36 }
 0x341   : > { %v3796_v2 = vpop.f32.mrf.mxu2 }
 0x342   : > { %v5333_v21 = vmul.f32 %v8126_v34, %v5297_v57  ;;  %v3875_v56 = vadd.f32 %v3796_v2, %v3449_v13 }
 0x344   : > { %v5369_v49 = vadd.f32 %v8135_v52, %v5333_v21  ;;  %v4190_v28 = vadd.f32 %v7887_v43, %v3875_v56  ;;  %v3618_v43 = vrot.slane %v3616_v58, 4  ;;  %v3685_v21 = vunpack.c.l.b16 %v3617_v17  ;;  %v8181_v58 = vpop.f32.mrf.mxu0 }
 0x346   : > { %v5401_v45 = vmax.f32 %v5369_v49, 0.0  ;;  %v4872_v5 = vadd.f32 %v7891_v19, %v4190_v28  ;;  %5995 = vmatmul.msk.bf16.gmra.mxu2 %vm1692_vm0, %v3706_v3  ;;  %v3620_v38 = vsel %vm6601_vm8, %v3618_v43, %v3619_v20  ;;  %v8174_v2 = vpop.f32.mrf.mxu3  ;;  %v2456_v3 = vadd.f32 %v7145_v23, %v2002_v63  ;;  %v8184_v49 = vpop.f32.mrf.mxu1  ;;  %v6348_v28 = vld [vmem:[#allocation2 + $0x94] sm:$0xf]  ;;  %v8729_v63 = vld [vmem:[#allocation51_spill] sm:$0xff] }
 0x347   : > { %v3686_v56 = vunpack.c.l.b16 %v3620_v38  ;;  %v3623_v51 = vrot.slane %v6348_v28, 5  ;;  %v8726_v23 = vld [vmem:[#allocation102_spill] sm:$0xff] }
 0x348   : > { %5434 = vst.msk [vmem:[%s8148_s25] sm:$0xff] %vm5433_vm1, %v5401_v45  ;;  %v5298_v46 = vadd.f32 %v8045_v30, %v4872_v5  ;;  %v2004_v45 = vadd.f32 %v8726_v23, %v8725_v16  ;;  %v2770_v43 = vadd.f32 %v8727_v42, %v2456_v3  ;;  %v8731_v3 = vld [vmem:[#allocation103_spill] sm:$0xff] }
 0x349   : > { %v3799_v19 = vpop.f32.mrf.mxu2 }
 0x34a   : > { %v5334_v44 = vmul.f32 %v8126_v34, %v5298_v46  ;;  %v3876_v36 = vadd.f32 %v3799_v19, %v3450_v11  ;;  %v5957_v46 = vrot.slane %v3491_v37, 9  ;;  %v3625_v11 = vrot.slane %v3623_v51, 4  ;;  %v6349_v19 = vld [vmem:[#allocation2 + $0x98] sm:$0x1] }
 0x34c   : > { %v5370_v30 = vadd.f32 %v8135_v52, %v5334_v44  ;;  %v4191_v35 = vadd.f32 %v7907_v27, %v3876_v36  ;;  %v3626_v44 = vrot.slane %v6349_v19, 5  ;;  %v8728_v36 = vld [vmem:[#allocation5_spill] sm:$0xff] }
 0x34d   : > { %v2457_v17 = vadd.f32 %v8728_v36, %v2004_v45 }
 0x34e   : > { %v5402_v57 = vmax.f32 %v5370_v30, 0.0  ;;  %v4873_v13 = vadd.f32 %v7909_v33, %v4191_v35  ;;  %v3707_v33 = vpack.c.b16 %v3686_v56, %v3685_v21  ;;  %v8198_v30 = vpop.f32.mrf.mxu3  ;;  %v3627_v21 = vsel %vm6601_vm8, %v3625_v11, %v3626_v44  ;;  %v8730_v56 = vld [vmem:[#allocation10_spill] sm:$0xff] }
 0x34f   : > { %v3688_v16 = vunpack.c.l.b16 %v3627_v21  ;;  %v8737_v21 = vld [vmem:[#allocation11_spill] sm:$0xff] }
 0x350   : > { %5435 = vst.msk [vmem:[%s8148_s25 + $0x8] sm:$0xff] %vm5433_vm1, %v5402_v57  ;;  %v5299_v14 = vadd.f32 %v8055_v8, %v4873_v13  ;;  %v8201_v57 = vpop.f32.mrf.mxu0  ;;  %v3624_v13 = vsel %vm6601_vm8, %v5957_v46, %v3623_v51  ;;  %v8733_v51 = vld [vmem:[#allocation8_spill] sm:$0xff] }
 0x351   : > { %v3801_v27 = vpop.f32.mrf.mxu2  ;;  %v3687_v28 = vunpack.c.l.b16 %v3624_v13  ;;  %v6351_v13 = vld [vmem:[#allocation2 + $0xa4] sm:$0x1] }
 0x352   : > { %v5335_v4 = vmul.f32 %v8126_v34, %v5299_v14  ;;  %v3877_v6 = vadd.f32 %v3801_v27, %v3451_v32  ;;  %v8732_v32 = vld [vmem:[#allocation6_spill] sm:$0xff] }
 0x353   : > { %v2771_v27 = vadd.f32 %v8732_v32, %v2457_v17  ;;  %v3492_v17 = vld [vmem:[#allocation2 + $0x9c] sm:$0xe] }
 0x354   : > { %v5371_v5 = vadd.f32 %v8135_v52, %v5335_v4  ;;  %v4192_v8 = vadd.f32 %v7920_v12, %v3877_v6  ;;  %v3452_v12 = vadd.f32 %v8729_v63, %v2770_v43  ;;  %v8212_v4 = vpop.f32.mrf.mxu1 }
 0x356   : > { %v5403_v20 = vmax.f32 %v5371_v5, 0.0  ;;  %v4874_v29 = vadd.f32 %v7922_v60, %v4192_v8  ;;  %5996 = vmatmul.msk.bf16.gmra.mxu2 %vm1692_vm0, %v3707_v33  ;;  %v8734_v5 = vld [vmem:[#allocation54_spill] sm:$0xff]  ;;  %v8221_v37 = vpop.f32.mrf.mxu3 }
 0x357   : > { %v3453_v8 = vadd.f32 %v8734_v5, %v2771_v27 }
 0x358   : > { %5436 = vst.msk [vmem:[%s8148_s25 + $0x10] sm:$0xff] %vm5433_vm1, %v5403_v20  ;;  %v5300_v38 = vadd.f32 %v8062_v24, %v4874_v29  ;;  %v2007_v24 = vadd.f32 %v8731_v3, %v8730_v56  ;;  %v3708_v20 = vpack.c.b16 %v3688_v16, %v3687_v28  ;;  %v6350_v29 = vld [vmem:[#allocation2 + $0xa0] sm:$0xf]  ;;  %v8738_v3 = vld [vmem:[#allocation58_spill] sm:$0xff] }
 0x359   : > { %v3804_v35 = vpop.f32.mrf.mxu2  ;;  %v3630_v46 = vrot.slane %v6350_v29, 5  ;;  %v8740_v16 = vld [vmem:[#allocation12_spill] sm:$0xff]  ;;  %v8742_v29 = vld [vmem:[#allocation62_spill] sm:$0xff] }
 0x35a   : > { %v5336_v60 = vmul.f32 %v8126_v34, %v5300_v38  ;;  %v3878_v55 = vadd.f32 %v3804_v35, %v3452_v12  ;;  %v2458_v23 = vadd.f32 %v8733_v51, %v2007_v24  ;;  %v8228_v38 = vpop.f32.mrf.mxu0 }
 0x35c   : > { %v5372_v14 = vadd.f32 %v8135_v52, %v5336_v60  ;;  %v4193_v0 = vadd.f32 %v7938_v39, %v3878_v55  ;;  %v8232_v35 = vpop.f32.mrf.mxu1  ;;  %v5958_v60 = vrot.slane %v3492_v17, 9  ;;  %v3632_v55 = vrot.slane %v3630_v46, 4  ;;  %v8744_v17 = vld [vmem:[#allocation107_spill] sm:$0xff] }
 0x35e   : > { %v5404_v6 = vmax.f32 %v5372_v14, 0.0  ;;  %v4875_v33 = vadd.f32 %v7942_v47, %v4193_v0  ;;  %v8735_v47 = vld [vmem:[#allocation13_spill] sm:$0xff]  ;;  %v3631_v32 = vsel %vm6601_vm8, %v5958_v60, %v3630_v46 }
 0x35f   : > { %v2009_v11 = vadd.f32 %v7905_v53, %v8735_v47  ;;  %v3633_v53 = vrot.slane %v6351_v13, 5  ;;  %v3493_v13 = vld [vmem:[#allocation2 + $0xa8] sm:$0xe] }
 0x360   : > { %5437 = vst.msk [vmem:[%s8148_s25 + $0x18] sm:$0xff] %vm5433_vm1, %v5404_v6  ;;  %v5301_v45 = vadd.f32 %v8074_v31, %v4875_v33  ;;  %v8736_v31 = vld [vmem:[#allocation9_spill] sm:$0xff]  ;;  %v8739_v6 = vld [vmem:[#allocation16_spill] sm:$0xff] }
 0x361   : > { %v3806_v42 = vpop.f32.mrf.mxu2  ;;  %v2772_v36 = vadd.f32 %v8736_v31, %v2458_v23  ;;  %v2459_v56 = vadd.f32 %v8737_v21, %v2009_v11  ;;  %v3634_v27 = vsel %vm6601_vm8, %v3632_v55, %v3633_v53  ;;  %v2012_v33 = vadd.f32 %v7918_v26, %v8739_v6  ;;  %v8249_v23 = vpop.f32.mrf.mxu3 }
 0x362   : > { %v5337_v39 = vmul.f32 %v8126_v34, %v5301_v45  ;;  %v3879_v43 = vadd.f32 %v3806_v42, %v3453_v8  ;;  %v8252_v8 = vpop.f32.mrf.mxu0  ;;  %v3689_v42 = vunpack.c.l.b16 %v3631_v32  ;;  %v8747_v32 = vld [vmem:[#allocation66_spill] sm:$0xff] }
 0x363   : > { %v3454_v24 = vadd.f32 %v8738_v3, %v2772_v36  ;;  %v2773_v51 = vadd.f32 %v8740_v16, %v2459_v56  ;;  %v8743_v36 = vld [vmem:[#allocation19_spill] sm:$0xff] }
 0x364   : > { %v5373_v19 = vadd.f32 %v8135_v52, %v5337_v39  ;;  %v4194_v44 = vadd.f32 %v7954_v41, %v3879_v43  ;;  %v3690_v39 = vunpack.c.l.b16 %v3634_v27  ;;  %v8741_v43 = vld [vmem:[#allocation14_spill] sm:$0xff] }
 0x365   : > { %v3455_v46 = vadd.f32 %v8742_v29, %v2773_v51 }
 0x366   : > { %v5405_v63 = vmax.f32 %v5373_v19, 0.0  ;;  %v4876_v12 = vadd.f32 %v7959_v18, %v4194_v44  ;;  %5997 = vmatmul.msk.bf16.gmra.mxu2 %vm1692_vm0, %v3708_v20  ;;  %v2460_v20 = vadd.f32 %v8741_v43, %v2012_v33  ;;  %v3709_v44 = vpack.c.b16 %v3690_v39, %v3689_v42  ;;  %v8749_v39 = vld [vmem:[#allocation18_spill] sm:$0xff] }
 0x368   : > { %5438 = vst.msk [vmem:[%s8148_s25 + $0x20] sm:$0xff] %vm5433_vm1, %v5405_v63  ;;  %v5302_v41 = vadd.f32 %v8085_v7, %v4876_v12  ;;  %v2014_v63 = vadd.f32 %v8744_v17, %v8743_v36 }
 0x369   : > { %v3809_v14 = vpop.f32.mrf.mxu2  ;;  %v8269_v56 = vpop.f32.mrf.mxu3 }
 0x36a   : > { %v5338_v18 = vmul.f32 %v8126_v34, %v5302_v41  ;;  %v3880_v0 = vadd.f32 %v3809_v14, %v3454_v24  ;;  %v5959_v41 = vrot.slane %v3493_v13, 9  ;;  %v6353_v24 = vld [vmem:[#allocation2 + $0xb0] sm:$0x1]  ;;  %v8276_v6 = vpop.f32.mrf.mxu0  ;;  %v8753_v13 = vld [vmem:[#allocation21_spill] sm:$0xff] }
 0x36b   : > { %v3640_v14 = vrot.slane %v6353_v24, 5 }
 0x36c   : > { %v5374_v28 = vadd.f32 %v8135_v52, %v5338_v18  ;;  %v4195_v7 = vadd.f32 %v8110_v50, %v3880_v0  ;;  %v8259_v50 = vpop.f32.mrf.mxu1  ;;  %v8746_v18 = vld [vmem:[#allocation17_spill] sm:$0xff] }
 0x36d   : > { %v2461_v0 = vadd.f32 %v8746_v18, %v2014_v63 }
 0x36e   : > { %v5406_v45 = vmax.f32 %v5374_v28, 0.0  ;;  %v4877_v5 = vadd.f32 %v8120_v54, %v4195_v7  ;;  %v6352_v54 = vld [vmem:[#allocation2 + $0xac] sm:$0xf] }
 0x36f   : > { %v3637_v31 = vrot.slane %v6352_v54, 5  ;;  %v2775_v43 = vadd.f32 %v8749_v39, %v2461_v0  ;;  %v6355_v0 = vld [vmem:[#allocation2 + $0xbc] sm:$0x1] }
 0x370   : > { %5439 = vst.msk [vmem:[%s8148_s25 + $0x28] sm:$0xff] %vm5433_vm1, %v5406_v45  ;;  %v5303_v26 = vadd.f32 %v8128_v25, %v4877_v5  ;;  %v8745_v25 = vld [vmem:[#allocation15_spill] sm:$0xff]  ;;  %v8748_v45 = vld [vmem:[#allocation22_spill] sm:$0xff] }
 0x371   : > { %v3811_v47 = vpop.f32.mrf.mxu2  ;;  %v2774_v55 = vadd.f32 %v8745_v25, %v2460_v20  ;;  %v3639_v3 = vrot.slane %v3637_v31, 4  ;;  %v3638_v16 = vsel %vm6601_vm8, %v5959_v41, %v3637_v31 }
 0x372   : > { %v5339_v11 = vmul.f32 %v8126_v34, %v5303_v26  ;;  %v3881_v19 = vadd.f32 %v3811_v47, %v3455_v46  ;;  %v3691_v29 = vunpack.c.l.b16 %v3638_v16  ;;  %v8750_v47 = vld [vmem:[#allocation20_spill] sm:$0xff]  ;;  %v8299_v17 = vpop.f32.mrf.mxu0 }
 0x373   : > { %v3456_v27 = vadd.f32 %v8747_v32, %v2774_v55  ;;  %v3641_v51 = vsel %vm6601_vm8, %v3639_v3, %v3640_v14  ;;  %v8754_v32 = vld [vmem:[#allocation23_spill] sm:$0xff] }
 0x374   : > { %v5375_v12 = vadd.f32 %v8135_v52, %v5339_v11  ;;  %v4196_v60 = vadd.f32 %v8150_v59, %v3881_v19  ;;  %v8279_v7 = vpop.f32.mrf.mxu1  ;;  %v3692_v46 = vunpack.c.l.b16 %v3641_v51 }
 0x376   : > { %v5407_v53 = vmax.f32 %v5375_v12, 0.0  ;;  %v4878_v21 = vadd.f32 %v8154_v10, %v4196_v60  ;;  %5998 = vmatmul.msk.bf16.gmra.mxu2 %vm1692_vm0, %v3709_v44  ;;  %v8751_v44 = vld [vmem:[#allocation70_spill] sm:$0xff]  ;;  %v3710_v63 = vpack.c.b16 %v3692_v46, %v3691_v29  ;;  %v8752_v60 = vld [vmem:[#allocation24_spill] sm:$0xff] }
 0x377   : > { %v3457_v54 = vadd.f32 %v8751_v44, %v2775_v43  ;;  %v2019_v25 = vadd.f32 %v7957_v40, %v8752_v60  ;;  %v4266_v60 = vld [vmem:[#allocation2 + $0xcc] sm:$0xf] }
 0x378   : > { %5440 = vst.msk [vmem:[%s8148_s25 + $0x30] sm:$0xff] %vm5433_vm1, %v5407_v53  ;;  %v5304_v59 = vadd.f32 %v8161_v48, %v4878_v21  ;;  %v2017_v48 = vadd.f32 %v7946_v1, %v8748_v45  ;;  %v8296_v1 = vpop.f32.mrf.mxu3  ;;  %v3494_v21 = vld [vmem:[#allocation2 + $0xb4] sm:$0xe] }
 0x379   : > { %v3814_v10 = vpop.f32.mrf.mxu2  ;;  %v5960_v14 = vrot.slane %v3494_v21, 9  ;;  %v2463_v40 = vadd.f32 %v8754_v32, %v2019_v25  ;;  %v4267_v25 = vld [vmem:[#allocation2 + $0xd0] sm:$0xf] }
 0x37a   : > { %v5340_v33 = vmul.f32 %v8126_v34, %v5304_v59  ;;  %v3882_v28 = vadd.f32 %v3814_v10, %v3456_v27  ;;  %v2462_v11 = vadd.f32 %v8750_v47, %v2017_v48  ;;  %v3647_v59 = vrot.slane %v6355_v0, 5  ;;  %v8755_v27 = vld [vmem:[#allocation74_spill] sm:$0xff]  ;;  %v8328_v29 = vpop.f32.mrf.mxu0 }
 0x37b   : > { %v4643_v21 = vshrl.u32 %v4267_v25, 16 }
 0x37c   : > { %v5376_v5 = vadd.f32 %v8135_v52, %v5340_v33  ;;  %v4197_v42 = vadd.f32 %v8174_v2, %v3882_v28  ;;  %v2776_v53 = vadd.f32 %v8753_v13, %v2462_v11  ;;  %v8306_v41 = vpop.f32.mrf.mxu1  ;;  %v6293_v33 = vld [vmem:[#allocation2 + $0xcc] sm:$0xff]  ;;  %v4633_v13 = vshll.u32 %v4266_v60, 16 }
 0x37d   : > { %6105 = vmatmul.msk.bf16.gmra.mxu3 %vm1692_vm0, %v6293_v33  ;;  %v8763_v33 = vld [vmem:[#allocation28_spill] sm:$0xff] }
 0x37e   : > { %v5408_v20 = vmax.f32 %v5376_v5, 0.0  ;;  %v4879_v26 = vadd.f32 %v8181_v58, %v4197_v42  ;;  %v6354_v58 = vld [vmem:[#allocation2 + $0xb8] sm:$0xf]  ;;  %v3458_v10 = vadd.f32 %v8755_v27, %v2776_v53  ;;  %v4639_v53 = vshll.u32 %v4267_v25, 16 }
 0x37f   : > { %v3644_v12 = vrot.slane %v6354_v58, 5  ;;  %v8756_v5 = vld [vmem:[#allocation27_spill] sm:$0xff]  ;;  %v4635_v32 = vrot.slane %v4633_v13, 5 }
 0x380   : > { %5441 = vst.msk [vmem:[%s8148_s25 + $0x38] sm:$0xff] %vm5433_vm1, %v5408_v20  ;;  %v5305_v19 = vadd.f32 %v8184_v49, %v4879_v26  ;;  %v8758_v20 = vld [vmem:[#allocation25_spill] sm:$0xff]  ;;  %v8762_v58 = vld [vmem:[#allocation79_spill] sm:$0xff] }
 0x381   : > { %v3816_v31 = vpop.f32.mrf.mxu2  ;;  %v3646_v18 = vrot.slane %v3644_v12, 4  ;;  %v3645_v45 = vsel %vm6601_vm8, %v5960_v14, %v3644_v12  ;;  %v2777_v26 = vadd.f32 %v8758_v20, %v2463_v40  ;;  %v6356_v14 = vld [vmem:[#allocation2 + $0xc4] sm:$0xf]  ;;  %v4641_v40 = vrot.slane %v4639_v53, 5 }
 0x382   : > { %v5341_v2 = vmul.f32 %v8126_v34, %v5305_v19  ;;  %v3883_v36 = vadd.f32 %v3816_v31, %v3457_v54  ;;  %v3693_v19 = vunpack.c.l.b16 %v3645_v45  ;;  %v8759_v54 = vld [vmem:[#allocation26_spill] sm:$0xff] }
 0x383   : > { %v3648_v48 = vsel %vm6601_vm8, %v3646_v18, %v3647_v59  ;;  %v3459_v12 = vadd.f32 %v8762_v58, %v2777_v26  ;;  %v3651_v18 = vrot.slane %v6356_v14, 5  ;;  %v4918_v58 = vld [vmem:[#allocation2 + $0xcc] sm:$0xe] }
 0x384   : > { %v5377_v55 = vadd.f32 %v8135_v52, %v5341_v2  ;;  %v4198_v49 = vadd.f32 %v8198_v30, %v3883_v36  ;;  %v8331_v11 = vpop.f32.mrf.mxu1  ;;  %v3694_v44 = vunpack.c.l.b16 %v3648_v48  ;;  %v8760_v2 = vld [vmem:[#allocation30_spill] sm:$0xff]  ;;  %v8761_v36 = vld [vmem:[#allocation112_spill] sm:$0xff]  ;;  %v6161_v53 = vrot.slane %v4918_v58, 9 }
 0x385   : > { %v8774_v58 = vld [vmem:[#allocation36_spill] sm:$0xff] }
 0x386   : > { %v5409_v3 = vmax.f32 %v5377_v55, 0.0  ;;  %v4880_v24 = vadd.f32 %v8201_v57, %v4198_v49  ;;  %5999 = vmatmul.msk.bf16.gmra.mxu2 %vm1692_vm0, %v3710_v63  ;;  %v8317_v57 = vpop.f32.mrf.mxu3  ;;  %v2024_v63 = vadd.f32 %v8761_v36, %v8760_v2  ;;  %v4268_v49 = vld [vmem:[#allocation2 + $0xd4] sm:$0x1]  ;;  %v8767_v2 = vld [vmem:[#allocation83_spill] sm:$0xff] }
 0x387   : > { %v4649_v0 = vshll.u32 %v4268_v49, 16 }
 0x388   : > { %5442 = vst.msk [vmem:[%s8148_s25 + $0x40] sm:$0xff] %vm5433_vm1, %v5409_v3  ;;  %v5306_v30 = vadd.f32 %v8212_v4, %v4880_v24  ;;  %v8757_v4 = vld [vmem:[#allocation110_spill] sm:$0xff] }
 0x389   : > { %v3819_v28 = vpop.f32.mrf.mxu2  ;;  %v2022_v42 = vadd.f32 %v8757_v4, %v8756_v5  ;;  %v4651_v5 = vrot.slane %v4649_v0, 5  ;;  %v8764_v4 = vld [vmem:[#allocation29_spill] sm:$0xff]  ;;  %v8769_v0 = vld [vmem:[#allocation31_spill] sm:$0xff] }
 0x38a   : > { %v5342_v16 = vmul.f32 %v8126_v34, %v5306_v30  ;;  %v3884_v51 = vadd.f32 %v3819_v28, %v3458_v10  ;;  %v3711_v10 = vpack.c.b16 %v3694_v44, %v3693_v19  ;;  %v3653_v19 = vrot.slane %v3651_v18, 4 }
 0x38b   : > { %v2464_v31 = vadd.f32 %v8759_v54, %v2022_v42  ;;  %v2465_v42 = vadd.f32 %v8764_v4, %v2024_v63  ;;  %v6357_v63 = vld [vmem:[#allocation2 + $0xc8] sm:$0x1] }
 0x38c   : > { %v5378_v39 = vadd.f32 %v8135_v52, %v5342_v16  ;;  %v4199_v43 = vadd.f32 %v8221_v37, %v3884_v51  ;;  %v3495_v16 = vld [vmem:[#allocation2 + $0xc0] sm:$0xe] }
 0x38d   : > { %v2778_v28 = vadd.f32 %v8763_v33, %v2464_v31 }
 0x38e   : > { %v5410_v46 = vmax.f32 %v5378_v39, 0.0  ;;  %v4881_v47 = vadd.f32 %v8228_v38, %v4199_v43  ;;  %v4630_v38 = vshrl.u32 %v4266_v60, 16  ;;  %v8344_v51 = vpop.f32.mrf.mxu3  ;;  %v8765_v39 = vld [vmem:[#allocation33_spill] sm:$0xff]  ;;  %v8766_v43 = vld [vmem:[#allocation114_spill] sm:$0xff]  ;;  %v8357_v60 = vpop.f32.mrf.mxu1 }
 0x38f   : > { %v2027_v20 = vadd.f32 %v8766_v43, %v8765_v39  ;;  %v3460_v36 = vadd.f32 %v8767_v2, %v2778_v28  ;;  %v8773_v2 = vld [vmem:[#allocation34_spill] sm:$0xff] }
 0x390   : > { %5443 = vst.msk [vmem:[%s8148_s25 + $0x48] sm:$0xff] %vm5433_vm1, %v5410_v46  ;;  %v5307_v37 = vadd.f32 %v8232_v35, %v4881_v47  ;;  %v4632_v59 = vrot.slane %v4630_v38, 4  ;;  %v4645_v35 = vrot.slane %v4643_v21, 4  ;;  %v5961_v47 = vrot.slane %v3495_v16, 9 }
 0x391   : > { %v3821_v55 = vpop.f32.mrf.mxu2  ;;  %v5077_v21 = vrot.slane %v4268_v49, 5 }
 0x392   : > { %v5343_v3 = vmul.f32 %v8126_v34, %v5307_v37  ;;  %v3885_v24 = vadd.f32 %v3821_v55, %v3459_v12  ;;  %v4636_v45 = vor.u32 %v4635_v32, %v4632_v59  ;;  %v4646_v48 = vor.u32 %v4645_v35, %v4641_v40 }
 0x393   : > { %v3654_v37 = vrot.slane %v6357_v63, 5  ;;  %v5074_v12 = vrot.slane %v4267_v25, 5  ;;  %v2779_v59 = vadd.f32 %v8769_v0, %v2465_v42  ;;  %v3652_v25 = vsel %vm6601_vm8, %v5961_v47, %v3651_v18  ;;  %v8771_v42 = vld [vmem:[#allocation87_spill] sm:$0xff]  ;;  %v8778_v0 = vld [vmem:[#allocation37_spill] sm:$0xff] }
 0x394   : > { %v5379_v30 = vadd.f32 %v8135_v52, %v5343_v3  ;;  %v4200_v27 = vadd.f32 %v8249_v23, %v3885_v24  ;;  %v8351_v23 = vpop.f32.mrf.mxu0  ;;  %v4637_v44 = vrot.slane %v4636_v45, 4  ;;  %v4647_v54 = vrot.slane %v4646_v48, 4  ;;  %v8770_v45 = vld [vmem:[#allocation32_spill] sm:$0xff] }
 0x395   : > { %v5075_v32 = vsel %vm6601_vm8, %v6161_v53, %v5074_v12  ;;  %v2466_v48 = vadd.f32 %v8770_v45, %v2027_v20  ;;  %v3695_v4 = vunpack.c.l.b16 %v3652_v25  ;;  %v3461_v39 = vadd.f32 %v8771_v42, %v2779_v59 }
 0x396   : > { %v5411_v26 = vmax.f32 %v5379_v30, 0.0  ;;  %v4882_v46 = vadd.f32 %v8252_v8, %v4200_v27  ;;  %6000 = vmatmul.msk.bf16.gmra.mxu2 %vm1692_vm0, %v3711_v10  ;;  %v4642_v38 = vsel %vm6617_vm13, %v4637_v44, %v4641_v40  ;;  %v4652_v13 = vsel %vm6617_vm13, %v4647_v54, %v4651_v5  ;;  %v4149_v5 = vpop.f32.mrf.mxu3  ;;  %v5257_v44 = vpop.f32.mrf.mxu1 }
 0x397   : > { %v4692_v24 = vunpack.c.l.b16 %v4642_v38  ;;  %v4693_v14 = vunpack.c.l.b16 %v4652_v13  ;;  %v5076_v40 = vrot.slane %v5074_v12, 4  ;;  %v5118_v27 = vunpack.c.l.b16 %v5075_v32 }
 0x398   : > { %5444 = vst.msk [vmem:[%s8148_s25 + $0x50] sm:$0xff] %vm5433_vm1, %v5411_v26  ;;  %v5308_v31 = vadd.f32 %v8259_v50, %v4882_v46  ;;  %v3655_v10 = vsel %vm6601_vm8, %v3653_v19, %v3654_v37  ;;  %v8772_v19 = vld [vmem:[#allocation35_spill] sm:$0xff] }
 0x399   : > { %v3824_v8 = vpop.f32.mrf.mxu2  ;;  %v4709_v49 = vpack.c.b16 %v4693_v14, %v4692_v24  ;;  %v5078_v33 = vsel %vm6601_vm8, %v5076_v40, %v5077_v21  ;;  %v3696_v43 = vunpack.c.l.b16 %v3655_v10  ;;  %v2029_v20 = vadd.f32 %v7986_v22, %v8772_v19  ;;  %v8779_v40 = vld [vmem:[#allocation39_spill] sm:$0xff] }
 0x39a   : > { %v5344_v3 = vmul.f32 %v8126_v34, %v5308_v31  ;;  %v3886_v50 = vadd.f32 %v3824_v8, %v3460_v36  ;;  %v5119_v16 = vunpack.c.l.b16 %v5078_v33  ;;  %v2780_v36 = vadd.f32 %v8773_v2, %v2466_v48  ;;  %v8775_v8 = vld [vmem:[#allocation91_spill] sm:$0xff]  ;;  %v8782_v48 = vld [vmem:[#allocation40_spill] sm:$0xff] }
 0x39b   : > { %6145 = vmatmul.msk.bf16.gmra.mxu0 %vm1692_vm0, %v4709_v49  ;;  %v3712_v31 = vpack.c.b16 %v3696_v43, %v3695_v4  ;;  %v2467_v12 = vadd.f32 %v8774_v58, %v2029_v20  ;;  %v8780_v49 = vld [vmem:[#allocation94_spill] sm:$0xff]  ;;  %v8785_v20 = vld [vmem:[#allocation43_spill] sm:$0xff]  ;;  %v8787_v2 = vld [vmem:[#allocation44_spill] sm:$0xff] }
 0x39c   : > { %v5380_v35 = vadd.f32 %v8135_v52, %v5344_v3  ;;  %v4201_v30 = vadd.f32 %v8269_v56, %v3886_v50  ;;  %v5135_v26 = vpack.c.b16 %v5119_v16, %v5118_v27  ;;  %v4831_v62 = vpop.f32.mrf.mxu0  ;;  %v3462_v55 = vadd.f32 %v8775_v8, %v2780_v36  ;;  %v8776_v3 = vld [vmem:[#allocation38_spill] sm:$0xff]  ;;  %v8777_v50 = vld [vmem:[#allocation116_spill] sm:$0xff] }
 0x39d   : > { %v2781_v59 = vadd.f32 %v8778_v0, %v2467_v12  ;;  %v8783_v43 = vld [vmem:[#allocation42_spill] sm:$0xff]  ;;  %v8792_v0 = vld [vmem:[#allocation47_spill] sm:$0xff] }
 0x39e   : > { %v5412_v28 = vmax.f32 %v5380_v35, 0.0  ;;  %v4883_v18 = vadd.f32 %v8276_v6, %v4201_v30  ;;  %6201 = vmatmul.msk.bf16.gmra.mxu1 %vm1692_vm0, %v5135_v26  ;;  %v4151_v38 = vpop.f32.mrf.mxu3  ;;  %v5259_v25 = vpop.f32.mrf.mxu1 }
 0x39f   : > { %v3463_v27 = vadd.f32 %v8780_v49, %v2781_v59  ;;  %v8794_v49 = vld [vmem:[#allocation101_spill] sm:$0xff] }
 0x3a0   : > { %5445 = vst.msk [vmem:[%s8148_s25 + $0x58] sm:$0xff] %vm5433_vm1, %v5412_v28  ;;  %v5309_v56 = vadd.f32 %v8279_v7, %v4883_v18  ;;  %v8781_v18 = vld [vmem:[#allocation41_spill] sm:$0xff] }
 0x3a1   : > { %v3826_v46 = vpop.f32.mrf.mxu2  ;;  %v2034_v16 = vadd.f32 %v7999_v9, %v8781_v18 }
 0x3a2   : > { %v5345_v6 = vmul.f32 %v8126_v34, %v5309_v56  ;;  %v3887_v47 = vadd.f32 %v3826_v46, %v3461_v39 }
 0x3a3   : > { %v2469_v26 = vadd.f32 %v8783_v43, %v2034_v16 }
 0x3a4   : > { %v5381_v54 = vadd.f32 %v8135_v52, %v5345_v6  ;;  %v4202_v7 = vadd.f32 %v8296_v1, %v3887_v47  ;;  %v4833_v21 = vpop.f32.mrf.mxu0  ;;  %v8784_v6 = vld [vmem:[#allocation97_spill] sm:$0xff] }
 0x3a5   : > { %v2783_v36 = vadd.f32 %v8787_v2, %v2469_v26  ;;  %v8798_v26 = vld [vmem:[#allocation55_spill] sm:$0xff]  ;;  %v8802_v2 = vld [vmem:[#allocation56_spill] sm:$0xff] }
 0x3a6   : > { %v5413_v63 = vmax.f32 %v5381_v54, 0.0  ;;  %v4884_v37 = vadd.f32 %v8299_v17, %v4202_v7  ;;  %6001 = vmatmul.msk.bf16.gmra.mxu2 %vm1692_vm0, %v3712_v31  ;;  %v2032_v17 = vadd.f32 %v8777_v50, %v8776_v3  ;;  %v5262_v39 = vpop.f32.mrf.mxu1  ;;  %v8786_v54 = vld [vmem:[#allocation119_spill] sm:$0xff] }
 0x3a7   : > { %v2037_v7 = vadd.f32 %v8786_v54, %v8785_v20 }
 0x3a8   : > { %5446 = vst.msk [vmem:[%s8148_s25 + $0x60] sm:$0xff] %vm5433_vm1, %v5413_v63  ;;  %v5310_v22 = vadd.f32 %v8306_v41, %v4884_v37  ;;  %v2468_v35 = vadd.f32 %v8779_v40, %v2032_v17  ;;  %v8791_v17 = vld [vmem:[#allocation121_spill] sm:$0xff] }
 0x3a9   : > { %v3829_v13 = vpop.f32.mrf.mxu2 }
 0x3aa   : > { %v5346_v1 = vmul.f32 %v8126_v34, %v5310_v22  ;;  %v3888_v53 = vadd.f32 %v3829_v13, %v3462_v55  ;;  %v2782_v4 = vadd.f32 %v8782_v48, %v2468_v35  ;;  %v8788_v22 = vld [vmem:[#allocation46_spill] sm:$0xff]  ;;  %v8789_v55 = vld [vmem:[#allocation100_spill] sm:$0xff] }
 0x3ab   : > { %v3465_v13 = vadd.f32 %v8789_v55, %v2783_v36  ;;  %v8793_v35 = vld [vmem:[#allocation50_spill] sm:$0xff]  ;;  %v8804_v55 = vld [vmem:[#allocation105_spill] sm:$0xff] }
 0x3ac   : > { %v5382_v24 = vadd.f32 %v8135_v52, %v5346_v1  ;;  %v4203_v14 = vadd.f32 %v8317_v57, %v3888_v53  ;;  %v4154_v57 = vpop.f32.mrf.mxu3  ;;  %v4836_v56 = vpop.f32.mrf.mxu0  ;;  %v3464_v9 = vadd.f32 %v8784_v6, %v2782_v4  ;;  %v8797_v4 = vld [vmem:[#allocation52_spill] sm:$0xff] }
 0x3ad   : > { %v8799_v6 = vld [vmem:[#allocation104_spill] sm:$0xff] }
 0x3ae   : > { %v5414_v32 = vmax.f32 %v5382_v24, 0.0  ;;  %v4885_v41 = vadd.f32 %v8328_v29, %v4203_v14  ;;  %v5264_v1 = vpop.f32.mrf.mxu1 }
 0x3b0   : > { %5447 = vst.msk [vmem:[%s8148_s25 + $0x68] sm:$0xff] %vm5433_vm1, %v5414_v32  ;;  %v5311_v30 = vadd.f32 %v8331_v11, %v4885_v41 }
 0x3b1   : > { %v3831_v10 = vpop.f32.mrf.mxu2 }
 0x3b2   : > { %v5347_v33 = vmul.f32 %v8126_v34, %v5311_v30  ;;  %v3889_v28 = vadd.f32 %v3831_v10, %v3463_v27 }
 0x3b4   : > { %v5383_v45 = vadd.f32 %v8135_v52, %v5347_v33  ;;  %v4204_v29 = vadd.f32 %v8344_v51, %v3889_v28  ;;  %v4156_v63 = vpop.f32.mrf.mxu3  ;;  %v4838_v12 = vpop.f32.mrf.mxu0 }
 0x3b6   : > { %v5415_v42 = vmax.f32 %v5383_v45, 0.0  ;;  %v4886_v11 = vadd.f32 %v8351_v23, %v4204_v29  ;;  %v5267_v16 = vpop.f32.mrf.mxu1  ;;  %v8796_v45 = vld [vmem:[#allocation123_spill] sm:$0xff] }
 0x3b8   : > { %5448 = vst.msk [vmem:[%s8148_s25 + $0x70] sm:$0xff] %vm5433_vm1, %v5415_v42  ;;  %v5312_v46 = vadd.f32 %v8357_v60, %v4886_v11  ;;  %v2470_v60 = vadd.f32 %v8788_v22, %v2037_v7  ;;  %v8800_v7 = vld [vmem:[#allocation53_spill] sm:$0xff] }
 0x3b9   : > { %v3834_v47 = vpop.f32.mrf.mxu2 }
 0x3ba   : > { %v5348_v19 = vmul.f32 %v8126_v34, %v5312_v46  ;;  %v3890_v51 = vadd.f32 %v3834_v47, %v3464_v9  ;;  %v2784_v59 = vadd.f32 %v8792_v0, %v2470_v60 }
 0x3bc   : > { %v5384_v31 = vadd.f32 %v8135_v52, %v5348_v19  ;;  %v4205_v23 = vadd.f32 %v4149_v5, %v3890_v51  ;;  %v8790_v5 = vld [vmem:[#allocation45_spill] sm:$0xff]  ;;  %v4159_v40 = vpop.f32.mrf.mxu3  ;;  %v3466_v27 = vadd.f32 %v8794_v49, %v2784_v59  ;;  %v4841_v10 = vpop.f32.mrf.mxu0  ;;  %v8809_v49 = vld [vmem:[#allocation106_spill] sm:$0xff] }
 0x3bd   : > { %v2039_v24 = vadd.f32 %v8791_v17, %v8790_v5  ;;  %v8805_v17 = vld [vmem:[#allocation57_spill] sm:$0xff] }
 0x3be   : > { %v5416_v37 = vmax.f32 %v5384_v31, 0.0  ;;  %v4887_v58 = vadd.f32 %v4831_v62, %v4205_v23 }
 0x3c0   : > { %5449 = vst.msk [vmem:[%s8148_s25 + $0x78] sm:$0xff] %vm5433_vm1, %v5416_v37  ;;  %v5313_v8 = vadd.f32 %v5257_v44, %v4887_v58  ;;  %v2471_v44 = vadd.f32 %v8793_v35, %v2039_v24  ;;  %v5269_v37 = vpop.f32.mrf.mxu1 }
 0x3c1   : > { %v3836_v53 = vpop.f32.mrf.mxu2 }
 0x3c2   : > { %v5349_v3 = vmul.f32 %v8126_v34, %v5313_v8  ;;  %v3891_v50 = vadd.f32 %v3836_v53, %v3465_v13  ;;  %v2785_v42 = vadd.f32 %v8797_v4, %v2471_v44 }
 0x3c4   : > { %v5385_v14 = vadd.f32 %v8135_v52, %v5349_v3  ;;  %v4206_v62 = vadd.f32 %v4151_v38, %v3891_v50  ;;  %v8795_v38 = vld [vmem:[#allocation49_spill] sm:$0xff]  ;;  %v3467_v9 = vadd.f32 %v8799_v6, %v2785_v42  ;;  %v4161_v47 = vpop.f32.mrf.mxu3  ;;  %v4843_v54 = vpop.f32.mrf.mxu0 }
 0x3c5   : > { %v2042_v29 = vadd.f32 %v8796_v45, %v8795_v38  ;;  %v8810_v38 = vld [vmem:[#allocation60_spill] sm:$0xff] }
 0x3c6   : > { %v5417_v32 = vmax.f32 %v5385_v14, 0.0  ;;  %v4888_v41 = vadd.f32 %v4833_v21, %v4206_v62 }
 0x3c8   : > { %5450 = vst.msk [vmem:[%s8148_s25 + $0x80] sm:$0xff] %vm5433_vm1, %v5417_v32  ;;  %v5314_v30 = vadd.f32 %v5259_v25, %v4888_v41  ;;  %v2472_v25 = vadd.f32 %v8798_v26, %v2042_v29  ;;  %v5272_v35 = vpop.f32.mrf.mxu1  ;;  %v8813_v26 = vld [vmem:[#allocation68_spill] sm:$0xff] }
 0x3c9   : > { %v3839_v33 = vpop.f32.mrf.mxu2 }
 0x3ca   : > { %v5350_v28 = vmul.f32 %v8126_v34, %v5314_v30  ;;  %v3892_v18 = vadd.f32 %v3839_v33, %v3466_v27  ;;  %v2786_v36 = vadd.f32 %v8802_v2, %v2472_v25 }
 0x3cc   : > { %v5386_v21 = vadd.f32 %v8135_v52, %v5350_v28  ;;  %v4207_v48 = vadd.f32 %v4154_v57, %v3892_v18  ;;  %v8801_v57 = vld [vmem:[#allocation124_spill] sm:$0xff]  ;;  %v3468_v13 = vadd.f32 %v8804_v55, %v2786_v36  ;;  %v4164_v5 = vpop.f32.mrf.mxu3  ;;  %v4846_v59 = vpop.f32.mrf.mxu0 }
 0x3cd   : > { %v2044_v31 = vadd.f32 %v8801_v57, %v8800_v7  ;;  %v8816_v7 = vld [vmem:[#allocation128_spill] sm:$0xff] }
 0x3ce   : > { %v5418_v11 = vmax.f32 %v5386_v21, 0.0  ;;  %v4889_v43 = vadd.f32 %v4836_v56, %v4207_v48 }
 0x3d0   : > { %5451 = vst.msk [vmem:[%s8148_s25 + $0x88] sm:$0xff] %vm5433_vm1, %v5418_v11  ;;  %v5315_v46 = vadd.f32 %v5262_v39, %v4889_v43  ;;  %v8803_v39 = vld [vmem:[#allocation59_spill] sm:$0xff] }
 0x3d1   : > { %v3841_v19 = vpop.f32.mrf.mxu2  ;;  %v2473_v60 = vadd.f32 %v8803_v39, %v2044_v31 }
 0x3d2   : > { %v5351_v51 = vmul.f32 %v8126_v34, %v5315_v46  ;;  %v3893_v20 = vadd.f32 %v3841_v19, %v3467_v9  ;;  %v8814_v46 = vld [vmem:[#allocation108_spill] sm:$0xff]  ;;  %v5274_v9 = vpop.f32.mrf.mxu1 }
 0x3d4   : > { %v5387_v23 = vadd.f32 %v8135_v52, %v5351_v51  ;;  %v4208_v56 = vadd.f32 %v4156_v63, %v3893_v20  ;;  %v8806_v63 = vld [vmem:[#allocation126_spill] sm:$0xff]  ;;  %v4166_v4 = vpop.f32.mrf.mxu3  ;;  %v4848_v43 = vpop.f32.mrf.mxu0 }
 0x3d5   : > { %v2047_v24 = vadd.f32 %v8806_v63, %v8805_v17  ;;  %v8821_v17 = vld [vmem:[#allocation129_spill] sm:$0xff] }
 0x3d6   : > { %v5419_v58 = vmax.f32 %v5387_v23, 0.0  ;;  %v4890_v22 = vadd.f32 %v4838_v12, %v4208_v56  ;;  %v8807_v12 = vld [vmem:[#allocation61_spill] sm:$0xff] }
 0x3d7   : > { %v2787_v0 = vadd.f32 %v8807_v12, %v2473_v60  ;;  %v8817_v23 = vld [vmem:[#allocation69_spill] sm:$0xff] }
 0x3d8   : > { %5452 = vst.msk [vmem:[%s8148_s25 + $0x90] sm:$0xff] %vm5433_vm1, %v5419_v58  ;;  %v5316_v8 = vadd.f32 %v5264_v1, %v4890_v22  ;;  %v8808_v1 = vld [vmem:[#allocation64_spill] sm:$0xff]  ;;  %v8819_v60 = vld [vmem:[#allocation109_spill] sm:$0xff] }
 0x3d9   : > { %v3844_v53 = vpop.f32.mrf.mxu2  ;;  %v2474_v44 = vadd.f32 %v8808_v1, %v2047_v24  ;;  %v3469_v27 = vadd.f32 %v8809_v49, %v2787_v0  ;;  %v8818_v22 = vld [vmem:[#allocation72_spill] sm:$0xff]  ;;  %v8824_v1 = vld [vmem:[#allocation111_spill] sm:$0xff] }
 0x3da   : > { %v5352_v3 = vmul.f32 %v8126_v34, %v5316_v8  ;;  %v3894_v50 = vadd.f32 %v3844_v53, %v3468_v13 }
 0x3dc   : > { %v5388_v14 = vadd.f32 %v8135_v52, %v5352_v3  ;;  %v4209_v62 = vadd.f32 %v4159_v40, %v3894_v50  ;;  %v8811_v40 = vld [vmem:[#allocation127_spill] sm:$0xff]  ;;  %v4169_v58 = vpop.f32.mrf.mxu3  ;;  %v4851_v55 = vpop.f32.mrf.mxu0 }
 0x3dd   : > { %v2049_v45 = vadd.f32 %v8811_v40, %v8810_v38  ;;  %v5277_v50 = vpop.f32.mrf.mxu1  ;;  %v8826_v38 = vld [vmem:[#allocation130_spill] sm:$0xff] }
 0x3de   : > { %v5420_v32 = vmax.f32 %v5388_v14, 0.0  ;;  %v4891_v41 = vadd.f32 %v4841_v10, %v4209_v62  ;;  %v8812_v10 = vld [vmem:[#allocation65_spill] sm:$0xff] }
 0x3df   : > { %v2788_v48 = vadd.f32 %v8812_v10, %v2474_v44  ;;  %v8822_v62 = vld [vmem:[#allocation73_spill] sm:$0xff] }
 0x3e0   : > { %5453 = vst.msk [vmem:[%s8148_s25 + $0x98] sm:$0xff] %vm5433_vm1, %v5420_v32  ;;  %v5317_v30 = vadd.f32 %v5267_v16, %v4891_v41  ;;  %v2475_v16 = vadd.f32 %v8813_v26, %v2049_v45  ;;  %v8823_v32 = vld [vmem:[#allocation76_spill] sm:$0xff] }
 0x3e1   : > { %v3846_v33 = vpop.f32.mrf.mxu2  ;;  %v3470_v6 = vadd.f32 %v8814_v46, %v2788_v48 }
 0x3e2   : > { %v5353_v28 = vmul.f32 %v8126_v34, %v5317_v30  ;;  %v3895_v18 = vadd.f32 %v3846_v33, %v3469_v27  ;;  %v2789_v56 = vadd.f32 %v8817_v23, %v2475_v16  ;;  %v8829_v16 = vld [vmem:[#allocation113_spill] sm:$0xff] }
 0x3e4   : > { %v5389_v29 = vadd.f32 %v8135_v52, %v5353_v28  ;;  %v4210_v21 = vadd.f32 %v4161_v47, %v3895_v18  ;;  %v8815_v47 = vld [vmem:[#allocation63_spill] sm:$0xff]  ;;  %v3471_v8 = vadd.f32 %v8819_v60, %v2789_v56  ;;  %v4171_v30 = vpop.f32.mrf.mxu3  ;;  %v4853_v28 = vpop.f32.mrf.mxu0 }
 0x3e5   : > { %v2052_v57 = vadd.f32 %v8816_v7, %v8815_v47  ;;  %v8825_v18 = vld [vmem:[#allocation71_spill] sm:$0xff]  ;;  %v5279_v48 = vpop.f32.mrf.mxu1 }
 0x3e6   : > { %v5421_v42 = vmax.f32 %v5389_v29, 0.0  ;;  %v4892_v11 = vadd.f32 %v4843_v54, %v4210_v21  ;;  %v2057_v40 = vadd.f32 %v8826_v38, %v8825_v18  ;;  %v8827_v21 = vld [vmem:[#allocation78_spill] sm:$0xff] }
 0x3e8   : > { %5454 = vst.msk [vmem:[%s8148_s25 + $0xa0] sm:$0xff] %vm5433_vm1, %v5421_v42  ;;  %v5318_v25 = vadd.f32 %v5269_v37, %v4892_v11  ;;  %v2476_v37 = vadd.f32 %v8818_v22, %v2052_v57  ;;  %v8828_v11 = vld [vmem:[#allocation81_spill] sm:$0xff] }
 0x3e9   : > { %v3849_v19 = vpop.f32.mrf.mxu2 }
 0x3ea   : > { %v5354_v51 = vmul.f32 %v8126_v34, %v5318_v25  ;;  %v3896_v20 = vadd.f32 %v3849_v19, %v3470_v6  ;;  %v2790_v12 = vadd.f32 %v8822_v62, %v2476_v37 }
 0x3ec   : > { %v5390_v31 = vadd.f32 %v8135_v52, %v5354_v51  ;;  %v4211_v54 = vadd.f32 %v4164_v5, %v3896_v20  ;;  %v8820_v5 = vld [vmem:[#allocation67_spill] sm:$0xff]  ;;  %v3472_v44 = vadd.f32 %v8824_v1, %v2790_v12  ;;  %v4174_v19 = vpop.f32.mrf.mxu3  ;;  %v4856_v23 = vpop.f32.mrf.mxu0 }
 0x3ed   : > { %v2054_v63 = vadd.f32 %v8821_v17, %v8820_v5  ;;  %v8830_v51 = vld [vmem:[#allocation75_spill] sm:$0xff] }
 0x3ee   : > { %v5422_v2 = vmax.f32 %v5390_v31, 0.0  ;;  %v4893_v36 = vadd.f32 %v4846_v59, %v4211_v54  ;;  %v8831_v20 = vld [vmem:[#allocation131_spill] sm:$0xff]  ;;  %v8832_v31 = vld [vmem:[#allocation82_spill] sm:$0xff] }
 0x3ef   : > { %v2477_v41 = vadd.f32 %v8823_v32, %v2054_v63  ;;  %v2059_v47 = vadd.f32 %v8831_v20, %v8830_v51  ;;  %v8837_v63 = vld [vmem:[#allocation86_spill] sm:$0xff]  ;;  %v8845_v20 = vld [vmem:[#allocation93_spill] sm:$0xff] }
 0x3f0   : > { %5455 = vst.msk [vmem:[%s8148_s25 + $0xa8] sm:$0xff] %vm5433_vm1, %v5422_v2  ;;  %v5319_v39 = vadd.f32 %v5272_v35, %v4893_v36  ;;  %v5282_v36 = vpop.f32.mrf.mxu1 }
 0x3f1   : > { %v3851_v13 = vpop.f32.mrf.mxu2  ;;  %v2791_v10 = vadd.f32 %v8827_v21, %v2477_v41 }
 0x3f2   : > { %v5355_v53 = vmul.f32 %v8126_v34, %v5319_v39  ;;  %v3897_v3 = vadd.f32 %v3851_v13, %v3471_v8  ;;  %v8834_v39 = vld [vmem:[#allocation115_spill] sm:$0xff] }
 0x3f3   : > { %v3473_v25 = vadd.f32 %v8829_v16, %v2791_v10 }
 0x3f4   : > { %v5391_v24 = vadd.f32 %v8135_v52, %v5355_v53  ;;  %v4212_v14 = vadd.f32 %v4166_v4, %v3897_v3  ;;  %v8835_v53 = vld [vmem:[#allocation77_spill] sm:$0xff]  ;;  %v8836_v3 = vld [vmem:[#allocation132_spill] sm:$0xff] }
 0x3f6   : > { %v5423_v0 = vmax.f32 %v5391_v24, 0.0  ;;  %v4894_v59 = vadd.f32 %v4848_v43, %v4212_v14  ;;  %v2478_v43 = vadd.f32 %v8828_v11, %v2057_v40  ;;  %v4176_v14 = vpop.f32.mrf.mxu3  ;;  %v8841_v40 = vld [vmem:[#allocation90_spill] sm:$0xff] }
 0x3f8   : > { %5456 = vst.msk [vmem:[%s8148_s25 + $0xb0] sm:$0xff] %vm5433_vm1, %v5423_v0  ;;  %v5320_v35 = vadd.f32 %v5274_v9, %v4894_v59  ;;  %v2792_v54 = vadd.f32 %v8832_v31, %v2478_v43  ;;  %v4858_v0 = vpop.f32.mrf.mxu0  ;;  %v8838_v59 = vld [vmem:[#allocation89_spill] sm:$0xff]  ;;  %v5284_v1 = vpop.f32.mrf.mxu1  ;;  %v8846_v31 = vld [vmem:[#allocation95_spill] sm:$0xff] }
 0x3f9   : > { %v3854_v49 = vpop.f32.mrf.mxu2 }
 0x3fa   : > { %v5356_v27 = vmul.f32 %v8126_v34, %v5320_v35  ;;  %v3898_v33 = vadd.f32 %v3854_v49, %v3472_v44  ;;  %v3474_v60 = vadd.f32 %v8834_v39, %v2792_v54  ;;  %v8839_v35 = vld [vmem:[#allocation117_spill] sm:$0xff]  ;;  %v8848_v39 = vld [vmem:[#allocation88_spill] sm:$0xff] }
 0x3fc   : > { %v5392_v45 = vadd.f32 %v8135_v52, %v5356_v27  ;;  %v4213_v29 = vadd.f32 %v4169_v58, %v3898_v33  ;;  %v8833_v58 = vld [vmem:[#allocation85_spill] sm:$0xff]  ;;  %v8840_v27 = vld [vmem:[#allocation80_spill] sm:$0xff] }
 0x3fd   : > { %v2479_v22 = vadd.f32 %v8833_v58, %v2059_v47  ;;  %v2064_v33 = vadd.f32 %v8090_v15, %v8840_v27  ;;  %v8843_v15 = vld [vmem:[#allocation118_spill] sm:$0xff] }
 0x3fe   : > { %v5424_v4 = vmax.f32 %v5392_v45, 0.0  ;;  %v4895_v42 = vadd.f32 %v4851_v55, %v4213_v29  ;;  %v4179_v10 = vpop.f32.mrf.mxu3 }
 0x3ff   : > { %v2793_v24 = vadd.f32 %v8837_v63, %v2479_v22  ;;  %v8851_v63 = vld [vmem:[#allocation98_spill] sm:$0xff] }
 0x400   : > { %5457 = vst.msk [vmem:[%s8148_s25 + $0xb8] sm:$0xff] %vm5433_vm1, %v5424_v4  ;;  %v5321_v26 = vadd.f32 %v5277_v50, %v4895_v42  ;;  %v2062_v50 = vadd.f32 %v8836_v3, %v8835_v53  ;;  %v4861_v43 = vpop.f32.mrf.mxu0  ;;  %v8850_v53 = vld [vmem:[#allocation96_spill] sm:$0xff] }
 0x401   : > { %v3856_v46 = vpop.f32.mrf.mxu2 }
 0x402   : > { %v5357_v6 = vmul.f32 %v8126_v34, %v5321_v26  ;;  %v3899_v9 = vadd.f32 %v3856_v46, %v3473_v25  ;;  %v2480_v32 = vadd.f32 %v8838_v59, %v2062_v50  ;;  %v5287_v46 = vpop.f32.mrf.mxu1 }
 0x404   : > { %v5393_v7 = vadd.f32 %v8135_v52, %v5357_v6  ;;  %v4214_v57 = vadd.f32 %v4171_v30, %v3899_v9  ;;  %v2794_v45 = vadd.f32 %v8841_v40, %v2480_v32  ;;  %v8844_v6 = vld [vmem:[#allocation84_spill] sm:$0xff] }
 0x405   : > { %v2067_v9 = vadd.f32 %v8093_v61, %v8844_v6 }
 0x406   : > { %v5425_v56 = vmax.f32 %v5393_v7, 0.0  ;;  %v4896_v2 = vadd.f32 %v4853_v28, %v4214_v57  ;;  %v8530_v28 = vld [vmem:[%s8579_s6] ss:$0 sm:$0xff]  ;;  %v3476_v11 = vadd.f32 %v8843_v15, %v2794_v45 }
 0x407   : > { %v2482_v54 = vadd.f32 %v8846_v31, %v2067_v9 }
 0x408   : > { %5458 = vst.msk [vmem:[%s8148_s25 + $0xc0] sm:$0xff] %vm5433_vm1, %v5425_v56  ;;  %v5322_v37 = vadd.f32 %v5279_v48, %v4896_v2  ;;  %v8842_v48 = vld [vmem:[#allocation92_spill] sm:$0xff] }
 0x409   : > { %v3859_v8 = vpop.f32.mrf.mxu2  ;;  %v2481_v4 = vadd.f32 %v8842_v48, %v2064_v33  ;;  %v8847_v56 = vld [vmem:[#allocation120_spill] sm:$0xff]  ;;  %v2796_v3 = vadd.f32 %v8850_v53, %v2482_v54 }
 0x40a   : > { %v5358_v55 = vmul.f32 %v8126_v34, %v5322_v37  ;;  %v3900_v13 = vadd.f32 %v3859_v8, %v3474_v60  ;;  %v3475_v34 = vadd.f32 %v8839_v35, %v2793_v24  ;;  %v4863_v37 = vpop.f32.mrf.mxu0  ;;  %v8849_v60 = vld [vmem:[#allocation133_spill] sm:$0xff]  ;;  %v5289_v50 = vpop.f32.mrf.mxu1 }
 0x40b   : > { %v2795_v47 = vadd.f32 %v8845_v20, %v2481_v4  ;;  %v2069_v8 = vadd.f32 %v8849_v60, %v8848_v39 }
 0x40c   : > { %v5394_v5 = vadd.f32 %v8135_v52, %v5358_v55  ;;  %v4215_v17 = vadd.f32 %v4174_v19, %v3900_v13  ;;  %v8522_v52 = vld [vmem:[%s8578_s5] ss:$0 sm:$0xff] }
 0x40d   : > { %v3477_v2 = vadd.f32 %v8847_v56, %v2795_v47  ;;  %v2483_v24 = vadd.f32 %v8851_v63, %v2069_v8 }
 0x40e   : > { %v5426_v62 = vmax.f32 %v5394_v5, 0.0  ;;  %v4897_v12 = vadd.f32 %v4856_v23, %v4215_v17 }
 0x410   : > { %5459 = vst.msk [vmem:[%s8148_s25 + $0xc8] sm:$0xff] %vm5433_vm1, %v5426_v62  ;;  %v5323_v41 = vadd.f32 %v5282_v36, %v4897_v12  ;;  %v4181_v36 = vpop.f32.mrf.mxu3  ;;  %v8852_v62 = vld [vmem:[#allocation122_spill] sm:$0xff] }
 0x411   : > { %v3861_v44 = vpop.f32.mrf.mxu2  ;;  %v3478_v12 = vadd.f32 %v8852_v62, %v2796_v3 }
 0x412   : > { %v5359_v30 = vmul.f32 %v8522_v52, %v5323_v41  ;;  %v3901_v49 = vadd.f32 %v3861_v44, %v3475_v34  ;;  %v8853_v44 = vld [vmem:[#allocation99_spill] sm:$0xff] }
 0x414   : > { %v5395_v18 = vadd.f32 %v8530_v28, %v5359_v30  ;;  %v4216_v38 = vadd.f32 %v4176_v14, %v3901_v49  ;;  %v2797_v30 = vadd.f32 %v8853_v44, %v2483_v24 }
 0x416   : > { %v5427_v29 = vmax.f32 %v5395_v18, 0.0  ;;  %v4898_v21 = vadd.f32 %v4858_v0, %v4216_v38  ;;  %v8854_v38 = vld [vmem:[#allocation125_spill] sm:$0xff] }
 0x417   : > { %v3479_v40 = vadd.f32 %v8854_v38, %v2797_v30 }
 0x418   : > { %5460 = vst.msk [vmem:[%s8148_s25 + $0xd0] sm:$0xff] %vm5433_vm1, %v5427_v29  ;;  %v5324_v42 = vadd.f32 %v5284_v1, %v4898_v21  ;;  %v4184_v0 = vpop.f32.mrf.mxu3  ;;  %v4866_v35 = vpop.f32.mrf.mxu0 }
 0x419   : > { %v3864_v26 = vpop.f32.mrf.mxu2 }
 0x41a   : > { %v5360_v16 = vmul.f32 %v8522_v52, %v5324_v42  ;;  %v3902_v25 = vadd.f32 %v3864_v26, %v3476_v11 }
 0x41b   : > { %v5292_v49 = vpop.f32.mrf.mxu1 }
 0x41c   : > { %v5396_v19 = vadd.f32 %v8530_v28, %v5360_v16  ;;  %v4217_v51 = vadd.f32 %v4179_v10, %v3902_v25 }
 0x41e   : > { %v5428_v7 = vmax.f32 %v5396_v19, 0.0  ;;  %v4899_v57 = vadd.f32 %v4861_v43, %v4217_v51 }
 0x420   : > { %5461 = vst.msk [vmem:[%s8148_s25 + $0xd8] sm:$0xff] %vm5433_vm1, %v5428_v7  ;;  %v5325_v23 = vadd.f32 %v5287_v46, %v4899_v57  ;;  %v4186_v10 = vpop.f32.mrf.mxu3  ;;  %v4868_v42 = vpop.f32.mrf.mxu0 }
 0x421   : > { %v3866_v58 = vpop.f32.mrf.mxu2 }
 0x422   : > { %v5361_v22 = vmul.f32 %v8522_v52, %v5325_v23  ;;  %v3903_v61 = vadd.f32 %v3866_v58, %v3477_v2 }
 0x423   : > { %v5294_v43 = vpop.f32.mrf.mxu1 }
 0x424   : > { %v5397_v55 = vadd.f32 %v8530_v28, %v5361_v22  ;;  %v4218_v13 = vadd.f32 %v4181_v36, %v3903_v61 }
 0x426   : > { %v5429_v5 = vmax.f32 %v5397_v55, 0.0  ;;  %v4900_v17 = vadd.f32 %v4863_v37, %v4218_v13 }
 0x428   : > { %5462 = vst.msk [vmem:[%s8148_s25 + $0xe0] sm:$0xff] %vm5433_vm1, %v5429_v5  ;;  %v5326_v14 = vadd.f32 %v5289_v50, %v4900_v17 }
 0x429   : > { %v3869_v59 = vpop.f32.mrf.mxu2 }
 0x42a   : > { %v5362_v32 = vmul.f32 %v8522_v52, %v5326_v14  ;;  %v3904_v41 = vadd.f32 %v3869_v59, %v3478_v12 }
 0x42c   : > { %v5398_v34 = vadd.f32 %v8530_v28, %v5362_v32  ;;  %v4219_v1 = vadd.f32 %v4184_v0, %v3904_v41 }
 0x42e   : > { %v5430_v27 = vmax.f32 %v5398_v34, 0.0  ;;  %v4901_v33 = vadd.f32 %v4866_v35, %v4219_v1 }
 0x430   : > { %5463 = vst.msk [vmem:[%s8148_s25 + $0xe8] sm:$0xff] %vm5433_vm1, %v5430_v27  ;;  %v5327_v18 = vadd.f32 %v5292_v49, %v4901_v33 }
 0x431   : > { %v3871_v45 = vpop.f32.mrf.mxu2 }
 0x432   : > { %v5363_v29 = vmul.f32 %v8522_v52, %v5327_v18  ;;  %v3905_v21 = vadd.f32 %v3871_v45, %v3479_v40 }
 0x434   : > { %v5399_v48 = vadd.f32 %v8530_v28, %v5363_v29  ;;  %v4220_v4 = vadd.f32 %v4186_v10, %v3905_v21 }
 0x436   : > { %v5431_v15 = vmax.f32 %v5399_v48, 0.0  ;;  %v4902_v11 = vadd.f32 %v4868_v42, %v4220_v4 }
 0x438   : > { %5464 = vst.msk [vmem:[%s8148_s25 + $0xf0] sm:$0xff] %vm5433_vm1, %v5431_v15  ;;  %v5328_v26 = vadd.f32 %v5294_v43, %v4902_v11 }
 0x43a   : > { %v5364_v16 = vmul.f32 %v8522_v52, %v5328_v26 }
 0x43c   : > { %v5400_v25 = vadd.f32 %v8530_v28, %v5364_v16 }
 0x43e   : > { %v5432_v46 = vmax.f32 %v5400_v25, 0.0 }
 0x440   : > { %5465 = vst.msk [vmem:[%s8148_s25 + $0xf8] sm:$0xff] %vm5433_vm1, %v5432_v46 }
 0x441 PF: > { %s17_s24 = sadd.s32 1, %s6366_s24  }
 0x442   : > { %p14_p4 = scmp.ge.s32.totalorder %s17_s24, 4  }
 0x444   :  { %16 = sbr.rel (!%p14_p4) target bundleno = 1 (0x1), region = 88 }

</bundles_post_ra>
